<compile_context>
chip_gen: v6e
topology: v6e:2x2x1
jax: 0.10.0
libtpu: 0.0.40
codegen_flags: <defaults>
</compile_context>

<pallas_src>
import jax
import jax.numpy as jnp
from jax.experimental import pallas as pl
from jax.experimental.pallas import tpu as pltpu


# ----------------------------------------------------------------------------
# in-kernel math helpers (VPU/EUP only; no erf primitive in Mosaic)
# ----------------------------------------------------------------------------
_SQRT1_2 = 0.7071067811865476


def _erf(x):
    # Abramowitz & Stegun 7.1.26, |error| <= 1.5e-7 -> "exact" GELU semantics.
    sgn = jnp.where(x >= 0.0, 1.0, -1.0)
    ax = jnp.abs(x)
    t = 1.0 / (1.0 + 0.3275911 * ax)
    poly = t * (0.254829592 + t * (-0.284496736 + t * (1.421413741
               + t * (-1.453152027 + t * 1.061405429))))
    return sgn * (1.0 - poly * jnp.exp(-ax * ax))


def _gelu(x):
    return 0.5 * x * (1.0 + _erf(x * _SQRT1_2))


def _sigmoid(x):
    return 1.0 / (1.0 + jnp.exp(-x))


# ----------------------------------------------------------------------------
# Pallas kernels
# ----------------------------------------------------------------------------
def channel_attention_pallas(x, w1, w2):
    """GAP -> 1x1 -> relu -> 1x1 -> sigmoid.  x:(B,H,W,C) -> (B,C) f32.

    GAP runs per batch; the two (C,C) matmuls run once over all B rows at the
    last grid step (resident output block is the pooled-row accumulator)."""
    B, H, W, C = x.shape

    def kernel(x_ref, w1_ref, w2_ref, o_ref):
        bi = pl.program_id(0)
        pooled = jnp.mean(x_ref[...].reshape(H * W, C), axis=0, keepdims=True)
        rows = jax.lax.broadcasted_iota(jnp.int32, (B, C), 0)
        o_ref[...] = jnp.where(rows == bi, pooled, o_ref[...])

        @pl.when(bi == pl.num_programs(0) - 1)
        def _():
            y = jnp.maximum(jnp.dot(o_ref[...], w1_ref[...],
                                    preferred_element_type=jnp.float32), 0.0)
            y = jnp.dot(y, w2_ref[...], preferred_element_type=jnp.float32)
            o_ref[...] = _sigmoid(y)

    return pl.pallas_call(
        kernel,
        out_shape=jax.ShapeDtypeStruct((B, C), jnp.float32),
        grid=(B,),
        in_specs=[pl.BlockSpec((1, H, W, C), lambda i: (i, 0, 0, 0)),
                  pl.BlockSpec((C, C), lambda i: (0, 0)),
                  pl.BlockSpec((C, C), lambda i: (0, 0))],
        out_specs=pl.BlockSpec((B, C), lambda i: (0, 0)),
        compiler_params=pltpu.CompilerParams(dimension_semantics=("arbitrary",)),
    )(x, w1, w2)


def qkv_linear_pallas(x, w_qkv_bf16, c):
    """Fused q|k|v projection: (M,C) f32 -> q,k (M,C) f32 and v (M,C) bf16.

    One (TM, C)bf16 @ (C, 3C)bf16 matmul per grid step; three separate
    lane-dense outputs (no wrapper-side slices of a (M, 3C) slab)."""
    M, K = x.shape
    TM = M if M < 256 else 256

    def kernel(x_ref, w_ref, q_ref, k_ref, v_ref):
        y = jnp.dot(x_ref[...].astype(jnp.bfloat16), w_ref[...],
                    preferred_element_type=jnp.float32)
        q_ref[...] = y[:, :c]
        k_ref[...] = y[:, c:2 * c]
        v_ref[...] = y[:, 2 * c:].astype(jnp.bfloat16)

    return pl.pallas_call(
        kernel,
        out_shape=(jax.ShapeDtypeStruct((M, c), jnp.float32),
                   jax.ShapeDtypeStruct((M, c), jnp.float32),
                   jax.ShapeDtypeStruct((M, c), jnp.bfloat16)),
        grid=(pl.cdiv(M, TM),),
        in_specs=[pl.BlockSpec((TM, K), lambda i: (i, 0)),
                  pl.BlockSpec((K, 3 * c), lambda i: (0, 0))],
        out_specs=(pl.BlockSpec((TM, c), lambda i: (i, 0)),
                   pl.BlockSpec((TM, c), lambda i: (i, 0)),
                   pl.BlockSpec((TM, c), lambda i: (i, 0))),
        compiler_params=pltpu.CompilerParams(dimension_semantics=("parallel",)),
    )(x, w_qkv_bf16)


def spatial_mask_conv_pallas(x_msi, v_img_bf16, cm3, x_hsi, w_sa, w_att_bf16):
    """Fused: spatial-attention mask (folded 7x7 tap table) -> v*sm*cm ->
    im2col 3x3 attention_conv (one MXU matmul) -> + x_hsi residual.

    All arrays in (B,H,W,C); one grid step per batch.  Returns v_spec
    (B,H,W,C) f32 and the mask (B,1,H*W) f32 (h-major, lane-dense)."""
    B, H, W, C = x_msi.shape
    HW = H * W

    def kernel(xm_ref, v_ref, cm_ref, xh_ref, wsa_ref, wcv_ref,
               vs_ref, sm_ref, xm_pad, vm_pad):
        # --- spatial mask: 49-tap VPU MAC on an in-VMEM zero-padded copy ----
        xm_pad[...] = jnp.zeros((H + 6, W + 6, C), jnp.float32)
        xm_pad[3:3 + H, 3:3 + W, :] = xm_ref[0]
        wsa = wsa_ref[...].reshape(49, 1, 1, C)
        acc = jnp.zeros((H, W, C), jnp.float32)
        for t in range(49):
            ki, kj = divmod(t, 7)
            acc = acc + xm_pad[ki:ki + H, kj:kj + W, :] * wsa[t]
        m = _sigmoid(jnp.sum(acc, axis=-1))                      # (H, W)
        sm_ref[...] = m.reshape(1, 1, HW)

        # --- masked v (f32 math), zero-padded by 1 in VMEM (bf16) -----------
        vm = v_ref[0].astype(jnp.float32) * m[:, :, None] * cm_ref[0]
        vm_pad[...] = jnp.zeros((H + 2, W + 2, C), jnp.bfloat16)
        vm_pad[1:1 + H, 1:1 + W, :] = vm.astype(jnp.bfloat16)

        # --- im2col 3x3 conv: one (HW, 9C) @ (9C, C) matmul, + residual -----
        cols = jnp.concatenate(
            [vm_pad[ki:ki + H, kj:kj + W, :].reshape(HW, C)
             for ki in range(3) for kj in range(3)], axis=1)
        y = jnp.dot(cols, wcv_ref[...], preferred_element_type=jnp.float32)
        vs_ref[...] = (y + xh_ref[...].reshape(HW, C)).reshape(1, H, W, C)

    img = pl.BlockSpec((1, H, W, C), lambda i: (i, 0, 0, 0))
    return pl.pallas_call(
        kernel,
        out_shape=(jax.ShapeDtypeStruct((B, H, W, C), jnp.float32),
                   jax.ShapeDtypeStruct((B, 1, HW), jnp.float32)),
        grid=(B,),
        in_specs=[img, img,
                  pl.BlockSpec((1, 1, C), lambda i: (i, 0, 0)),
                  img,
                  pl.BlockSpec((49, C), lambda i: (0, 0)),
                  pl.BlockSpec((9 * C, C), lambda i: (0, 0))],
        out_specs=(img, pl.BlockSpec((1, 1, HW), lambda i: (i, 0, 0))),
        scratch_shapes=[pltpu.VMEM((H + 6, W + 6, C), jnp.float32),
                        pltpu.VMEM((H + 2, W + 2, C), jnp.bfloat16)],
        compiler_params=pltpu.CompilerParams(dimension_semantics=("parallel",)),
    )(x_msi, v_img_bf16, cm3, x_hsi, w_sa, w_att_bf16)


def attention_proj_pallas(q, k, v, proj_w_bf16, proj_b2, neg_mask):
    """All heads in one pass: column-wise L2 norm (hoisted, rsqrt on EUP), one
    block-diagonal-masked (C,C) logits matmul, masked softmax with approx
    reciprocal, one (N,C)@(C,C) attn@v, fused proj Linear + exact GELU."""
    B, N, C = q.shape

    def kernel(q_ref, k_ref, v_ref, pw_ref, pb_ref, nm_ref, o_ref):
        qf = q_ref[0]
        kf = k_ref[0]
        qn = (qf * jax.lax.rsqrt(
            jnp.maximum(jnp.sum(qf * qf, axis=0, keepdims=True), 1e-24))
              ).astype(jnp.bfloat16)
        kn = (kf * jax.lax.rsqrt(
            jnp.maximum(jnp.sum(kf * kf, axis=0, keepdims=True), 1e-24))
              ).astype(jnp.bfloat16)
        # logits for all heads at once; cross-head entries pushed to -1e30
        s = jax.lax.dot_general(kn, qn, (((0,), (0,)), ((), ())),
                                preferred_element_type=jnp.float32) + nm_ref[...]
        mx = jnp.max(s, axis=-1, keepdims=True)
        e = jnp.exp(s - mx)                                      # off-block -> 0
        p = (e * pl.reciprocal(jnp.sum(e, axis=-1, keepdims=True), approx=True)
             ).astype(jnp.bfloat16)
        x1 = jax.lax.dot_general(v_ref[0].astype(jnp.bfloat16), p,
                                 (((1,), (1,)), ((), ())),
                                 preferred_element_type=jnp.float32)   # (N, C)
        y = jnp.dot(x1.astype(jnp.bfloat16), pw_ref[...],
                    preferred_element_type=jnp.float32) + pb_ref[...]
        o_ref[...] = _gelu(y).reshape(1, N, C)

    blk = pl.BlockSpec((1, N, C), lambda i: (i, 0, 0))
    return pl.pallas_call(
        kernel,
        out_shape=jax.ShapeDtypeStruct((B, N, C), jnp.float32),
        grid=(B,),
        in_specs=[blk, blk, blk,
                  pl.BlockSpec((C, C), lambda i: (0, 0)),
                  pl.BlockSpec((1, C), lambda i: (0, 0)),
                  pl.BlockSpec((C, C), lambda i: (0, 0))],
        out_specs=blk,
        compiler_params=pltpu.CompilerParams(dimension_semantics=("parallel",)),
    )(q, k, v, proj_w_bf16, proj_b2, neg_mask)


def pos_emb_pallas(v_spec, out1_img, w1_mat_bf16, b1r, w2_mat_bf16, b2r):
    """pos_emb = conv3x3 -> GELU -> conv3x3, each im2col-folded into a single
    (HW,9C)@(9C,C) matmul, fused with the `out1 +` residual.  One VMEM padded
    buffer is reused for both convs (its zero ring supplies both zero pads)."""
    B, H, W, C = v_spec.shape
    HW = H * W

    def kernel(vs_ref, o1_ref, w1_ref, b1_ref, w2_ref, b2_ref, o_ref, pad_buf):
        pad_buf[...] = jnp.zeros((H + 2, W + 2, C), jnp.bfloat16)
        pad_buf[1:1 + H, 1:1 + W, :] = vs_ref[0].astype(jnp.bfloat16)
        cols1 = jnp.concatenate(
            [pad_buf[ki:ki + H, kj:kj + W, :].reshape(HW, C)
             for ki in range(3) for kj in range(3)], axis=1)
        y1 = (jnp.dot(cols1, w1_ref[...], preferred_element_type=jnp.float32)
              + b1_ref[...])
        pad_buf[1:1 + H, 1:1 + W, :] = _gelu(y1).reshape(H, W, C).astype(jnp.bfloat16)
        cols2 = jnp.concatenate(
            [pad_buf[ki:ki + H, kj:kj + W, :].reshape(HW, C)
             for ki in range(3) for kj in range(3)], axis=1)
        y2 = (jnp.dot(cols2, w2_ref[...], preferred_element_type=jnp.float32)
              + b2_ref[...] + o1_ref[...].reshape(HW, C))
        o_ref[...] = y2.reshape(1, H, W, C)

    img = pl.BlockSpec((1, H, W, C), lambda i: (i, 0, 0, 0))
    return pl.pallas_call(
        kernel,
        out_shape=jax.ShapeDtypeStruct((B, H, W, C), jnp.float32),
        grid=(B,),
        in_specs=[img, img,
                  pl.BlockSpec((9 * C, C), lambda i: (0, 0)),
                  pl.BlockSpec((1, C), lambda i: (0, 0)),
                  pl.BlockSpec((9 * C, C), lambda i: (0, 0)),
                  pl.BlockSpec((1, C), lambda i: (0, 0))],
        out_specs=img,
        scratch_shapes=[pltpu.VMEM((H + 2, W + 2, C), jnp.bfloat16)],
        compiler_params=pltpu.CompilerParams(dimension_semantics=("parallel",)),
    )(v_spec, out1_img, w1_mat_bf16, b1r, w2_mat_bf16, b2r)


# ----------------------------------------------------------------------------
# Parameters (deterministic synthetic init; shapes follow the module __init__)
# ----------------------------------------------------------------------------
def init_params(key, c):
    ks = jax.random.split(key, 17)

    def wgt(k, shape, scale=0.05):
        return (scale * jax.random.normal(k, shape)).astype(jnp.float32)

    return dict(
        wq=wgt(ks[0], (c, c)), wk=wgt(ks[1], (c, c)), wv=wgt(ks[2], (c, c)),
        proj_w=wgt(ks[3], (c, c)), proj_b=wgt(ks[4], (c,)),
        pos_w1=wgt(ks[5], (3, 3, c, c)), pos_b1=wgt(ks[6], (c,)),
        pos_w2=wgt(ks[7], (3, 3, c, c)), pos_b2=wgt(ks[8], (c,)),
        attn_conv_w=wgt(ks[9], (3, 3, c, c)),
        ca_w1=wgt(ks[10], (c, c)), ca_w2=wgt(ks[11], (c, c)),
        sa_w3=wgt(ks[12], (3, 3, c, c)), sa_wb1=wgt(ks[13], (c, 1)),
        sa_w7=wgt(ks[14], (7, 7, c, c)), sa_wb2=wgt(ks[15], (c, 1)),
        sa_wc=wgt(ks[16], (1, 2)),
    )


# ----------------------------------------------------------------------------
# Forward pass (Pallas)
# ----------------------------------------------------------------------------
def forward_pallas(params, x_fu, x_msi, x_hsi, heads):
    p = params
    b, h, w, c = x_fu.shape
    n = h * w
    d = c // heads
    bf16 = jnp.bfloat16

    # channel mask (b, c)
    cm = channel_attention_pallas(x_hsi, p['ca_w1'], p['ca_w2'])

    # fused q|k|v projection (three lane-dense outputs; v already bf16)
    w_qkv = jnp.concatenate([p['wq'], p['wk'], p['wv']], axis=1).astype(bf16)
    q_f, k_f, v_bf = qkv_linear_pallas(x_fu.reshape(b * n, c), w_qkv, c)
    q = q_f.reshape(b, n, c)
    k = k_f.reshape(b, n, c)
    v_img = v_bf.reshape(b, h, w, c)

    # spatial-attention branches folded into one 7x7 tap table (3x3 branch at
    # the centre), spatially transposed so the kernels can stay in (h, w).
    w7c = jnp.einsum('ijco,o->ijc', p['sa_w7'], p['sa_wb2'][:, 0]) * p['sa_wc'][0, 1]
    w3c = jnp.einsum('ijco,o->ijc', p['sa_w3'], p['sa_wb1'][:, 0]) * p['sa_wc'][0, 0]
    w_eff = w7c.at[2:5, 2:5, :].add(w3c)
    w_sa = jnp.transpose(w_eff, (1, 0, 2)).reshape(49, c)
    # attention_conv: spatial transpose + im2col layout (9c, c), bf16
    w_att = jnp.transpose(p['attn_conv_w'], (1, 0, 2, 3)).reshape(9 * c, c).astype(bf16)

    v_spec, sm_flat = spatial_mask_conv_pallas(
        x_msi, v_img, cm.reshape(b, 1, c), x_hsi, w_sa, w_att)

    # block-diagonal additive bias (0 in-head, -1e30 cross-head)
    head_id = jnp.arange(c) // d
    neg_mask = jnp.where(head_id[:, None] == head_id[None, :], 0.0, -1e30
                         ).astype(jnp.float32)
    out1 = attention_proj_pallas(q, k, v_spec.reshape(b, n, c),
                                 p['proj_w'].astype(bf16),
                                 p['proj_b'].reshape(1, c), neg_mask)

    # pos_emb (transposed kernels, im2col) fused with the out1 residual
    w_p1 = jnp.transpose(p['pos_w1'], (1, 0, 2, 3)).reshape(9 * c, c).astype(bf16)
    w_p2 = jnp.transpose(p['pos_w2'], (1, 0, 2, 3)).reshape(9 * c, c).astype(bf16)
    out = pos_emb_pallas(v_spec, out1.reshape(b, h, w, c),
                         w_p1, p['pos_b1'].reshape(1, c),
                         w_p2, p['pos_b2'].reshape(1, c))

    # back to PyTorch conventions (only output-layout permutes remain)
    out_nchw = jnp.transpose(out, (0, 3, 2, 1))                    # (b, c, w, h)
    channel_mask = cm.reshape(b, c, 1, 1)
    spatial_mask = jnp.transpose(sm_flat.reshape(b, h, w), (0, 2, 1)
                                 ).reshape(b, 1, w, h)
    return out_nchw, channel_mask, spatial_mask


# ----------------------------------------------------------------------------
# Pure-JAX reference (same math, all f32, exact GELU) for correctness check
# ----------------------------------------------------------------------------
def _conv_ref(x, w, bias, pad):
    y = jax.lax.conv_general_dilated(x, w, (1, 1), [(pad, pad), (pad, pad)],
                                     dimension_numbers=('NHWC', 'HWIO', 'NHWC'))
    return y if bias is None else y + bias


def forward_reference(params, x_fu, x_msi, x_hsi, heads):
    p = params
    b, h, w, c = x_fu.shape
    d = c // heads
    n = h * w
    sig = lambda t: 1.0 / (1.0 + jnp.exp(-t))

    pooled = jnp.mean(x_hsi, axis=(1, 2))
    cm = sig(jnp.maximum(pooled @ p['ca_w1'], 0.0) @ p['ca_w2'])

    xm = jnp.transpose(x_msi, (0, 2, 1, 3))
    m1 = jnp.einsum('bxyc,co->bxyo', _conv_ref(xm, p['sa_w3'], None, 1), p['sa_wb1'])
    m2 = jnp.einsum('bxyc,co->bxyo', _conv_ref(xm, p['sa_w7'], None, 3), p['sa_wb2'])
    sm = sig(m1 * p['sa_wc'][0, 0] + m2 * p['sa_wc'][0, 1])

    x = x_fu.reshape(b, n, c)
    q_inp, k_inp, v_inp = x @ p['wq'], x @ p['wk'], x @ p['wv']
    v_img = jnp.transpose(v_inp.reshape(b, h, w, c), (0, 2, 1, 3))
    v_spec = v_img * sm * cm[:, None, None, :]
    v_spec = _conv_ref(v_spec, p['attn_conv_w'], None, 1)
    v_spec = v_spec + jnp.transpose(x_hsi, (0, 2, 1, 3))
    v_flat = jnp.transpose(v_spec, (0, 2, 1, 3)).reshape(b, n, c)

    def to_heads(t):
        return jnp.transpose(t.reshape(b, n, heads, d), (0, 2, 3, 1))

    q, k, v1 = to_heads(q_inp), to_heads(k_inp), to_heads(v_flat)
    qn = q / jnp.maximum(jnp.sqrt(jnp.sum(q * q, -1, keepdims=True)), 1e-12)
    kn = k / jnp.maximum(jnp.sqrt(jnp.sum(k * k, -1, keepdims=True)), 1e-12)
    attn = jnp.einsum('bhdn,bhen->bhde', kn, qn)
    attn = jax.nn.softmax(attn, axis=-1)
    x1 = jnp.einsum('bhde,bhen->bhdn', attn, v1)
    x1 = jnp.transpose(x1, (0, 3, 1, 2)).reshape(b, n, c)

    out1 = jax.nn.gelu(x1 @ p['proj_w'] + p['proj_b'], approximate=False)
    out1 = jnp.transpose(out1.reshape(b, h, w, c), (0, 2, 1, 3))
    p1 = jax.nn.gelu(_conv_ref(v_spec, p['pos_w1'], p['pos_b1'], 1), approximate=False)
    out_p = _conv_ref(p1, p['pos_w2'], p['pos_b2'], 1)
    out = out1 + out_p
    return (jnp.transpose(out, (0, 3, 1, 2)), cm.reshape(b, c, 1, 1),
            jnp.transpose(sm, (0, 3, 1, 2)))


# ----------------------------------------------------------------------------
if __name__ == "__main__":
    key = jax.random.PRNGKey(0)
    b, h, w, c = 2, 8, 8, 32
    heads_number = 4                       # num_heads_column = c // heads = 8
    kx, kp = jax.random.split(key)
    k1, k2, k3 = jax.random.split(kx, 3)
    x_fu = jax.random.normal(k1, (b, h, w, c), jnp.float32)
    x_msi = jax.random.normal(k2, (b, h, w, c), jnp.float32)
    x_hsi = jax.random.normal(k3, (b, h, w, c), jnp.float32)
    params = init_params(kp, c)

    fwd = jax.jit(forward_pallas, static_argnums=4)
    out, cmask, smask = fwd(params, x_fu, x_msi, x_hsi, heads_number)
    jax.block_until_ready((out, cmask, smask))

    ref = forward_reference(params, x_fu, x_msi, x_hsi, heads_number)
    for got, want in zip((out, cmask, smask), ref):
        assert got.shape == want.shape, (got.shape, want.shape)
        err = float(jnp.max(jnp.abs(got - want)))
        # tolerance accounts for bf16 matmul/conv operands (f32 accumulation)
        assert jnp.allclose(got, want, rtol=2e-2, atol=2e-2), err

    print("KERNEL_OK")
</pallas_src>

<mosaic_0001>
module attributes {stable_mosaic.version = 11 : i64} {
  func.func @kernel(%arg0: i32, %arg1: memref<128x32xf32, #tpu.memory_space<vmem>>, %arg2: memref<32x96xbf16, #tpu.memory_space<vmem>>, %arg3: memref<128x32xf32, #tpu.memory_space<vmem>>, %arg4: memref<128x32xf32, #tpu.memory_space<vmem>>, %arg5: memref<128x32xbf16, #tpu.memory_space<vmem>>) attributes {dimension_semantics = [#tpu.dimension_semantics<parallel>], iteration_bounds = array<i64: 1>, scalar_prefetch = 0 : i64, scratch_operands = 0 : i64, tpu.core_type = #tpu.core_type<tc>, window_params = [{transform_indices = @transform_0, window_bounds = array<i64: 128, 32>}, {pipeline_mode = #tpu.pipeline_mode<synchronous>, transform_indices = @transform_1, window_bounds = array<i64: 32, 96>}, {transform_indices = @transform_2, window_bounds = array<i64: 128, 32>}, {transform_indices = @transform_3, window_bounds = array<i64: 128, 32>}, {transform_indices = @transform_4, window_bounds = array<i64: 128, 32>}]} {
    %c0 = arith.constant 0 : index
    %c0_0 = arith.constant 0 : index
    %0 = vector.load %arg1[%c0, %c0_0] : memref<128x32xf32, #tpu.memory_space<vmem>>, vector<128x32xf32>
    %1 = arith.truncf %0 : vector<128x32xf32> to vector<128x32xbf16>
    %c0_1 = arith.constant 0 : index
    %c0_2 = arith.constant 0 : index
    %2 = vector.load %arg2[%c0_1, %c0_2] : memref<32x96xbf16, #tpu.memory_space<vmem>>, vector<32x96xbf16>
    %cst = arith.constant dense<0.000000e+00> : vector<128x96xf32>
    %3 = tpu.matmul %1, %2, %cst {dimension_numbers = #tpu.dot_dimension_numbers<[1], [0], [0], [1], [0, 0, 1, 1], [], []>} : vector<128x32xbf16>, vector<32x96xbf16>, vector<128x96xf32> -> vector<128x96xf32>
    %4 = vector.extract_strided_slice %3 {offsets = [0, 0], sizes = [128, 32], strides = [1, 1]} : vector<128x96xf32> to vector<128x32xf32>
    %c0_3 = arith.constant 0 : index
    %c0_4 = arith.constant 0 : index
    %5 = vector.load %arg3[%c0_3, %c0_4] : memref<128x32xf32, #tpu.memory_space<vmem>>, vector<128x32xf32>
    tpu.vector_store %arg3[%c0_3, %c0_4], %4 {strides = array<i32>} : memref<128x32xf32, #tpu.memory_space<vmem>>, vector<128x32xf32>,
    %6 = vector.extract_strided_slice %3 {offsets = [0, 32], sizes = [128, 32], strides = [1, 1]} : vector<128x96xf32> to vector<128x32xf32>
    %c0_5 = arith.constant 0 : index
    %c0_6 = arith.constant 0 : index
    %7 = vector.load %arg4[%c0_5, %c0_6] : memref<128x32xf32, #tpu.memory_space<vmem>>, vector<128x32xf32>
    tpu.vector_store %arg4[%c0_5, %c0_6], %6 {strides = array<i32>} : memref<128x32xf32, #tpu.memory_space<vmem>>, vector<128x32xf32>,
    %8 = vector.extract_strided_slice %3 {offsets = [0, 64], sizes = [128, 32], strides = [1, 1]} : vector<128x96xf32> to vector<128x32xf32>
    %9 = arith.truncf %8 : vector<128x32xf32> to vector<128x32xbf16>
    %c0_7 = arith.constant 0 : index
    %c0_8 = arith.constant 0 : index
    %10 = vector.load %arg5[%c0_7, %c0_8] : memref<128x32xbf16, #tpu.memory_space<vmem>>, vector<128x32xbf16>
    tpu.vector_store %arg5[%c0_7, %c0_8], %9 {strides = array<i32>} : memref<128x32xbf16, #tpu.memory_space<vmem>>, vector<128x32xbf16>,
    return
  }
  func.func @transform_0(%arg0: i32) -> (i32, i32) {
    %c0_i32 = arith.constant 0 : i32
    %c0_i32_0 = arith.constant 0 : i32
    return %arg0, %c0_i32 : i32, i32
  }
  func.func @transform_1(%arg0: i32) -> (i32, i32) {
    %c0_i32 = arith.constant 0 : i32
    %c0_i32_0 = arith.constant 0 : i32
    %c0_i32_1 = arith.constant 0 : i32
    return %c0_i32, %c0_i32_0 : i32, i32
  }
  func.func @transform_2(%arg0: i32) -> (i32, i32) {
    %c0_i32 = arith.constant 0 : i32
    %c0_i32_0 = arith.constant 0 : i32
    return %arg0, %c0_i32 : i32, i32
  }
  func.func @transform_3(%arg0: i32) -> (i32, i32) {
    %c0_i32 = arith.constant 0 : i32
    %c0_i32_0 = arith.constant 0 : i32
    return %arg0, %c0_i32 : i32, i32
  }
  func.func @transform_4(%arg0: i32) -> (i32, i32) {
    %c0_i32 = arith.constant 0 : i32
    %c0_i32_0 = arith.constant 0 : i32
    return %arg0, %c0_i32 : i32, i32
  }
}

module attributes {stable_mosaic.version = 11 : i64} {
  func.func @kernel(%arg0: i32, %arg1: memref<1x8x8x32xf32, #tpu.memory_space<vmem>>, %arg2: memref<32x32xf32, #tpu.memory_space<vmem>>, %arg3: memref<32x32xf32, #tpu.memory_space<vmem>>, %arg4: memref<2x32xf32, #tpu.memory_space<vmem>>) attributes {dimension_semantics = [#tpu.dimension_semantics<arbitrary>], iteration_bounds = array<i64: 2>, scalar_prefetch = 0 : i64, scratch_operands = 0 : i64, tpu.core_type = #tpu.core_type<tc>, window_params = [{transform_indices = @transform_0, window_bounds = array<i64: 1, 8, 8, 32>}, {pipeline_mode = #tpu.pipeline_mode<synchronous>, transform_indices = @transform_1, window_bounds = array<i64: 32, 32>}, {pipeline_mode = #tpu.pipeline_mode<synchronous>, transform_indices = @transform_2, window_bounds = array<i64: 32, 32>}, {pipeline_mode = #tpu.pipeline_mode<synchronous>, transform_indices = @transform_3, window_bounds = array<i64: 2, 32>}]} {
    %c0 = arith.constant 0 : index
    %c0_0 = arith.constant 0 : index
    %c0_1 = arith.constant 0 : index
    %c0_2 = arith.constant 0 : index
    %0 = vector.load %arg1[%c0, %c0_0, %c0_1, %c0_2] : memref<1x8x8x32xf32, #tpu.memory_space<vmem>>, vector<1x8x8x32xf32>
    %1 = vector.shape_cast %0 : vector<1x8x8x32xf32> to vector<64x32xf32>
    %cst = arith.constant dense<0.000000e+00> : vector<32xf32>
    %2 = vector.multi_reduction <add>, %1, %cst [0] : vector<64x32xf32> to vector<32xf32>
    %3 = vector.shape_cast %2 : vector<32xf32> to vector<1x32xf32>
    %cst_3 = arith.constant 6.400000e+01 : f32
    %4 = vector.broadcast %cst_3 : f32 to vector<1x32xf32>
    %5 = arith.divf %3, %4 : vector<1x32xf32>
    %6 = tpu.iota {dimensions = array<i32: 0>} : vector<2x32xi32>
    %7 = vector.broadcast %arg0 : i32 to vector<2x32xi32>
    %8 = arith.cmpi eq, %6, %7 : vector<2x32xi32>
    %c0_4 = arith.constant 0 : index
    %c0_5 = arith.constant 0 : index
    %9 = vector.load %arg4[%c0_4, %c0_5] : memref<2x32xf32, #tpu.memory_space<vmem>>, vector<2x32xf32>
    %10 = vector.shape_cast %5 : vector<1x32xf32> to vector<1x32xf32>
    %11 = vector.broadcast %10 : vector<1x32xf32> to vector<2x32xf32>
    %12 = arith.select %8, %11, %9 : vector<2x32xi1>, vector<2x32xf32>
    %c0_6 = arith.constant 0 : index
    %c0_7 = arith.constant 0 : index
    %13 = vector.load %arg4[%c0_6, %c0_7] : memref<2x32xf32, #tpu.memory_space<vmem>>, vector<2x32xf32>
    tpu.vector_store %arg4[%c0_6, %c0_7], %12 {strides = array<i32>} : memref<2x32xf32, #tpu.memory_space<vmem>>, vector<2x32xf32>,
    %c1_i32 = arith.constant 1 : i32
    %14 = arith.cmpi eq, %arg0, %c1_i32 : i32
    %15 = arith.extui %14 : i1 to i32
    %c0_i32 = arith.constant 0 : i32
    %16 = arith.cmpi ne, %15, %c0_i32 : i32
    scf.if %16 {
      %c0_8 = arith.constant 0 : index
      %c0_9 = arith.constant 0 : index
      %17 = vector.load %arg4[%c0_8, %c0_9] : memref<2x32xf32, #tpu.memory_space<vmem>>, vector<2x32xf32>
      %c0_10 = arith.constant 0 : index
      %c0_11 = arith.constant 0 : index
      %18 = vector.load %arg2[%c0_10, %c0_11] : memref<32x32xf32, #tpu.memory_space<vmem>>, vector<32x32xf32>
      %cst_12 = arith.constant dense<0.000000e+00> : vector<2x32xf32>
      %19 = tpu.matmul %17, %18, %cst_12 {dimension_numbers = #tpu.dot_dimension_numbers<[1], [0], [0], [1], [0, 0, 1, 1], [], []>} : vector<2x32xf32>, vector<32x32xf32>, vector<2x32xf32> -> vector<2x32xf32>
      %cst_13 = arith.constant 0.000000e+00 : f32
      %20 = vector.broadcast %cst_13 : f32 to vector<2x32xf32>
      %21 = arith.maximumf %19, %20 : vector<2x32xf32>
      %c0_14 = arith.constant 0 : index
      %c0_15 = arith.constant 0 : index
      %22 = vector.load %arg3[%c0_14, %c0_15] : memref<32x32xf32, #tpu.memory_space<vmem>>, vector<32x32xf32>
      %cst_16 = arith.constant dense<0.000000e+00> : vector<2x32xf32>
      %23 = tpu.matmul %21, %22, %cst_16 {dimension_numbers = #tpu.dot_dimension_numbers<[1], [0], [0], [1], [0, 0, 1, 1], [], []>} : vector<2x32xf32>, vector<32x32xf32>, vector<2x32xf32> -> vector<2x32xf32>
      %cst_17 = arith.constant 0.000000e+00 : f32
      %24 = vector.broadcast %cst_17 : f32 to vector<2x32xf32>
      %25 = arith.subf %24, %23 : vector<2x32xf32>
      %26 = math.exp %25 : vector<2x32xf32>
      %cst_18 = arith.constant 1.000000e+00 : f32
      %27 = vector.broadcast %cst_18 : f32 to vector<2x32xf32>
      %28 = arith.addf %27, %26 : vector<2x32xf32>
      %cst_19 = arith.constant 1.000000e+00 : f32
      %29 = vector.broadcast %cst_19 : f32 to vector<2x32xf32>
      %30 = arith.divf %29, %28 : vector<2x32xf32>
      %c0_20 = arith.constant 0 : index
      %c0_21 = arith.constant 0 : index
      %31 = vector.load %arg4[%c0_20, %c0_21] : memref<2x32xf32, #tpu.memory_space<vmem>>, vector<2x32xf32>
      tpu.vector_store %arg4[%c0_20, %c0_21], %30 {strides = array<i32>} : memref<2x32xf32, #tpu.memory_space<vmem>>, vector<2x32xf32>,
    } else {
    }
    return
  }
  func.func @transform_0(%arg0: i32) -> (i32, i32, i32, i32) {
    %c0_i32 = arith.constant 0 : i32
    %c0_i32_0 = arith.constant 0 : i32
    %c0_i32_1 = arith.constant 0 : i32
    %c0_i32_2 = arith.constant 0 : i32
    return %arg0, %c0_i32, %c0_i32_0, %c0_i32_1 : i32, i32, i32, i32
  }
  func.func @transform_1(%arg0: i32) -> (i32, i32) {
    %c0_i32 = arith.constant 0 : i32
    %c0_i32_0 = arith.constant 0 : i32
    %c0_i32_1 = arith.constant 0 : i32
    return %c0_i32, %c0_i32_0 : i32, i32
  }
  func.func @transform_2(%arg0: i32) -> (i32, i32) {
    %c0_i32 = arith.constant 0 : i32
    %c0_i32_0 = arith.constant 0 : i32
    %c0_i32_1 = arith.constant 0 : i32
    return %c0_i32, %c0_i32_0 : i32, i32
  }
  func.func @transform_3(%arg0: i32) -> (i32, i32) {
    %c0_i32 = arith.constant 0 : i32
    %c0_i32_0 = arith.constant 0 : i32
    %c0_i32_1 = arith.constant 0 : i32
    return %c0_i32, %c0_i32_0 : i32, i32
  }
}

module attributes {stable_mosaic.version = 11 : i64} {
  func.func @kernel(%arg0: i32, %arg1: memref<1x8x8x32xf32, #tpu.memory_space<vmem>>, %arg2: memref<1x8x8x32xbf16, #tpu.memory_space<vmem>>, %arg3: memref<1x1x32xf32, #tpu.memory_space<vmem>>, %arg4: memref<1x8x8x32xf32, #tpu.memory_space<vmem>>, %arg5: memref<49x32xf32, #tpu.memory_space<vmem>>, %arg6: memref<288x32xbf16, #tpu.memory_space<vmem>>, %arg7: memref<1x8x8x32xf32, #tpu.memory_space<vmem>>, %arg8: memref<1x1x64xf32, #tpu.memory_space<vmem>>, %arg9: memref<14x14x32xf32, #tpu.memory_space<vmem>>, %arg10: memref<10x10x32xbf16, #tpu.memory_space<vmem>>) attributes {dimension_semantics = [#tpu.dimension_semantics<parallel>], iteration_bounds = array<i64: 2>, scalar_prefetch = 0 : i64, scratch_operands = 2 : i64, tpu.core_type = #tpu.core_type<tc>, window_params = [{transform_indices = @transform_0, window_bounds = array<i64: 1, 8, 8, 32>}, {transform_indices = @transform_1, window_bounds = array<i64: 1, 8, 8, 32>}, {transform_indices = @transform_2, window_bounds = array<i64: 1, 1, 32>}, {transform_indices = @transform_3, window_bounds = array<i64: 1, 8, 8, 32>}, {pipeline_mode = #tpu.pipeline_mode<synchronous>, transform_indices = @transform_4, window_bounds = array<i64: 49, 32>}, {pipeline_mode = #tpu.pipeline_mode<synchronous>, transform_indices = @transform_5, window_bounds = array<i64: 288, 32>}, {transform_indices = @transform_6, window_bounds = array<i64: 1, 8, 8, 32>}, {transform_indices = @transform_7, window_bounds = array<i64: 1, 1, 64>}]} {
    %cst = arith.constant 0.000000e+00 : f32
    %0 = vector.broadcast %cst : f32 to vector<14x14x32xf32>
    %c0 = arith.constant 0 : index
    %c0_0 = arith.constant 0 : index
    %c0_1 = arith.constant 0 : index
    %1 = vector.load %arg9[%c0, %c0_0, %c0_1] : memref<14x14x32xf32, #tpu.memory_space<vmem>>, vector<14x14x32xf32>
    tpu.vector_store %arg9[%c0, %c0_0, %c0_1], %0 {strides = array<i32>} : memref<14x14x32xf32, #tpu.memory_space<vmem>>, vector<14x14x32xf32>,
    %c0_2 = arith.constant 0 : index
    %c0_3 = arith.constant 0 : index
    %c0_4 = arith.constant 0 : index
    %c0_5 = arith.constant 0 : index
    %2 = vector.load %arg1[%c0_2, %c0_3, %c0_4, %c0_5] : memref<1x8x8x32xf32, #tpu.memory_space<vmem>>, vector<1x8x8x32xf32>
    %3 = vector.shape_cast %2 : vector<1x8x8x32xf32> to vector<8x8x32xf32>
    %c3 = arith.constant 3 : index
    %c3_6 = arith.constant 3 : index
    %c0_7 = arith.constant 0 : index
    %4 = vector.load %arg9[%c3, %c3_6, %c0_7] : memref<14x14x32xf32, #tpu.memory_space<vmem>>, vector<8x8x32xf32>
    tpu.vector_store %arg9[%c3, %c3_6, %c0_7], %3 {strides = array<i32>} : memref<14x14x32xf32, #tpu.memory_space<vmem>>, vector<8x8x32xf32>,
    %c0_8 = arith.constant 0 : index
    %c0_9 = arith.constant 0 : index
    %5 = vector.load %arg5[%c0_8, %c0_9] : memref<49x32xf32, #tpu.memory_space<vmem>>, vector<49x32xf32>
    %6 = vector.shape_cast %5 : vector<49x32xf32> to vector<49x1x1x32xf32>
    %cst_10 = arith.constant 0.000000e+00 : f32
    %7 = vector.broadcast %cst_10 : f32 to vector<8x8x32xf32>
    %c0_11 = arith.constant 0 : index
    %c0_12 = arith.constant 0 : index
    %c0_13 = arith.constant 0 : index
    %8 = vector.load %arg9[%c0_11, %c0_12, %c0_13] : memref<14x14x32xf32, #tpu.memory_space<vmem>>, vector<8x8x32xf32>
    %9 = vector.extract_strided_slice %6 {offsets = [0, 0, 0, 0], sizes = [1, 1, 1, 32], strides = [1, 1, 1, 1]} : vector<49x1x1x32xf32> to vector<1x1x1x32xf32>
    %10 = vector.shape_cast %9 : vector<1x1x1x32xf32> to vector<1x1x32xf32>
    %11 = vector.broadcast %10 : vector<1x1x32xf32> to vector<8x8x32xf32>
    %12 = arith.mulf %8, %11 : vector<8x8x32xf32>
    %13 = arith.addf %7, %12 : vector<8x8x32xf32>
    %c0_14 = arith.constant 0 : index
    %c1 = arith.constant 1 : index
    %c0_15 = arith.constant 0 : index
    %14 = vector.load %arg9[%c0_14, %c1, %c0_15] : memref<14x14x32xf32, #tpu.memory_space<vmem>>, vector<8x8x32xf32>
    %15 = vector.extract_strided_slice %6 {offsets = [1, 0, 0, 0], sizes = [1, 1, 1, 32], strides = [1, 1, 1, 1]} : vector<49x1x1x32xf32> to vector<1x1x1x32xf32>
    %16 = vector.shape_cast %15 : vector<1x1x1x32xf32> to vector<1x1x32xf32>
    %17 = vector.broadcast %16 : vector<1x1x32xf32> to vector<8x8x32xf32>
    %18 = arith.mulf %14, %17 : vector<8x8x32xf32>
    %19 = arith.addf %13, %18 : vector<8x8x32xf32>
    %c0_16 = arith.constant 0 : index
    %c2 = arith.constant 2 : index
    %c0_17 = arith.constant 0 : index
    %20 = vector.load %arg9[%c0_16, %c2, %c0_17] : memref<14x14x32xf32, #tpu.memory_space<vmem>>, vector<8x8x32xf32>
    %21 = vector.extract_strided_slice %6 {offsets = [2, 0, 0, 0], sizes = [1, 1, 1, 32], strides = [1, 1, 1, 1]} : vector<49x1x1x32xf32> to vector<1x1x1x32xf32>
    %22 = vector.shape_cast %21 : vector<1x1x1x32xf32> to vector<1x1x32xf32>
    %23 = vector.broadcast %22 : vector<1x1x32xf32> to vector<8x8x32xf32>
    %24 = arith.mulf %20, %23 : vector<8x8x32xf32>
    %25 = arith.addf %19, %24 : vector<8x8x32xf32>
    %c0_18 = arith.constant 0 : index
    %c3_19 = arith.constant 3 : index
    %c0_20 = arith.constant 0 : index
    %26 = vector.load %arg9[%c0_18, %c3_19, %c0_20] : memref<14x14x32xf32, #tpu.memory_space<vmem>>, vector<8x8x32xf32>
    %27 = vector.extract_strided_slice %6 {offsets = [3, 0, 0, 0], sizes = [1, 1, 1, 32], strides = [1, 1, 1, 1]} : vector<49x1x1x32xf32> to vector<1x1x1x32xf32>
    %28 = vector.shape_cast %27 : vector<1x1x1x32xf32> to vector<1x1x32xf32>
    %29 = vector.broadcast %28 : vector<1x1x32xf32> to vector<8x8x32xf32>
    %30 = arith.mulf %26, %29 : vector<8x8x32xf32>
    %31 = arith.addf %25, %30 : vector<8x8x32xf32>
    %c0_21 = arith.constant 0 : index
    %c4 = arith.constant 4 : index
    %c0_22 = arith.constant 0 : index
    %32 = vector.load %arg9[%c0_21, %c4, %c0_22] : memref<14x14x32xf32, #tpu.memory_space<vmem>>, vector<8x8x32xf32>
    %33 = vector.extract_strided_slice %6 {offsets = [4, 0, 0, 0], sizes = [1, 1, 1, 32], strides = [1, 1, 1, 1]} : vector<49x1x1x32xf32> to vector<1x1x1x32xf32>
    %34 = vector.shape_cast %33 : vector<1x1x1x32xf32> to vector<1x1x32xf32>
    %35 = vector.broadcast %34 : vector<1x1x32xf32> to vector<8x8x32xf32>
    %36 = arith.mulf %32, %35 : vector<8x8x32xf32>
    %37 = arith.addf %31, %36 : vector<8x8x32xf32>
    %c0_23 = arith.constant 0 : index
    %c5 = arith.constant 5 : index
    %c0_24 = arith.constant 0 : index
    %38 = vector.load %arg9[%c0_23, %c5, %c0_24] : memref<14x14x32xf32, #tpu.memory_space<vmem>>, vector<8x8x32xf32>
    %39 = vector.extract_strided_slice %6 {offsets = [5, 0, 0, 0], sizes = [1, 1, 1, 32], strides = [1, 1, 1, 1]} : vector<49x1x1x32xf32> to vector<1x1x1x32xf32>
    %40 = vector.shape_cast %39 : vector<1x1x1x32xf32> to vector<1x1x32xf32>
    %41 = vector.broadcast %40 : vector<1x1x32xf32> to vector<8x8x32xf32>
    %42 = arith.mulf %38, %41 : vector<8x8x32xf32>
    %43 = arith.addf %37, %42 : vector<8x8x32xf32>
    %c0_25 = arith.constant 0 : index
    %c6 = arith.constant 6 : index
    %c0_26 = arith.constant 0 : index
    %44 = vector.load %arg9[%c0_25, %c6, %c0_26] : memref<14x14x32xf32, #tpu.memory_space<vmem>>, vector<8x8x32xf32>
    %45 = vector.extract_strided_slice %6 {offsets = [6, 0, 0, 0], sizes = [1, 1, 1, 32], strides = [1, 1, 1, 1]} : vector<49x1x1x32xf32> to vector<1x1x1x32xf32>
    %46 = vector.shape_cast %45 : vector<1x1x1x32xf32> to vector<1x1x32xf32>
    %47 = vector.broadcast %46 : vector<1x1x32xf32> to vector<8x8x32xf32>
    %48 = arith.mulf %44, %47 : vector<8x8x32xf32>
    %49 = arith.addf %43, %48 : vector<8x8x32xf32>
    %c1_27 = arith.constant 1 : index
    %c0_28 = arith.constant 0 : index
    %c0_29 = arith.constant 0 : index
    %50 = vector.load %arg9[%c1_27, %c0_28, %c0_29] : memref<14x14x32xf32, #tpu.memory_space<vmem>>, vector<8x8x32xf32>
    %51 = vector.extract_strided_slice %6 {offsets = [7, 0, 0, 0], sizes = [1, 1, 1, 32], strides = [1, 1, 1, 1]} : vector<49x1x1x32xf32> to vector<1x1x1x32xf32>
    %52 = vector.shape_cast %51 : vector<1x1x1x32xf32> to vector<1x1x32xf32>
    %53 = vector.broadcast %52 : vector<1x1x32xf32> to vector<8x8x32xf32>
    %54 = arith.mulf %50, %53 : vector<8x8x32xf32>
    %55 = arith.addf %49, %54 : vector<8x8x32xf32>
    %c1_30 = arith.constant 1 : index
    %c1_31 = arith.constant 1 : index
    %c0_32 = arith.constant 0 : index
    %56 = vector.load %arg9[%c1_30, %c1_31, %c0_32] : memref<14x14x32xf32, #tpu.memory_space<vmem>>, vector<8x8x32xf32>
    %57 = vector.extract_strided_slice %6 {offsets = [8, 0, 0, 0], sizes = [1, 1, 1, 32], strides = [1, 1, 1, 1]} : vector<49x1x1x32xf32> to vector<1x1x1x32xf32>
    %58 = vector.shape_cast %57 : vector<1x1x1x32xf32> to vector<1x1x32xf32>
    %59 = vector.broadcast %58 : vector<1x1x32xf32> to vector<8x8x32xf32>
    %60 = arith.mulf %56, %59 : vector<8x8x32xf32>
    %61 = arith.addf %55, %60 : vector<8x8x32xf32>
    %c1_33 = arith.constant 1 : index
    %c2_34 = arith.constant 2 : index
    %c0_35 = arith.constant 0 : index
    %62 = vector.load %arg9[%c1_33, %c2_34, %c0_35] : memref<14x14x32xf32, #tpu.memory_space<vmem>>, vector<8x8x32xf32>
    %63 = vector.extract_strided_slice %6 {offsets = [9, 0, 0, 0], sizes = [1, 1, 1, 32], strides = [1, 1, 1, 1]} : vector<49x1x1x32xf32> to vector<1x1x1x32xf32>
    %64 = vector.shape_cast %63 : vector<1x1x1x32xf32> to vector<1x1x32xf32>
    %65 = vector.broadcast %64 : vector<1x1x32xf32> to vector<8x8x32xf32>
    %66 = arith.mulf %62, %65 : vector<8x8x32xf32>
    %67 = arith.addf %61, %66 : vector<8x8x32xf32>
    %c1_36 = arith.constant 1 : index
    %c3_37 = arith.constant 3 : index
    %c0_38 = arith.constant 0 : index
    %68 = vector.load %arg9[%c1_36, %c3_37, %c0_38] : memref<14x14x32xf32, #tpu.memory_space<vmem>>, vector<8x8x32xf32>
    %69 = vector.extract_strided_slice %6 {offsets = [10, 0, 0, 0], sizes = [1, 1, 1, 32], strides = [1, 1, 1, 1]} : vector<49x1x1x32xf32> to vector<1x1x1x32xf32>
    %70 = vector.shape_cast %69 : vector<1x1x1x32xf32> to vector<1x1x32xf32>
    %71 = vector.broadcast %70 : vector<1x1x32xf32> to vector<8x8x32xf32>
    %72 = arith.mulf %68, %71 : vector<8x8x32xf32>
    %73 = arith.addf %67, %72 : vector<8x8x32xf32>
    %c1_39 = arith.constant 1 : index
    %c4_40 = arith.constant 4 : index
    %c0_41 = arith.constant 0 : index
    %74 = vector.load %arg9[%c1_39, %c4_40, %c0_41] : memref<14x14x32xf32, #tpu.memory_space<vmem>>, vector<8x8x32xf32>
    %75 = vector.extract_strided_slice %6 {offsets = [11, 0, 0, 0], sizes = [1, 1, 1, 32], strides = [1, 1, 1, 1]} : vector<49x1x1x32xf32> to vector<1x1x1x32xf32>
    %76 = vector.shape_cast %75 : vector<1x1x1x32xf32> to vector<1x1x32xf32>
    %77 = vector.broadcast %76 : vector<1x1x32xf32> to vector<8x8x32xf32>
    %78 = arith.mulf %74, %77 : vector<8x8x32xf32>
    %79 = arith.addf %73, %78 : vector<8x8x32xf32>
    %c1_42 = arith.constant 1 : index
    %c5_43 = arith.constant 5 : index
    %c0_44 = arith.constant 0 : index
    %80 = vector.load %arg9[%c1_42, %c5_43, %c0_44] : memref<14x14x32xf32, #tpu.memory_space<vmem>>, vector<8x8x32xf32>
    %81 = vector.extract_strided_slice %6 {offsets = [12, 0, 0, 0], sizes = [1, 1, 1, 32], strides = [1, 1, 1, 1]} : vector<49x1x1x32xf32> to vector<1x1x1x32xf32>
    %82 = vector.shape_cast %81 : vector<1x1x1x32xf32> to vector<1x1x32xf32>
    %83 = vector.broadcast %82 : vector<1x1x32xf32> to vector<8x8x32xf32>
    %84 = arith.mulf %80, %83 : vector<8x8x32xf32>
    %85 = arith.addf %79, %84 : vector<8x8x32xf32>
    %c1_45 = arith.constant 1 : index
    %c6_46 = arith.constant 6 : index
    %c0_47 = arith.constant 0 : index
    %86 = vector.load %arg9[%c1_45, %c6_46, %c0_47] : memref<14x14x32xf32, #tpu.memory_space<vmem>>, vector<8x8x32xf32>
    %87 = vector.extract_strided_slice %6 {offsets = [13, 0, 0, 0], sizes = [1, 1, 1, 32], strides = [1, 1, 1, 1]} : vector<49x1x1x32xf32> to vector<1x1x1x32xf32>
    %88 = vector.shape_cast %87 : vector<1x1x1x32xf32> to vector<1x1x32xf32>
    %89 = vector.broadcast %88 : vector<1x1x32xf32> to vector<8x8x32xf32>
    %90 = arith.mulf %86, %89 : vector<8x8x32xf32>
    %91 = arith.addf %85, %90 : vector<8x8x32xf32>
    %c2_48 = arith.constant 2 : index
    %c0_49 = arith.constant 0 : index
    %c0_50 = arith.constant 0 : index
    %92 = vector.load %arg9[%c2_48, %c0_49, %c0_50] : memref<14x14x32xf32, #tpu.memory_space<vmem>>, vector<8x8x32xf32>
    %93 = vector.extract_strided_slice %6 {offsets = [14, 0, 0, 0], sizes = [1, 1, 1, 32], strides = [1, 1, 1, 1]} : vector<49x1x1x32xf32> to vector<1x1x1x32xf32>
    %94 = vector.shape_cast %93 : vector<1x1x1x32xf32> to vector<1x1x32xf32>
    %95 = vector.broadcast %94 : vector<1x1x32xf32> to vector<8x8x32xf32>
    %96 = arith.mulf %92, %95 : vector<8x8x32xf32>
    %97 = arith.addf %91, %96 : vector<8x8x32xf32>
    %c2_51 = arith.constant 2 : index
    %c1_52 = arith.constant 1 : index
    %c0_53 = arith.constant 0 : index
    %98 = vector.load %arg9[%c2_51, %c1_52, %c0_53] : memref<14x14x32xf32, #tpu.memory_space<vmem>>, vector<8x8x32xf32>
    %99 = vector.extract_strided_slice %6 {offsets = [15, 0, 0, 0], sizes = [1, 1, 1, 32], strides = [1, 1, 1, 1]} : vector<49x1x1x32xf32> to vector<1x1x1x32xf32>
    %100 = vector.shape_cast %99 : vector<1x1x1x32xf32> to vector<1x1x32xf32>
    %101 = vector.broadcast %100 : vector<1x1x32xf32> to vector<8x8x32xf32>
    %102 = arith.mulf %98, %101 : vector<8x8x32xf32>
    %103 = arith.addf %97, %102 : vector<8x8x32xf32>
    %c2_54 = arith.constant 2 : index
    %c2_55 = arith.constant 2 : index
    %c0_56 = arith.constant 0 : index
    %104 = vector.load %arg9[%c2_54, %c2_55, %c0_56] : memref<14x14x32xf32, #tpu.memory_space<vmem>>, vector<8x8x32xf32>
    %105 = vector.extract_strided_slice %6 {offsets = [16, 0, 0, 0], sizes = [1, 1, 1, 32], strides = [1, 1, 1, 1]} : vector<49x1x1x32xf32> to vector<1x1x1x32xf32>
    %106 = vector.shape_cast %105 : vector<1x1x1x32xf32> to vector<1x1x32xf32>
    %107 = vector.broadcast %106 : vector<1x1x32xf32> to vector<8x8x32xf32>
    %108 = arith.mulf %104, %107 : vector<8x8x32xf32>
    %109 = arith.addf %103, %108 : vector<8x8x32xf32>
    %c2_57 = arith.constant 2 : index
    %c3_58 = arith.constant 3 : index
    %c0_59 = arith.constant 0 : index
    %110 = vector.load %arg9[%c2_57, %c3_58, %c0_59] : memref<14x14x32xf32, #tpu.memory_space<vmem>>, vector<8x8x32xf32>
    %111 = vector.extract_strided_slice %6 {offsets = [17, 0, 0, 0], sizes = [1, 1, 1, 32], strides = [1, 1, 1, 1]} : vector<49x1x1x32xf32> to vector<1x1x1x32xf32>
    %112 = vector.shape_cast %111 : vector<1x1x1x32xf32> to vector<1x1x32xf32>
    %113 = vector.broadcast %112 : vector<1x1x32xf32> to vector<8x8x32xf32>
    %114 = arith.mulf %110, %113 : vector<8x8x32xf32>
    %115 = arith.addf %109, %114 : vector<8x8x32xf32>
    %c2_60 = arith.constant 2 : index
    %c4_61 = arith.constant 4 : index
    %c0_62 = arith.constant 0 : index
    %116 = vector.load %arg9[%c2_60, %c4_61, %c0_62] : memref<14x14x32xf32, #tpu.memory_space<vmem>>, vector<8x8x32xf32>
    %117 = vector.extract_strided_slice %6 {offsets = [18, 0, 0, 0], sizes = [1, 1, 1, 32], strides = [1, 1, 1, 1]} : vector<49x1x1x32xf32> to vector<1x1x1x32xf32>
    %118 = vector.shape_cast %117 : vector<1x1x1x32xf32> to vector<1x1x32xf32>
    %119 = vector.broadcast %118 : vector<1x1x32xf32> to vector<8x8x32xf32>
    %120 = arith.mulf %116, %119 : vector<8x8x32xf32>
    %121 = arith.addf %115, %120 : vector<8x8x32xf32>
    %c2_63 = arith.constant 2 : index
    %c5_64 = arith.constant 5 : index
    %c0_65 = arith.constant 0 : index
    %122 = vector.load %arg9[%c2_63, %c5_64, %c0_65] : memref<14x14x32xf32, #tpu.memory_space<vmem>>, vector<8x8x32xf32>
    %123 = vector.extract_strided_slice %6 {offsets = [19, 0, 0, 0], sizes = [1, 1, 1, 32], strides = [1, 1, 1, 1]} : vector<49x1x1x32xf32> to vector<1x1x1x32xf32>
    %124 = vector.shape_cast %123 : vector<1x1x1x32xf32> to vector<1x1x32xf32>
    %125 = vector.broadcast %124 : vector<1x1x32xf32> to vector<8x8x32xf32>
    %126 = arith.mulf %122, %125 : vector<8x8x32xf32>
    %127 = arith.addf %121, %126 : vector<8x8x32xf32>
    %c2_66 = arith.constant 2 : index
    %c6_67 = arith.constant 6 : index
    %c0_68 = arith.constant 0 : index
    %128 = vector.load %arg9[%c2_66, %c6_67, %c0_68] : memref<14x14x32xf32, #tpu.memory_space<vmem>>, vector<8x8x32xf32>
    %129 = vector.extract_strided_slice %6 {offsets = [20, 0, 0, 0], sizes = [1, 1, 1, 32], strides = [1, 1, 1, 1]} : vector<49x1x1x32xf32> to vector<1x1x1x32xf32>
    %130 = vector.shape_cast %129 : vector<1x1x1x32xf32> to vector<1x1x32xf32>
    %131 = vector.broadcast %130 : vector<1x1x32xf32> to vector<8x8x32xf32>
    %132 = arith.mulf %128, %131 : vector<8x8x32xf32>
    %133 = arith.addf %127, %132 : vector<8x8x32xf32>
    %c3_69 = arith.constant 3 : index
    %c0_70 = arith.constant 0 : index
    %c0_71 = arith.constant 0 : index
    %134 = vector.load %arg9[%c3_69, %c0_70, %c0_71] : memref<14x14x32xf32, #tpu.memory_space<vmem>>, vector<8x8x32xf32>
    %135 = vector.extract_strided_slice %6 {offsets = [21, 0, 0, 0], sizes = [1, 1, 1, 32], strides = [1, 1, 1, 1]} : vector<49x1x1x32xf32> to vector<1x1x1x32xf32>
    %136 = vector.shape_cast %135 : vector<1x1x1x32xf32> to vector<1x1x32xf32>
    %137 = vector.broadcast %136 : vector<1x1x32xf32> to vector<8x8x32xf32>
    %138 = arith.mulf %134, %137 : vector<8x8x32xf32>
    %139 = arith.addf %133, %138 : vector<8x8x32xf32>
    %c3_72 = arith.constant 3 : index
    %c1_73 = arith.constant 1 : index
    %c0_74 = arith.constant 0 : index
    %140 = vector.load %arg9[%c3_72, %c1_73, %c0_74] : memref<14x14x32xf32, #tpu.memory_space<vmem>>, vector<8x8x32xf32>
    %141 = vector.extract_strided_slice %6 {offsets = [22, 0, 0, 0], sizes = [1, 1, 1, 32], strides = [1, 1, 1, 1]} : vector<49x1x1x32xf32> to vector<1x1x1x32xf32>
    %142 = vector.shape_cast %141 : vector<1x1x1x32xf32> to vector<1x1x32xf32>
    %143 = vector.broadcast %142 : vector<1x1x32xf32> to vector<8x8x32xf32>
    %144 = arith.mulf %140, %143 : vector<8x8x32xf32>
    %145 = arith.addf %139, %144 : vector<8x8x32xf32>
    %c3_75 = arith.constant 3 : index
    %c2_76 = arith.constant 2 : index
    %c0_77 = arith.constant 0 : index
    %146 = vector.load %arg9[%c3_75, %c2_76, %c0_77] : memref<14x14x32xf32, #tpu.memory_space<vmem>>, vector<8x8x32xf32>
    %147 = vector.extract_strided_slice %6 {offsets = [23, 0, 0, 0], sizes = [1, 1, 1, 32], strides = [1, 1, 1, 1]} : vector<49x1x1x32xf32> to vector<1x1x1x32xf32>
    %148 = vector.shape_cast %147 : vector<1x1x1x32xf32> to vector<1x1x32xf32>
    %149 = vector.broadcast %148 : vector<1x1x32xf32> to vector<8x8x32xf32>
    %150 = arith.mulf %146, %149 : vector<8x8x32xf32>
    %151 = arith.addf %145, %150 : vector<8x8x32xf32>
    %c3_78 = arith.constant 3 : index
    %c3_79 = arith.constant 3 : index
    %c0_80 = arith.constant 0 : index
    %152 = vector.load %arg9[%c3_78, %c3_79, %c0_80] : memref<14x14x32xf32, #tpu.memory_space<vmem>>, vector<8x8x32xf32>
    %153 = vector.extract_strided_slice %6 {offsets = [24, 0, 0, 0], sizes = [1, 1, 1, 32], strides = [1, 1, 1, 1]} : vector<49x1x1x32xf32> to vector<1x1x1x32xf32>
    %154 = vector.shape_cast %153 : vector<1x1x1x32xf32> to vector<1x1x32xf32>
    %155 = vector.broadcast %154 : vector<1x1x32xf32> to vector<8x8x32xf32>
    %156 = arith.mulf %152, %155 : vector<8x8x32xf32>
    %157 = arith.addf %151, %156 : vector<8x8x32xf32>
    %c3_81 = arith.constant 3 : index
    %c4_82 = arith.constant 4 : index
    %c0_83 = arith.constant 0 : index
    %158 = vector.load %arg9[%c3_81, %c4_82, %c0_83] : memref<14x14x32xf32, #tpu.memory_space<vmem>>, vector<8x8x32xf32>
    %159 = vector.extract_strided_slice %6 {offsets = [25, 0, 0, 0], sizes = [1, 1, 1, 32], strides = [1, 1, 1, 1]} : vector<49x1x1x32xf32> to vector<1x1x1x32xf32>
    %160 = vector.shape_cast %159 : vector<1x1x1x32xf32> to vector<1x1x32xf32>
    %161 = vector.broadcast %160 : vector<1x1x32xf32> to vector<8x8x32xf32>
    %162 = arith.mulf %158, %161 : vector<8x8x32xf32>
    %163 = arith.addf %157, %162 : vector<8x8x32xf32>
    %c3_84 = arith.constant 3 : index
    %c5_85 = arith.constant 5 : index
    %c0_86 = arith.constant 0 : index
    %164 = vector.load %arg9[%c3_84, %c5_85, %c0_86] : memref<14x14x32xf32, #tpu.memory_space<vmem>>, vector<8x8x32xf32>
    %165 = vector.extract_strided_slice %6 {offsets = [26, 0, 0, 0], sizes = [1, 1, 1, 32], strides = [1, 1, 1, 1]} : vector<49x1x1x32xf32> to vector<1x1x1x32xf32>
    %166 = vector.shape_cast %165 : vector<1x1x1x32xf32> to vector<1x1x32xf32>
    %167 = vector.broadcast %166 : vector<1x1x32xf32> to vector<8x8x32xf32>
    %168 = arith.mulf %164, %167 : vector<8x8x32xf32>
    %169 = arith.addf %163, %168 : vector<8x8x32xf32>
    %c3_87 = arith.constant 3 : index
    %c6_88 = arith.constant 6 : index
    %c0_89 = arith.constant 0 : index
    %170 = vector.load %arg9[%c3_87, %c6_88, %c0_89] : memref<14x14x32xf32, #tpu.memory_space<vmem>>, vector<8x8x32xf32>
    %171 = vector.extract_strided_slice %6 {offsets = [27, 0, 0, 0], sizes = [1, 1, 1, 32], strides = [1, 1, 1, 1]} : vector<49x1x1x32xf32> to vector<1x1x1x32xf32>
    %172 = vector.shape_cast %171 : vector<1x1x1x32xf32> to vector<1x1x32xf32>
    %173 = vector.broadcast %172 : vector<1x1x32xf32> to vector<8x8x32xf32>
    %174 = arith.mulf %170, %173 : vector<8x8x32xf32>
    %175 = arith.addf %169, %174 : vector<8x8x32xf32>
    %c4_90 = arith.constant 4 : index
    %c0_91 = arith.constant 0 : index
    %c0_92 = arith.constant 0 : index
    %176 = vector.load %arg9[%c4_90, %c0_91, %c0_92] : memref<14x14x32xf32, #tpu.memory_space<vmem>>, vector<8x8x32xf32>
    %177 = vector.extract_strided_slice %6 {offsets = [28, 0, 0, 0], sizes = [1, 1, 1, 32], strides = [1, 1, 1, 1]} : vector<49x1x1x32xf32> to vector<1x1x1x32xf32>
    %178 = vector.shape_cast %177 : vector<1x1x1x32xf32> to vector<1x1x32xf32>
    %179 = vector.broadcast %178 : vector<1x1x32xf32> to vector<8x8x32xf32>
    %180 = arith.mulf %176, %179 : vector<8x8x32xf32>
    %181 = arith.addf %175, %180 : vector<8x8x32xf32>
    %c4_93 = arith.constant 4 : index
    %c1_94 = arith.constant 1 : index
    %c0_95 = arith.constant 0 : index
    %182 = vector.load %arg9[%c4_93, %c1_94, %c0_95] : memref<14x14x32xf32, #tpu.memory_space<vmem>>, vector<8x8x32xf32>
    %183 = vector.extract_strided_slice %6 {offsets = [29, 0, 0, 0], sizes = [1, 1, 1, 32], strides = [1, 1, 1, 1]} : vector<49x1x1x32xf32> to vector<1x1x1x32xf32>
    %184 = vector.shape_cast %183 : vector<1x1x1x32xf32> to vector<1x1x32xf32>
    %185 = vector.broadcast %184 : vector<1x1x32xf32> to vector<8x8x32xf32>
    %186 = arith.mulf %182, %185 : vector<8x8x32xf32>
    %187 = arith.addf %181, %186 : vector<8x8x32xf32>
    %c4_96 = arith.constant 4 : index
    %c2_97 = arith.constant 2 : index
    %c0_98 = arith.constant 0 : index
    %188 = vector.load %arg9[%c4_96, %c2_97, %c0_98] : memref<14x14x32xf32, #tpu.memory_space<vmem>>, vector<8x8x32xf32>
    %189 = vector.extract_strided_slice %6 {offsets = [30, 0, 0, 0], sizes = [1, 1, 1, 32], strides = [1, 1, 1, 1]} : vector<49x1x1x32xf32> to vector<1x1x1x32xf32>
    %190 = vector.shape_cast %189 : vector<1x1x1x32xf32> to vector<1x1x32xf32>
    %191 = vector.broadcast %190 : vector<1x1x32xf32> to vector<8x8x32xf32>
    %192 = arith.mulf %188, %191 : vector<8x8x32xf32>
    %193 = arith.addf %187, %192 : vector<8x8x32xf32>
    %c4_99 = arith.constant 4 : index
    %c3_100 = arith.constant 3 : index
    %c0_101 = arith.constant 0 : index
    %194 = vector.load %arg9[%c4_99, %c3_100, %c0_101] : memref<14x14x32xf32, #tpu.memory_space<vmem>>, vector<8x8x32xf32>
    %195 = vector.extract_strided_slice %6 {offsets = [31, 0, 0, 0], sizes = [1, 1, 1, 32], strides = [1, 1, 1, 1]} : vector<49x1x1x32xf32> to vector<1x1x1x32xf32>
    %196 = vector.shape_cast %195 : vector<1x1x1x32xf32> to vector<1x1x32xf32>
    %197 = vector.broadcast %196 : vector<1x1x32xf32> to vector<8x8x32xf32>
    %198 = arith.mulf %194, %197 : vector<8x8x32xf32>
    %199 = arith.addf %193, %198 : vector<8x8x32xf32>
    %c4_102 = arith.constant 4 : index
    %c4_103 = arith.constant 4 : index
    %c0_104 = arith.constant 0 : index
    %200 = vector.load %arg9[%c4_102, %c4_103, %c0_104] : memref<14x14x32xf32, #tpu.memory_space<vmem>>, vector<8x8x32xf32>
    %201 = vector.extract_strided_slice %6 {offsets = [32, 0, 0, 0], sizes = [1, 1, 1, 32], strides = [1, 1, 1, 1]} : vector<49x1x1x32xf32> to vector<1x1x1x32xf32>
    %202 = vector.shape_cast %201 : vector<1x1x1x32xf32> to vector<1x1x32xf32>
    %203 = vector.broadcast %202 : vector<1x1x32xf32> to vector<8x8x32xf32>
    %204 = arith.mulf %200, %203 : vector<8x8x32xf32>
    %205 = arith.addf %199, %204 : vector<8x8x32xf32>
    %c4_105 = arith.constant 4 : index
    %c5_106 = arith.constant 5 : index
    %c0_107 = arith.constant 0 : index
    %206 = vector.load %arg9[%c4_105, %c5_106, %c0_107] : memref<14x14x32xf32, #tpu.memory_space<vmem>>, vector<8x8x32xf32>
    %207 = vector.extract_strided_slice %6 {offsets = [33, 0, 0, 0], sizes = [1, 1, 1, 32], strides = [1, 1, 1, 1]} : vector<49x1x1x32xf32> to vector<1x1x1x32xf32>
    %208 = vector.shape_cast %207 : vector<1x1x1x32xf32> to vector<1x1x32xf32>
    %209 = vector.broadcast %208 : vector<1x1x32xf32> to vector<8x8x32xf32>
    %210 = arith.mulf %206, %209 : vector<8x8x32xf32>
    %211 = arith.addf %205, %210 : vector<8x8x32xf32>
    %c4_108 = arith.constant 4 : index
    %c6_109 = arith.constant 6 : index
    %c0_110 = arith.constant 0 : index
    %212 = vector.load %arg9[%c4_108, %c6_109, %c0_110] : memref<14x14x32xf32, #tpu.memory_space<vmem>>, vector<8x8x32xf32>
    %213 = vector.extract_strided_slice %6 {offsets = [34, 0, 0, 0], sizes = [1, 1, 1, 32], strides = [1, 1, 1, 1]} : vector<49x1x1x32xf32> to vector<1x1x1x32xf32>
    %214 = vector.shape_cast %213 : vector<1x1x1x32xf32> to vector<1x1x32xf32>
    %215 = vector.broadcast %214 : vector<1x1x32xf32> to vector<8x8x32xf32>
    %216 = arith.mulf %212, %215 : vector<8x8x32xf32>
    %217 = arith.addf %211, %216 : vector<8x8x32xf32>
    %c5_111 = arith.constant 5 : index
    %c0_112 = arith.constant 0 : index
    %c0_113 = arith.constant 0 : index
    %218 = vector.load %arg9[%c5_111, %c0_112, %c0_113] : memref<14x14x32xf32, #tpu.memory_space<vmem>>, vector<8x8x32xf32>
    %219 = vector.extract_strided_slice %6 {offsets = [35, 0, 0, 0], sizes = [1, 1, 1, 32], strides = [1, 1, 1, 1]} : vector<49x1x1x32xf32> to vector<1x1x1x32xf32>
    %220 = vector.shape_cast %219 : vector<1x1x1x32xf32> to vector<1x1x32xf32>
    %221 = vector.broadcast %220 : vector<1x1x32xf32> to vector<8x8x32xf32>
    %222 = arith.mulf %218, %221 : vector<8x8x32xf32>
    %223 = arith.addf %217, %222 : vector<8x8x32xf32>
    %c5_114 = arith.constant 5 : index
    %c1_115 = arith.constant 1 : index
    %c0_116 = arith.constant 0 : index
    %224 = vector.load %arg9[%c5_114, %c1_115, %c0_116] : memref<14x14x32xf32, #tpu.memory_space<vmem>>, vector<8x8x32xf32>
    %225 = vector.extract_strided_slice %6 {offsets = [36, 0, 0, 0], sizes = [1, 1, 1, 32], strides = [1, 1, 1, 1]} : vector<49x1x1x32xf32> to vector<1x1x1x32xf32>
    %226 = vector.shape_cast %225 : vector<1x1x1x32xf32> to vector<1x1x32xf32>
    %227 = vector.broadcast %226 : vector<1x1x32xf32> to vector<8x8x32xf32>
    %228 = arith.mulf %224, %227 : vector<8x8x32xf32>
    %229 = arith.addf %223, %228 : vector<8x8x32xf32>
    %c5_117 = arith.constant 5 : index
    %c2_118 = arith.constant 2 : index
    %c0_119 = arith.constant 0 : index
    %230 = vector.load %arg9[%c5_117, %c2_118, %c0_119] : memref<14x14x32xf32, #tpu.memory_space<vmem>>, vector<8x8x32xf32>
    %231 = vector.extract_strided_slice %6 {offsets = [37, 0, 0, 0], sizes = [1, 1, 1, 32], strides = [1, 1, 1, 1]} : vector<49x1x1x32xf32> to vector<1x1x1x32xf32>
    %232 = vector.shape_cast %231 : vector<1x1x1x32xf32> to vector<1x1x32xf32>
    %233 = vector.broadcast %232 : vector<1x1x32xf32> to vector<8x8x32xf32>
    %234 = arith.mulf %230, %233 : vector<8x8x32xf32>
    %235 = arith.addf %229, %234 : vector<8x8x32xf32>
    %c5_120 = arith.constant 5 : index
    %c3_121 = arith.constant 3 : index
    %c0_122 = arith.constant 0 : index
    %236 = vector.load %arg9[%c5_120, %c3_121, %c0_122] : memref<14x14x32xf32, #tpu.memory_space<vmem>>, vector<8x8x32xf32>
    %237 = vector.extract_strided_slice %6 {offsets = [38, 0, 0, 0], sizes = [1, 1, 1, 32], strides = [1, 1, 1, 1]} : vector<49x1x1x32xf32> to vector<1x1x1x32xf32>
    %238 = vector.shape_cast %237 : vector<1x1x1x32xf32> to vector<1x1x32xf32>
    %239 = vector.broadcast %238 : vector<1x1x32xf32> to vector<8x8x32xf32>
    %240 = arith.mulf %236, %239 : vector<8x8x32xf32>
    %241 = arith.addf %235, %240 : vector<8x8x32xf32>
    %c5_123 = arith.constant 5 : index
    %c4_124 = arith.constant 4 : index
    %c0_125 = arith.constant 0 : index
    %242 = vector.load %arg9[%c5_123, %c4_124, %c0_125] : memref<14x14x32xf32, #tpu.memory_space<vmem>>, vector<8x8x32xf32>
    %243 = vector.extract_strided_slice %6 {offsets = [39, 0, 0, 0], sizes = [1, 1, 1, 32], strides = [1, 1, 1, 1]} : vector<49x1x1x32xf32> to vector<1x1x1x32xf32>
    %244 = vector.shape_cast %243 : vector<1x1x1x32xf32> to vector<1x1x32xf32>
    %245 = vector.broadcast %244 : vector<1x1x32xf32> to vector<8x8x32xf32>
    %246 = arith.mulf %242, %245 : vector<8x8x32xf32>
    %247 = arith.addf %241, %246 : vector<8x8x32xf32>
    %c5_126 = arith.constant 5 : index
    %c5_127 = arith.constant 5 : index
    %c0_128 = arith.constant 0 : index
    %248 = vector.load %arg9[%c5_126, %c5_127, %c0_128] : memref<14x14x32xf32, #tpu.memory_space<vmem>>, vector<8x8x32xf32>
    %249 = vector.extract_strided_slice %6 {offsets = [40, 0, 0, 0], sizes = [1, 1, 1, 32], strides = [1, 1, 1, 1]} : vector<49x1x1x32xf32> to vector<1x1x1x32xf32>
    %250 = vector.shape_cast %249 : vector<1x1x1x32xf32> to vector<1x1x32xf32>
    %251 = vector.broadcast %250 : vector<1x1x32xf32> to vector<8x8x32xf32>
    %252 = arith.mulf %248, %251 : vector<8x8x32xf32>
    %253 = arith.addf %247, %252 : vector<8x8x32xf32>
    %c5_129 = arith.constant 5 : index
    %c6_130 = arith.constant 6 : index
    %c0_131 = arith.constant 0 : index
    %254 = vector.load %arg9[%c5_129, %c6_130, %c0_131] : memref<14x14x32xf32, #tpu.memory_space<vmem>>, vector<8x8x32xf32>
    %255 = vector.extract_strided_slice %6 {offsets = [41, 0, 0, 0], sizes = [1, 1, 1, 32], strides = [1, 1, 1, 1]} : vector<49x1x1x32xf32> to vector<1x1x1x32xf32>
    %256 = vector.shape_cast %255 : vector<1x1x1x32xf32> to vector<1x1x32xf32>
    %257 = vector.broadcast %256 : vector<1x1x32xf32> to vector<8x8x32xf32>
    %258 = arith.mulf %254, %257 : vector<8x8x32xf32>
    %259 = arith.addf %253, %258 : vector<8x8x32xf32>
    %c6_132 = arith.constant 6 : index
    %c0_133 = arith.constant 0 : index
    %c0_134 = arith.constant 0 : index
    %260 = vector.load %arg9[%c6_132, %c0_133, %c0_134] : memref<14x14x32xf32, #tpu.memory_space<vmem>>, vector<8x8x32xf32>
    %261 = vector.extract_strided_slice %6 {offsets = [42, 0, 0, 0], sizes = [1, 1, 1, 32], strides = [1, 1, 1, 1]} : vector<49x1x1x32xf32> to vector<1x1x1x32xf32>
    %262 = vector.shape_cast %261 : vector<1x1x1x32xf32> to vector<1x1x32xf32>
    %263 = vector.broadcast %262 : vector<1x1x32xf32> to vector<8x8x32xf32>
    %264 = arith.mulf %260, %263 : vector<8x8x32xf32>
    %265 = arith.addf %259, %264 : vector<8x8x32xf32>
    %c6_135 = arith.constant 6 : index
    %c1_136 = arith.constant 1 : index
    %c0_137 = arith.constant 0 : index
    %266 = vector.load %arg9[%c6_135, %c1_136, %c0_137] : memref<14x14x32xf32, #tpu.memory_space<vmem>>, vector<8x8x32xf32>
    %267 = vector.extract_strided_slice %6 {offsets = [43, 0, 0, 0], sizes = [1, 1, 1, 32], strides = [1, 1, 1, 1]} : vector<49x1x1x32xf32> to vector<1x1x1x32xf32>
    %268 = vector.shape_cast %267 : vector<1x1x1x32xf32> to vector<1x1x32xf32>
    %269 = vector.broadcast %268 : vector<1x1x32xf32> to vector<8x8x32xf32>
    %270 = arith.mulf %266, %269 : vector<8x8x32xf32>
    %271 = arith.addf %265, %270 : vector<8x8x32xf32>
    %c6_138 = arith.constant 6 : index
    %c2_139 = arith.constant 2 : index
    %c0_140 = arith.constant 0 : index
    %272 = vector.load %arg9[%c6_138, %c2_139, %c0_140] : memref<14x14x32xf32, #tpu.memory_space<vmem>>, vector<8x8x32xf32>
    %273 = vector.extract_strided_slice %6 {offsets = [44, 0, 0, 0], sizes = [1, 1, 1, 32], strides = [1, 1, 1, 1]} : vector<49x1x1x32xf32> to vector<1x1x1x32xf32>
    %274 = vector.shape_cast %273 : vector<1x1x1x32xf32> to vector<1x1x32xf32>
    %275 = vector.broadcast %274 : vector<1x1x32xf32> to vector<8x8x32xf32>
    %276 = arith.mulf %272, %275 : vector<8x8x32xf32>
    %277 = arith.addf %271, %276 : vector<8x8x32xf32>
    %c6_141 = arith.constant 6 : index
    %c3_142 = arith.constant 3 : index
    %c0_143 = arith.constant 0 : index
    %278 = vector.load %arg9[%c6_141, %c3_142, %c0_143] : memref<14x14x32xf32, #tpu.memory_space<vmem>>, vector<8x8x32xf32>
    %279 = vector.extract_strided_slice %6 {offsets = [45, 0, 0, 0], sizes = [1, 1, 1, 32], strides = [1, 1, 1, 1]} : vector<49x1x1x32xf32> to vector<1x1x1x32xf32>
    %280 = vector.shape_cast %279 : vector<1x1x1x32xf32> to vector<1x1x32xf32>
    %281 = vector.broadcast %280 : vector<1x1x32xf32> to vector<8x8x32xf32>
    %282 = arith.mulf %278, %281 : vector<8x8x32xf32>
    %283 = arith.addf %277, %282 : vector<8x8x32xf32>
    %c6_144 = arith.constant 6 : index
    %c4_145 = arith.constant 4 : index
    %c0_146 = arith.constant 0 : index
    %284 = vector.load %arg9[%c6_144, %c4_145, %c0_146] : memref<14x14x32xf32, #tpu.memory_space<vmem>>, vector<8x8x32xf32>
    %285 = vector.extract_strided_slice %6 {offsets = [46, 0, 0, 0], sizes = [1, 1, 1, 32], strides = [1, 1, 1, 1]} : vector<49x1x1x32xf32> to vector<1x1x1x32xf32>
    %286 = vector.shape_cast %285 : vector<1x1x1x32xf32> to vector<1x1x32xf32>
    %287 = vector.broadcast %286 : vector<1x1x32xf32> to vector<8x8x32xf32>
    %288 = arith.mulf %284, %287 : vector<8x8x32xf32>
    %289 = arith.addf %283, %288 : vector<8x8x32xf32>
    %c6_147 = arith.constant 6 : index
    %c5_148 = arith.constant 5 : index
    %c0_149 = arith.constant 0 : index
    %290 = vector.load %arg9[%c6_147, %c5_148, %c0_149] : memref<14x14x32xf32, #tpu.memory_space<vmem>>, vector<8x8x32xf32>
    %291 = vector.extract_strided_slice %6 {offsets = [47, 0, 0, 0], sizes = [1, 1, 1, 32], strides = [1, 1, 1, 1]} : vector<49x1x1x32xf32> to vector<1x1x1x32xf32>
    %292 = vector.shape_cast %291 : vector<1x1x1x32xf32> to vector<1x1x32xf32>
    %293 = vector.broadcast %292 : vector<1x1x32xf32> to vector<8x8x32xf32>
    %294 = arith.mulf %290, %293 : vector<8x8x32xf32>
    %295 = arith.addf %289, %294 : vector<8x8x32xf32>
    %c6_150 = arith.constant 6 : index
    %c6_151 = arith.constant 6 : index
    %c0_152 = arith.constant 0 : index
    %296 = vector.load %arg9[%c6_150, %c6_151, %c0_152] : memref<14x14x32xf32, #tpu.memory_space<vmem>>, vector<8x8x32xf32>
    %297 = vector.extract_strided_slice %6 {offsets = [48, 0, 0, 0], sizes = [1, 1, 1, 32], strides = [1, 1, 1, 1]} : vector<49x1x1x32xf32> to vector<1x1x1x32xf32>
    %298 = vector.shape_cast %297 : vector<1x1x1x32xf32> to vector<1x1x32xf32>
    %299 = vector.broadcast %298 : vector<1x1x32xf32> to vector<8x8x32xf32>
    %300 = arith.mulf %296, %299 : vector<8x8x32xf32>
    %301 = arith.addf %295, %300 : vector<8x8x32xf32>
    %cst_153 = arith.constant dense<0.000000e+00> : vector<8x8xf32>
    %302 = vector.multi_reduction <add>, %301, %cst_153 [2] : vector<8x8x32xf32> to vector<8x8xf32>
    %cst_154 = arith.constant 0.000000e+00 : f32
    %303 = vector.broadcast %cst_154 : f32 to vector<8x8xf32>
    %304 = arith.subf %303, %302 : vector<8x8xf32>
    %305 = math.exp %304 : vector<8x8xf32>
    %cst_155 = arith.constant 1.000000e+00 : f32
    %306 = vector.broadcast %cst_155 : f32 to vector<8x8xf32>
    %307 = arith.addf %306, %305 : vector<8x8xf32>
    %cst_156 = arith.constant 1.000000e+00 : f32
    %308 = vector.broadcast %cst_156 : f32 to vector<8x8xf32>
    %309 = arith.divf %308, %307 : vector<8x8xf32>
    %310 = vector.shape_cast %309 : vector<8x8xf32> to vector<1x1x64xf32>
    %c0_157 = arith.constant 0 : index
    %c0_158 = arith.constant 0 : index
    %c0_159 = arith.constant 0 : index
    %311 = vector.load %arg8[%c0_157, %c0_158, %c0_159] : memref<1x1x64xf32, #tpu.memory_space<vmem>>, vector<1x1x64xf32>
    tpu.vector_store %arg8[%c0_157, %c0_158, %c0_159], %310 {strides = array<i32>} : memref<1x1x64xf32, #tpu.memory_space<vmem>>, vector<1x1x64xf32>,
    %c0_160 = arith.constant 0 : index
    %c0_161 = arith.constant 0 : index
    %c0_162 = arith.constant 0 : index
    %c0_163 = arith.constant 0 : index
    %312 = vector.load %arg2[%c0_160, %c0_161, %c0_162, %c0_163] : memref<1x8x8x32xbf16, #tpu.memory_space<vmem>>, vector<1x8x8x32xbf16>
    %313 = vector.shape_cast %312 : vector<1x8x8x32xbf16> to vector<8x8x32xbf16>
    %314 = arith.extf %313 : vector<8x8x32xbf16> to vector<8x8x32xf32>
    %315 = vector.shape_cast %309 : vector<8x8xf32> to vector<8x8x1xf32>
    %316 = vector.broadcast %315 : vector<8x8x1xf32> to vector<8x8x32xf32>
    %317 = arith.mulf %314, %316 : vector<8x8x32xf32>
    %c0_164 = arith.constant 0 : index
    %c0_165 = arith.constant 0 : index
    %c0_166 = arith.constant 0 : index
    %318 = vector.load %arg3[%c0_164, %c0_165, %c0_166] : memref<1x1x32xf32, #tpu.memory_space<vmem>>, vector<1x1x32xf32>
    %319 = vector.shape_cast %318 : vector<1x1x32xf32> to vector<1x32xf32>
    %320 = vector.shape_cast %319 : vector<1x32xf32> to vector<1x1x32xf32>
    %321 = vector.broadcast %320 : vector<1x1x32xf32> to vector<8x8x32xf32>
    %322 = arith.mulf %317, %321 : vector<8x8x32xf32>
    %cst_167 = arith.constant 0.000000e+00 : bf16
    %323 = vector.broadcast %cst_167 : bf16 to vector<10x10x32xbf16>
    %c0_168 = arith.constant 0 : index
    %c0_169 = arith.constant 0 : index
    %c0_170 = arith.constant 0 : index
    %324 = vector.load %arg10[%c0_168, %c0_169, %c0_170] : memref<10x10x32xbf16, #tpu.memory_space<vmem>>, vector<10x10x32xbf16>
    tpu.vector_store %arg10[%c0_168, %c0_169, %c0_170], %323 {strides = array<i32>} : memref<10x10x32xbf16, #tpu.memory_space<vmem>>, vector<10x10x32xbf16>,
    %325 = arith.truncf %322 : vector<8x8x32xf32> to vector<8x8x32xbf16>
    %c1_171 = arith.constant 1 : index
    %c1_172 = arith.constant 1 : index
    %c0_173 = arith.constant 0 : index
    %326 = vector.load %arg10[%c1_171, %c1_172, %c0_173] : memref<10x10x32xbf16, #tpu.memory_space<vmem>>, vector<8x8x32xbf16>
    tpu.vector_store %arg10[%c1_171, %c1_172, %c0_173], %325 {strides = array<i32>} : memref<10x10x32xbf16, #tpu.memory_space<vmem>>, vector<8x8x32xbf16>,
    %c0_174 = arith.constant 0 : index
    %c0_175 = arith.constant 0 : index
    %c0_176 = arith.constant 0 : index
    %327 = vector.load %arg10[%c0_174, %c0_175, %c0_176] : memref<10x10x32xbf16, #tpu.memory_space<vmem>>, vector<8x8x32xbf16>
    %328 = vector.shape_cast %327 : vector<8x8x32xbf16> to vector<64x32xbf16>
    %c0_177 = arith.constant 0 : index
    %c1_178 = arith.constant 1 : index
    %c0_179 = arith.constant 0 : index
    %329 = vector.load %arg10[%c0_177, %c1_178, %c0_179] : memref<10x10x32xbf16, #tpu.memory_space<vmem>>, vector<8x8x32xbf16>
    %330 = vector.shape_cast %329 : vector<8x8x32xbf16> to vector<64x32xbf16>
    %c0_180 = arith.constant 0 : index
    %c2_181 = arith.constant 2 : index
    %c0_182 = arith.constant 0 : index
    %331 = vector.load %arg10[%c0_180, %c2_181, %c0_182] : memref<10x10x32xbf16, #tpu.memory_space<vmem>>, vector<8x8x32xbf16>
    %332 = vector.shape_cast %331 : vector<8x8x32xbf16> to vector<64x32xbf16>
    %c1_183 = arith.constant 1 : index
    %c0_184 = arith.constant 0 : index
    %c0_185 = arith.constant 0 : index
    %333 = vector.load %arg10[%c1_183, %c0_184, %c0_185] : memref<10x10x32xbf16, #tpu.memory_space<vmem>>, vector<8x8x32xbf16>
    %334 = vector.shape_cast %333 : vector<8x8x32xbf16> to vector<64x32xbf16>
    %c1_186 = arith.constant 1 : index
    %c1_187 = arith.constant 1 : index
    %c0_188 = arith.constant 0 : index
    %335 = vector.load %arg10[%c1_186, %c1_187, %c0_188] : memref<10x10x32xbf16, #tpu.memory_space<vmem>>, vector<8x8x32xbf16>
    %336 = vector.shape_cast %335 : vector<8x8x32xbf16> to vector<64x32xbf16>
    %c1_189 = arith.constant 1 : index
    %c2_190 = arith.constant 2 : index
    %c0_191 = arith.constant 0 : index
    %337 = vector.load %arg10[%c1_189, %c2_190, %c0_191] : memref<10x10x32xbf16, #tpu.memory_space<vmem>>, vector<8x8x32xbf16>
    %338 = vector.shape_cast %337 : vector<8x8x32xbf16> to vector<64x32xbf16>
    %c2_192 = arith.constant 2 : index
    %c0_193 = arith.constant 0 : index
    %c0_194 = arith.constant 0 : index
    %339 = vector.load %arg10[%c2_192, %c0_193, %c0_194] : memref<10x10x32xbf16, #tpu.memory_space<vmem>>, vector<8x8x32xbf16>
    %340 = vector.shape_cast %339 : vector<8x8x32xbf16> to vector<64x32xbf16>
    %c2_195 = arith.constant 2 : index
    %c1_196 = arith.constant 1 : index
    %c0_197 = arith.constant 0 : index
    %341 = vector.load %arg10[%c2_195, %c1_196, %c0_197] : memref<10x10x32xbf16, #tpu.memory_space<vmem>>, vector<8x8x32xbf16>
    %342 = vector.shape_cast %341 : vector<8x8x32xbf16> to vector<64x32xbf16>
    %c2_198 = arith.constant 2 : index
    %c2_199 = arith.constant 2 : index
    %c0_200 = arith.constant 0 : index
    %343 = vector.load %arg10[%c2_198, %c2_199, %c0_200] : memref<10x10x32xbf16, #tpu.memory_space<vmem>>, vector<8x8x32xbf16>
    %344 = vector.shape_cast %343 : vector<8x8x32xbf16> to vector<64x32xbf16>
    %345 = tpu.concatenate %328, %330, %332, %334, %336, %338, %340, %342, %344 in 1 : vector<64x32xbf16>, vector<64x32xbf16>, vector<64x32xbf16>, vector<64x32xbf16>, vector<64x32xbf16>, vector<64x32xbf16>, vector<64x32xbf16>, vector<64x32xbf16>, vector<64x32xbf16> -> vector<64x288xbf16>
    %c0_201 = arith.constant 0 : index
    %c0_202 = arith.constant 0 : index
    %346 = vector.load %arg6[%c0_201, %c0_202] : memref<288x32xbf16, #tpu.memory_space<vmem>>, vector<288x32xbf16>
    %cst_203 = arith.constant dense<0.000000e+00> : vector<64x32xf32>
    %347 = tpu.matmul %345, %346, %cst_203 {dimension_numbers = #tpu.dot_dimension_numbers<[1], [0], [0], [1], [0, 0, 1, 1], [], []>} : vector<64x288xbf16>, vector<288x32xbf16>, vector<64x32xf32> -> vector<64x32xf32>
    %c0_204 = arith.constant 0 : index
    %c0_205 = arith.constant 0 : index
    %c0_206 = arith.constant 0 : index
    %c0_207 = arith.constant 0 : index
    %348 = vector.load %arg4[%c0_204, %c0_205, %c0_206, %c0_207] : memref<1x8x8x32xf32, #tpu.memory_space<vmem>>, vector<1x8x8x32xf32>
    %349 = vector.shape_cast %348 : vector<1x8x8x32xf32> to vector<64x32xf32>
    %350 = arith.addf %347, %349 : vector<64x32xf32>
    %351 = vector.shape_cast %350 : vector<64x32xf32> to vector<1x8x8x32xf32>
    %c0_208 = arith.constant 0 : index
    %c0_209 = arith.constant 0 : index
    %c0_210 = arith.constant 0 : index
    %c0_211 = arith.constant 0 : index
    %352 = vector.load %arg7[%c0_208, %c0_209, %c0_210, %c0_211] : memref<1x8x8x32xf32, #tpu.memory_space<vmem>>, vector<1x8x8x32xf32>
    tpu.vector_store %arg7[%c0_208, %c0_209, %c0_210, %c0_211], %351 {strides = array<i32>} : memref<1x8x8x32xf32, #tpu.memory_space<vmem>>, vector<1x8x8x32xf32>,
    return
  }
  func.func @transform_0(%arg0: i32) -> (i32, i32, i32, i32) {
    %c0_i32 = arith.constant 0 : i32
    %c0_i32_0 = arith.constant 0 : i32
    %c0_i32_1 = arith.constant 0 : i32
    %c0_i32_2 = arith.constant 0 : i32
    return %arg0, %c0_i32, %c0_i32_0, %c0_i32_1 : i32, i32, i32, i32
  }
  func.func @transform_1(%arg0: i32) -> (i32, i32, i32, i32) {
    %c0_i32 = arith.constant 0 : i32
    %c0_i32_0 = arith.constant 0 : i32
    %c0_i32_1 = arith.constant 0 : i32
    %c0_i32_2 = arith.constant 0 : i32
    return %arg0, %c0_i32, %c0_i32_0, %c0_i32_1 : i32, i32, i32, i32
  }
  func.func @transform_2(%arg0: i32) -> (i32, i32, i32) {
    %c0_i32 = arith.constant 0 : i32
    %c0_i32_0 = arith.constant 0 : i32
    %c0_i32_1 = arith.constant 0 : i32
    return %arg0, %c0_i32, %c0_i32_0 : i32, i32, i32
  }
  func.func @transform_3(%arg0: i32) -> (i32, i32, i32, i32) {
    %c0_i32 = arith.constant 0 : i32
    %c0_i32_0 = arith.constant 0 : i32
    %c0_i32_1 = arith.constant 0 : i32
    %c0_i32_2 = arith.constant 0 : i32
    return %arg0, %c0_i32, %c0_i32_0, %c0_i32_1 : i32, i32, i32, i32
  }
  func.func @transform_4(%arg0: i32) -> (i32, i32) {
    %c0_i32 = arith.constant 0 : i32
    %c0_i32_0 = arith.constant 0 : i32
    %c0_i32_1 = arith.constant 0 : i32
    return %c0_i32, %c0_i32_0 : i32, i32
  }
  func.func @transform_5(%arg0: i32) -> (i32, i32) {
    %c0_i32 = arith.constant 0 : i32
    %c0_i32_0 = arith.constant 0 : i32
    %c0_i32_1 = arith.constant 0 : i32
    return %c0_i32, %c0_i32_0 : i32, i32
  }
  func.func @transform_6(%arg0: i32) -> (i32, i32, i32, i32) {
    %c0_i32 = arith.constant 0 : i32
    %c0_i32_0 = arith.constant 0 : i32
    %c0_i32_1 = arith.constant 0 : i32
    %c0_i32_2 = arith.constant 0 : i32
    return %arg0, %c0_i32, %c0_i32_0, %c0_i32_1 : i32, i32, i32, i32
  }
  func.func @transform_7(%arg0: i32) -> (i32, i32, i32) {
    %c0_i32 = arith.constant 0 : i32
    %c0_i32_0 = arith.constant 0 : i32
    %c0_i32_1 = arith.constant 0 : i32
    return %arg0, %c0_i32, %c0_i32_0 : i32, i32, i32
  }
}

module attributes {stable_mosaic.version = 11 : i64} {
  func.func @kernel(%arg0: i32, %arg1: memref<1x64x32xf32, #tpu.memory_space<vmem>>, %arg2: memref<1x64x32xf32, #tpu.memory_space<vmem>>, %arg3: memref<1x64x32xf32, #tpu.memory_space<vmem>>, %arg4: memref<32x32xbf16, #tpu.memory_space<vmem>>, %arg5: memref<1x32xf32, #tpu.memory_space<vmem>>, %arg6: memref<32x32xf32, #tpu.memory_space<vmem>>, %arg7: memref<1x64x32xf32, #tpu.memory_space<vmem>>) attributes {dimension_semantics = [#tpu.dimension_semantics<parallel>], iteration_bounds = array<i64: 2>, scalar_prefetch = 0 : i64, scratch_operands = 0 : i64, tpu.core_type = #tpu.core_type<tc>, window_params = [{transform_indices = @transform_0, window_bounds = array<i64: 1, 64, 32>}, {transform_indices = @transform_1, window_bounds = array<i64: 1, 64, 32>}, {transform_indices = @transform_2, window_bounds = array<i64: 1, 64, 32>}, {pipeline_mode = #tpu.pipeline_mode<synchronous>, transform_indices = @transform_3, window_bounds = array<i64: 32, 32>}, {pipeline_mode = #tpu.pipeline_mode<synchronous>, transform_indices = @transform_4, window_bounds = array<i64: 1, 32>}, {pipeline_mode = #tpu.pipeline_mode<synchronous>, transform_indices = @transform_5, window_bounds = array<i64: 32, 32>}, {transform_indices = @transform_6, window_bounds = array<i64: 1, 64, 32>}]} {
    %c0 = arith.constant 0 : index
    %c0_0 = arith.constant 0 : index
    %c0_1 = arith.constant 0 : index
    %0 = vector.load %arg1[%c0, %c0_0, %c0_1] : memref<1x64x32xf32, #tpu.memory_space<vmem>>, vector<1x64x32xf32>
    %1 = vector.shape_cast %0 : vector<1x64x32xf32> to vector<64x32xf32>
    %c0_2 = arith.constant 0 : index
    %c0_3 = arith.constant 0 : index
    %c0_4 = arith.constant 0 : index
    %2 = vector.load %arg2[%c0_2, %c0_3, %c0_4] : memref<1x64x32xf32, #tpu.memory_space<vmem>>, vector<1x64x32xf32>
    %3 = vector.shape_cast %2 : vector<1x64x32xf32> to vector<64x32xf32>
    %4 = arith.mulf %1, %1 : vector<64x32xf32>
    %cst = arith.constant dense<0.000000e+00> : vector<32xf32>
    %5 = vector.multi_reduction <add>, %4, %cst [0] : vector<64x32xf32> to vector<32xf32>
    %6 = vector.shape_cast %5 : vector<32xf32> to vector<1x32xf32>
    %cst_5 = arith.constant 1.000000e-24 : f32
    %7 = vector.broadcast %cst_5 : f32 to vector<1x32xf32>
    %8 = arith.maximumf %6, %7 : vector<1x32xf32>
    %9 = math.rsqrt %8 : vector<1x32xf32>
    %10 = vector.broadcast %9 : vector<1x32xf32> to vector<64x32xf32>
    %11 = arith.mulf %1, %10 : vector<64x32xf32>
    %12 = arith.truncf %11 : vector<64x32xf32> to vector<64x32xbf16>
    %13 = arith.mulf %3, %3 : vector<64x32xf32>
    %cst_6 = arith.constant dense<0.000000e+00> : vector<32xf32>
    %14 = vector.multi_reduction <add>, %13, %cst_6 [0] : vector<64x32xf32> to vector<32xf32>
    %15 = vector.shape_cast %14 : vector<32xf32> to vector<1x32xf32>
    %cst_7 = arith.constant 1.000000e-24 : f32
    %16 = vector.broadcast %cst_7 : f32 to vector<1x32xf32>
    %17 = arith.maximumf %15, %16 : vector<1x32xf32>
    %18 = math.rsqrt %17 : vector<1x32xf32>
    %19 = vector.broadcast %18 : vector<1x32xf32> to vector<64x32xf32>
    %20 = arith.mulf %3, %19 : vector<64x32xf32>
    %21 = arith.truncf %20 : vector<64x32xf32> to vector<64x32xbf16>
    %cst_8 = arith.constant dense<0.000000e+00> : vector<32x32xf32>
    %22 = tpu.matmul %21, %12, %cst_8 {dimension_numbers = #tpu.dot_dimension_numbers<[0], [0], [1], [1], [0, 1, 1, 1], [], []>} : vector<64x32xbf16>, vector<64x32xbf16>, vector<32x32xf32> -> vector<32x32xf32>
    %c0_9 = arith.constant 0 : index
    %c0_10 = arith.constant 0 : index
    %23 = vector.load %arg6[%c0_9, %c0_10] : memref<32x32xf32, #tpu.memory_space<vmem>>, vector<32x32xf32>
    %24 = arith.addf %22, %23 : vector<32x32xf32>
    %cst_11 = arith.constant dense<0xFF800000> : vector<32xf32>
    %25 = vector.multi_reduction <maximumf>, %24, %cst_11 [1] : vector<32x32xf32> to vector<32xf32>
    %26 = vector.shape_cast %25 : vector<32xf32> to vector<32x1xf32>
    %27 = vector.broadcast %26 : vector<32x1xf32> to vector<32x32xf32>
    %28 = arith.subf %24, %27 : vector<32x32xf32>
    %29 = math.exp %28 : vector<32x32xf32>
    %cst_12 = arith.constant dense<0.000000e+00> : vector<32xf32>
    %30 = vector.multi_reduction <add>, %29, %cst_12 [1] : vector<32x32xf32> to vector<32xf32>
    %31 = vector.shape_cast %30 : vector<32xf32> to vector<32x1xf32>
    %32 = tpu.reciprocal %31 {approx = true} : vector<32x1xf32> -> vector<32x1xf32>
    %33 = vector.broadcast %32 : vector<32x1xf32> to vector<32x32xf32>
    %34 = arith.mulf %29, %33 : vector<32x32xf32>
    %35 = arith.truncf %34 : vector<32x32xf32> to vector<32x32xbf16>
    %c0_13 = arith.constant 0 : index
    %c0_14 = arith.constant 0 : index
    %c0_15 = arith.constant 0 : index
    %36 = vector.load %arg3[%c0_13, %c0_14, %c0_15] : memref<1x64x32xf32, #tpu.memory_space<vmem>>, vector<1x64x32xf32>
    %37 = vector.shape_cast %36 : vector<1x64x32xf32> to vector<64x32xf32>
    %38 = arith.truncf %37 : vector<64x32xf32> to vector<64x32xbf16>
    %cst_16 = arith.constant dense<0.000000e+00> : vector<64x32xf32>
    %39 = tpu.matmul %38, %35, %cst_16 {dimension_numbers = #tpu.dot_dimension_numbers<[1], [1], [0], [0], [0, 0, 1, 0], [], []>} : vector<64x32xbf16>, vector<32x32xbf16>, vector<64x32xf32> -> vector<64x32xf32>
    %40 = arith.truncf %39 : vector<64x32xf32> to vector<64x32xbf16>
    %c0_17 = arith.constant 0 : index
    %c0_18 = arith.constant 0 : index
    %41 = vector.load %arg4[%c0_17, %c0_18] : memref<32x32xbf16, #tpu.memory_space<vmem>>, vector<32x32xbf16>
    %cst_19 = arith.constant dense<0.000000e+00> : vector<64x32xf32>
    %42 = tpu.matmul %40, %41, %cst_19 {dimension_numbers = #tpu.dot_dimension_numbers<[1], [0], [0], [1], [0, 0, 1, 1], [], []>} : vector<64x32xbf16>, vector<32x32xbf16>, vector<64x32xf32> -> vector<64x32xf32>
    %c0_20 = arith.constant 0 : index
    %c0_21 = arith.constant 0 : index
    %43 = vector.load %arg5[%c0_20, %c0_21] : memref<1x32xf32, #tpu.memory_space<vmem>>, vector<1x32xf32>
    %44 = vector.broadcast %43 : vector<1x32xf32> to vector<64x32xf32>
    %45 = arith.addf %42, %44 : vector<64x32xf32>
    %cst_22 = arith.constant 5.000000e-01 : f32
    %46 = vector.broadcast %cst_22 : f32 to vector<64x32xf32>
    %47 = arith.mulf %46, %45 : vector<64x32xf32>
    %cst_23 = arith.constant 0.707106769 : f32
    %48 = vector.broadcast %cst_23 : f32 to vector<64x32xf32>
    %49 = arith.mulf %45, %48 : vector<64x32xf32>
    %cst_24 = arith.constant 0.000000e+00 : f32
    %50 = vector.broadcast %cst_24 : f32 to vector<64x32xf32>
    %51 = arith.cmpf oge, %49, %50 : vector<64x32xf32>
    %cst_25 = arith.constant 1.000000e+00 : f32
    %cst_26 = arith.constant -1.000000e+00 : f32
    %52 = vector.broadcast %cst_25 : f32 to vector<64x32xf32>
    %53 = vector.broadcast %cst_26 : f32 to vector<64x32xf32>
    %54 = arith.select %51, %52, %53 : vector<64x32xi1>, vector<64x32xf32>
    %55 = math.absf %49 : vector<64x32xf32>
    %cst_27 = arith.constant 0.327591091 : f32
    %56 = vector.broadcast %cst_27 : f32 to vector<64x32xf32>
    %57 = arith.mulf %56, %55 : vector<64x32xf32>
    %cst_28 = arith.constant 1.000000e+00 : f32
    %58 = vector.broadcast %cst_28 : f32 to vector<64x32xf32>
    %59 = arith.addf %58, %57 : vector<64x32xf32>
    %cst_29 = arith.constant 1.000000e+00 : f32
    %60 = vector.broadcast %cst_29 : f32 to vector<64x32xf32>
    %61 = arith.divf %60, %59 : vector<64x32xf32>
    %cst_30 = arith.constant 1.06140542 : f32
    %62 = vector.broadcast %cst_30 : f32 to vector<64x32xf32>
    %63 = arith.mulf %61, %62 : vector<64x32xf32>
    %cst_31 = arith.constant -1.45315206 : f32
    %64 = vector.broadcast %cst_31 : f32 to vector<64x32xf32>
    %65 = arith.addf %64, %63 : vector<64x32xf32>
    %66 = arith.mulf %61, %65 : vector<64x32xf32>
    %cst_32 = arith.constant 1.42141378 : f32
    %67 = vector.broadcast %cst_32 : f32 to vector<64x32xf32>
    %68 = arith.addf %67, %66 : vector<64x32xf32>
    %69 = arith.mulf %61, %68 : vector<64x32xf32>
    %cst_33 = arith.constant -0.284496725 : f32
    %70 = vector.broadcast %cst_33 : f32 to vector<64x32xf32>
    %71 = arith.addf %70, %69 : vector<64x32xf32>
    %72 = arith.mulf %61, %71 : vector<64x32xf32>
    %cst_34 = arith.constant 0.254829586 : f32
    %73 = vector.broadcast %cst_34 : f32 to vector<64x32xf32>
    %74 = arith.addf %73, %72 : vector<64x32xf32>
    %75 = arith.mulf %61, %74 : vector<64x32xf32>
    %cst_35 = arith.constant 0.000000e+00 : f32
    %76 = vector.broadcast %cst_35 : f32 to vector<64x32xf32>
    %77 = arith.subf %76, %55 : vector<64x32xf32>
    %78 = arith.mulf %77, %55 : vector<64x32xf32>
    %79 = math.exp %78 : vector<64x32xf32>
    %80 = arith.mulf %75, %79 : vector<64x32xf32>
    %cst_36 = arith.constant 1.000000e+00 : f32
    %81 = vector.broadcast %cst_36 : f32 to vector<64x32xf32>
    %82 = arith.subf %81, %80 : vector<64x32xf32>
    %83 = arith.mulf %54, %82 : vector<64x32xf32>
    %cst_37 = arith.constant 1.000000e+00 : f32
    %84 = vector.broadcast %cst_37 : f32 to vector<64x32xf32>
    %85 = arith.addf %84, %83 : vector<64x32xf32>
    %86 = arith.mulf %47, %85 : vector<64x32xf32>
    %87 = vector.shape_cast %86 : vector<64x32xf32> to vector<1x64x32xf32>
    %c0_38 = arith.constant 0 : index
    %c0_39 = arith.constant 0 : index
    %c0_40 = arith.constant 0 : index
    %88 = vector.load %arg7[%c0_38, %c0_39, %c0_40] : memref<1x64x32xf32, #tpu.memory_space<vmem>>, vector<1x64x32xf32>
    tpu.vector_store %arg7[%c0_38, %c0_39, %c0_40], %87 {strides = array<i32>} : memref<1x64x32xf32, #tpu.memory_space<vmem>>, vector<1x64x32xf32>,
    return
  }
  func.func @transform_0(%arg0: i32) -> (i32, i32, i32) {
    %c0_i32 = arith.constant 0 : i32
    %c0_i32_0 = arith.constant 0 : i32
    %c0_i32_1 = arith.constant 0 : i32
    return %arg0, %c0_i32, %c0_i32_0 : i32, i32, i32
  }
  func.func @transform_1(%arg0: i32) -> (i32, i32, i32) {
    %c0_i32 = arith.constant 0 : i32
    %c0_i32_0 = arith.constant 0 : i32
    %c0_i32_1 = arith.constant 0 : i32
    return %arg0, %c0_i32, %c0_i32_0 : i32, i32, i32
  }
  func.func @transform_2(%arg0: i32) -> (i32, i32, i32) {
    %c0_i32 = arith.constant 0 : i32
    %c0_i32_0 = arith.constant 0 : i32
    %c0_i32_1 = arith.constant 0 : i32
    return %arg0, %c0_i32, %c0_i32_0 : i32, i32, i32
  }
  func.func @transform_3(%arg0: i32) -> (i32, i32) {
    %c0_i32 = arith.constant 0 : i32
    %c0_i32_0 = arith.constant 0 : i32
    %c0_i32_1 = arith.constant 0 : i32
    return %c0_i32, %c0_i32_0 : i32, i32
  }
  func.func @transform_4(%arg0: i32) -> (i32, i32) {
    %c0_i32 = arith.constant 0 : i32
    %c0_i32_0 = arith.constant 0 : i32
    %c0_i32_1 = arith.constant 0 : i32
    return %c0_i32, %c0_i32_0 : i32, i32
  }
  func.func @transform_5(%arg0: i32) -> (i32, i32) {
    %c0_i32 = arith.constant 0 : i32
    %c0_i32_0 = arith.constant 0 : i32
    %c0_i32_1 = arith.constant 0 : i32
    return %c0_i32, %c0_i32_0 : i32, i32
  }
  func.func @transform_6(%arg0: i32) -> (i32, i32, i32) {
    %c0_i32 = arith.constant 0 : i32
    %c0_i32_0 = arith.constant 0 : i32
    %c0_i32_1 = arith.constant 0 : i32
    return %arg0, %c0_i32, %c0_i32_0 : i32, i32, i32
  }
}

module attributes {stable_mosaic.version = 11 : i64} {
  func.func @kernel(%arg0: i32, %arg1: memref<1x8x8x32xf32, #tpu.memory_space<vmem>>, %arg2: memref<1x8x8x32xf32, #tpu.memory_space<vmem>>, %arg3: memref<288x32xbf16, #tpu.memory_space<vmem>>, %arg4: memref<1x32xf32, #tpu.memory_space<vmem>>, %arg5: memref<288x32xbf16, #tpu.memory_space<vmem>>, %arg6: memref<1x32xf32, #tpu.memory_space<vmem>>, %arg7: memref<1x8x8x32xf32, #tpu.memory_space<vmem>>, %arg8: memref<10x10x32xbf16, #tpu.memory_space<vmem>>) attributes {dimension_semantics = [#tpu.dimension_semantics<parallel>], iteration_bounds = array<i64: 2>, scalar_prefetch = 0 : i64, scratch_operands = 1 : i64, tpu.core_type = #tpu.core_type<tc>, window_params = [{transform_indices = @transform_0, window_bounds = array<i64: 1, 8, 8, 32>}, {transform_indices = @transform_1, window_bounds = array<i64: 1, 8, 8, 32>}, {pipeline_mode = #tpu.pipeline_mode<synchronous>, transform_indices = @transform_2, window_bounds = array<i64: 288, 32>}, {pipeline_mode = #tpu.pipeline_mode<synchronous>, transform_indices = @transform_3, window_bounds = array<i64: 1, 32>}, {pipeline_mode = #tpu.pipeline_mode<synchronous>, transform_indices = @transform_4, window_bounds = array<i64: 288, 32>}, {pipeline_mode = #tpu.pipeline_mode<synchronous>, transform_indices = @transform_5, window_bounds = array<i64: 1, 32>}, {transform_indices = @transform_6, window_bounds = array<i64: 1, 8, 8, 32>}]} {
    %cst = arith.constant 0.000000e+00 : bf16
    %0 = vector.broadcast %cst : bf16 to vector<10x10x32xbf16>
    %c0 = arith.constant 0 : index
    %c0_0 = arith.constant 0 : index
    %c0_1 = arith.constant 0 : index
    %1 = vector.load %arg8[%c0, %c0_0, %c0_1] : memref<10x10x32xbf16, #tpu.memory_space<vmem>>, vector<10x10x32xbf16>
    tpu.vector_store %arg8[%c0, %c0_0, %c0_1], %0 {strides = array<i32>} : memref<10x10x32xbf16, #tpu.memory_space<vmem>>, vector<10x10x32xbf16>,
    %c0_2 = arith.constant 0 : index
    %c0_3 = arith.constant 0 : index
    %c0_4 = arith.constant 0 : index
    %c0_5 = arith.constant 0 : index
    %2 = vector.load %arg1[%c0_2, %c0_3, %c0_4, %c0_5] : memref<1x8x8x32xf32, #tpu.memory_space<vmem>>, vector<1x8x8x32xf32>
    %3 = vector.shape_cast %2 : vector<1x8x8x32xf32> to vector<8x8x32xf32>
    %4 = arith.truncf %3 : vector<8x8x32xf32> to vector<8x8x32xbf16>
    %c1 = arith.constant 1 : index
    %c1_6 = arith.constant 1 : index
    %c0_7 = arith.constant 0 : index
    %5 = vector.load %arg8[%c1, %c1_6, %c0_7] : memref<10x10x32xbf16, #tpu.memory_space<vmem>>, vector<8x8x32xbf16>
    tpu.vector_store %arg8[%c1, %c1_6, %c0_7], %4 {strides = array<i32>} : memref<10x10x32xbf16, #tpu.memory_space<vmem>>, vector<8x8x32xbf16>,
    %c0_8 = arith.constant 0 : index
    %c0_9 = arith.constant 0 : index
    %c0_10 = arith.constant 0 : index
    %6 = vector.load %arg8[%c0_8, %c0_9, %c0_10] : memref<10x10x32xbf16, #tpu.memory_space<vmem>>, vector<8x8x32xbf16>
    %7 = vector.shape_cast %6 : vector<8x8x32xbf16> to vector<64x32xbf16>
    %c0_11 = arith.constant 0 : index
    %c1_12 = arith.constant 1 : index
    %c0_13 = arith.constant 0 : index
    %8 = vector.load %arg8[%c0_11, %c1_12, %c0_13] : memref<10x10x32xbf16, #tpu.memory_space<vmem>>, vector<8x8x32xbf16>
    %9 = vector.shape_cast %8 : vector<8x8x32xbf16> to vector<64x32xbf16>
    %c0_14 = arith.constant 0 : index
    %c2 = arith.constant 2 : index
    %c0_15 = arith.constant 0 : index
    %10 = vector.load %arg8[%c0_14, %c2, %c0_15] : memref<10x10x32xbf16, #tpu.memory_space<vmem>>, vector<8x8x32xbf16>
    %11 = vector.shape_cast %10 : vector<8x8x32xbf16> to vector<64x32xbf16>
    %c1_16 = arith.constant 1 : index
    %c0_17 = arith.constant 0 : index
    %c0_18 = arith.constant 0 : index
    %12 = vector.load %arg8[%c1_16, %c0_17, %c0_18] : memref<10x10x32xbf16, #tpu.memory_space<vmem>>, vector<8x8x32xbf16>
    %13 = vector.shape_cast %12 : vector<8x8x32xbf16> to vector<64x32xbf16>
    %c1_19 = arith.constant 1 : index
    %c1_20 = arith.constant 1 : index
    %c0_21 = arith.constant 0 : index
    %14 = vector.load %arg8[%c1_19, %c1_20, %c0_21] : memref<10x10x32xbf16, #tpu.memory_space<vmem>>, vector<8x8x32xbf16>
    %15 = vector.shape_cast %14 : vector<8x8x32xbf16> to vector<64x32xbf16>
    %c1_22 = arith.constant 1 : index
    %c2_23 = arith.constant 2 : index
    %c0_24 = arith.constant 0 : index
    %16 = vector.load %arg8[%c1_22, %c2_23, %c0_24] : memref<10x10x32xbf16, #tpu.memory_space<vmem>>, vector<8x8x32xbf16>
    %17 = vector.shape_cast %16 : vector<8x8x32xbf16> to vector<64x32xbf16>
    %c2_25 = arith.constant 2 : index
    %c0_26 = arith.constant 0 : index
    %c0_27 = arith.constant 0 : index
    %18 = vector.load %arg8[%c2_25, %c0_26, %c0_27] : memref<10x10x32xbf16, #tpu.memory_space<vmem>>, vector<8x8x32xbf16>
    %19 = vector.shape_cast %18 : vector<8x8x32xbf16> to vector<64x32xbf16>
    %c2_28 = arith.constant 2 : index
    %c1_29 = arith.constant 1 : index
    %c0_30 = arith.constant 0 : index
    %20 = vector.load %arg8[%c2_28, %c1_29, %c0_30] : memref<10x10x32xbf16, #tpu.memory_space<vmem>>, vector<8x8x32xbf16>
    %21 = vector.shape_cast %20 : vector<8x8x32xbf16> to vector<64x32xbf16>
    %c2_31 = arith.constant 2 : index
    %c2_32 = arith.constant 2 : index
    %c0_33 = arith.constant 0 : index
    %22 = vector.load %arg8[%c2_31, %c2_32, %c0_33] : memref<10x10x32xbf16, #tpu.memory_space<vmem>>, vector<8x8x32xbf16>
    %23 = vector.shape_cast %22 : vector<8x8x32xbf16> to vector<64x32xbf16>
    %24 = tpu.concatenate %7, %9, %11, %13, %15, %17, %19, %21, %23 in 1 : vector<64x32xbf16>, vector<64x32xbf16>, vector<64x32xbf16>, vector<64x32xbf16>, vector<64x32xbf16>, vector<64x32xbf16>, vector<64x32xbf16>, vector<64x32xbf16>, vector<64x32xbf16> -> vector<64x288xbf16>
    %c0_34 = arith.constant 0 : index
    %c0_35 = arith.constant 0 : index
    %25 = vector.load %arg3[%c0_34, %c0_35] : memref<288x32xbf16, #tpu.memory_space<vmem>>, vector<288x32xbf16>
    %cst_36 = arith.constant dense<0.000000e+00> : vector<64x32xf32>
    %26 = tpu.matmul %24, %25, %cst_36 {dimension_numbers = #tpu.dot_dimension_numbers<[1], [0], [0], [1], [0, 0, 1, 1], [], []>} : vector<64x288xbf16>, vector<288x32xbf16>, vector<64x32xf32> -> vector<64x32xf32>
    %c0_37 = arith.constant 0 : index
    %c0_38 = arith.constant 0 : index
    %27 = vector.load %arg4[%c0_37, %c0_38] : memref<1x32xf32, #tpu.memory_space<vmem>>, vector<1x32xf32>
    %28 = vector.broadcast %27 : vector<1x32xf32> to vector<64x32xf32>
    %29 = arith.addf %26, %28 : vector<64x32xf32>
    %cst_39 = arith.constant 5.000000e-01 : f32
    %30 = vector.broadcast %cst_39 : f32 to vector<64x32xf32>
    %31 = arith.mulf %30, %29 : vector<64x32xf32>
    %cst_40 = arith.constant 0.707106769 : f32
    %32 = vector.broadcast %cst_40 : f32 to vector<64x32xf32>
    %33 = arith.mulf %29, %32 : vector<64x32xf32>
    %cst_41 = arith.constant 0.000000e+00 : f32
    %34 = vector.broadcast %cst_41 : f32 to vector<64x32xf32>
    %35 = arith.cmpf oge, %33, %34 : vector<64x32xf32>
    %cst_42 = arith.constant 1.000000e+00 : f32
    %cst_43 = arith.constant -1.000000e+00 : f32
    %36 = vector.broadcast %cst_42 : f32 to vector<64x32xf32>
    %37 = vector.broadcast %cst_43 : f32 to vector<64x32xf32>
    %38 = arith.select %35, %36, %37 : vector<64x32xi1>, vector<64x32xf32>
    %39 = math.absf %33 : vector<64x32xf32>
    %cst_44 = arith.constant 0.327591091 : f32
    %40 = vector.broadcast %cst_44 : f32 to vector<64x32xf32>
    %41 = arith.mulf %40, %39 : vector<64x32xf32>
    %cst_45 = arith.constant 1.000000e+00 : f32
    %42 = vector.broadcast %cst_45 : f32 to vector<64x32xf32>
    %43 = arith.addf %42, %41 : vector<64x32xf32>
    %cst_46 = arith.constant 1.000000e+00 : f32
    %44 = vector.broadcast %cst_46 : f32 to vector<64x32xf32>
    %45 = arith.divf %44, %43 : vector<64x32xf32>
    %cst_47 = arith.constant 1.06140542 : f32
    %46 = vector.broadcast %cst_47 : f32 to vector<64x32xf32>
    %47 = arith.mulf %45, %46 : vector<64x32xf32>
    %cst_48 = arith.constant -1.45315206 : f32
    %48 = vector.broadcast %cst_48 : f32 to vector<64x32xf32>
    %49 = arith.addf %48, %47 : vector<64x32xf32>
    %50 = arith.mulf %45, %49 : vector<64x32xf32>
    %cst_49 = arith.constant 1.42141378 : f32
    %51 = vector.broadcast %cst_49 : f32 to vector<64x32xf32>
    %52 = arith.addf %51, %50 : vector<64x32xf32>
    %53 = arith.mulf %45, %52 : vector<64x32xf32>
    %cst_50 = arith.constant -0.284496725 : f32
    %54 = vector.broadcast %cst_50 : f32 to vector<64x32xf32>
    %55 = arith.addf %54, %53 : vector<64x32xf32>
    %56 = arith.mulf %45, %55 : vector<64x32xf32>
    %cst_51 = arith.constant 0.254829586 : f32
    %57 = vector.broadcast %cst_51 : f32 to vector<64x32xf32>
    %58 = arith.addf %57, %56 : vector<64x32xf32>
    %59 = arith.mulf %45, %58 : vector<64x32xf32>
    %cst_52 = arith.constant 0.000000e+00 : f32
    %60 = vector.broadcast %cst_52 : f32 to vector<64x32xf32>
    %61 = arith.subf %60, %39 : vector<64x32xf32>
    %62 = arith.mulf %61, %39 : vector<64x32xf32>
    %63 = math.exp %62 : vector<64x32xf32>
    %64 = arith.mulf %59, %63 : vector<64x32xf32>
    %cst_53 = arith.constant 1.000000e+00 : f32
    %65 = vector.broadcast %cst_53 : f32 to vector<64x32xf32>
    %66 = arith.subf %65, %64 : vector<64x32xf32>
    %67 = arith.mulf %38, %66 : vector<64x32xf32>
    %cst_54 = arith.constant 1.000000e+00 : f32
    %68 = vector.broadcast %cst_54 : f32 to vector<64x32xf32>
    %69 = arith.addf %68, %67 : vector<64x32xf32>
    %70 = arith.mulf %31, %69 : vector<64x32xf32>
    %71 = vector.shape_cast %70 : vector<64x32xf32> to vector<8x8x32xf32>
    %72 = arith.truncf %71 : vector<8x8x32xf32> to vector<8x8x32xbf16>
    %c1_55 = arith.constant 1 : index
    %c1_56 = arith.constant 1 : index
    %c0_57 = arith.constant 0 : index
    %73 = vector.load %arg8[%c1_55, %c1_56, %c0_57] : memref<10x10x32xbf16, #tpu.memory_space<vmem>>, vector<8x8x32xbf16>
    tpu.vector_store %arg8[%c1_55, %c1_56, %c0_57], %72 {strides = array<i32>} : memref<10x10x32xbf16, #tpu.memory_space<vmem>>, vector<8x8x32xbf16>,
    %c0_58 = arith.constant 0 : index
    %c0_59 = arith.constant 0 : index
    %c0_60 = arith.constant 0 : index
    %74 = vector.load %arg8[%c0_58, %c0_59, %c0_60] : memref<10x10x32xbf16, #tpu.memory_space<vmem>>, vector<8x8x32xbf16>
    %75 = vector.shape_cast %74 : vector<8x8x32xbf16> to vector<64x32xbf16>
    %c0_61 = arith.constant 0 : index
    %c1_62 = arith.constant 1 : index
    %c0_63 = arith.constant 0 : index
    %76 = vector.load %arg8[%c0_61, %c1_62, %c0_63] : memref<10x10x32xbf16, #tpu.memory_space<vmem>>, vector<8x8x32xbf16>
    %77 = vector.shape_cast %76 : vector<8x8x32xbf16> to vector<64x32xbf16>
    %c0_64 = arith.constant 0 : index
    %c2_65 = arith.constant 2 : index
    %c0_66 = arith.constant 0 : index
    %78 = vector.load %arg8[%c0_64, %c2_65, %c0_66] : memref<10x10x32xbf16, #tpu.memory_space<vmem>>, vector<8x8x32xbf16>
    %79 = vector.shape_cast %78 : vector<8x8x32xbf16> to vector<64x32xbf16>
    %c1_67 = arith.constant 1 : index
    %c0_68 = arith.constant 0 : index
    %c0_69 = arith.constant 0 : index
    %80 = vector.load %arg8[%c1_67, %c0_68, %c0_69] : memref<10x10x32xbf16, #tpu.memory_space<vmem>>, vector<8x8x32xbf16>
    %81 = vector.shape_cast %80 : vector<8x8x32xbf16> to vector<64x32xbf16>
    %c1_70 = arith.constant 1 : index
    %c1_71 = arith.constant 1 : index
    %c0_72 = arith.constant 0 : index
    %82 = vector.load %arg8[%c1_70, %c1_71, %c0_72] : memref<10x10x32xbf16, #tpu.memory_space<vmem>>, vector<8x8x32xbf16>
    %83 = vector.shape_cast %82 : vector<8x8x32xbf16> to vector<64x32xbf16>
    %c1_73 = arith.constant 1 : index
    %c2_74 = arith.constant 2 : index
    %c0_75 = arith.constant 0 : index
    %84 = vector.load %arg8[%c1_73, %c2_74, %c0_75] : memref<10x10x32xbf16, #tpu.memory_space<vmem>>, vector<8x8x32xbf16>
    %85 = vector.shape_cast %84 : vector<8x8x32xbf16> to vector<64x32xbf16>
    %c2_76 = arith.constant 2 : index
    %c0_77 = arith.constant 0 : index
    %c0_78 = arith.constant 0 : index
    %86 = vector.load %arg8[%c2_76, %c0_77, %c0_78] : memref<10x10x32xbf16, #tpu.memory_space<vmem>>, vector<8x8x32xbf16>
    %87 = vector.shape_cast %86 : vector<8x8x32xbf16> to vector<64x32xbf16>
    %c2_79 = arith.constant 2 : index
    %c1_80 = arith.constant 1 : index
    %c0_81 = arith.constant 0 : index
    %88 = vector.load %arg8[%c2_79, %c1_80, %c0_81] : memref<10x10x32xbf16, #tpu.memory_space<vmem>>, vector<8x8x32xbf16>
    %89 = vector.shape_cast %88 : vector<8x8x32xbf16> to vector<64x32xbf16>
    %c2_82 = arith.constant 2 : index
    %c2_83 = arith.constant 2 : index
    %c0_84 = arith.constant 0 : index
    %90 = vector.load %arg8[%c2_82, %c2_83, %c0_84] : memref<10x10x32xbf16, #tpu.memory_space<vmem>>, vector<8x8x32xbf16>
    %91 = vector.shape_cast %90 : vector<8x8x32xbf16> to vector<64x32xbf16>
    %92 = tpu.concatenate %75, %77, %79, %81, %83, %85, %87, %89, %91 in 1 : vector<64x32xbf16>, vector<64x32xbf16>, vector<64x32xbf16>, vector<64x32xbf16>, vector<64x32xbf16>, vector<64x32xbf16>, vector<64x32xbf16>, vector<64x32xbf16>, vector<64x32xbf16> -> vector<64x288xbf16>
    %c0_85 = arith.constant 0 : index
    %c0_86 = arith.constant 0 : index
    %93 = vector.load %arg5[%c0_85, %c0_86] : memref<288x32xbf16, #tpu.memory_space<vmem>>, vector<288x32xbf16>
    %cst_87 = arith.constant dense<0.000000e+00> : vector<64x32xf32>
    %94 = tpu.matmul %92, %93, %cst_87 {dimension_numbers = #tpu.dot_dimension_numbers<[1], [0], [0], [1], [0, 0, 1, 1], [], []>} : vector<64x288xbf16>, vector<288x32xbf16>, vector<64x32xf32> -> vector<64x32xf32>
    %c0_88 = arith.constant 0 : index
    %c0_89 = arith.constant 0 : index
    %95 = vector.load %arg6[%c0_88, %c0_89] : memref<1x32xf32, #tpu.memory_space<vmem>>, vector<1x32xf32>
    %96 = vector.broadcast %95 : vector<1x32xf32> to vector<64x32xf32>
    %97 = arith.addf %94, %96 : vector<64x32xf32>
    %c0_90 = arith.constant 0 : index
    %c0_91 = arith.constant 0 : index
    %c0_92 = arith.constant 0 : index
    %c0_93 = arith.constant 0 : index
    %98 = vector.load %arg2[%c0_90, %c0_91, %c0_92, %c0_93] : memref<1x8x8x32xf32, #tpu.memory_space<vmem>>, vector<1x8x8x32xf32>
    %99 = vector.shape_cast %98 : vector<1x8x8x32xf32> to vector<64x32xf32>
    %100 = arith.addf %97, %99 : vector<64x32xf32>
    %101 = vector.shape_cast %100 : vector<64x32xf32> to vector<1x8x8x32xf32>
    %c0_94 = arith.constant 0 : index
    %c0_95 = arith.constant 0 : index
    %c0_96 = arith.constant 0 : index
    %c0_97 = arith.constant 0 : index
    %102 = vector.load %arg7[%c0_94, %c0_95, %c0_96, %c0_97] : memref<1x8x8x32xf32, #tpu.memory_space<vmem>>, vector<1x8x8x32xf32>
    tpu.vector_store %arg7[%c0_94, %c0_95, %c0_96, %c0_97], %101 {strides = array<i32>} : memref<1x8x8x32xf32, #tpu.memory_space<vmem>>, vector<1x8x8x32xf32>,
    return
  }
  func.func @transform_0(%arg0: i32) -> (i32, i32, i32, i32) {
    %c0_i32 = arith.constant 0 : i32
    %c0_i32_0 = arith.constant 0 : i32
    %c0_i32_1 = arith.constant 0 : i32
    %c0_i32_2 = arith.constant 0 : i32
    return %arg0, %c0_i32, %c0_i32_0, %c0_i32_1 : i32, i32, i32, i32
  }
  func.func @transform_1(%arg0: i32) -> (i32, i32, i32, i32) {
    %c0_i32 = arith.constant 0 : i32
    %c0_i32_0 = arith.constant 0 : i32
    %c0_i32_1 = arith.constant 0 : i32
    %c0_i32_2 = arith.constant 0 : i32
    return %arg0, %c0_i32, %c0_i32_0, %c0_i32_1 : i32, i32, i32, i32
  }
  func.func @transform_2(%arg0: i32) -> (i32, i32) {
    %c0_i32 = arith.constant 0 : i32
    %c0_i32_0 = arith.constant 0 : i32
    %c0_i32_1 = arith.constant 0 : i32
    return %c0_i32, %c0_i32_0 : i32, i32
  }
  func.func @transform_3(%arg0: i32) -> (i32, i32) {
    %c0_i32 = arith.constant 0 : i32
    %c0_i32_0 = arith.constant 0 : i32
    %c0_i32_1 = arith.constant 0 : i32
    return %c0_i32, %c0_i32_0 : i32, i32
  }
  func.func @transform_4(%arg0: i32) -> (i32, i32) {
    %c0_i32 = arith.constant 0 : i32
    %c0_i32_0 = arith.constant 0 : i32
    %c0_i32_1 = arith.constant 0 : i32
    return %c0_i32, %c0_i32_0 : i32, i32
  }
  func.func @transform_5(%arg0: i32) -> (i32, i32) {
    %c0_i32 = arith.constant 0 : i32
    %c0_i32_0 = arith.constant 0 : i32
    %c0_i32_1 = arith.constant 0 : i32
    return %c0_i32, %c0_i32_0 : i32, i32
  }
  func.func @transform_6(%arg0: i32) -> (i32, i32, i32, i32) {
    %c0_i32 = arith.constant 0 : i32
    %c0_i32_0 = arith.constant 0 : i32
    %c0_i32_1 = arith.constant 0 : i32
    %c0_i32_2 = arith.constant 0 : i32
    return %arg0, %c0_i32, %c0_i32_0, %c0_i32_1 : i32, i32, i32, i32
  }
}

</mosaic_0001>

<bundles_post_ra>
// kernel: forward_pallas.5
= control target key start
LH: loop header
LB: loop body
LE: loop exit
PB: predicated region body
PF: predicated region fallthrough
CT: control target
= control target key end

     0   :  { %s479_s12 = smov 0   ;;  %s549_s0 = inlined_call_operand.vmem [shape: f32[2,8,8,32], index: 0, kind: input, shape index: {}]   ;;  %s550_s1 = inlined_call_operand.vmem [shape: f32[32,32], index: 1, kind: input, shape index: {}]   ;;  %s551_s2 = inlined_call_operand.vmem [shape: f32[32,32], index: 2, kind: input, shape index: {}]   ;;  %s552_s3 = inlined_call_operand.vmem [shape: f32[2,32], index: 3, kind: output, shape index: {}]  }
   0x1 LB: > { %s485_s13 = sadd.s32 4294967295, %s455_s12   ;;  %p394_p0 = scmp.ge.s32.totalorder %s455_s12, 1  ;;  %s455_s12 = sphi %s479_s12, %s13_s12  }
   0x2   : > { %p132_p1 = scmp.lt.s32.totalorder %s455_s12, 3 }
   0x4   : > { %p133_p2 = pnand %p394_p0, %p132_p1 }
   0x5   : > { %p151_p3 = scmp.lt.s32.totalorder (!%p133_p2), %s485_s13, 1  ;;  %p397_p4 = scmp.ne.s32.totalorder (!%p133_p2), %s485_s13, 1 }
   0x6   : > { %136 = sbr.rel (%p133_p2) target bundleno = 479 (0x1df), region = 32 }
   0xb   : > { %s152_s14 = scalar_select %p151_p3, %s485_s13, 1  ;;  %vm164_vm0 = vcmask 261120   ;;  %v188_v25 = vlaneseq  ;;  %v190_v30 = vstv %s485_s13  ;;  %v192_v32 = vld [vmem:[%s552_s3] sm:$0x3]  ;;  %vm194_vm2 = vcmask 254976  }
   0xd   : > { %s402_s15 = sshll.u32 %s152_s14, 6  ;;  %v189_v28 = vshrl.u32 %v188_v25, 7 }
   0xe   : > { %s155_s18 = scalar_lea.vmem %s549_s0, %s402_s15 }
   0xf   : > { %v156_v0 = vld [vmem:[%s155_s18] sm:$0xff]  ;;  %v157_v1 = vld [vmem:[%s155_s18 + $0x8] sm:$0xff]  ;;  %v158_v2 = vld [vmem:[%s155_s18 + $0x10] sm:$0xff]  ;;  %vm191_vm1 = vcmp.eq.s32.totalorder %v189_v28, %v190_v30 }
  0x10   : > { %v159_v3 = vld [vmem:[%s155_s18 + $0x18] sm:$0xff]  ;;  %v165_v4 = vsel %vm164_vm0, %v156_v0, 0.0  ;;  %v166_v5 = vsel %vm164_vm0, %v157_v1, 0.0  ;;  %v168_v6 = vsel %vm164_vm0, %v158_v2, 0.0  ;;  %v160_v7 = vld [vmem:[%s155_s18 + $0x20] sm:$0xff]  ;;  %v161_v10 = vld [vmem:[%s155_s18 + $0x28] sm:$0xff] }
  0x11   : > { %v167_v8 = vadd.f32 %v166_v5, %v165_v4  ;;  %v170_v9 = vsel %vm164_vm0, %v159_v3, 0.0  ;;  %v172_v12 = vsel %vm164_vm0, %v160_v7, 0.0  ;;  %v162_v13 = vld [vmem:[%s155_s18 + $0x30] sm:$0xff]  ;;  %v174_v15 = vsel %vm164_vm0, %v161_v10, 0.0  ;;  %v163_v16 = vld [vmem:[%s155_s18 + $0x38] sm:$0xff] }
  0x12   : > { %v176_v18 = vsel %vm164_vm0, %v162_v13, 0.0  ;;  %v178_v20 = vsel %vm164_vm0, %v163_v16, 0.0 }
  0x13   : > { %v169_v11 = vadd.f32 %v168_v6, %v167_v8 }
  0x15   : > { %v171_v14 = vadd.f32 %v170_v9, %v169_v11 }
  0x17   : > { %v173_v17 = vadd.f32 %v172_v12, %v171_v14 }
  0x19   : > { %v175_v19 = vadd.f32 %v174_v15, %v173_v17 }
  0x1b   : > { %v177_v21 = vadd.f32 %v176_v18, %v175_v19 }
  0x1d   : > { %v179_v22 = vadd.f32 %v178_v20, %v177_v21 }
  0x1f   : > { %v180_v23 = vrot.slane %v179_v22, 4 }
  0x21   : > { %v181_v24 = vadd.f32 %v180_v23, %v179_v22 }
  0x23   : > { %v182_v26 = vrot.slane %v181_v24, 2 }
  0x25   : > { %v183_v27 = vadd.f32 %v182_v26, %v181_v24 }
  0x27   : > { %v184_v29 = vrot.slane %v183_v27, 1 }
  0x29   : > { %v185_v31 = vadd.f32 %v184_v29, %v183_v27 }
  0x2a   : > { %199 = sbr.rel (%p397_p4) target bundleno = 479 (0x1df), region = 36 }
  0x2b   : > { %v187_v33 = vmul.f32 0.015625, %v185_v31 }
  0x2d   : > { %v193_v34 = vsel %vm191_vm1, %v187_v33, %v192_v32 }
  0x2e   : > { %195 = vst.msk [vmem:[%s552_s3] sm:$0x3] %vm194_vm2, %v193_v34 }
  0x2f   : > { %v204_v35 = vld [vmem:[%s550_s1 + $0x18] sm:$0xff]  ;;  %v457_v36 = vmov 0.0   ;;  %v203_v37 = vld [vmem:[%s550_s1 + $0x10] sm:$0xff]  ;;  %vm458_vm3 = vmmov 0   ;;  %v202_v40 = vld [vmem:[%s550_s1 + $0x8] sm:$0xff] }
  0x30   : > { %413 = vmatprep.subr.mxu0 %v457_v36  ;;  %421 = vmatprep.mubr.msk.f32.mxu0 %vm458_vm3, %v457_v36  ;;  %v282_v38 = vld [vmem:[%s551_s2 + $0x18] sm:$0xff]  ;;  %v281_v39 = vld [vmem:[%s551_s2 + $0x10] sm:$0xff]  ;;  %v201_v41 = vld [vmem:[%s550_s1] sm:$0xff] }
  0x31   : > { %414 = vmatpush3.msra.mxu0 %v204_v35  ;;  %424 = vmatprep.subr.mxu1 %v457_v36  ;;  %v280_v43 = vld [vmem:[%s551_s2 + $0x8] sm:$0xff]  ;;  %v279_v44 = vld [vmem:[%s551_s2] sm:$0xff] }
  0x32   : > { %415 = vmatprep.subr.mxu0 %v457_v36  ;;  %425 = vmatpush3.msra.mxu1 %v282_v38 }
  0x33   : > { %416 = vmatpush3.msra.mxu0 %v203_v37  ;;  %426 = vmatprep.subr.mxu1 %v457_v36 }
  0x34   : > { %417 = vmatprep.subr.mxu0 %v457_v36  ;;  %427 = vmatpush3.msra.mxu1 %v281_v39 }
  0x35   : > { %418 = vmatpush3.msra.mxu0 %v202_v40  ;;  %v200_v42 = vld [vmem:[%s552_s3] sm:$0x3]  ;;  %428 = vmatprep.subr.mxu1 %v457_v36 }
  0x36   : > { %419 = vmatprep.subr.mxu0 %v457_v36  ;;  %432 = vmatprep.mubr.msk.f32.mxu1 %vm458_vm3, %v457_v36 }
  0x37   : > { %420 = vmatpush3.msra.mxu0 %v201_v41  ;;  %429 = vmatpush3.msra.mxu1 %v280_v43 }
  0x38   : > { %422 = vmatmul.mubr.msk.f32.vlgmr.msra.gmra.mxu0 %vm164_vm0, %v200_v42  ;;  %430 = vmatprep.subr.mxu1 %v457_v36 }
  0x39   : > { %431 = vmatpush3.msra.mxu1 %v279_v44 }
  0xf8   : > { %v274_v45 = vpop.f32.mrf.mxu0 }
  0xf9   : > { %v278_v46 = vmax.f32 %v274_v45, 0.0 }
  0xfa   : > { %v423_v47 = vpop.f32.mrf.mxu0 }
  0xfb   : > { %433 = vmatmul.mubr.msk.f32.vlgmr.msra.gmra.mxu1 %vm164_vm0, %v278_v46 }
 0x1bb   : > { %v352_v48 = vpop.f32.mrf.mxu1 }
 0x1bc   : > { %v356_v49 = vsub.f32 0.0, %v352_v48 }
 0x1bd   : > { %v434_v50 = vpop.f32.mrf.mxu1 }
 0x1be   : > { %v357_v51 = vmul.f32 1.442695, %v356_v49 }
 0x1c0   : > { %445 = vpow2.f32 %v357_v51 }
 0x1cd   : > { %v446_v52 = vpop.eup %445 }
 0x1ce   : > { %v359_v53 = vadd.f32 1.0, %v446_v52 }
 0x1d0   : > { %447 = vrcp.f32 %v359_v53 }
 0x1dd   : > { %v448_v54 = vpop.eup %447 }
 0x1de   : > { %362 = vst.msk [vmem:[%s552_s3] sm:$0x3] %vm194_vm2, %v448_v54 }
 0x1df PF: > { %s13_s12 = sadd.s32 1, %s455_s12  }
 0x1e0   : > { %p10_p5 = scmp.ge.s32.totalorder %s13_s12, 4  }
 0x1e2   :  { %12 = sbr.rel (!%p10_p5) target bundleno = 1 (0x1), region = 62 }

// kernel: forward_pallas.6
= control target key start
LH: loop header
LB: loop body
LE: loop exit
PB: predicated region body
PF: predicated region fallthrough
CT: control target
= control target key end

     0   :  { %vm55_vm0 = vcmask 261120   ;;  %s478_s27 = smov 96   ;;  %s479_s21 = smov 64   ;;  %vm369_vm1 = vcmask 257024   ;;  %s791_s1 = inlined_call_operand.vmem [shape: bf16[32,96], index: 1, kind: input, shape index: {}]   ;;  %s792_s0 = inlined_call_operand.vmem [shape: f32[128,32], index: 0, kind: input, shape index: {}]   ;;  %s793_s2 = inlined_call_operand.vmem [shape: f32[128,32], index: 2, kind: output, shape index: {0}]   ;;  %s794_s3 = inlined_call_operand.vmem [shape: f32[128,32], index: 3, kind: output, shape index: {1}]   ;;  %s795_s4 = inlined_call_operand.vmem [shape: bf16[128,32], index: 4, kind: output, shape index: {2}]  }
   0x1   :  { %v476_v0 = vld [vmem:[%s791_s1 + $0x8] sm:$0xff]   ;;  %v477_v1 = vld [vmem:[%s791_s1] sm:$0xff]   ;;  %v17_v7 = vld [vmem:[%s792_s0 + $0x10] sm:$0xff] }
   0x2   :  { %450 = vmatprep.subr.bf16.mxu0 %v476_v0  ;;  %470 = vmatprep.subr.bf16.mxu1 %v476_v0  ;;  %v15_v2 = vld [vmem:[%s792_s0] sm:$0xff]  ;;  %v16_v3 = vld [vmem:[%s792_s0 + $0x8] sm:$0xff]  ;;  %v18_v8 = vld [vmem:[%s792_s0 + $0x18] sm:$0xff] }
   0x3   :  { %v23_v4 = vld [vmem:[%s792_s0 + $0x40] sm:$0xff]  ;;  %451 = vmatpush3.bf16.msra.mxu0 %v476_v0  ;;  %472 = vmatpush3.bf16.msra.mxu1 %v476_v0  ;;  %v31_v5 = vpack.c.bf16 %v16_v3, %v15_v2  ;;  %v24_v6 = vld [vmem:[%s792_s0 + $0x48] sm:$0xff]  ;;  %v25_v10 = vld [vmem:[%s792_s0 + $0x50] sm:$0xff]  ;;  %v32_v14 = vpack.c.bf16 %v18_v8, %v17_v7 }
   0x4   :  { %452 = vmatprep.subr.bf16.mxu0 %v477_v1  ;;  %471 = vmatprep.subr.bf16.mxu1 %v477_v1  ;;  %v35_v9 = vpack.c.bf16 %v24_v6, %v23_v4  ;;  %v26_v11 = vld [vmem:[%s792_s0 + $0x58] sm:$0xff]  ;;  %v19_v12 = vld [vmem:[%s792_s0 + $0x20] sm:$0xff]  ;;  %v20_v13 = vld [vmem:[%s792_s0 + $0x28] sm:$0xff] }
   0x5   :  { %454 = vmatprep.mubr.msk.bf16.mxu0 %vm55_vm0, %v31_v5  ;;  %v36_v15 = vpack.c.bf16 %v26_v11, %v25_v10  ;;  %v27_v16 = vld [vmem:[%s792_s0 + $0x60] sm:$0xff]  ;;  %v28_v17 = vld [vmem:[%s792_s0 + $0x68] sm:$0xff]  ;;  %v33_v18 = vpack.c.bf16 %v20_v13, %v19_v12  ;;  %v21_v20 = vld [vmem:[%s792_s0 + $0x30] sm:$0xff] }
   0x6   :  { %462 = vmatprep.mubr.msk.bf16.mxu1 %vm55_vm0, %v35_v9  ;;  %v37_v19 = vpack.c.bf16 %v28_v17, %v27_v16  ;;  %v22_v21 = vld [vmem:[%s792_s0 + $0x38] sm:$0xff]  ;;  %v29_v22 = vld [vmem:[%s792_s0 + $0x70] sm:$0xff] }
   0x7   :  { %453 = vmatpush3.bf16.msra.mxu0 %v477_v1  ;;  %473 = vmatpush3.bf16.msra.mxu1 %v477_v1  ;;  %v30_v23 = vld [vmem:[%s792_s0 + $0x78] sm:$0xff]  ;;  %v34_v24 = vpack.c.bf16 %v22_v21, %v21_v20 }
   0x8   :  { %v38_v25 = vpack.c.bf16 %v30_v23, %v29_v22 }
   0xa   :  { %455 = vmatmul.mubr.msk.bf16.vlgmr.msra.gmra.mxu0 %vm55_vm0, %v32_v14  ;;  %463 = vmatmul.mubr.msk.bf16.vlgmr.msra.gmra.mxu1 %vm55_vm0, %v36_v15 }
   0xb   :  { %458 = vmatprep.mubr.msk.bf16.mxu0 %vm55_vm0, %v33_v18  ;;  %466 = vmatprep.mubr.msk.bf16.mxu1 %vm55_vm0, %v37_v19 }
  0x12   :  { %459 = vmatmul.mubr.msk.bf16.gmra.mxu0 %vm55_vm0, %v34_v24  ;;  %467 = vmatmul.mubr.msk.bf16.gmra.mxu1 %vm55_vm0, %v38_v25 }
  0xca   :  { %v456_v26 = vpop.f32.mrf.mxu0  ;;  %v464_v27 = vpop.f32.mrf.mxu1 }
  0xcb   :  { %179 = vst.msk [vmem:[%s793_s2 + $0x10] sm:$0xff] %vm55_vm0, %v456_v26  ;;  %187 = vst.msk [vmem:[%s793_s2 + $0x50] sm:$0xff] %vm55_vm0, %v464_v27  ;;  %229 = vrot.lane.b32.xlu0 %v464_v27, %s478_s27  ;;  %213 = vrot.lane.b32.xlu1 %v456_v26, %s478_s27  ;;  %v426_v38 = vpack.c.bf16 %v456_v26, %v456_v26  ;;  %v434_v43 = vpack.c.bf16 %v464_v27, %v464_v27 }
  0xcc   :  { %v114_v28 = vpop.f32.mrf.mxu0  ;;  %v146_v29 = vpop.f32.mrf.mxu1 }
  0xcd   :  { %177 = vst.msk [vmem:[%s793_s2] sm:$0xff] %vm55_vm0, %v114_v28  ;;  %185 = vst.msk [vmem:[%s793_s2 + $0x40] sm:$0xff] %vm55_vm0, %v146_v29  ;;  %v424_v45 = vpack.c.bf16 %v114_v28, %v114_v28  ;;  %v432_v47 = vpack.c.bf16 %v146_v29, %v146_v29 }
  0xce   :  { %v457_v30 = vpop.f32.mrf.mxu0  ;;  %v465_v31 = vpop.f32.mrf.mxu1 }
  0xcf   :  { %180 = vst.msk [vmem:[%s793_s2 + $0x18] sm:$0xff] %vm55_vm0, %v457_v30  ;;  %188 = vst.msk [vmem:[%s793_s2 + $0x58] sm:$0xff] %vm55_vm0, %v465_v31  ;;  %209 = vrot.lane.b32.xlu0 %v114_v28, %s478_s27  ;;  %215 = vrot.lane.b32.xlu1 %v457_v30, %s478_s27  ;;  %v427_v44 = vpack.c.bf16 %v457_v30, %v457_v30  ;;  %v435_v46 = vpack.c.bf16 %v465_v31, %v465_v31 }
  0xd0   :  { %v117_v32 = vpop.f32.mrf.mxu0  ;;  %v149_v33 = vpop.f32.mrf.mxu1 }
  0xd1   :  { %178 = vst.msk [vmem:[%s793_s2 + $0x8] sm:$0xff] %vm55_vm0, %v117_v32  ;;  %186 = vst.msk [vmem:[%s793_s2 + $0x48] sm:$0xff] %vm55_vm0, %v149_v33  ;;  %v425_v48 = vpack.c.bf16 %v117_v32, %v117_v32  ;;  %v433_v49 = vpack.c.bf16 %v149_v33, %v149_v33 }
  0xd2   :  { %v460_v34 = vpop.f32.mrf.mxu0  ;;  %v468_v35 = vpop.f32.mrf.mxu1 }
  0xd3   :  { %225 = vrot.lane.b32.xlu0 %v146_v29, %s478_s27  ;;  %231 = vrot.lane.b32.xlu1 %v465_v31, %s478_s27  ;;  %183 = vst.msk [vmem:[%s793_s2 + $0x30] sm:$0xff] %vm55_vm0, %v460_v34  ;;  %191 = vst.msk [vmem:[%s793_s2 + $0x70] sm:$0xff] %vm55_vm0, %v468_v35  ;;  %v430_v50 = vpack.c.bf16 %v460_v34, %v460_v34  ;;  %v438_v56 = vpack.c.bf16 %v468_v35, %v468_v35 }
  0xd4   :  { %v130_v36 = vpop.f32.mrf.mxu0  ;;  %v162_v37 = vpop.f32.mrf.mxu1 }
  0xd5   :  { %181 = vst.msk [vmem:[%s793_s2 + $0x20] sm:$0xff] %vm55_vm0, %v130_v36  ;;  %189 = vst.msk [vmem:[%s793_s2 + $0x60] sm:$0xff] %vm55_vm0, %v162_v37  ;;  %v428_v52 = vpack.c.bf16 %v130_v36, %v130_v36  ;;  %v436_v54 = vpack.c.bf16 %v162_v37, %v162_v37 }
  0xd6   :  { %v461_v39 = vpop.f32.mrf.mxu0  ;;  %v469_v40 = vpop.f32.mrf.mxu1 }
  0xd7   :  { %325 = vrot.lane.b32.xlu0 %v426_v38, %s479_s21  ;;  %227 = vrot.lane.b32.xlu1 %v149_v33, %s478_s27  ;;  %184 = vst.msk [vmem:[%s793_s2 + $0x38] sm:$0xff] %vm55_vm0, %v461_v39  ;;  %192 = vst.msk [vmem:[%s793_s2 + $0x78] sm:$0xff] %vm55_vm0, %v469_v40  ;;  %v431_v51 = vpack.c.bf16 %v461_v39, %v461_v39  ;;  %v439_v57 = vpack.c.bf16 %v469_v40, %v469_v40 }
  0xd8   :  { %v133_v41 = vpop.f32.mrf.mxu0  ;;  %v165_v42 = vpop.f32.mrf.mxu1 }
  0xd9   :  { %182 = vst.msk [vmem:[%s793_s2 + $0x28] sm:$0xff] %vm55_vm0, %v133_v41  ;;  %190 = vst.msk [vmem:[%s793_s2 + $0x68] sm:$0xff] %vm55_vm0, %v165_v42  ;;  %v429_v53 = vpack.c.bf16 %v133_v41, %v133_v41  ;;  %v437_v55 = vpack.c.bf16 %v165_v42, %v165_v42 }
  0xdb   :  { %341 = vrot.lane.b32.xlu0 %v434_v43, %s479_s21  ;;  %327 = vrot.lane.b32.xlu1 %v427_v44, %s479_s21 }
  0xdf   :  { %321 = vrot.lane.b32.xlu0 %v424_v45, %s479_s21  ;;  %343 = vrot.lane.b32.xlu1 %v435_v46, %s479_s21 }
  0xe3   :  { %337 = vrot.lane.b32.xlu0 %v432_v47, %s479_s21  ;;  %323 = vrot.lane.b32.xlu1 %v425_v48, %s479_s21 }
  0xe7   :  { %211 = vrot.lane.b32.xlu0 %v117_v32, %s478_s27  ;;  %339 = vrot.lane.b32.xlu1 %v433_v49, %s479_s21 }
  0xeb   :  { %221 = vrot.lane.b32.xlu0 %v460_v34, %s478_s27  ;;  %223 = vrot.lane.b32.xlu1 %v461_v39, %s478_s27 }
  0xef   :  { %237 = vrot.lane.b32.xlu0 %v468_v35, %s478_s27  ;;  %239 = vrot.lane.b32.xlu1 %v469_v40, %s478_s27 }
  0xf3   :  { %217 = vrot.lane.b32.xlu0 %v130_v36, %s478_s27  ;;  %219 = vrot.lane.b32.xlu1 %v133_v41, %s478_s27 }
  0xf7   :  { %233 = vrot.lane.b32.xlu0 %v162_v37, %s478_s27  ;;  %235 = vrot.lane.b32.xlu1 %v165_v42, %s478_s27 }
  0xfb   :  { %333 = vrot.lane.b32.xlu0 %v430_v50, %s479_s21  ;;  %335 = vrot.lane.b32.xlu1 %v431_v51, %s479_s21 }
  0xff   :  { %329 = vrot.lane.b32.xlu0 %v428_v52, %s479_s21  ;;  %331 = vrot.lane.b32.xlu1 %v429_v53, %s479_s21 }
 0x103   :  { %345 = vrot.lane.b32.xlu0 %v436_v54, %s479_s21  ;;  %347 = vrot.lane.b32.xlu1 %v437_v55, %s479_s21 }
 0x107   :  { %349 = vrot.lane.b32.xlu0 %v438_v56, %s479_s21  ;;  %351 = vrot.lane.b32.xlu1 %v439_v57, %s479_s21 }
 0x13d   :  { %v230_v58 = vpop.permute.xlu0 %229  ;;  %v214_v59 = vpop.permute.xlu1 %213 }
 0x13e   :  { %267 = vst.msk [vmem:[%s794_s3 + $0x50] sm:$0xff] %vm55_vm0, %v230_v58  ;;  %259 = vst.msk [vmem:[%s794_s3 + $0x10] sm:$0xff] %vm55_vm0, %v214_v59 }
 0x141   :  { %v210_v60 = vpop.permute.xlu0 %209  ;;  %v216_v61 = vpop.permute.xlu1 %215 }
 0x142   :  { %257 = vst.msk [vmem:[%s794_s3] sm:$0xff] %vm55_vm0, %v210_v60  ;;  %260 = vst.msk [vmem:[%s794_s3 + $0x18] sm:$0xff] %vm55_vm0, %v216_v61 }
 0x145   :  { %v226_v62 = vpop.permute.xlu0 %225  ;;  %v232_v63 = vpop.permute.xlu1 %231 }
 0x146   :  { %265 = vst.msk [vmem:[%s794_s3 + $0x40] sm:$0xff] %vm55_vm0, %v226_v62  ;;  %268 = vst.msk [vmem:[%s794_s3 + $0x58] sm:$0xff] %vm55_vm0, %v232_v63 }
 0x149   :  { %v326_v0 = vpop.permute.xlu0 %325  ;;  %v228_v1 = vpop.permute.xlu1 %227 }
 0x14a   :  { %372 = vst.msk [vmem:[%s795_s4 + $0x8] sm:$0xf] %vm369_vm1, %v326_v0 }
 0x14b   :  { %266 = vst.msk [vmem:[%s794_s3 + $0x48] sm:$0xff] %vm55_vm0, %v228_v1 }
 0x14d   :  { %v342_v2 = vpop.permute.xlu0 %341  ;;  %v328_v3 = vpop.permute.xlu1 %327 }
 0x14e   :  { %380 = vst.msk [vmem:[%s795_s4 + $0x28] sm:$0xf] %vm369_vm1, %v342_v2  ;;  %373 = vst.msk [vmem:[%s795_s4 + $0xc] sm:$0xf] %vm369_vm1, %v328_v3 }
 0x151   :  { %v322_v4 = vpop.permute.xlu0 %321  ;;  %v344_v5 = vpop.permute.xlu1 %343 }
 0x152   :  { %370 = vst.msk [vmem:[%s795_s4] sm:$0xf] %vm369_vm1, %v322_v4  ;;  %381 = vst.msk [vmem:[%s795_s4 + $0x2c] sm:$0xf] %vm369_vm1, %v344_v5 }
 0x155   :  { %v338_v6 = vpop.permute.xlu0 %337  ;;  %v324_v7 = vpop.permute.xlu1 %323 }
 0x156   :  { %378 = vst.msk [vmem:[%s795_s4 + $0x20] sm:$0xf] %vm369_vm1, %v338_v6  ;;  %371 = vst.msk [vmem:[%s795_s4 + $0x4] sm:$0xf] %vm369_vm1, %v324_v7 }
 0x159   :  { %v212_v8 = vpop.permute.xlu0 %211  ;;  %v340_v9 = vpop.permute.xlu1 %339 }
 0x15a   :  { %258 = vst.msk [vmem:[%s794_s3 + $0x8] sm:$0xff] %vm55_vm0, %v212_v8 }
 0x15b   :  { %379 = vst.msk [vmem:[%s795_s4 + $0x24] sm:$0xf] %vm369_vm1, %v340_v9 }
 0x15d   :  { %v222_v10 = vpop.permute.xlu0 %221  ;;  %v224_v11 = vpop.permute.xlu1 %223 }
 0x15e   :  { %263 = vst.msk [vmem:[%s794_s3 + $0x30] sm:$0xff] %vm55_vm0, %v222_v10  ;;  %264 = vst.msk [vmem:[%s794_s3 + $0x38] sm:$0xff] %vm55_vm0, %v224_v11 }
 0x161   :  { %v238_v12 = vpop.permute.xlu0 %237  ;;  %v240_v13 = vpop.permute.xlu1 %239 }
 0x162   :  { %271 = vst.msk [vmem:[%s794_s3 + $0x70] sm:$0xff] %vm55_vm0, %v238_v12  ;;  %272 = vst.msk [vmem:[%s794_s3 + $0x78] sm:$0xff] %vm55_vm0, %v240_v13 }
 0x165   :  { %v218_v14 = vpop.permute.xlu0 %217  ;;  %v220_v15 = vpop.permute.xlu1 %219 }
 0x166   :  { %261 = vst.msk [vmem:[%s794_s3 + $0x20] sm:$0xff] %vm55_vm0, %v218_v14  ;;  %262 = vst.msk [vmem:[%s794_s3 + $0x28] sm:$0xff] %vm55_vm0, %v220_v15 }
 0x169   :  { %v234_v16 = vpop.permute.xlu0 %233  ;;  %v236_v17 = vpop.permute.xlu1 %235 }
 0x16a   :  { %269 = vst.msk [vmem:[%s794_s3 + $0x60] sm:$0xff] %vm55_vm0, %v234_v16  ;;  %270 = vst.msk [vmem:[%s794_s3 + $0x68] sm:$0xff] %vm55_vm0, %v236_v17 }
 0x16d   :  { %v334_v18 = vpop.permute.xlu0 %333  ;;  %v336_v19 = vpop.permute.xlu1 %335 }
 0x16e   :  { %376 = vst.msk [vmem:[%s795_s4 + $0x18] sm:$0xf] %vm369_vm1, %v334_v18  ;;  %377 = vst.msk [vmem:[%s795_s4 + $0x1c] sm:$0xf] %vm369_vm1, %v336_v19 }
 0x171   :  { %v330_v20 = vpop.permute.xlu0 %329  ;;  %v332_v21 = vpop.permute.xlu1 %331 }
 0x172   :  { %374 = vst.msk [vmem:[%s795_s4 + $0x10] sm:$0xf] %vm369_vm1, %v330_v20  ;;  %375 = vst.msk [vmem:[%s795_s4 + $0x14] sm:$0xf] %vm369_vm1, %v332_v21 }
 0x175   :  { %v346_v22 = vpop.permute.xlu0 %345  ;;  %v348_v23 = vpop.permute.xlu1 %347 }
 0x176   :  { %382 = vst.msk [vmem:[%s795_s4 + $0x30] sm:$0xf] %vm369_vm1, %v346_v22  ;;  %383 = vst.msk [vmem:[%s795_s4 + $0x34] sm:$0xf] %vm369_vm1, %v348_v23 }
 0x179   :  { %v350_v24 = vpop.permute.xlu0 %349  ;;  %v352_v25 = vpop.permute.xlu1 %351 }
 0x17a   :  { %384 = vst.msk [vmem:[%s795_s4 + $0x38] sm:$0xf] %vm369_vm1, %v350_v24  ;;  %385 = vst.msk [vmem:[%s795_s4 + $0x3c] sm:$0xf] %vm369_vm1, %v352_v25 }

// kernel: forward_pallas.8
= control target key start
LH: loop header
LB: loop body
LE: loop exit
PB: predicated region body
PF: predicated region fallthrough
CT: control target
= control target key end

     0   :  { %s1216_s21 = smov 0   ;;  %s1534_s0 = inlined_call_operand.vmem [shape: f32[2,64,32], index: 0, kind: input, shape index: {}]   ;;  %s1535_s1 = inlined_call_operand.vmem [shape: f32[2,64,32], index: 1, kind: input, shape index: {}]   ;;  %s1536_s2 = inlined_call_operand.vmem [shape: f32[2,64,32], index: 2, kind: input, shape index: {}]   ;;  %s1537_s3 = inlined_call_operand.vmem [shape: bf16[32,32], index: 3, kind: input, shape index: {}]   ;;  %s1538_s4 = inlined_call_operand.vmem [shape: f32[1,32], index: 4, kind: input, shape index: {}]   ;;  %s1539_s5 = inlined_call_operand.vmem [shape: f32[32,32], index: 5, kind: input, shape index: {}]   ;;  %s1540_s6 = inlined_call_operand.vmem [shape: f32[2,64,32], index: 6, kind: output, shape index: {}]  }
   0x1 LB: > { %s1020_s22 = sadd.s32 4294967295, %s1178_s21   ;;  %p1024_p0 = scmp.ge.s32.totalorder %s1178_s21, 1  ;;  %s1178_s21 = sphi %s1216_s21, %s16_s21  }
   0x2   : > { %p232_p1 = scmp.lt.s32.totalorder %s1178_s21, 3 }
   0x4   : > { %p233_p2 = pnand %p1024_p0, %p232_p1 }
   0x5   : > { %p272_p3 = scmp.lt.s32.totalorder (!%p233_p2), %s1020_s22, 1 }
   0x6   : > { %236 = sbr.rel (%p233_p2) target bundleno = 1163 (0x48b), region = 44 }
   0xb   : > { %s1542_s22 = smov (!%p272_p3, %s1020_s22), 1  ;;  %vm317_vm0 = vcmask 261120   ;;  %vm416_vm1 = vcmask 523264  }
   0xc   : > { %s1224_s23 = sshll.u32 %s1542_s22, 6 }
   0xd   : > { %s281_s26 = scalar_lea.vmem %s1535_s1, %s1224_s23  ;;  %s1234_s29 = scalar_lea.vmem %s1534_s0, %s1224_s23 }
   0xe   : > { %v1236_v0 = vld [vmem:[%s281_s26] sm:$0xff]  ;;  %v1238_v1 = vld [vmem:[%s281_s26 + $0x8] sm:$0xff]  ;;  %v1240_v2 = vld [vmem:[%s281_s26 + $0x10] sm:$0xff]  ;;  %s1349_s16 = scalar_lea.vmem %s1536_s2, %s1224_s23  ;;  %s1482_s27 = scalar_lea.vmem %s1540_s6, %s1224_s23 }
   0xf   : > { %v1242_v3 = vld [vmem:[%s281_s26 + $0x18] sm:$0xff]  ;;  %v1244_v4 = vld [vmem:[%s281_s26 + $0x20] sm:$0xff]  ;;  %v353_v5 = vmul.f32 %v1236_v0, %v1236_v0  ;;  %v354_v6 = vmul.f32 %v1238_v1, %v1238_v1  ;;  %v355_v7 = vmul.f32 %v1240_v2, %v1240_v2  ;;  %v1252_v8 = vld [vmem:[%s281_s26 + $0x28] sm:$0xff] }
  0x10   : > { %v356_v9 = vmul.f32 %v1242_v3, %v1242_v3  ;;  %v1257_v10 = vld [vmem:[%s1234_s29] sm:$0xff]  ;;  %v357_v11 = vmul.f32 %v1244_v4, %v1244_v4  ;;  %v1264_v14 = vld [vmem:[%s1234_s29 + $0x8] sm:$0xff]  ;;  %v1267_v15 = vld [vmem:[%s1234_s29 + $0x10] sm:$0xff]  ;;  %v358_v21 = vmul.f32 %v1252_v8, %v1252_v8 }
  0x11   : > { %v361_v12 = vsel %vm317_vm0, %v353_v5, 0.0  ;;  %v362_v13 = vsel %vm317_vm0, %v354_v6, 0.0  ;;  %v1270_v16 = vld [vmem:[%s1234_s29 + $0x18] sm:$0xff]  ;;  %v1272_v17 = vld [vmem:[%s281_s26 + $0x30] sm:$0xff]  ;;  %v364_v19 = vsel %vm317_vm0, %v355_v7, 0.0  ;;  %v1276_v20 = vld [vmem:[%s1234_s29 + $0x20] sm:$0xff]  ;;  %v309_v23 = vmul.f32 %v1257_v10, %v1257_v10 }
  0x12   : > { %v363_v18 = vadd.f32 %v362_v13, %v361_v12  ;;  %v366_v22 = vsel %vm317_vm0, %v356_v9, 0.0  ;;  %v1283_v24 = vld [vmem:[%s281_s26 + $0x38] sm:$0xff]  ;;  %v310_v26 = vmul.f32 %v1264_v14, %v1264_v14  ;;  %v311_v27 = vmul.f32 %v1267_v15, %v1267_v15  ;;  %v298_v31 = vld [vmem:[%s1234_s29 + $0x28] sm:$0xff]  ;;  %v299_v39 = vld [vmem:[%s1234_s29 + $0x30] sm:$0xff] }
  0x13   : > { %v312_v28 = vmul.f32 %v1270_v16, %v1270_v16  ;;  %v359_v29 = vmul.f32 %v1272_v17, %v1272_v17  ;;  %v368_v30 = vsel %vm317_vm0, %v357_v11, 0.0  ;;  %v313_v32 = vmul.f32 %v1276_v20, %v1276_v20  ;;  %v300_v45 = vld [vmem:[%s1234_s29 + $0x38] sm:$0xff] }
  0x14   : > { %v365_v25 = vadd.f32 %v364_v19, %v363_v18  ;;  %v318_v34 = vsel %vm317_vm0, %v309_v23, 0.0  ;;  %v319_v35 = vsel %vm317_vm0, %v310_v26, 0.0  ;;  %v321_v36 = vsel %vm317_vm0, %v311_v27, 0.0 }
  0x15   : > { %v360_v37 = vmul.f32 %v1283_v24, %v1283_v24  ;;  %v370_v38 = vsel %vm317_vm0, %v358_v21, 0.0  ;;  %v320_v40 = vadd.f32 %v319_v35, %v318_v34  ;;  %v314_v42 = vmul.f32 %v298_v31, %v298_v31 }
  0x16   : > { %v367_v33 = vadd.f32 %v366_v22, %v365_v25  ;;  %v323_v43 = vsel %vm317_vm0, %v312_v28, 0.0  ;;  %v372_v44 = vsel %vm317_vm0, %v359_v29, 0.0  ;;  %v315_v48 = vmul.f32 %v299_v39, %v299_v39 }
  0x17   : > { %v322_v46 = vadd.f32 %v321_v36, %v320_v40  ;;  %v325_v49 = vsel %vm317_vm0, %v313_v32, 0.0  ;;  %v374_v50 = vsel %vm317_vm0, %v360_v37, 0.0  ;;  %v316_v53 = vmul.f32 %v300_v45, %v300_v45 }
  0x18   : > { %v369_v41 = vadd.f32 %v368_v30, %v367_v33  ;;  %v327_v54 = vsel %vm317_vm0, %v314_v42, 0.0  ;;  %v329_v57 = vsel %vm317_vm0, %v315_v48, 0.0 }
  0x19   : > { %v324_v51 = vadd.f32 %v323_v43, %v322_v46  ;;  %v331_v60 = vsel %vm317_vm0, %v316_v53, 0.0  ;;  %v396_v46 = vld [vmem:[%s1539_s5] sm:$0xff] }
  0x1a   : > { %v371_v47 = vadd.f32 %v370_v38, %v369_v41 }
  0x1b   : > { %v326_v55 = vadd.f32 %v325_v49, %v324_v51 }
  0x1c   : > { %v373_v52 = vadd.f32 %v372_v44, %v371_v47  ;;  %v399_v44 = vld [vmem:[%s1539_s5 + $0x18] sm:$0xff] }
  0x1d   : > { %v328_v58 = vadd.f32 %v327_v54, %v326_v55 }
  0x1e   : > { %v375_v56 = vadd.f32 %v374_v50, %v373_v52  ;;  %v397_v52 = vld [vmem:[%s1539_s5 + $0x8] sm:$0xff] }
  0x1f   : > { %v330_v61 = vadd.f32 %v329_v57, %v328_v58 }
  0x20   : > { %v376_v59 = vrot.slane %v375_v56, 4 }
  0x21   : > { %v332_v63 = vadd.f32 %v331_v60, %v330_v61 }
  0x22   : > { %v377_v62 = vadd.f32 %v376_v59, %v375_v56 }
  0x23   : > { %v333_v6 = vrot.slane %v332_v63, 4 }
  0x24   : > { %v378_v5 = vrot.slane %v377_v62, 2 }
  0x25   : > { %v334_v9 = vadd.f32 %v333_v6, %v332_v63 }
  0x26   : > { %v379_v7 = vadd.f32 %v378_v5, %v377_v62 }
  0x27   : > { %v335_v12 = vrot.slane %v334_v9, 2 }
  0x28   : > { %v380_v11 = vrot.slane %v379_v7, 1 }
  0x29   : > { %v336_v18 = vadd.f32 %v335_v12, %v334_v9 }
  0x2a   : > { %v381_v13 = vadd.f32 %v380_v11, %v379_v7 }
  0x2b   : > { %v337_v21 = vrot.slane %v336_v18, 1 }
  0x2c   : > { %v382_v19 = vmax.f32 %v381_v13, 1e-24 }
  0x2d   : > { %v338_v22 = vadd.f32 %v337_v21, %v336_v18 }
  0x2e   : > { %1120 = vrsqrt.f32 %v382_v19 }
  0x2f   : > { %v339_v23 = vmax.f32 %v338_v22, 1e-24 }
  0x31   : > { %1122 = vrsqrt.f32 %v339_v23 }
  0x3b   : > { %v1121_v25 = vpop.eup %1120 }
  0x3c   : > { %v384_v26 = vmul.f32 %v1121_v25, %v1236_v0  ;;  %v385_v27 = vmul.f32 %v1121_v25, %v1238_v1  ;;  %v386_v28 = vmul.f32 %v1121_v25, %v1240_v2  ;;  %v387_v29 = vmul.f32 %v1121_v25, %v1242_v3 }
  0x3d   : > { %v388_v34 = vmul.f32 %v1121_v25, %v1244_v4  ;;  %v389_v35 = vmul.f32 %v1121_v25, %v1252_v8  ;;  %v390_v42 = vmul.f32 %v1121_v25, %v1272_v17  ;;  %v391_v43 = vmul.f32 %v1121_v25, %v1283_v24  ;;  %v518_v25 = vld [vmem:[%s1349_s16] sm:$0xff] }
  0x3e   : > { %v392_v30 = vpack.c.bf16 %v385_v27, %v384_v26  ;;  %v1123_v32 = vpop.eup %1122  ;;  %v393_v33 = vpack.c.bf16 %v387_v29, %v386_v28  ;;  %v519_v26 = vld [vmem:[%s1349_s16 + $0x8] sm:$0xff] }
  0x3f   : > { %v347_v36 = vmul.f32 %v1123_v32, %v299_v39  ;;  %v348_v37 = vmul.f32 %v1123_v32, %v300_v45  ;;  %v345_v38 = vmul.f32 %v1123_v32, %v1276_v20  ;;  %v346_v40 = vmul.f32 %v1123_v32, %v298_v31 }
  0x40   : > { %400 = vxpose.xlu0.c.b16.start [1/4] (short) (narrow) %v392_v30, 32  ;;  %v343_v1 = vmul.f32 %v1123_v32, %v1267_v15  ;;  %v344_v2 = vmul.f32 %v1123_v32, %v1270_v16  ;;  %v394_v3 = vpack.c.bf16 %v389_v35, %v388_v34  ;;  %v341_v8 = vmul.f32 %v1123_v32, %v1257_v10  ;;  %v398_v10 = vld [vmem:[%s1539_s5 + $0x10] sm:$0xff] }
  0x41   : > { %v352_v0 = vpack.c.bf16 %v348_v37, %v347_v36  ;;  %v351_v41 = vpack.c.bf16 %v346_v40, %v345_v38  ;;  %v342_v20 = vmul.f32 %v1123_v32, %v1264_v14  ;;  %v395_v31 = vpack.c.bf16 %v391_v43, %v390_v42  ;;  %v520_v42 = vld [vmem:[%s1349_s16 + $0x10] sm:$0xff]  ;;  %v521_v43 = vld [vmem:[%s1349_s16 + $0x18] sm:$0xff] }
  0x42   : > { %v350_v4 = vpack.c.bf16 %v344_v2, %v343_v1  ;;  %v526_v27 = vpack.c.bf16 %v519_v26, %v518_v25 }
  0x43   : > { %1070 = vmatprep.subr.bf16.mxu0 %v352_v0  ;;  %v349_v15 = vpack.c.bf16 %v342_v20, %v341_v8  ;;  %v523_v8 = vld [vmem:[%s1349_s16 + $0x28] sm:$0xff]  ;;  %v527_v20 = vpack.c.bf16 %v521_v43, %v520_v42 }
  0x44   : > { %401 = vxpose.xlu0.c.b16.cont [2/4] (short) (narrow) %v393_v33, 32  ;;  %1071 = vmatpush3.bf16.msra.mxu0 %v352_v0 }
  0x45   : > { %1072 = vmatprep.subr.bf16.mxu0 %v351_v41  ;;  %1086 = vmatprep.mubr.msk.bf16.mxu1 %vm317_vm0, %v526_v27 }
  0x48   : > { %402 = vxpose.xlu0.c.b16.cont [3/4] (short) (narrow) %v394_v3, 32  ;;  %1073 = vmatpush3.bf16.msra.mxu0 %v351_v41 }
  0x49   : > { %1074 = vmatprep.subr.bf16.mxu0 %v350_v4 }
  0x4c   : > { %403 = vxpose.xlu0.c.b16.end [4/4] (short) (narrow) %v395_v31, 32  ;;  %1075 = vmatpush3.bf16.msra.mxu0 %v350_v4  ;;  %v522_v4 = vld [vmem:[%s1349_s16 + $0x20] sm:$0xff] }
  0x4d   : > { %1076 = vmatprep.subr.bf16.mxu0 %v349_v15  ;;  %v528_v31 = vpack.c.bf16 %v523_v8, %v522_v4 }
  0x50   : > { %1077 = vmatpush3.bf16.msra.mxu0 %v349_v15  ;;  %v524_v15 = vld [vmem:[%s1349_s16 + $0x30] sm:$0xff] }
  0xa2   : > { %v408_v16 = vpop.trf.xlu0 }
  0xa3   : > { %1078 = vmatprep.mubr.msk.bf16.mxu0 %vm416_vm1, %v408_v16  ;;  %v525_v16 = vld [vmem:[%s1349_s16 + $0x38] sm:$0xff] }
  0xa6   : > { %v409_v17 = vpop.trf.xlu0 }
  0xa7   : > { %1079 = vmatmul.mubr.msk.bf16.vlgmr.msra.gmra.mxu0 %vm416_vm1, %v409_v17  ;;  %v529_v17 = vpack.c.bf16 %v525_v16, %v524_v15 }
 0x167   : > { %v1080_v24 = vpop.f32.mrf.mxu0 }
 0x168   : > { %v466_v14 = vadd.f32 %v1080_v24, %v398_v10  ;;  %v1118_v10 = vld [vmem:[%s1537_s3 + $0x8] sm:$0xff]   ;;  %v1119_v24 = vld [vmem:[%s1537_s3] sm:$0xff]  }
 0x169   : > { %v457_v39 = vpop.f32.mrf.mxu0  ;;  %1094 = vmatprep.subr.bf16.mxu0 %v1118_v10 }
 0x16a   : > { %v478_v45 = vsel %vm317_vm0, %v466_v14, -inf  ;;  %v458_v49 = vadd.f32 %v457_v39, %v396_v46  ;;  %1095 = vmatpush3.bf16.msra.mxu0 %v1118_v10 }
 0x16b   : > { %479 = vmax.xlane.f32.xlu1 %v478_v45  ;;  %v1081_v47 = vpop.f32.mrf.mxu0  ;;  %1096 = vmatprep.subr.bf16.mxu0 %v1119_v24 }
 0x16c   : > { %v469_v48 = vadd.f32 %v1081_v47, %v399_v44  ;;  %v472_v54 = vsel %vm317_vm0, %v458_v49, -inf }
 0x16d   : > { %v460_v51 = vpop.f32.mrf.mxu0 }
 0x16e   : > { %v481_v50 = vsel %vm317_vm0, %v469_v48, -inf  ;;  %v461_v53 = vadd.f32 %v460_v51, %v397_v52  ;;  %1097 = vmatpush3.bf16.msra.mxu0 %v1119_v24 }
 0x16f   : > { %482 = vmax.xlane.f32.xlu1 %v481_v50 }
 0x170   : > { %v475_v55 = vsel %vm317_vm0, %v461_v53, -inf }
 0x173   : > { %473 = vmax.xlane.f32.xlu1 %v472_v54  ;;  %v1039_v54 = vld [vmem:[%s1538_s4] ss:$0 sm:$0xff] }
 0x177   : > { %476 = vmax.xlane.f32.xlu1 %v475_v55 }
 0x1f4   : > { %v480_v56 = vpop.xlane.xlu1 %479 }
 0x1f5   : > { %v486_v57 = vsub.f32 %v466_v14, %v480_v56 }
 0x1f7   : > { %v492_v58 = vmul.f32 1.442695, %v486_v57 }
 0x1f8   : > { %v483_v59 = vpop.xlane.xlu1 %482 }
 0x1f9   : > { %1124 = vpow2.f32 %v492_v58  ;;  %v487_v60 = vsub.f32 %v469_v48, %v483_v59 }
 0x1fb   : > { %v494_v61 = vmul.f32 1.442695, %v487_v60 }
 0x1fc   : > { %v474_v62 = vpop.xlane.xlu1 %473 }
 0x1fd   : > { %1126 = vpow2.f32 %v494_v61  ;;  %v484_v63 = vsub.f32 %v458_v49, %v474_v62 }
 0x1ff   : > { %v488_v5 = vmul.f32 1.442695, %v484_v63 }
 0x200   : > { %v477_v6 = vpop.xlane.xlu1 %476 }
 0x201   : > { %1128 = vpow2.f32 %v488_v5  ;;  %v485_v7 = vsub.f32 %v461_v53, %v477_v6 }
 0x203   : > { %v490_v9 = vmul.f32 1.442695, %v485_v7 }
 0x205   : > { %1130 = vpow2.f32 %v490_v9 }
 0x206   : > { %v1125_v11 = vpop.eup %1124 }
 0x207   : > { %v502_v12 = vsel %vm317_vm0, %v1125_v11, 0.0 }
 0x208   : > { %503 = vadd.xlane.f32.xlu0 %v502_v12 }
 0x20a   : > { %v1127_v13 = vpop.eup %1126 }
 0x20b   : > { %v505_v18 = vsel %vm317_vm0, %v1127_v13, 0.0 }
 0x20c   : > { %506 = vadd.xlane.f32.xlu1 %v505_v18 }
 0x20e   : > { %v1129_v19 = vpop.eup %1128 }
 0x20f   : > { %v496_v21 = vsel %vm317_vm0, %v1129_v19, 0.0 }
 0x210   : > { %497 = vadd.xlane.f32.xlu1 %v496_v21 }
 0x212   : > { %v1131_v22 = vpop.eup %1130 }
 0x213   : > { %v499_v23 = vsel %vm317_vm0, %v1131_v22, 0.0 }
 0x214   : > { %500 = vadd.xlane.f32.xlu1 %v499_v23 }
 0x291   : > { %v504_v28 = vpop.xlane.xlu0 %503 }
 0x292   : > { %1132 = vrcp.f32 %v504_v28 }
 0x295   : > { %v507_v29 = vpop.xlane.xlu1 %506 }
 0x296   : > { %1134 = vrcp.f32 %v507_v29 }
 0x299   : > { %v498_v30 = vpop.xlane.xlu1 %497 }
 0x29a   : > { %1136 = vrcp.f32 %v498_v30 }
 0x29d   : > { %v501_v32 = vpop.xlane.xlu1 %500 }
 0x29e   : > { %1138 = vrcp.f32 %v501_v32 }
 0x29f   : > { %v1133_v33 = vpop.eup %1132 }
 0x2a0   : > { %v514_v35 = vmul.f32 %v1133_v33, %v1125_v11 }
 0x2a3   : > { %v1135_v34 = vpop.eup %1134 }
 0x2a4   : > { %v515_v36 = vmul.f32 %v1135_v34, %v1127_v13 }
 0x2a6   : > { %v517_v37 = vpack.c.bf16 %v515_v36, %v514_v35 }
 0x2a7   : > { %v1137_v40 = vpop.eup %1136 }
 0x2a8   : > { %1106 = vmatprep.subr.msk.bf16.mxu1 %vm317_vm0, %v517_v37  ;;  %v546_v38 = vsel %vm317_vm0, %v517_v37, 0  ;;  %v512_v41 = vmul.f32 %v1137_v40, %v1129_v19 }
 0x2a9   : > { %1083 = vmatpush3.bf16.xpose.msra.mxu1 %v546_v38 }
 0x2ab   : > { %v1139_v0 = vpop.eup %1138 }
 0x2ac   : > { %v513_v1 = vmul.f32 %v1139_v0, %v1131_v22 }
 0x2ae   : > { %v516_v2 = vpack.c.bf16 %v513_v1, %v512_v41 }
 0x2b0   : > { %1107 = vmatprep.subr.msk.bf16.mxu1 %vm317_vm0, %v516_v2  ;;  %v543_v3 = vsel %vm317_vm0, %v516_v2, 0 }
 0x2b1   : > { %1085 = vmatpush3.bf16.xpose.msra.mxu1 %v543_v3 }
 0x2b8   : > { %1087 = vmatmul.mubr.msk.bf16.vlgmr.msra.gmra.mxu1 %vm317_vm0, %v527_v20 }
 0x2b9   : > { %1090 = vmatprep.mubr.msk.bf16.mxu1 %vm317_vm0, %v528_v31 }
 0x2c0   : > { %1091 = vmatmul.mubr.msk.bf16.gmra.mxu1 %vm317_vm0, %v529_v17 }
 0x378   : > { %v1088_v14 = vpop.f32.mrf.mxu1 }
 0x37a   : > { %v582_v39 = vpop.f32.mrf.mxu1 }
 0x37c   : > { %v1089_v44 = vpop.f32.mrf.mxu1 }
 0x37d   : > { %v614_v47 = vpack.c.bf16 %v1089_v44, %v1088_v14 }
 0x37e   : > { %v585_v45 = vpop.f32.mrf.mxu1 }
 0x37f   : > { %v613_v46 = vpack.c.bf16 %v585_v45, %v582_v39 }
 0x380   : > { %v1092_v48 = vpop.f32.mrf.mxu1 }
 0x381   : > { %1098 = vmatprep.mubr.msk.bf16.mxu0 %vm317_vm0, %v613_v46 }
 0x382   : > { %v598_v49 = vpop.f32.mrf.mxu1  ;;  %1099 = vmatmul.mubr.msk.bf16.vlgmr.msra.gmra.mxu0 %vm317_vm0, %v614_v47  ;;  %v1180_v47 = vmov -1.0  }
 0x384   : > { %v1093_v50 = vpop.f32.mrf.mxu1 }
 0x385   : > { %v616_v53 = vpack.c.bf16 %v1093_v50, %v1092_v48 }
 0x386   : > { %v601_v51 = vpop.f32.mrf.mxu1 }
 0x387   : > { %v615_v52 = vpack.c.bf16 %v601_v51, %v598_v49 }
 0x389   : > { %1102 = vmatprep.mubr.msk.bf16.mxu0 %vm317_vm0, %v615_v52 }
 0x38a   : > { %1103 = vmatmul.mubr.msk.bf16.gmra.mxu0 %vm317_vm0, %v616_v53 }
 0x442   : > { %v1100_v55 = vpop.f32.mrf.mxu0 }
 0x443   : > { %v695_v56 = vadd.f32 %v1100_v55, %v1039_v54 }
 0x444   : > { %v686_v57 = vpop.f32.mrf.mxu0 }
 0x445   : > { %v727_v58 = vmul.f32 0.70710677, %v695_v56  ;;  %v687_v59 = vadd.f32 %v1039_v54, %v686_v57  ;;  %v1411_v4 = vmul.f32 0.5, %v695_v56 }
 0x446   : > { %v1101_v60 = vpop.f32.mrf.mxu0 }
 0x447   : > { %v751_v61 = vand.u32 2147483647, %v727_v58  ;;  %v725_v62 = vmul.f32 0.70710677, %v687_v59  ;;  %v1380_v63 = vadd.f32 %v1101_v60, %v1039_v54  ;;  %vm735_vm2 = vcmp.ge.f32.partialorder %v727_v58, 0.0 }
 0x448   : > { %v689_v5 = vpop.f32.mrf.mxu0  ;;  %v1420_v44 = vmul.f32 0.5, %v687_v59  ;;  %v1423_v48 = vsel %vm735_vm2, 1.0, %v1180_v47 }
 0x449   : > { %v759_v6 = vmul.f32 0.3275911, %v751_v61  ;;  %v749_v7 = vand.u32 2147483647, %v725_v62  ;;  %v1383_v9 = vmul.f32 0.70710677, %v1380_v63  ;;  %v1385_v11 = vadd.f32 %v1039_v54, %v689_v5 }
 0x44a   : > { %v1104_v12 = vpop.f32.mrf.mxu0  ;;  %v863_v33 = vsub.f32 0.0, %v751_v61  ;;  %vm733_vm3 = vcmp.ge.f32.partialorder %v725_v62, 0.0 }
 0x44b   : > { %v767_v13 = vadd.f32 1.0, %v759_v6  ;;  %v757_v18 = vmul.f32 0.3275911, %v749_v7  ;;  %v752_v19 = vand.u32 2147483647, %v1383_v9  ;;  %v1392_v28 = vadd.f32 %v1104_v12, %v1039_v54 }
 0x44c   : > { %v1389_v21 = vmul.f32 0.70710677, %v1385_v11  ;;  %v702_v22 = vpop.f32.mrf.mxu0  ;;  %v861_v37 = vsub.f32 0.0, %v749_v7  ;;  %v871_v41 = vmul.f32 %v863_v33, %v751_v61  ;;  %v1426_v49 = vsel %vm733_vm3, 1.0, %v1180_v47 }
 0x44d   : > { %1140 = vrcp.f32 %v767_v13  ;;  %v765_v23 = vadd.f32 1.0, %v757_v18  ;;  %v760_v25 = vmul.f32 0.3275911, %v752_v19  ;;  %v1394_v32 = vadd.f32 %v1039_v54, %v702_v22 }
 0x44e   : > { %v750_v26 = vand.u32 2147483647, %v1389_v21  ;;  %v1105_v29 = vpop.f32.mrf.mxu0  ;;  %v1397_v34 = vmul.f32 0.70710677, %v1392_v28  ;;  %v864_v1 = vsub.f32 0.0, %v752_v19  ;;  %v869_v8 = vmul.f32 %v861_v37, %v749_v7 }
 0x44f   : > { %1142 = vrcp.f32 %v765_v23  ;;  %v768_v27 = vadd.f32 1.0, %v760_v25  ;;  %v1400_v36 = vmul.f32 0.70710677, %v1394_v32  ;;  %v1403_v40 = vadd.f32 %v1105_v29, %v1039_v54 }
 0x450   : > { %v758_v30 = vmul.f32 0.3275911, %v750_v26  ;;  %v755_v38 = vand.u32 2147483647, %v1397_v34  ;;  %v705_v0 = vpop.f32.mrf.mxu0  ;;  %v881_v10 = vmul.f32 1.442695, %v871_v41  ;;  %v872_v24 = vmul.f32 %v864_v1, %v752_v19 }
 0x451   : > { %1144 = vrcp.f32 %v768_v27  ;;  %v753_v3 = vand.u32 2147483647, %v1400_v36  ;;  %v1407_v42 = vmul.f32 0.70710677, %v1403_v40  ;;  %v1409_v43 = vadd.f32 %v1039_v54, %v705_v0 }
 0x452   : > { %v766_v35 = vadd.f32 1.0, %v758_v30  ;;  %v763_v2 = vmul.f32 0.3275911, %v755_v38  ;;  %v862_v45 = vsub.f32 0.0, %v750_v26  ;;  %v877_v50 = vmul.f32 1.442695, %v869_v8 }
 0x453   : > { %v761_v31 = vmul.f32 0.3275911, %v753_v3  ;;  %v756_v15 = vand.u32 2147483647, %v1407_v42  ;;  %v1415_v16 = vmul.f32 0.70710677, %v1409_v43 }
 0x454   : > { %1146 = vrcp.f32 %v766_v35  ;;  %v771_v20 = vadd.f32 1.0, %v763_v2  ;;  %v867_v54 = vsub.f32 0.0, %v755_v38  ;;  %v883_v57 = vmul.f32 1.442695, %v872_v24 }
 0x455   : > { %v769_v14 = vadd.f32 1.0, %v761_v31  ;;  %v764_v46 = vmul.f32 0.3275911, %v756_v15  ;;  %v754_v51 = vand.u32 2147483647, %v1415_v16  ;;  %v870_v61 = vmul.f32 %v862_v45, %v750_v26 }
 0x456   : > { %1148 = vrcp.f32 %v771_v20  ;;  %v865_v62 = vsub.f32 0.0, %v753_v3  ;;  %v868_v7 = vsub.f32 0.0, %v756_v15  ;;  %v1437_v18 = vmul.f32 0.5, %v1380_v63 }
 0x457   : > { %1150 = vrcp.f32 %v769_v14  ;;  %v772_v55 = vadd.f32 1.0, %v764_v46  ;;  %v762_v58 = vmul.f32 0.3275911, %v754_v51  ;;  %v875_v19 = vmul.f32 %v867_v54, %v755_v38 }
 0x458   : > { %1152 = vpow2.f32 %v881_v10  ;;  %v866_v26 = vsub.f32 0.0, %v754_v51  ;;  %v879_v30 = vmul.f32 1.442695, %v870_v61  ;;  %v873_v33 = vmul.f32 %v865_v62, %v753_v3 }
 0x459   : > { %1154 = vrcp.f32 %v772_v55  ;;  %v770_v12 = vadd.f32 1.0, %v762_v58  ;;  %v876_v63 = vmul.f32 %v868_v7, %v756_v15  ;;  %v889_v41 = vmul.f32 1.442695, %v875_v19 }
 0x45a   : > { %v1417_v17 = vpop.eup %1140  ;;  %1156 = vpow2.f32 %v877_v50  ;;  %vm736_vm4 = vcmp.ge.f32.partialorder %v1383_v9, 0.0  ;;  %v874_v8 = vmul.f32 %v866_v26, %v754_v51  ;;  %v885_v10 = vmul.f32 1.442695, %v873_v33 }
 0x45b   : > { %v791_v39 = vmul.f32 1.0614054, %v1417_v17  ;;  %1158 = vrcp.f32 %v770_v12  ;;  %v744_v46 = vsel %vm736_vm4, 1.0, %v1180_v47  ;;  %vm734_vm5 = vcmp.ge.f32.partialorder %v1389_v21, 0.0 }
 0x45c   : > { %v1429_v52 = vpop.eup %1142  ;;  %1160 = vpow2.f32 %v883_v57  ;;  %v887_v55 = vmul.f32 1.442695, %v874_v8  ;;  %vm739_vm6 = vcmp.ge.f32.partialorder %v1397_v34, 0.0  ;;  %vm737_vm7 = vcmp.ge.f32.partialorder %v1400_v36, 0.0 }
 0x45d   : > { %v799_v53 = vadd.f32 -1.4531521, %v791_v39  ;;  %v789_v56 = vmul.f32 1.0614054, %v1429_v52  ;;  %1162 = vpow2.f32 %v879_v30  ;;  %v891_v39 = vmul.f32 1.442695, %v876_v63 }
 0x45e   : > { %v1432_v59 = vpop.eup %1144  ;;  %1164 = vpow2.f32 %v889_v41  ;;  %v747_v34 = vsel %vm739_vm6, 1.0, %v1180_v47  ;;  %vm740_vm8 = vcmp.ge.f32.partialorder %v1407_v42, 0.0  ;;  %vm738_vm9 = vcmp.ge.f32.partialorder %v1415_v16, 0.0 }
 0x45f   : > { %v807_v60 = vmul.f32 %v1417_v17, %v799_v53  ;;  %v797_v5 = vadd.f32 -1.4531521, %v789_v56  ;;  %v792_v6 = vmul.f32 1.0614054, %v1432_v59  ;;  %1166 = vpow2.f32 %v885_v10 }
 0x460   : > { %1168 = vpow2.f32 %v891_v39  ;;  %v721_v42 = vmul.f32 0.5, %v1394_v32 }
 0x461   : > { %v815_v13 = vadd.f32 1.4214138, %v807_v60  ;;  %v1439_v22 = vpop.eup %1146  ;;  %v805_v23 = vmul.f32 %v1429_v52, %v797_v5  ;;  %v800_v25 = vadd.f32 -1.4531521, %v792_v6  ;;  %1170 = vpow2.f32 %v887_v55 }
 0x462   : > { %v790_v29 = vmul.f32 1.0614054, %v1439_v22 }
 0x463   : > { %v823_v27 = vmul.f32 %v1417_v17, %v815_v13  ;;  %v813_v35 = vadd.f32 1.4214138, %v805_v23  ;;  %v808_v37 = vmul.f32 %v1432_v59, %v800_v25  ;;  %v1447_v20 = vpop.eup %1148 }
 0x464   : > { %v798_v38 = vadd.f32 -1.4531521, %v790_v29  ;;  %v795_v14 = vmul.f32 1.0614054, %v1447_v20  ;;  %v1454_v50 = vpop.eup %1150 }
 0x465   : > { %v831_v0 = vadd.f32 -0.28449672, %v823_v27  ;;  %v821_v1 = vmul.f32 %v1429_v52, %v813_v35  ;;  %v816_v2 = vadd.f32 1.4214138, %v808_v37  ;;  %v1153_v56 = vpop.eup %1152  ;;  %v793_v60 = vmul.f32 1.0614054, %v1454_v50 }
 0x466   : > { %v806_v3 = vmul.f32 %v1439_v22, %v798_v38  ;;  %v803_v54 = vadd.f32 -1.4531521, %v795_v14  ;;  %v1460_v61 = vpop.eup %1154 }
 0x467   : > { %v839_v31 = vmul.f32 %v1417_v17, %v831_v0  ;;  %v829_v24 = vadd.f32 -0.28449672, %v821_v1  ;;  %v824_v15 = vmul.f32 %v1432_v59, %v816_v2  ;;  %v801_v13 = vadd.f32 -1.4531521, %v793_v60  ;;  %v1157_v19 = vpop.eup %1156 }
 0x468   : > { %v814_v9 = vadd.f32 1.4214138, %v806_v3  ;;  %v811_v6 = vmul.f32 %v1447_v20, %v803_v54  ;;  %v1467_v27 = vpop.eup %1158 }
 0x469   : > { %v847_v45 = vadd.f32 0.2548296, %v839_v31  ;;  %v837_v51 = vmul.f32 %v1429_v52, %v829_v24  ;;  %v832_v53 = vadd.f32 -0.28449672, %v824_v15  ;;  %v809_v33 = vmul.f32 %v1454_v50, %v801_v13 }
 0x46a   : > { %v822_v58 = vmul.f32 %v1439_v22, %v814_v9  ;;  %v819_v26 = vadd.f32 1.4214138, %v811_v6  ;;  %v794_v38 = vmul.f32 1.0614054, %v1467_v27 }
 0x46b   : > { %v855_v57 = vmul.f32 %v1417_v17, %v847_v45  ;;  %v845_v62 = vadd.f32 0.2548296, %v837_v51  ;;  %v840_v5 = vmul.f32 %v1432_v59, %v832_v53  ;;  %v796_v17 = vmul.f32 1.0614054, %v1460_v61 }
 0x46c   : > { %v830_v12 = vadd.f32 -0.28449672, %v822_v58  ;;  %v827_v0 = vmul.f32 %v1447_v20, %v819_v26  ;;  %v817_v2 = vadd.f32 1.4214138, %v809_v33  ;;  %v802_v24 = vadd.f32 -1.4531521, %v794_v38 }
 0x46d   : > { %v895_v7 = vmul.f32 %v1153_v56, %v855_v57  ;;  %v853_v23 = vmul.f32 %v1429_v52, %v845_v62  ;;  %v848_v25 = vadd.f32 0.2548296, %v840_v5  ;;  %v804_v35 = vadd.f32 -1.4531521, %v796_v17  ;;  %v1161_v52 = vpop.eup %1160 }
 0x46e   : > { %v838_v30 = vmul.f32 %v1439_v22, %v830_v12  ;;  %v835_v10 = vadd.f32 -0.28449672, %v827_v0  ;;  %v1163_v45 = vpop.eup %1162  ;;  %v810_v53 = vmul.f32 %v1467_v27, %v802_v24 }
 0x46f   : > { %v903_v29 = vsub.f32 1.0, %v895_v7  ;;  %v893_v37 = vmul.f32 %v1157_v19, %v853_v23  ;;  %v856_v63 = vmul.f32 %v1432_v59, %v848_v25  ;;  %v812_v8 = vmul.f32 %v1460_v61, %v804_v35  ;;  %v1165_v57 = vpop.eup %1164 }
 0x470   : > { %v846_v1 = vadd.f32 0.2548296, %v838_v30  ;;  %v825_v59 = vmul.f32 %v1454_v50, %v817_v2  ;;  %v843_v51 = vmul.f32 %v1447_v20, %v835_v10  ;;  %v818_v5 = vadd.f32 1.4214138, %v810_v53  ;;  %v1167_v12 = vpop.eup %1166 }
 0x471   : > { %v911_v41 = vmul.f32 %v903_v29, %v1423_v48  ;;  %v901_v31 = vsub.f32 1.0, %v893_v37  ;;  %v896_v3 = vmul.f32 %v1161_v52, %v856_v63  ;;  %v820_v39 = vadd.f32 1.4214138, %v812_v8  ;;  %v1169_v23 = vpop.eup %1168 }
 0x472   : > { %v854_v14 = vmul.f32 %v1439_v22, %v846_v1  ;;  %v833_v55 = vadd.f32 -0.28449672, %v825_v59  ;;  %v851_v62 = vadd.f32 0.2548296, %v843_v51  ;;  %v723_v8 = vmul.f32 0.5, %v1392_v28 }
 0x473   : > { %v919_v15 = vadd.f32 1.0, %v911_v41  ;;  %v909_v48 = vmul.f32 %v901_v31, %v1426_v49  ;;  %v904_v9 = vsub.f32 1.0, %v896_v3  ;;  %v828_v56 = vmul.f32 %v1460_v61, %v820_v39 }
 0x474   : > { %v894_v22 = vmul.f32 %v1163_v45, %v854_v14  ;;  %v742_v49 = vsel %vm734_vm5, 1.0, %v1180_v47  ;;  %v841_v7 = vmul.f32 %v1454_v50, %v833_v55  ;;  %v859_v19 = vmul.f32 %v1447_v20, %v851_v62 }
 0x475   : > { %v927_v54 = vmul.f32 %v919_v15, %v1411_v4  ;;  %v917_v58 = vadd.f32 1.0, %v909_v48  ;;  %v912_v60 = vmul.f32 %v904_v9, %v744_v46  ;;  %v836_v4 = vadd.f32 -0.28449672, %v828_v56 }
 0x476   : > { %v902_v6 = vsub.f32 1.0, %v894_v22  ;;  %v826_v46 = vmul.f32 %v1467_v27, %v818_v5  ;;  %v849_v26 = vadd.f32 0.2548296, %v841_v7  ;;  %v899_v30 = vmul.f32 %v1165_v57, %v859_v19 }
 0x477   : > { %935 = vst.msk [vmem:[%s1482_s27 + $0x10] sm:$0xff] %vm317_vm0, %v927_v54  ;;  %v925_v13 = vmul.f32 %v917_v58, %v1420_v44  ;;  %v920_v17 = vadd.f32 1.0, %v912_v60  ;;  %v844_v21 = vmul.f32 %v1460_v61, %v836_v4  ;;  %v1171_v44 = vpop.eup %1170  ;;  %v718_v20 = vmul.f32 0.5, %v1385_v11 }
 0x478   : > { %v910_v25 = vmul.f32 %v902_v6, %v742_v49  ;;  %v834_v33 = vadd.f32 -0.28449672, %v826_v46  ;;  %v857_v37 = vmul.f32 %v1454_v50, %v849_v26  ;;  %v907_v0 = vsub.f32 1.0, %v899_v30 }
 0x479   : > { %933 = vst.msk [vmem:[%s1482_s27] sm:$0xff] %vm317_vm0, %v925_v13  ;;  %v928_v29 = vmul.f32 %v920_v17, %v1437_v18  ;;  %v852_v63 = vadd.f32 0.2548296, %v844_v21  ;;  %v745_v3 = vsel %vm737_vm7, 1.0, %v1180_v47  ;;  %v748_v15 = vsel %vm740_vm8, 1.0, %v1180_v47 }
 0x47a   : > { %v918_v35 = vadd.f32 1.0, %v910_v25  ;;  %v842_v38 = vmul.f32 %v1467_v27, %v834_v33  ;;  %v897_v18 = vmul.f32 %v1167_v12, %v857_v37  ;;  %v915_v1 = vmul.f32 %v907_v0, %v747_v34 }
 0x47b   : > { %936 = vst.msk [vmem:[%s1482_s27 + $0x18] sm:$0xff] %vm317_vm0, %v928_v29  ;;  %v860_v41 = vmul.f32 %v1460_v61, %v852_v63  ;;  %v746_v9 = vsel %vm738_vm9, 1.0, %v1180_v47  ;;  %v722_v53 = vmul.f32 0.5, %v1409_v43 }
 0x47c   : > { %v926_v52 = vmul.f32 %v918_v35, %v718_v20  ;;  %v850_v2 = vadd.f32 0.2548296, %v842_v38  ;;  %v905_v11 = vsub.f32 1.0, %v897_v18  ;;  %v923_v31 = vadd.f32 1.0, %v915_v1 }
 0x47d   : > { %v900_v50 = vmul.f32 %v1169_v23, %v860_v41 }
 0x47e   : > { %934 = vst.msk [vmem:[%s1482_s27 + $0x8] sm:$0xff] %vm317_vm0, %v926_v52  ;;  %v858_v10 = vmul.f32 %v1467_v27, %v850_v2  ;;  %v913_v36 = vmul.f32 %v905_v11, %v745_v3  ;;  %v931_v61 = vmul.f32 %v923_v31, %v723_v8  ;;  %v724_v27 = vmul.f32 0.5, %v1403_v40 }
 0x47f   : > { %v908_v24 = vsub.f32 1.0, %v900_v50 }
 0x480   : > { %v898_v14 = vmul.f32 %v1171_v44, %v858_v10  ;;  %v921_v59 = vadd.f32 1.0, %v913_v36  ;;  %939 = vst.msk [vmem:[%s1482_s27 + $0x30] sm:$0xff] %vm317_vm0, %v931_v61 }
 0x481   : > { %v916_v28 = vmul.f32 %v908_v24, %v748_v15 }
 0x482   : > { %v906_v39 = vsub.f32 1.0, %v898_v14  ;;  %v929_v45 = vmul.f32 %v921_v59, %v721_v42 }
 0x483   : > { %v924_v48 = vadd.f32 1.0, %v916_v28 }
 0x484   : > { %v914_v51 = vmul.f32 %v906_v39, %v746_v9  ;;  %937 = vst.msk [vmem:[%s1482_s27 + $0x20] sm:$0xff] %vm317_vm0, %v929_v45 }
 0x485   : > { %v932_v16 = vmul.f32 %v924_v48, %v724_v27 }
 0x486   : > { %v922_v54 = vadd.f32 1.0, %v914_v51 }
 0x487   : > { %940 = vst.msk [vmem:[%s1482_s27 + $0x38] sm:$0xff] %vm317_vm0, %v932_v16 }
 0x488   : > { %v930_v32 = vmul.f32 %v922_v54, %v722_v53 }
 0x48a   : > { %938 = vst.msk [vmem:[%s1482_s27 + $0x28] sm:$0xff] %vm317_vm0, %v930_v32 }
 0x48b PF: > { %s16_s21 = sadd.s32 1, %s1178_s21  }
 0x48c   : > { %p13_p4 = scmp.ge.s32.totalorder %s16_s21, 4  }
 0x48e   :  { %15 = sbr.rel (!%p13_p4) target bundleno = 1 (0x1), region = 80 }

// kernel: forward_pallas.7
= control target key start
LH: loop header
LB: loop body
LE: loop exit
PB: predicated region body
PF: predicated region fallthrough
CT: control target
= control target key end

     0   :  { %s3701_s24 = smov 0   ;;  %s5901_s0 = inlined_call_operand.vmem [shape: f32[2,8,8,32], index: 0, kind: input, shape index: {}]   ;;  %s5902_s1 = inlined_call_operand.vmem [shape: bf16[2,8,8,32], index: 1, kind: input, shape index: {}]   ;;  %s5903_s2 = inlined_call_operand.vmem [shape: f32[2,1,32], index: 2, kind: input, shape index: {}]   ;;  %s5904_s3 = inlined_call_operand.vmem [shape: f32[2,8,8,32], index: 3, kind: input, shape index: {}]   ;;  %s5905_s4 = inlined_call_operand.vmem [shape: f32[49,32], index: 4, kind: input, shape index: {}]   ;;  %s5906_s5 = inlined_call_operand.vmem [shape: bf16[288,32], index: 5, kind: input, shape index: {}]   ;;  %s5907_s6 = inlined_call_operand.vmem [shape: f32[2,8,8,32], index: 6, kind: output, shape index: {0}]   ;;  %s5908_s7 = inlined_call_operand.vmem [shape: f32[2,1,64], index: 7, kind: output, shape index: {1}]  }
   0x1 LB: > { %s3360_s25 = sadd.s32 4294967295, %s3654_s24   ;;  %p3364_p0 = scmp.ge.s32.totalorder %s3654_s24, 1  ;;  %s3654_s24 = sphi %s3701_s24, %s18_s24  }
   0x2   : > { %p268_p1 = scmp.lt.s32.totalorder %s3654_s24, 3 }
   0x4   : > { %p269_p2 = pnand %p3364_p0, %p268_p1 }
   0x6   : > { %272 = sbr.rel (%p269_p2) target bundleno = 860 (0x35c), region = 44 }
   0xb   : > { %p3711_p3 = scmp.lt.s32.totalorder %s3360_s25, 1  ;;  %vm343_vm0 = vcmask 261120   ;;  %vm345_vm1 = vcmask 259072   ;;  %v5909_v0 = vlaneseq  ;;  %v3656_v1 = vmov 0.0   ;;  %v390_v2 = vld [vmem:[%s5905_s4] sm:$0xff]  ;;  %v3825_v34 = vld [vmem:[%s5905_s4 + $0x8] sm:$0xff] }
   0xc   : > { %344 = vst.msk [vmem:[#allocation2] sm:$0xff] %vm343_vm0, %v3656_v1  ;;  %347 = vst.msk [vmem:[#allocation2 + $0x10] sm:$0xff] %vm343_vm0, %v3656_v1  ;;  %vm1951_vm2 = vcmask 257024   ;;  %vm1953_vm3 = vcmask 253952   ;;  %vm2087_vm4 = vsmask.f32 7938 }
   0xd   : > { %346 = vst.msk [vmem:[#allocation2 + $0x8] sm:$0x3f] %vm345_vm1, %v3656_v1  ;;  %348 = vst.msk [vmem:[#allocation2 + $0x18] sm:$0x3f] %vm345_vm1, %v3656_v1  ;;  %s6614_s25 = smov (!%p3711_p3, %s3360_s25), 1  ;;  %v3753_v3 = vshrl.u32 %v5909_v0, 7 }
   0xe   : > { %349 = vst.msk [vmem:[#allocation2 + $0x20] sm:$0xff] %vm343_vm0, %v3656_v1  ;;  %351 = vst.msk [vmem:[#allocation2 + $0x30] sm:$0xff] %vm343_vm0, %v3656_v1  ;;  %s3756_s29 = sshll.u32 %s6614_s25, 6  ;;  %s3468_s26 = sshll.u32 %s6614_s25, 5  ;;  %vm2093_vm5 = vsmask.f32 256 }
   0xf   : > { %350 = vst.msk [vmem:[#allocation2 + $0x28] sm:$0x3f] %vm345_vm1, %v3656_v1  ;;  %352 = vst.msk [vmem:[#allocation2 + $0x38] sm:$0x3f] %vm345_vm1, %v3656_v1  ;;  %v3759_v4 = vsub.s32 0, %v3753_v3  ;;  %v3762_v5 = vsub.s32 1, %v3753_v3  ;;  %s3774_s9 = scalar_lea.vmem %s5901_s0, %s3756_s29  ;;  %s5159_s30 = scalar_lea.vmem %s5902_s1, %s3468_s26 }
  0x10   : > { %353 = vst.msk [vmem:[#allocation2 + $0x40] sm:$0xff] %vm343_vm0, %v3656_v1  ;;  %355 = vst.msk [vmem:[#allocation2 + $0x50] sm:$0xff] %vm343_vm0, %v3656_v1  ;;  %v3765_v6 = vsub.s32 2, %v3753_v3  ;;  %v3768_v7 = vsub.s32 3, %v3753_v3  ;;  %v373_v8 = vld [vmem:[%s3774_s9] sm:$0xff]  ;;  %v374_v9 = vld [vmem:[%s3774_s9 + $0x8] sm:$0xff]  ;;  %s328_s10 = scalar_lea.vmem %s5903_s2, %s6614_s25  ;;  %s341_s19 = scalar_lea.vmem %s5908_s7, %s6614_s25 }
  0x11   : > { %354 = vst.msk [vmem:[#allocation2 + $0x48] sm:$0x3f] %vm345_vm1, %v3656_v1  ;;  %356 = vst.msk [vmem:[#allocation2 + $0x58] sm:$0x3f] %vm345_vm1, %v3656_v1  ;;  %v375_v10 = vld [vmem:[%s3774_s9 + $0x10] sm:$0xff]  ;;  %v3780_v11 = vrot.slane %v390_v2, %v3759_v4  ;;  %v3783_v12 = vrot.slane %v390_v2, %v3762_v5  ;;  %v3789_v14 = vsub.s32 4, %v3753_v3  ;;  %v3866_v60 = vrot.slane %v3825_v34, %v3759_v4  ;;  %s5866_s17 = scalar_lea.vmem %s5904_s3, %s3756_s29  ;;  %s5874_s25 = scalar_lea.vmem %s5907_s6, %s3756_s29 }
  0x12   : > { %357 = vst.msk [vmem:[#allocation2 + $0x60] sm:$0xff] %vm343_vm0, %v3656_v1  ;;  %359 = vst.msk [vmem:[#allocation2 + $0x70] sm:$0xff] %vm343_vm0, %v3656_v1  ;;  %v3786_v13 = vrot.slane %v390_v2, %v3765_v6  ;;  %v376_v15 = vld [vmem:[%s3774_s9 + $0x18] sm:$0xff]  ;;  %v3796_v16 = vrot.slane %v390_v2, %v3768_v7  ;;  %v377_v17 = vld [vmem:[%s3774_s9 + $0x20] sm:$0xff]  ;;  %v3802_v22 = vsub.s32 5, %v3753_v3  ;;  %v3813_v28 = vsub.s32 6, %v3753_v3 }
  0x13   : > { %358 = vst.msk [vmem:[#allocation2 + $0x68] sm:$0x3f] %vm345_vm1, %v3656_v1  ;;  %360 = vst.msk [vmem:[#allocation2 + $0x78] sm:$0x3f] %vm345_vm1, %v3656_v1  ;;  %v378_v18 = vld [vmem:[%s3774_s9 + $0x28] sm:$0xff]  ;;  %v397_v19 = vld [vmem:[#allocation2] sm:$0xff]  ;;  %v3810_v27 = vrot.slane %v390_v2, %v3789_v14 }
  0x14   : > { %361 = vst.msk [vmem:[#allocation2 + $0x80] sm:$0xff] %vm343_vm0, %v3656_v1  ;;  %363 = vst.msk [vmem:[#allocation2 + $0x90] sm:$0xff] %vm343_vm0, %v3656_v1  ;;  %v425_v20 = vld [vmem:[#allocation2 + $0x1] sm:$0xff]  ;;  %v409_v23 = vmul.f32 %v3780_v11, %v397_v19  ;;  %v3817_v32 = vrot.slane %v390_v2, %v3802_v22  ;;  %v3820_v33 = vsub.s32 7, %v3753_v3  ;;  %v3835_v41 = vrot.slane %v390_v2, %v3813_v28  ;;  %v3868_v62 = vld [vmem:[#allocation2 + $0x10] sm:$0xff]  ;;  %s3658_s11 = smov 64  }
  0x15   : > { %362 = vst.msk [vmem:[#allocation2 + $0x88] sm:$0x3f] %vm345_vm1, %v3656_v1  ;;  %364 = vst.msk [vmem:[#allocation2 + $0x98] sm:$0x3f] %vm345_vm1, %v3656_v1  ;;  %v453_v21 = vld [vmem:[#allocation2 + $0x2] sm:$0xff]  ;;  %v437_v24 = vmul.f32 %v3783_v12, %v425_v20  ;;  %vm1865_vm8 = vcmask 130112  }
  0x16   : > { %365 = vst.msk [vmem:[#allocation2 + $0xa0] sm:$0xff] %vm343_vm0, %v3656_v1  ;;  %367 = vst.msk [vmem:[#allocation2 + $0xb0] sm:$0xff] %vm343_vm0, %v3656_v1  ;;  %v465_v25 = vmul.f32 %v3786_v13, %v453_v21  ;;  %v481_v26 = vld [vmem:[#allocation2 + $0x3] sm:$0xff]  ;;  %v3851_v51 = vrot.slane %v390_v2, %v3820_v33  ;;  %vm1872_vm9 = vcmask 195712   ;;  %vm2295_vm10 = vcmask 1042432   ;;  %s3659_s12 = smov 32  }
  0x17   : > { %366 = vst.msk [vmem:[#allocation2 + $0xa8] sm:$0x3f] %vm345_vm1, %v3656_v1  ;;  %368 = vst.msk [vmem:[#allocation2 + $0xb8] sm:$0x3f] %vm345_vm1, %v3656_v1  ;;  %v445_v29 = vadd.f32 %v437_v24, %v409_v23  ;;  %v493_v30 = vmul.f32 %v3796_v16, %v481_v26  ;;  %v509_v31 = vld [vmem:[#allocation2 + $0x4] sm:$0xff]  ;;  %v3890_v23 = vrot.slane %v3825_v34, %v3765_v6  ;;  %v3892_v24 = vld [vmem:[#allocation2 + $0x12] sm:$0xff] }
  0x18   : > { %369 = vst.msk [vmem:[#allocation2 + $0xc0] sm:$0xff] %vm343_vm0, %v3656_v1  ;;  %371 = vst.msk [vmem:[#allocation2 + $0xd0] sm:$0xff] %vm343_vm0, %v3656_v1  ;;  %v537_v36 = vld [vmem:[#allocation2 + $0x5] sm:$0xff]  ;;  %v521_v40 = vmul.f32 %v3810_v27, %v509_v31  ;;  %v606_v2 = vmul.f32 %v3851_v51, %v3868_v62  ;;  %vm2296_vm11 = vcmask 1046532   ;;  %vm2156_vm12 = vsmask.f32 3328 }
  0x19   : > { %370 = vst.msk [vmem:[#allocation2 + $0xc8] sm:$0x3f] %vm345_vm1, %v3656_v1  ;;  %372 = vst.msk [vmem:[#allocation2 + $0xd8] sm:$0x3f] %vm345_vm1, %v3656_v1  ;;  %v473_v35 = vadd.f32 %v465_v25, %v445_v29  ;;  %v565_v48 = vld [vmem:[#allocation2 + $0x6] sm:$0xff]  ;;  %v549_v50 = vmul.f32 %v3817_v32, %v537_v36  ;;  %v3896_v25 = vrot.slane %v3825_v34, %v3768_v7  ;;  %s3660_s13 = smov 96  }
  0x1a   : > { %6157 = vst [vmem:[#allocation4_spill] sm:$0xff] %v3753_v3  ;;  %6158 = vst [vmem:[#allocation5_spill] sm:$0xff] %v3780_v11  ;;  %v577_v59 = vmul.f32 %v3835_v41, %v565_v48  ;;  %v3914_v48 = vrot.slane %v3825_v34, %v3789_v14  ;;  %vm2157_vm14 = vsmask.f32 7440  ;;  %vm1879_vm1 = vcmask 261312  }
  0x1b   : > { %6159 = vst [vmem:[#allocation6_spill] sm:$0xff] %v3783_v12  ;;  %6160 = vst [vmem:[#allocation7_spill] sm:$0xff] %v3786_v13  ;;  %v501_v47 = vadd.f32 %v493_v30, %v473_v35 }
  0x1c   : > { %382 = vst.msk [vmem:[#allocation2 + $0x33] sm:$0xff] %vm343_vm0, %v373_v8  ;;  %383 = vst.msk [vmem:[#allocation2 + $0x43] sm:$0xff] %vm343_vm0, %v374_v9  ;;  %v3876_v8 = vrot.slane %v3825_v34, %v3762_v5 }
  0x1d   : > { %384 = vst.msk [vmem:[#allocation2 + $0x53] sm:$0xff] %vm343_vm0, %v375_v10  ;;  %6161 = vst [vmem:[#allocation8_spill] sm:$0xff] %v3796_v16  ;;  %v529_v58 = vadd.f32 %v521_v40, %v501_v47 }
  0x1e   : > { %385 = vst.msk [vmem:[#allocation2 + $0x63] sm:$0xff] %vm343_vm0, %v376_v15  ;;  %386 = vst.msk [vmem:[#allocation2 + $0x73] sm:$0xff] %vm343_vm0, %v377_v17  ;;  %v662_v31 = vmul.f32 %v3876_v8, %v3892_v24 }
  0x1f   : > { %387 = vst.msk [vmem:[#allocation2 + $0x83] sm:$0xff] %vm343_vm0, %v378_v18  ;;  %6162 = vst [vmem:[#allocation9_spill] sm:$0xff] %v3810_v27  ;;  %v557_v1 = vadd.f32 %v549_v50, %v529_v58  ;;  %v3882_v18 = vld [vmem:[#allocation2 + $0x11] sm:$0xff]  ;;  %v3918_v50 = vrot.slane %v3825_v34, %v3802_v22 }
  0x20   : > { %6163 = vst [vmem:[#allocation10_spill] sm:$0xff] %v3817_v32  ;;  %6164 = vst [vmem:[#allocation11_spill] sm:$0xff] %v3835_v41  ;;  %v634_v21 = vmul.f32 %v3866_v60, %v3882_v18 }
  0x21   : > { %6167 = vst [vmem:[#allocation14_spill] sm:$0xff] %v3851_v51  ;;  %6169 = vst [vmem:[#allocation16_spill] sm:$0xff] %v3866_v60  ;;  %v585_v20 = vadd.f32 %v577_v59, %v557_v1 }
  0x22   : > { %6170 = vst [vmem:[#allocation17_spill] sm:$0xff] %v3868_v62  ;;  %6171 = vst [vmem:[#allocation18_spill] sm:$0xff] %v3876_v8 }
  0x23   : > { %6173 = vst [vmem:[#allocation20_spill] sm:$0xff] %v3882_v18  ;;  %6175 = vst [vmem:[#allocation22_spill] sm:$0xff] %v3890_v23  ;;  %v614_v30 = vadd.f32 %v606_v2, %v585_v20  ;;  %v3995_v18 = vld [vmem:[#allocation2 + $0x22] sm:$0xff] }
  0x24   : > { %v3827_v37 = vld [vmem:[#allocation2 + $0x50] sm:$0xff]  ;;  %6176 = vst [vmem:[#allocation23_spill] sm:$0xff] %v3892_v24  ;;  %6177 = vst [vmem:[#allocation24_spill] sm:$0xff] %v3896_v25  ;;  %v380_v24 = vld [vmem:[%s3774_s9 + $0x38] sm:$0xff] }
  0x25   : > { %v3829_v38 = vld [vmem:[#allocation2 + $0x51] sm:$0xff]  ;;  %v3837_v42 = vld [vmem:[#allocation2 + $0x60] sm:$0xff]  ;;  %v414_v43 = vmul.f32 %v3780_v11, %v3827_v37  ;;  %6181 = vst [vmem:[#allocation28_spill] sm:$0xff] %v3914_v48  ;;  %6182 = vst [vmem:[#allocation29_spill] sm:$0xff] %v3918_v50 }
  0x26   : > { %v3831_v39 = vld [vmem:[#allocation2 + $0x52] sm:$0xff]  ;;  %6165 = vst [vmem:[#allocation12_spill] sm:$0xff] %v3837_v42  ;;  %v3841_v44 = vld [vmem:[#allocation2 + $0x61] sm:$0xff]  ;;  %v442_v45 = vmul.f32 %v3783_v12, %v3829_v38  ;;  %v415_v52 = vmul.f32 %v3780_v11, %v3837_v42  ;;  %6195 = vst [vmem:[#allocation42_spill] sm:$0xff] %v3995_v18 }
  0x27   : > { %6166 = vst [vmem:[#allocation13_spill] sm:$0xff] %v3841_v44  ;;  %v470_v46 = vmul.f32 %v3786_v13, %v3831_v39  ;;  %v3847_v49 = vld [vmem:[#allocation2 + $0x53] sm:$0xff]  ;;  %v443_v53 = vmul.f32 %v3783_v12, %v3841_v44  ;;  %v3861_v57 = vld [vmem:[#allocation2 + $0x62] sm:$0xff]  ;;  %389 = vst.msk [vmem:[#allocation2 + $0xa3] sm:$0xff] %vm343_vm0, %v380_v24 }
  0x28   : > { %v450_v54 = vadd.f32 %v442_v45, %v414_v43  ;;  %v498_v55 = vmul.f32 %v3796_v16, %v3847_v49  ;;  %v3859_v56 = vld [vmem:[#allocation2 + $0x54] sm:$0xff]  ;;  %6168 = vst [vmem:[#allocation15_spill] sm:$0xff] %v3861_v57  ;;  %v471_v10 = vmul.f32 %v3786_v13, %v3861_v57  ;;  %v3884_v19 = vld [vmem:[#allocation2 + $0x63] sm:$0xff]  ;;  %vm5177_vm6 = vmand %vm1951_vm2, %vm2087_vm4  ;;  %vm1900_vm4 = vcmask 458112  }
  0x29   : > { %v526_v63 = vmul.f32 %v3810_v27, %v3859_v56  ;;  %v451_v9 = vadd.f32 %v443_v53, %v415_v52  ;;  %v3880_v17 = vld [vmem:[#allocation2 + $0x55] sm:$0xff]  ;;  %6174 = vst [vmem:[#allocation21_spill] sm:$0xff] %v3884_v19  ;;  %v499_v36 = vmul.f32 %v3796_v16, %v3884_v19  ;;  %v3908_v45 = vld [vmem:[#allocation2 + $0x64] sm:$0xff]  ;;  %v3924_v53 = vrot.slane %v3825_v34, %v3813_v28  ;;  %vm5182_vm7 = vmand %vm1953_vm3, %vm2093_vm5 }
  0x2a   : > { %v478_v61 = vadd.f32 %v470_v46, %v450_v54  ;;  %6172 = vst [vmem:[#allocation19_spill] sm:$0xff] %v3880_v17  ;;  %v554_v29 = vmul.f32 %v3817_v32, %v3880_v17  ;;  %v3904_v40 = vld [vmem:[#allocation2 + $0x56] sm:$0xff]  ;;  %6180 = vst [vmem:[#allocation27_spill] sm:$0xff] %v3908_v45  ;;  %v642_v46 = vadd.f32 %v634_v21, %v614_v30  ;;  %v3935_v2 = vld [vmem:[#allocation2 + $0x65] sm:$0xff]  ;;  %vm1907_vm5 = vcmask 523712  }
  0x2b   : > { %v479_v35 = vadd.f32 %v471_v10, %v451_v9  ;;  %6178 = vst [vmem:[#allocation25_spill] sm:$0xff] %v3904_v40  ;;  %v3906_v43 = vld [vmem:[#allocation2 + $0x13] sm:$0xff]  ;;  %6184 = vst [vmem:[#allocation31_spill] sm:$0xff] %v3924_v53  ;;  %v582_v58 = vmul.f32 %v3835_v41, %v3904_v40  ;;  %v527_v1 = vmul.f32 %v3810_v27, %v3908_v45 }
  0x2c   : > { %v506_v15 = vadd.f32 %v498_v55, %v478_v61  ;;  %6179 = vst [vmem:[#allocation26_spill] sm:$0xff] %v3906_v43  ;;  %v690_v47 = vmul.f32 %v3890_v23, %v3906_v43  ;;  %v3920_v52 = vld [vmem:[#allocation2 + $0x14] sm:$0xff]  ;;  %v670_v59 = vadd.f32 %v662_v31, %v642_v46  ;;  %6185 = vst [vmem:[#allocation32_spill] sm:$0xff] %v3935_v2 }
  0x2d   : > { %6183 = vst [vmem:[#allocation30_spill] sm:$0xff] %v3920_v52  ;;  %v392_v54 = vld [vmem:[%s5905_s4 + $0x10] sm:$0xff]  ;;  %v718_v61 = vmul.f32 %v3896_v25, %v3920_v52  ;;  %v3951_v30 = vrot.slane %v3825_v34, %v3820_v33  ;;  %v611_v34 = vmul.f32 %v3851_v51, %v3837_v42  ;;  %v3974_v52 = vmul.f32 %v3876_v8, %v3861_v57  ;;  %vm5276_vm13 = vmor %vm2295_vm10, %vm2296_vm11 }
  0x2e   : > { %v534_v26 = vadd.f32 %v526_v63, %v506_v15  ;;  %v507_v63 = vadd.f32 %v499_v36, %v479_v35  ;;  %v3937_v9 = vld [vmem:[#allocation2 + $0x15] sm:$0xff]  ;;  %v3941_v15 = vld [vmem:[#allocation2 + $0x66] sm:$0xff]  ;;  %v698_v20 = vadd.f32 %v690_v47, %v670_v59  ;;  %v3956_v35 = vrot.slane %v392_v54, %v3759_v4  ;;  %vm5314_vm15 = vmor %vm2156_vm12, %vm2157_vm14 }
  0x2f   : > { %6186 = vst [vmem:[#allocation33_spill] sm:$0xff] %v3937_v9  ;;  %v3939_v10 = vld [vmem:[#allocation2 + $0x16] sm:$0xff]  ;;  %6188 = vst [vmem:[#allocation35_spill] sm:$0xff] %v3941_v15  ;;  %v746_v21 = vmul.f32 %v3914_v48, %v3937_v9  ;;  %v3959_v36 = vrot.slane %v392_v54, %v3762_v5  ;;  %v3962_v46 = vrot.slane %v392_v54, %v3765_v6 }
  0x30   : > { %v562_v55 = vadd.f32 %v554_v29, %v534_v26  ;;  %6187 = vst [vmem:[#allocation34_spill] sm:$0xff] %v3939_v10  ;;  %v774_v26 = vmul.f32 %v3918_v50, %v3939_v10  ;;  %v3947_v29 = vld [vmem:[#allocation2 + $0x20] sm:$0xff]  ;;  %6190 = vst [vmem:[#allocation37_spill] sm:$0xff] %v3951_v30  ;;  %v555_v47 = vmul.f32 %v3817_v32, %v3935_v2  ;;  %v379_v43 = vld [vmem:[%s3774_s9 + $0x30] sm:$0xff] }
  0x31   : > { %6189 = vst [vmem:[#allocation36_spill] sm:$0xff] %v3947_v29  ;;  %v803_v31 = vmul.f32 %v3924_v53, %v3947_v29  ;;  %6191 = vst [vmem:[#allocation38_spill] sm:$0xff] %v3956_v35  ;;  %v726_v0 = vadd.f32 %v718_v61, %v698_v20  ;;  %v535_v3 = vadd.f32 %v527_v1, %v507_v63  ;;  %v3993_v20 = vld [vmem:[#allocation2 + $0x21] sm:$0xff]  ;;  %v4065_v40 = vld [vmem:[#allocation2 + $0x34] sm:$0xff] }
  0x32   : > { %6192 = vst [vmem:[#allocation39_spill] sm:$0xff] %v3959_v36  ;;  %6193 = vst [vmem:[#allocation40_spill] sm:$0xff] %v3962_v46  ;;  %v590_v59 = vadd.f32 %v582_v58, %v562_v55  ;;  %v583_v10 = vmul.f32 %v3835_v41, %v3941_v15  ;;  %v639_v9 = vmul.f32 %v3866_v60, %v3841_v44  ;;  %v393_v55 = vld [vmem:[%s5905_s4 + $0x18] sm:$0xff] }
  0x33   : > { %v3983_v58 = vmul.f32 %v3890_v23, %v3884_v19  ;;  %v3987_v61 = vmul.f32 %v3896_v25, %v3908_v45  ;;  %v3991_v63 = vmul.f32 %v3914_v48, %v3935_v2  ;;  %v754_v1 = vadd.f32 %v746_v21, %v726_v0  ;;  %6194 = vst [vmem:[#allocation41_spill] sm:$0xff] %v3993_v20  ;;  %v4063_v23 = vld [vmem:[#allocation2 + $0x33] sm:$0xff] }
  0x34   : > { %388 = vst.msk [vmem:[#allocation2 + $0x93] sm:$0xff] %vm343_vm0, %v379_v43  ;;  %v4001_v53 = vmul.f32 %v3918_v50, %v3941_v15  ;;  %v831_v62 = vmul.f32 %v3951_v30, %v3993_v20  ;;  %v859_v2 = vmul.f32 %v3956_v35, %v3995_v18  ;;  %v4008_v0 = vrot.slane %v392_v54, %v3768_v7  ;;  %v4016_v50 = vld [vmem:[#allocation2 + $0x23] sm:$0xff] }
  0x35   : > { %v619_v21 = vadd.f32 %v611_v34, %v590_v59  ;;  %v782_v48 = vadd.f32 %v774_v26, %v754_v1  ;;  %v4011_v45 = vrot.slane %v392_v54, %v3789_v14  ;;  %v4014_v24 = vrot.slane %v392_v54, %v3802_v22  ;;  %6200 = vst [vmem:[#allocation47_spill] sm:$0xff] %v4016_v50  ;;  %v4029_v34 = vld [vmem:[#allocation2 + $0x24] sm:$0xff] }
  0x36   : > { %6196 = vst [vmem:[#allocation43_spill] sm:$0xff] %v4001_v53  ;;  %6197 = vst [vmem:[#allocation44_spill] sm:$0xff] %v4008_v0  ;;  %v563_v43 = vadd.f32 %v555_v47, %v535_v3  ;;  %v4019_v15 = vrot.slane %v392_v54, %v3813_v28  ;;  %v4022_v30 = vrot.slane %v392_v54, %v3820_v33  ;;  %v4031_v1 = vld [vmem:[#allocation2 + $0x25] sm:$0xff]  ;;  %v4061_v53 = vld [vmem:[#allocation2 + $0x32] sm:$0xff] }
  0x37   : > { %6198 = vst [vmem:[#allocation45_spill] sm:$0xff] %v4011_v45  ;;  %6199 = vst [vmem:[#allocation46_spill] sm:$0xff] %v4014_v24  ;;  %v4025_v35 = vrot.slane %v393_v55, %v3759_v4  ;;  %v811_v59 = vadd.f32 %v803_v31, %v782_v48  ;;  %v887_v26 = vmul.f32 %v3959_v36, %v4016_v50  ;;  %v4043_v48 = vld [vmem:[#allocation2 + $0x26] sm:$0xff]  ;;  %v4045_v31 = vld [vmem:[#allocation2 + $0x30] sm:$0xff] }
  0x38   : > { %6201 = vst [vmem:[#allocation48_spill] sm:$0xff] %v4019_v15  ;;  %6202 = vst [vmem:[#allocation49_spill] sm:$0xff] %v4022_v30  ;;  %v4034_v3 = vrot.slane %v393_v55, %v3762_v5  ;;  %v4037_v47 = vrot.slane %v393_v55, %v3765_v6  ;;  %v915_v54 = vmul.f32 %v3962_v46, %v4029_v34  ;;  %v4047_v36 = vld [vmem:[#allocation2 + $0x31] sm:$0xff] }
  0x39   : > { %6203 = vst [vmem:[#allocation50_spill] sm:$0xff] %v4025_v35  ;;  %6204 = vst [vmem:[#allocation51_spill] sm:$0xff] %v4029_v34  ;;  %v943_v19 = vmul.f32 %v4008_v0, %v4031_v1  ;;  %v4050_v25 = vrot.slane %v393_v55, %v3768_v7  ;;  %v4053_v57 = vrot.slane %v393_v55, %v3789_v14 }
  0x3a   : > { %6205 = vst [vmem:[#allocation52_spill] sm:$0xff] %v4031_v1  ;;  %6206 = vst [vmem:[#allocation53_spill] sm:$0xff] %v4034_v3  ;;  %v647_v44 = vadd.f32 %v639_v9, %v619_v21  ;;  %v839_v42 = vadd.f32 %v831_v62, %v811_v59  ;;  %v971_v46 = vmul.f32 %v4011_v45, %v4043_v48  ;;  %v4081_v21 = vld [vmem:[#allocation2 + $0x35] sm:$0xff] }
  0x3b   : > { %6207 = vst [vmem:[#allocation54_spill] sm:$0xff] %v4037_v47  ;;  %6208 = vst [vmem:[#allocation55_spill] sm:$0xff] %v4043_v48  ;;  %v4059_v0 = vmul.f32 %v4014_v24, %v4045_v31  ;;  %v4067_v8 = vadd.f32 %v583_v10, %v563_v43  ;;  %v4071_v17 = vmul.f32 %v4019_v15, %v4047_v36  ;;  %v4083_v59 = vld [vmem:[#allocation2 + $0x36] sm:$0xff] }
  0x3c   : > { %6209 = vst [vmem:[#allocation56_spill] sm:$0xff] %v4045_v31  ;;  %6210 = vst [vmem:[#allocation57_spill] sm:$0xff] %v4047_v36  ;;  %v4075_v62 = vmul.f32 %v4022_v30, %v4061_v53  ;;  %v4079_v9 = vmul.f32 %v4025_v35, %v4063_v23  ;;  %v4085_v24 = vld [vmem:[#allocation2 + $0x70] sm:$0xff]  ;;  %v867_v10 = vadd.f32 %v859_v2, %v839_v42  ;;  %v4095_v30 = vld [vmem:[#allocation2 + $0x40] sm:$0xff] }
  0x3d   : > { %6211 = vst [vmem:[#allocation58_spill] sm:$0xff] %v4050_v25  ;;  %6212 = vst [vmem:[#allocation59_spill] sm:$0xff] %v4053_v57  ;;  %v4089_v43 = vmul.f32 %v4034_v3, %v4065_v40  ;;  %v4098_v35 = vrot.slane %v393_v55, %v3802_v22  ;;  %v4100_v15 = vld [vmem:[#allocation2 + $0x71] sm:$0xff]  ;;  %v394_v42 = vld [vmem:[%s5905_s4 + $0x20] sm:$0xff]  ;;  %v4109_v2 = vmul.f32 %v4050_v25, %v4083_v59 }
  0x3e   : > { %6213 = vst [vmem:[#allocation60_spill] sm:$0xff] %v4061_v53  ;;  %6214 = vst [vmem:[#allocation61_spill] sm:$0xff] %v4063_v23  ;;  %v4102_v45 = vld [vmem:[#allocation2 + $0x72] sm:$0xff]  ;;  %v4116_v3 = vrot.slane %v393_v55, %v3813_v28  ;;  %v411_v23 = vmul.f32 %v3947_v29, %v3780_v11  ;;  %v416_v25 = vmul.f32 %v3780_v11, %v4085_v24  ;;  %v4150_v29 = vld [vmem:[#allocation2 + $0x43] sm:$0xff] }
  0x3f   : > { %6215 = vst [vmem:[#allocation62_spill] sm:$0xff] %v4065_v40  ;;  %6216 = vst [vmem:[#allocation63_spill] sm:$0xff] %v4067_v8  ;;  %v4093_v8 = vmul.f32 %v4037_v47, %v4081_v21  ;;  %v4113_v47 = vmul.f32 %v4053_v57, %v4095_v30  ;;  %v675_v40 = vadd.f32 %v3974_v52, %v647_v44  ;;  %v4136_v52 = vld [vmem:[#allocation2 + $0x73] sm:$0xff] }
  0x40   : > { %6217 = vst [vmem:[#allocation64_spill] sm:$0xff] %v4081_v21  ;;  %6218 = vst [vmem:[#allocation65_spill] sm:$0xff] %v4083_v59  ;;  %v4119_v21 = vrot.slane %v393_v55, %v3820_v33  ;;  %v4126_v59 = vld [vmem:[#allocation2 + $0x41] sm:$0xff]  ;;  %v439_v57 = vmul.f32 %v3993_v20, %v3783_v12  ;;  %v467_v55 = vmul.f32 %v3995_v18, %v3786_v13 }
  0x41   : > { %6219 = vst [vmem:[#allocation66_spill] sm:$0xff] %v4085_v24  ;;  %6220 = vst [vmem:[#allocation67_spill] sm:$0xff] %v4093_v8  ;;  %v895_v8 = vadd.f32 %v887_v26, %v867_v10  ;;  %v472_v44 = vmul.f32 %v3786_v13, %v4102_v45  ;;  %v4140_v10 = vmul.f32 %v4098_v35, %v4126_v59  ;;  %v4142_v24 = vld [vmem:[#allocation2 + $0x42] sm:$0xff] }
  0x42   : > { %6221 = vst [vmem:[#allocation68_spill] sm:$0xff] %v4095_v30  ;;  %6222 = vst [vmem:[#allocation69_spill] sm:$0xff] %v4098_v35  ;;  %v444_v30 = vmul.f32 %v3783_v12, %v4100_v15  ;;  %v4145_v20 = vrot.slane %v394_v42, %v3759_v4  ;;  %v4152_v18 = vld [vmem:[#allocation2 + $0x44] sm:$0xff]  ;;  %v4163_v12 = vmul.f32 %v4116_v3, %v4142_v24 }
  0x43   : > { %6223 = vst [vmem:[#allocation70_spill] sm:$0xff] %v4100_v15  ;;  %6224 = vst [vmem:[#allocation71_spill] sm:$0xff] %v4102_v45  ;;  %v923_v26 = vadd.f32 %v915_v54, %v895_v8  ;;  %v4148_v15 = vrot.slane %v394_v42, %v3762_v5  ;;  %v4154_v45 = vld [vmem:[#allocation2 + $0x45] sm:$0xff]  ;;  %v4157_v8 = vrot.slane %v394_v42, %v3765_v6 }
  0x44   : > { %6225 = vst [vmem:[#allocation72_spill] sm:$0xff] %v4113_v47  ;;  %6226 = vst [vmem:[#allocation73_spill] sm:$0xff] %v4116_v3  ;;  %v447_v54 = vadd.f32 %v439_v57, %v411_v23  ;;  %v452_v35 = vadd.f32 %v444_v30, %v416_v25  ;;  %v4167_v11 = vmul.f32 %v4119_v21, %v4150_v29  ;;  %v4171_v47 = vld [vmem:[#allocation2 + $0x74] sm:$0xff]  ;;  %v395_v57 = vld [vmem:[%s5905_s4 + $0x28] sm:$0xff] }
  0x45   : > { %6227 = vst [vmem:[#allocation74_spill] sm:$0xff] %v4119_v21  ;;  %6228 = vst [vmem:[#allocation75_spill] sm:$0xff] %v4126_v59  ;;  %v495_v59 = vmul.f32 %v4016_v50, %v3796_v16  ;;  %v951_v13 = vadd.f32 %v943_v19, %v923_v26  ;;  %v703_v23 = vadd.f32 %v3983_v58, %v675_v40  ;;  %v4177_v19 = vld [vmem:[#allocation2 + $0x46] sm:$0xff] }
  0x46   : > { %6229 = vst [vmem:[#allocation76_spill] sm:$0xff] %v4136_v52  ;;  %6230 = vst [vmem:[#allocation77_spill] sm:$0xff] %v4140_v10  ;;  %v500_v10 = vmul.f32 %v3796_v16, %v4136_v52  ;;  %v475_v25 = vadd.f32 %v467_v55, %v447_v54  ;;  %v480_v30 = vadd.f32 %v472_v44, %v452_v35  ;;  %v4198_v55 = vld [vmem:[#allocation2 + $0x75] sm:$0xff] }
  0x47   : > { %6231 = vst [vmem:[#allocation78_spill] sm:$0xff] %v4145_v20  ;;  %6232 = vst [vmem:[#allocation79_spill] sm:$0xff] %v4148_v15  ;;  %v523_v26 = vmul.f32 %v4029_v34, %v3810_v27  ;;  %v979_v50 = vadd.f32 %v971_v46, %v951_v13  ;;  %v4183_v21 = vmul.f32 %v4145_v20, %v4152_v18 }
  0x48   : > { %6233 = vst [vmem:[#allocation80_spill] sm:$0xff] %v4150_v29  ;;  %6234 = vst [vmem:[#allocation81_spill] sm:$0xff] %v4157_v8  ;;  %v4187_v52 = vmul.f32 %v4148_v15, %v4154_v45  ;;  %v4190_v3 = vrot.slane %v394_v42, %v3768_v7  ;;  %v4193_v40 = vrot.slane %v394_v42, %v3789_v14 }
  0x49   : > { %6235 = vst [vmem:[#allocation82_spill] sm:$0xff] %v4171_v47  ;;  %6236 = vst [vmem:[#allocation83_spill] sm:$0xff] %v4177_v19  ;;  %v4196_v35 = vrot.slane %v394_v42, %v3802_v22  ;;  %v503_v58 = vadd.f32 %v495_v59, %v475_v25  ;;  %v551_v13 = vmul.f32 %v4031_v1, %v3817_v32 }
  0x4a   : > { %6237 = vst [vmem:[#allocation84_spill] sm:$0xff] %v4190_v3  ;;  %6238 = vst [vmem:[#allocation85_spill] sm:$0xff] %v4193_v40  ;;  %v1007_v46 = vadd.f32 %v4059_v0, %v979_v50  ;;  %v4205_v44 = vmul.f32 %v4157_v8, %v4177_v19  ;;  %v508_v54 = vadd.f32 %v500_v10, %v480_v30 }
  0x4b   : > { %6239 = vst [vmem:[#allocation86_spill] sm:$0xff] %v4196_v35  ;;  %6240 = vst [vmem:[#allocation87_spill] sm:$0xff] %v4198_v55  ;;  %v528_v34 = vmul.f32 %v3810_v27, %v4171_v47  ;;  %v731_v15 = vadd.f32 %v3987_v61, %v703_v23  ;;  %v4211_v20 = vrot.slane %v394_v42, %v3813_v28 }
  0x4c   : > { %v531_v59 = vadd.f32 %v523_v26, %v503_v58  ;;  %v579_v25 = vmul.f32 %v4043_v48, %v3835_v41  ;;  %v1035_v1 = vadd.f32 %v4071_v17, %v1007_v46  ;;  %v4218_v50 = vmul.f32 %v4190_v3, %v3827_v37  ;;  %v4242_v46 = vld [vmem:[#allocation2 + $0x76] sm:$0xff] }
  0x4d   : > { %6241 = vst [vmem:[#allocation88_spill] sm:$0xff] %v4211_v20  ;;  %v4221_v0 = vrot.slane %v394_v42, %v3820_v33  ;;  %v4224_v10 = vrot.slane %v395_v57, %v3759_v4  ;;  %v4228_v61 = vmul.f32 %v4193_v40, %v3829_v38  ;;  %v4232_v23 = vmul.f32 %v4196_v35, %v3831_v39  ;;  %v6302_v35 = vld [vmem:[#allocation7_spill] sm:$0xff] }
  0x4e   : > { %v559_v30 = vadd.f32 %v551_v13, %v531_v59  ;;  %v608_v17 = vmul.f32 %v4045_v31, %v3851_v51  ;;  %v1063_v26 = vadd.f32 %v4075_v62, %v1035_v1  ;;  %v4238_v42 = vrot.slane %v395_v57, %v3762_v5  ;;  %6246 = vst [vmem:[#allocation93_spill] sm:$0xff] %v4242_v46  ;;  %v6303_v40 = vld [vmem:[#allocation23_spill] sm:$0xff] }
  0x4f   : > { %6242 = vst [vmem:[#allocation89_spill] sm:$0xff] %v4221_v0  ;;  %6243 = vst [vmem:[#allocation90_spill] sm:$0xff] %v4224_v10  ;;  %v536_v58 = vadd.f32 %v528_v34, %v508_v54  ;;  %v556_v4 = vmul.f32 %v3817_v32, %v4198_v55  ;;  %v759_v48 = vadd.f32 %v3991_v63, %v731_v15  ;;  %v6249_v34 = vld [vmem:[#allocation19_spill] sm:$0xff]  ;;  %v6289_v55 = vld [vmem:[#allocation32_spill] sm:$0xff] }
  0x50   : > { %6244 = vst [vmem:[#allocation91_spill] sm:$0xff] %v4232_v23  ;;  %6245 = vst [vmem:[#allocation92_spill] sm:$0xff] %v4238_v42  ;;  %v4247_v47 = vmul.f32 %v4211_v20, %v3847_v49  ;;  %v587_v13 = vadd.f32 %v579_v25, %v559_v30  ;;  %v636_v59 = vmul.f32 %v4047_v36, %v3866_v60  ;;  %v6254_v30 = vld [vmem:[#allocation18_spill] sm:$0xff]  ;;  %v6298_v20 = vld [vmem:[#allocation31_spill] sm:$0xff] }
  0x51   : > { %v1091_v1 = vadd.f32 %v4079_v9, %v1063_v26  ;;  %v4254_v5 = vmul.f32 %v4221_v0, %v3859_v56  ;;  %v4258_v62 = vmul.f32 %v4224_v10, %v6249_v34  ;;  %v4261_v15 = vrot.slane %v395_v57, %v3765_v6  ;;  %v4312_v10 = vld [vmem:[#allocation2 + $0x81] sm:$0xff] }
  0x52   : > { %6247 = vst [vmem:[#allocation94_spill] sm:$0xff] %v4247_v47  ;;  %v4264_v63 = vrot.slane %v395_v57, %v3768_v7  ;;  %v4267_v54 = vrot.slane %v395_v57, %v3789_v14  ;;  %v616_v25 = vadd.f32 %v608_v17, %v587_v13  ;;  %v664_v9 = vmul.f32 %v4061_v53, %v6254_v30  ;;  %v4284_v17 = vld [vmem:[#allocation2 + $0x80] sm:$0xff] }
  0x53   : > { %6248 = vst [vmem:[#allocation95_spill] sm:$0xff] %v4254_v5  ;;  %6250 = vst [vmem:[#allocation19_spill] sm:$0xff] %v4258_v62  ;;  %v1119_v26 = vadd.f32 %v4089_v43, %v1091_v1  ;;  %v4273_v36 = vrot.slane %v395_v57, %v3802_v22  ;;  %v564_v31 = vadd.f32 %v556_v4, %v536_v58  ;;  %v6256_v62 = vld [vmem:[#allocation25_spill] sm:$0xff]  ;;  %v6260_v53 = vld [vmem:[#allocation22_spill] sm:$0xff] }
  0x54   : > { %6251 = vst [vmem:[#allocation96_spill] sm:$0xff] %v4261_v15  ;;  %6252 = vst [vmem:[#allocation97_spill] sm:$0xff] %v4264_v63  ;;  %v584_v6 = vmul.f32 %v3835_v41, %v4242_v46  ;;  %v4279_v7 = vmul.f32 %v4238_v42, %v6256_v62  ;;  %v4282_v14 = vrot.slane %v395_v57, %v3813_v28  ;;  %v6261_v5 = vld [vmem:[#allocation61_spill] sm:$0xff]  ;;  %v4291_v22 = vld [vmem:[%s5905_s4 + $0x30] ss:$0 sm:$0xff] }
  0x55   : > { %6253 = vst [vmem:[#allocation98_spill] sm:$0xff] %v4267_v54  ;;  %6255 = vst [vmem:[#allocation99_spill] sm:$0xff] %v4273_v36  ;;  %v644_v13 = vadd.f32 %v636_v59, %v616_v25  ;;  %v692_v43 = vmul.f32 %v6261_v5, %v6260_v53  ;;  %v6263_v58 = vld [vmem:[#allocation43_spill] sm:$0xff]  ;;  %v4302_v42 = vrot.slane %v395_v57, %v3820_v33  ;;  %v6269_v59 = vld [vmem:[#allocation13_spill] sm:$0xff] }
  0x56   : > { %6257 = vst [vmem:[#allocation100_spill] sm:$0xff] %v4279_v7  ;;  %6258 = vst [vmem:[#allocation101_spill] sm:$0xff] %v4282_v14  ;;  %v4294_v4 = vadd.f32 %v6263_v58, %v759_v48  ;;  %v6265_v1 = vld [vmem:[#allocation67_spill] sm:$0xff]  ;;  %v6266_v7 = vld [vmem:[#allocation12_spill] sm:$0xff]  ;;  %v4306_v25 = vmul.f32 %v4264_v63, %v6269_v59  ;;  %v592_v63 = vadd.f32 %v584_v6, %v564_v31 }
  0x57   : > { %6259 = vst [vmem:[#allocation102_spill] sm:$0xff] %v4284_v17  ;;  %6262 = vst [vmem:[#allocation103_spill] sm:$0xff] %v4291_v22  ;;  %v1147_v47 = vadd.f32 %v6265_v1, %v1119_v26  ;;  %v4299_v28 = vmul.f32 %v4261_v15, %v6266_v7  ;;  %v6271_v5 = vld [vmem:[#allocation15_spill] sm:$0xff]  ;;  %v672_v26 = vadd.f32 %v664_v9, %v644_v13  ;;  %v6275_v58 = vld [vmem:[#allocation24_spill] sm:$0xff] }
  0x58   : > { %6264 = vst [vmem:[#allocation43_spill] sm:$0xff] %v4294_v4  ;;  %6268 = vst [vmem:[#allocation12_spill] sm:$0xff] %v4302_v42  ;;  %v4310_v46 = vmul.f32 %v4267_v54, %v6271_v5  ;;  %v4314_v48 = vld [vmem:[#allocation2 + $0x82] sm:$0xff]  ;;  %v6277_v33 = vld [vmem:[#allocation21_spill] sm:$0xff]  ;;  %v4344_v0 = vmul.f32 %v4302_v42, %v6289_v55 }
  0x59   : > { %6267 = vst [vmem:[#allocation67_spill] sm:$0xff] %v4299_v28  ;;  %6270 = vst [vmem:[#allocation13_spill] sm:$0xff] %v4306_v25  ;;  %v6276_v1 = vld [vmem:[#allocation62_spill] sm:$0xff]  ;;  %v1175_v28 = vadd.f32 %v4109_v2, %v1147_v47  ;;  %v4321_v57 = vmul.f32 %v4273_v36, %v6277_v33  ;;  %v613_v25 = vmul.f32 %v3851_v51, %v4284_v17  ;;  %v6281_v15 = vld [vmem:[#allocation27_spill] sm:$0xff] }
  0x5a   : > { %6272 = vst [vmem:[#allocation15_spill] sm:$0xff] %v4310_v46  ;;  %6273 = vst [vmem:[#allocation104_spill] sm:$0xff] %v4312_v10  ;;  %v720_v4 = vmul.f32 %v6276_v1, %v6275_v58  ;;  %v4325_v54 = vld [vmem:[#allocation2 + $0x83] sm:$0xff]  ;;  %v4331_v9 = vmul.f32 %v4282_v14, %v6281_v15  ;;  %v700_v47 = vadd.f32 %v692_v43, %v672_v26  ;;  %v6287_v31 = vld [vmem:[#allocation64_spill] sm:$0xff] }
  0x5b   : > { %6274 = vst [vmem:[#allocation105_spill] sm:$0xff] %v4314_v48  ;;  %6278 = vst [vmem:[#allocation21_spill] sm:$0xff] %v4321_v57  ;;  %v4327_v46 = vld [vmem:[#allocation2 + $0x84] sm:$0xff]  ;;  %v6286_v57 = vld [vmem:[#allocation28_spill] sm:$0xff]  ;;  %v641_v14 = vmul.f32 %v3866_v60, %v4312_v10  ;;  %v697_v43 = vmul.f32 %v6260_v53, %v4325_v54  ;;  %v621_v23 = vadd.f32 %v613_v25, %v592_v63 }
  0x5c   : > { %6279 = vst [vmem:[#allocation106_spill] sm:$0xff] %v4325_v54  ;;  %6280 = vst [vmem:[#allocation107_spill] sm:$0xff] %v4327_v46  ;;  %v6283_v13 = vld [vmem:[#allocation35_spill] sm:$0xff]  ;;  %v748_v6 = vmul.f32 %v6287_v31, %v6286_v57  ;;  %v6288_v36 = vld [vmem:[#allocation72_spill] sm:$0xff]  ;;  %v4354_v26 = vmul.f32 %v6275_v58, %v4327_v46 }
  0x5d   : > { %6282 = vst [vmem:[#allocation27_spill] sm:$0xff] %v4331_v9  ;;  %v4335_v1 = vmul.f32 %v4291_v22, %v6283_v13  ;;  %v4337_v2 = vld [vmem:[#allocation2 + $0x85] sm:$0xff]  ;;  %v1204_v17 = vadd.f32 %v6288_v36, %v1175_v28  ;;  %6290 = vst [vmem:[#allocation72_spill] sm:$0xff] %v4344_v0  ;;  %v669_v9 = vmul.f32 %v6254_v30, %v4314_v48  ;;  %v6293_v36 = vld [vmem:[#allocation29_spill] sm:$0xff] }
  0x5e   : > { %6285 = vst [vmem:[#allocation108_spill] sm:$0xff] %v4337_v2  ;;  %6291 = vst [vmem:[#allocation32_spill] sm:$0xff] %v4354_v26  ;;  %v4356_v31 = vld [vmem:[#allocation2 + $0x86] sm:$0xff]  ;;  %v6294_v28 = vld [vmem:[#allocation65_spill] sm:$0xff]  ;;  %v4363_v10 = vmul.f32 %v6286_v57, %v4337_v2 }
  0x5f   : > { %6284 = vst [vmem:[#allocation35_spill] sm:$0xff] %v4335_v1  ;;  %v728_v1 = vadd.f32 %v720_v4, %v700_v47  ;;  %6292 = vst [vmem:[#allocation109_spill] sm:$0xff] %v4356_v31  ;;  %v776_v22 = vmul.f32 %v6294_v28, %v6293_v36  ;;  %v6295_v0 = vld [vmem:[#allocation77_spill] sm:$0xff]  ;;  %v6299_v46 = vld [vmem:[#allocation68_spill] sm:$0xff]  ;;  %v466_v28 = vmul.f32 %v6303_v40, %v6302_v35 }
  0x60   : > { %v1232_v42 = vadd.f32 %v6295_v0, %v1204_v17  ;;  %v6296_v48 = vld [vmem:[#allocation5_spill] sm:$0xff]  ;;  %v805_v58 = vmul.f32 %v6299_v46, %v6298_v20  ;;  %v6300_v4 = vld [vmem:[#allocation6_spill] sm:$0xff]  ;;  %v6301_v47 = vld [vmem:[#allocation20_spill] sm:$0xff]  ;;  %v4376_v63 = vmul.f32 %v6293_v36, %v4356_v31 }
  0x61   : > { %v6297_v30 = vld [vmem:[#allocation17_spill] sm:$0xff]  ;;  %v756_v53 = vadd.f32 %v748_v6, %v728_v1  ;;  %v438_v26 = vmul.f32 %v6301_v47, %v6300_v4  ;;  %v6306_v25 = vld [vmem:[#allocation75_spill] sm:$0xff]  ;;  %v6309_v4 = vld [vmem:[#allocation26_spill] sm:$0xff] }
  0x62   : > { %v410_v54 = vmul.f32 %v6297_v30, %v6296_v48  ;;  %v1260_v0 = vadd.f32 %v4163_v12, %v1232_v42  ;;  %6304 = vst [vmem:[#allocation77_spill] sm:$0xff] %v4376_v63  ;;  %v6305_v17 = vld [vmem:[#allocation37_spill] sm:$0xff]  ;;  %v6307_v30 = vld [vmem:[#allocation38_spill] sm:$0xff]  ;;  %v6308_v48 = vld [vmem:[#allocation39_spill] sm:$0xff]  ;;  %v494_v40 = vmul.f32 %v6309_v4, %v3796_v16  ;;  %v649_v42 = vadd.f32 %v641_v14, %v621_v23 }
  0x63   : > { %v833_v2 = vmul.f32 %v6306_v25, %v6305_v17  ;;  %v861_v1 = vmul.f32 %v4142_v24, %v6307_v30  ;;  %v784_v6 = vadd.f32 %v776_v22, %v756_v53  ;;  %v889_v46 = vmul.f32 %v4150_v29, %v6308_v48  ;;  %v6310_v35 = vld [vmem:[#allocation40_spill] sm:$0xff]  ;;  %v6312_v17 = vld [vmem:[#allocation45_spill] sm:$0xff]  ;;  %v6313_v29 = vld [vmem:[#allocation30_spill] sm:$0xff] }
  0x64   : > { %v446_v47 = vadd.f32 %v438_v26, %v410_v54  ;;  %v1288_v12 = vadd.f32 %v4167_v11, %v1260_v0  ;;  %v917_v63 = vmul.f32 %v4152_v18, %v6310_v35  ;;  %v6311_v36 = vld [vmem:[#allocation44_spill] sm:$0xff]  ;;  %v973_v53 = vmul.f32 %v4177_v19, %v6312_v17  ;;  %v6314_v4 = vld [vmem:[#allocation46_spill] sm:$0xff]  ;;  %v6316_v0 = vld [vmem:[#allocation49_spill] sm:$0xff] }
  0x65   : > { %v945_v25 = vmul.f32 %v4154_v45, %v6311_v36  ;;  %v813_v31 = vadd.f32 %v805_v58, %v784_v6  ;;  %v522_v54 = vmul.f32 %v6313_v29, %v3810_v27  ;;  %v1001_v11 = vmul.f32 %v6314_v4, %v3827_v37  ;;  %v6315_v23 = vld [vmem:[#allocation48_spill] sm:$0xff]  ;;  %v6317_v6 = vld [vmem:[#allocation50_spill] sm:$0xff]  ;;  %v6318_v29 = vld [vmem:[#allocation33_spill] sm:$0xff] }
  0x66   : > { %v474_v22 = vadd.f32 %v466_v28, %v446_v47  ;;  %v1316_v26 = vadd.f32 %v4183_v21, %v1288_v12  ;;  %v1029_v14 = vmul.f32 %v6315_v23, %v3829_v38  ;;  %v4402_v16 = vmul.f32 %v6316_v0, %v3831_v39  ;;  %v6319_v37 = vld [vmem:[#allocation53_spill] sm:$0xff]  ;;  %v6320_v38 = vld [vmem:[#allocation54_spill] sm:$0xff] }
  0x67   : > { %v841_v58 = vadd.f32 %v833_v2, %v813_v31  ;;  %v4406_v19 = vmul.f32 %v6317_v6, %v3847_v49  ;;  %v550_v47 = vmul.f32 %v6318_v29, %v3817_v32  ;;  %v677_v12 = vadd.f32 %v669_v9, %v649_v42  ;;  %v6321_v31 = vld [vmem:[#allocation58_spill] sm:$0xff]  ;;  %v6323_v9 = vld [vmem:[#allocation59_spill] sm:$0xff] }
  0x68   : > { %v502_v28 = vadd.f32 %v494_v40, %v474_v22  ;;  %v1344_v21 = vadd.f32 %v4187_v52, %v1316_v26  ;;  %v4413_v27 = vmul.f32 %v6319_v37, %v3859_v56  ;;  %v4417_v39 = vmul.f32 %v6320_v38, %v6249_v34  ;;  %v6322_v22 = vld [vmem:[#allocation34_spill] sm:$0xff]  ;;  %v6324_v56 = vld [vmem:[#allocation69_spill] sm:$0xff] }
  0x69   : > { %v869_v2 = vadd.f32 %v861_v1, %v841_v58  ;;  %v4421_v49 = vmul.f32 %v6321_v31, %v6256_v62  ;;  %v578_v29 = vmul.f32 %v6322_v22, %v3835_v41  ;;  %v4428_v42 = vmul.f32 %v6323_v9, %v6266_v7  ;;  %v6325_v34 = vld [vmem:[#allocation73_spill] sm:$0xff]  ;;  %v6329_v32 = vld [vmem:[#allocation78_spill] sm:$0xff]  ;;  %v6331_v62 = vld [vmem:[#allocation79_spill] sm:$0xff] }
  0x6a   : > { %v530_v40 = vadd.f32 %v522_v54, %v502_v28  ;;  %v1372_v52 = vadd.f32 %v4205_v44, %v1344_v21  ;;  %v4432_v26 = vmul.f32 %v6324_v56, %v6269_v59  ;;  %v4436_v1 = vmul.f32 %v6325_v34, %v6271_v5  ;;  %v6326_v54 = vld [vmem:[#allocation74_spill] sm:$0xff]  ;;  %v6328_v44 = vld [vmem:[#allocation36_spill] sm:$0xff] }
  0x6b   : > { %v897_v58 = vadd.f32 %v889_v46, %v869_v2  ;;  %v4440_v28 = vmul.f32 %v6326_v54, %v6277_v33  ;;  %v607_v21 = vmul.f32 %v6328_v44, %v3851_v51  ;;  %v705_v41 = vadd.f32 %v697_v43, %v677_v12  ;;  %v6334_v2 = vld [vmem:[#allocation41_spill] sm:$0xff]  ;;  %v6335_v43 = vld [vmem:[#allocation66_spill] sm:$0xff] }
  0x6c   : > { %v558_v22 = vadd.f32 %v550_v47, %v530_v40  ;;  %v1401_v7 = vadd.f32 %v4218_v50, %v1372_v52  ;;  %v4447_v59 = vmul.f32 %v6329_v32, %v6281_v15  ;;  %v4451_v5 = vmul.f32 %v6331_v62, %v6289_v55  ;;  %v6337_v15 = vld [vmem:[#allocation70_spill] sm:$0xff]  ;;  %v6338_v52 = vld [vmem:[#allocation85_spill] sm:$0xff]  ;;  %v6340_v55 = vld [vmem:[#allocation71_spill] sm:$0xff] }
  0x6d   : > { %6327 = vst [vmem:[#allocation17_spill] sm:$0xff] %v4440_v28  ;;  %v925_v46 = vadd.f32 %v917_v63, %v897_v58  ;;  %v4455_v33 = vmul.f32 %v4157_v8, %v6283_v13  ;;  %v635_v40 = vmul.f32 %v6334_v2, %v3866_v60  ;;  %v4462_v12 = vmul.f32 %v4190_v3, %v6335_v43  ;;  %v6341_v63 = vld [vmem:[#allocation86_spill] sm:$0xff]  ;;  %v6348_v8 = vld [vmem:[#allocation91_spill] sm:$0xff] }
  0x6e   : > { %6330 = vst [vmem:[#allocation20_spill] sm:$0xff] %v4447_v59  ;;  %6332 = vst [vmem:[#allocation23_spill] sm:$0xff] %v4451_v5  ;;  %v586_v47 = vadd.f32 %v578_v29, %v558_v22  ;;  %v1429_v50 = vadd.f32 %v4228_v61, %v1401_v7  ;;  %v4466_v44 = vmul.f32 %v6338_v52, %v6337_v15  ;;  %v6344_v29 = vld [vmem:[#allocation88_spill] sm:$0xff]  ;;  %v6346_v5 = vld [vmem:[#allocation18_spill] sm:$0xff] }
  0x6f   : > { %6333 = vst [vmem:[#allocation26_spill] sm:$0xff] %v4455_v33  ;;  %6336 = vst [vmem:[#allocation30_spill] sm:$0xff] %v4462_v12  ;;  %v4470_v58 = vmul.f32 %v6341_v63, %v6340_v55  ;;  %v953_v13 = vadd.f32 %v945_v25, %v925_v46  ;;  %v6343_v33 = vld [vmem:[#allocation76_spill] sm:$0xff]  ;;  %v6347_v61 = vld [vmem:[#allocation42_spill] sm:$0xff] }
  0x70   : > { %6339 = vst [vmem:[#allocation33_spill] sm:$0xff] %v4466_v44  ;;  %v4474_v22 = vmul.f32 %v6344_v29, %v6343_v33  ;;  %v615_v2 = vadd.f32 %v607_v21, %v586_v47  ;;  %v663_v7 = vmul.f32 %v6347_v61, %v6346_v5  ;;  %v1457_v3 = vadd.f32 %v6348_v8, %v1429_v50  ;;  %v6349_v12 = vld [vmem:[#allocation32_spill] sm:$0xff]  ;;  %v6350_v62 = vld [vmem:[#allocation82_spill] sm:$0xff]  ;;  %v6351_v52 = vld [vmem:[#allocation89_spill] sm:$0xff] }
  0x71   : > { %6342 = vst [vmem:[#allocation34_spill] sm:$0xff] %v4470_v58  ;;  %v733_v59 = vadd.f32 %v6349_v12, %v705_v41  ;;  %v4482_v44 = vmul.f32 %v6351_v52, %v6350_v62  ;;  %v6353_v28 = vld [vmem:[#allocation87_spill] sm:$0xff]  ;;  %v6354_v63 = vld [vmem:[#allocation90_spill] sm:$0xff]  ;;  %v981_v25 = vadd.f32 %v973_v53, %v953_v13  ;;  %v6356_v46 = vld [vmem:[#allocation93_spill] sm:$0xff] }
  0x72   : > { %6345 = vst [vmem:[#allocation59_spill] sm:$0xff] %v4474_v22  ;;  %v4486_v58 = vmul.f32 %v6354_v63, %v6353_v28  ;;  %v6357_v29 = vld [vmem:[#allocation92_spill] sm:$0xff]  ;;  %v643_v21 = vadd.f32 %v635_v40, %v615_v2  ;;  %v6359_v47 = vld [vmem:[#allocation22_spill] sm:$0xff]  ;;  %v6360_v61 = vld [vmem:[#allocation47_spill] sm:$0xff] }
  0x73   : > { %6352 = vst [vmem:[#allocation69_spill] sm:$0xff] %v4482_v44  ;;  %v4490_v22 = vmul.f32 %v6357_v29, %v6356_v46  ;;  %v691_v5 = vmul.f32 %v6360_v61, %v6359_v47  ;;  %v6361_v8 = vld [vmem:[#allocation94_spill] sm:$0xff]  ;;  %v6363_v12 = vld [vmem:[#allocation96_spill] sm:$0xff]  ;;  %v6366_v52 = vld [vmem:[#allocation97_spill] sm:$0xff]  ;;  %v1009_v29 = vadd.f32 %v1001_v11, %v981_v25 }
  0x74   : > { %6355 = vst [vmem:[#allocation73_spill] sm:$0xff] %v4486_v58  ;;  %v1485_v50 = vadd.f32 %v6361_v8, %v1457_v3  ;;  %v6362_v41 = vld [vmem:[#allocation102_spill] sm:$0xff]  ;;  %v6365_v44 = vld [vmem:[#allocation104_spill] sm:$0xff]  ;;  %v6368_v58 = vld [vmem:[#allocation105_spill] sm:$0xff]  ;;  %v671_v61 = vadd.f32 %v663_v7, %v643_v21 }
  0x75   : > { %6358 = vst [vmem:[#allocation74_spill] sm:$0xff] %v4490_v22  ;;  %v4497_v60 = vmul.f32 %v6363_v12, %v6362_v41  ;;  %v4501_v51 = vmul.f32 %v6366_v52, %v6365_v44  ;;  %v6369_v53 = vld [vmem:[#allocation98_spill] sm:$0xff]  ;;  %v6372_v40 = vld [vmem:[#allocation99_spill] sm:$0xff]  ;;  %v6374_v63 = vld [vmem:[#allocation24_spill] sm:$0xff]  ;;  %v1037_v11 = vadd.f32 %v1029_v14, %v1009_v29 }
  0x76   : > { %v4505_v13 = vmul.f32 %v6369_v53, %v6368_v58  ;;  %v6371_v22 = vld [vmem:[#allocation106_spill] sm:$0xff]  ;;  %v6375_v3 = vld [vmem:[#allocation51_spill] sm:$0xff]  ;;  %v6378_v52 = vld [vmem:[#allocation101_spill] sm:$0xff]  ;;  %v699_v25 = vadd.f32 %v691_v5, %v671_v61 }
  0x77   : > { %6364 = vst [vmem:[#allocation36_spill] sm:$0xff] %v4497_v60  ;;  %6367 = vst [vmem:[#allocation41_spill] sm:$0xff] %v4501_v51  ;;  %v4509_v2 = vmul.f32 %v6372_v40, %v6371_v22  ;;  %v719_v8 = vmul.f32 %v6375_v3, %v6374_v63  ;;  %v6376_v47 = vld [vmem:[#allocation95_spill] sm:$0xff]  ;;  %v761_v60 = vadd.f32 %v4363_v10, %v733_v59  ;;  %v6380_v40 = vld [vmem:[#allocation52_spill] sm:$0xff] }
  0x78   : > { %6370 = vst [vmem:[#allocation66_spill] sm:$0xff] %v4505_v13  ;;  %v1513_v12 = vadd.f32 %v6376_v47, %v1485_v50  ;;  %v6377_v32 = vld [vmem:[#allocation107_spill] sm:$0xff]  ;;  %v808_v13 = vmul.f32 %v6298_v20, %v6335_v43  ;;  %v6381_v7 = vld [vmem:[#allocation37_spill] sm:$0xff]  ;;  %v6383_v47 = vld [vmem:[#allocation108_spill] sm:$0xff]  ;;  %v1065_v14 = vadd.f32 %v4402_v16, %v1037_v11 }
  0x79   : > { %6373 = vst [vmem:[#allocation71_spill] sm:$0xff] %v4509_v2  ;;  %v4517_v51 = vmul.f32 %v6378_v52, %v6377_v32  ;;  %v747_v2 = vmul.f32 %v6380_v40, %v6286_v57  ;;  %v836_v21 = vmul.f32 %v6381_v7, %v6337_v15  ;;  %v6382_v3 = vld [vmem:[#allocation19_spill] sm:$0xff]  ;;  %v6384_v50 = vld [vmem:[#allocation12_spill] sm:$0xff]  ;;  %v6387_v5 = vld [vmem:[#allocation109_spill] sm:$0xff]  ;;  %v727_v40 = vadd.f32 %v719_v8, %v699_v25 }
  0x7a   : > { %v1541_v53 = vadd.f32 %v6382_v3, %v1513_v12  ;;  %v4528_v10 = vmul.f32 %v6384_v50, %v6383_v47  ;;  %v6386_v59 = vld [vmem:[#allocation43_spill] sm:$0xff]  ;;  %v6390_v57 = vld [vmem:[#allocation29_spill] sm:$0xff]  ;;  %v6392_v12 = vld [vmem:[#allocation100_spill] sm:$0xff] }
  0x7b   : > { %6379 = vst [vmem:[#allocation76_spill] sm:$0xff] %v4517_v51  ;;  %v816_v52 = vadd.f32 %v808_v13, %v6386_v59  ;;  %v864_v51 = vmul.f32 %v6307_v30, %v6340_v55  ;;  %v6388_v29 = vld [vmem:[#allocation103_spill] sm:$0xff]  ;;  %v6393_v15 = vld [vmem:[#allocation77_spill] sm:$0xff]  ;;  %v892_v13 = vmul.f32 %v6308_v48, %v6343_v33  ;;  %v1093_v59 = vadd.f32 %v4406_v19, %v1065_v14  ;;  %v6395_v11 = vld [vmem:[#allocation56_spill] sm:$0xff] }
  0x7c   : > { %6385 = vst [vmem:[#allocation42_spill] sm:$0xff] %v4528_v10  ;;  %v4536_v61 = vmul.f32 %v6388_v29, %v6387_v5  ;;  %v6391_v63 = vld [vmem:[#allocation55_spill] sm:$0xff]  ;;  %v1569_v3 = vadd.f32 %v6392_v12, %v1541_v53  ;;  %v4542_v50 = vadd.f32 %v6393_v15, %v761_v60  ;;  %v755_v16 = vadd.f32 %v747_v2, %v727_v40  ;;  %v6396_v8 = vld [vmem:[#allocation57_spill] sm:$0xff]  ;;  %v6398_v53 = vld [vmem:[#allocation60_spill] sm:$0xff] }
  0x7d   : > { %v775_v32 = vmul.f32 %v6391_v63, %v6390_v57  ;;  %v844_v10 = vadd.f32 %v836_v21, %v816_v52  ;;  %v804_v29 = vmul.f32 %v6395_v11, %v6298_v20  ;;  %v832_v25 = vmul.f32 %v6396_v8, %v6381_v7  ;;  %v6399_v19 = vld [vmem:[#allocation61_spill] sm:$0xff]  ;;  %v6400_v14 = vld [vmem:[#allocation62_spill] sm:$0xff] }
  0x7e   : > { %6389 = vst [vmem:[#allocation91_spill] sm:$0xff] %v4536_v61  ;;  %6394 = vst [vmem:[#allocation32_spill] sm:$0xff] %v4542_v50  ;;  %v6397_v61 = vld [vmem:[#allocation67_spill] sm:$0xff]  ;;  %v860_v12 = vmul.f32 %v6398_v53, %v6307_v30  ;;  %v920_v15 = vmul.f32 %v6310_v35, %v6350_v62  ;;  %v1121_v52 = vadd.f32 %v4413_v27, %v1093_v59  ;;  %v6401_v11 = vld [vmem:[#allocation13_spill] sm:$0xff] }
  0x7f   : > { %v1598_v63 = vadd.f32 %v6397_v61, %v1569_v3  ;;  %v872_v60 = vadd.f32 %v864_v51, %v844_v10  ;;  %v783_v21 = vadd.f32 %v775_v32, %v755_v16  ;;  %v888_v2 = vmul.f32 %v6399_v19, %v6308_v48  ;;  %v6402_v61 = vld [vmem:[#allocation64_spill] sm:$0xff]  ;;  %v6403_v27 = vld [vmem:[#allocation65_spill] sm:$0xff]  ;;  %v6405_v19 = vld [vmem:[#allocation15_spill] sm:$0xff] }
  0x80   : > { %v916_v40 = vmul.f32 %v6400_v14, %v6310_v35  ;;  %v944_v3 = vmul.f32 %v6402_v61, %v6311_v36  ;;  %v948_v51 = vmul.f32 %v6311_v36, %v6353_v28  ;;  %v1149_v10 = vadd.f32 %v4417_v39, %v1121_v52  ;;  %v6404_v59 = vld [vmem:[#allocation68_spill] sm:$0xff] }
  0x81   : > { %v1626_v8 = vadd.f32 %v6401_v11, %v1598_v63  ;;  %v900_v50 = vadd.f32 %v892_v13, %v872_v60  ;;  %v812_v53 = vadd.f32 %v804_v29, %v783_v21  ;;  %v972_v32 = vmul.f32 %v6403_v27, %v6312_v17  ;;  %v6406_v63 = vld [vmem:[#allocation75_spill] sm:$0xff]  ;;  %v6407_v21 = vld [vmem:[#allocation80_spill] sm:$0xff] }
  0x82   : > { %v4571_v16 = vmul.f32 %v6404_v59, %v6314_v4  ;;  %v4576_v11 = vmul.f32 %v6406_v63, %v6315_v23  ;;  %v976_v60 = vmul.f32 %v6312_v17, %v6356_v46  ;;  %v1177_v39 = vadd.f32 %v4421_v49, %v1149_v10  ;;  %v6409_v10 = vld [vmem:[#allocation83_spill] sm:$0xff]  ;;  %v4612_v63 = vld [vmem:[#allocation2 + $0x51] sm:$0xff] }
  0x83   : > { %v1654_v14 = vadd.f32 %v6405_v19, %v1626_v8  ;;  %v928_v13 = vadd.f32 %v920_v15, %v900_v50  ;;  %v840_v29 = vadd.f32 %v832_v25, %v812_v53  ;;  %v4583_v52 = vmul.f32 %v4142_v24, %v6316_v0  ;;  %v6408_v8 = vld [vmem:[#allocation21_spill] sm:$0xff]  ;;  %v4605_v19 = vld [vmem:[#allocation2 + $0x50] sm:$0xff]  ;;  %6412 = vst [vmem:[#allocation87_spill] sm:$0xff] %v4612_v63 }
  0x84   : > { %v4587_v61 = vmul.f32 %v6407_v21, %v6317_v6  ;;  %v4592_v59 = vmul.f32 %v4152_v18, %v6319_v37  ;;  %v1004_v15 = vmul.f32 %v6314_v4, %v6362_v41  ;;  %v1206_v49 = vadd.f32 %v4428_v42, %v1177_v39  ;;  %6410 = vst [vmem:[#allocation82_spill] sm:$0xff] %v4605_v19  ;;  %v4614_v42 = vld [vmem:[#allocation2 + $0x52] sm:$0xff] }
  0x85   : > { %v1682_v27 = vadd.f32 %v6408_v8, %v1654_v14  ;;  %v956_v50 = vadd.f32 %v948_v51, %v928_v13  ;;  %v868_v25 = vadd.f32 %v860_v12, %v840_v29  ;;  %v4599_v24 = vmul.f32 %v4154_v45, %v6320_v38  ;;  %v6411_v14 = vld [vmem:[#allocation27_spill] sm:$0xff]  ;;  %6413 = vst [vmem:[#allocation93_spill] sm:$0xff] %v4614_v42  ;;  %v4627_v8 = vld [vmem:[#allocation2 + $0x53] sm:$0xff] }
  0x86   : > { %v4603_v53 = vmul.f32 %v6409_v10, %v6321_v31  ;;  %v4610_v51 = vmul.f32 %v6323_v9, %v4605_v19  ;;  %v1032_v45 = vmul.f32 %v6315_v23, %v6365_v44  ;;  %v1234_v13 = vadd.f32 %v4432_v26, %v1206_v49  ;;  %6414 = vst [vmem:[#allocation47_spill] sm:$0xff] %v4627_v8  ;;  %v6423_v23 = vld [vmem:[#allocation70_spill] sm:$0xff] }
  0x87   : > { %v1710_v18 = vadd.f32 %v6411_v14, %v1682_v27  ;;  %v984_v12 = vadd.f32 %v976_v60, %v956_v50  ;;  %v896_v39 = vadd.f32 %v888_v2, %v868_v25  ;;  %v4621_v29 = vmul.f32 %v6324_v56, %v4612_v63  ;;  %v6415_v27 = vld [vmem:[#allocation72_spill] sm:$0xff]  ;;  %v6418_v14 = vld [vmem:[#allocation78_spill] sm:$0xff] }
  0x88   : > { %v4625_v21 = vmul.f32 %v6325_v34, %v4614_v42  ;;  %v4632_v60 = vmul.f32 %v6326_v54, %v4627_v8  ;;  %v4634_v50 = vld [vmem:[#allocation2 + $0x54] sm:$0xff]  ;;  %v1060_v2 = vmul.f32 %v6316_v0, %v6368_v58  ;;  %v1262_v49 = vadd.f32 %v4436_v1, %v1234_v13 }
  0x89   : > { %v1738_v10 = vadd.f32 %v6415_v27, %v1710_v18  ;;  %6417 = vst [vmem:[#allocation102_spill] sm:$0xff] %v4634_v50  ;;  %v1012_v26 = vadd.f32 %v1004_v15, %v984_v12  ;;  %v924_v25 = vadd.f32 %v916_v40, %v896_v39  ;;  %v4641_v42 = vmul.f32 %v6418_v14, %v4634_v50  ;;  %v6420_v27 = vld [vmem:[#allocation35_spill] sm:$0xff]  ;;  %v4646_v8 = vld [vmem:[#allocation2 + $0x55] sm:$0xff]  ;;  %v6422_v15 = vld [vmem:[#allocation14_spill] sm:$0xff] }
  0x8a   : > { %6416 = vst [vmem:[#allocation94_spill] sm:$0xff] %v4632_v60  ;;  %v1088_v18 = vmul.f32 %v6317_v6, %v6371_v22  ;;  %6421 = vst [vmem:[#allocation105_spill] sm:$0xff] %v4646_v8  ;;  %v612_v12 = vmul.f32 %v6422_v15, %v6335_v43  ;;  %v6424_v0 = vld [vmem:[#allocation16_spill] sm:$0xff]  ;;  %v6425_v1 = vld [vmem:[#allocation17_spill] sm:$0xff] }
  0x8b   : > { %6419 = vst [vmem:[#allocation104_spill] sm:$0xff] %v4641_v42  ;;  %v1766_v63 = vadd.f32 %v6420_v27, %v1738_v10  ;;  %v1040_v19 = vadd.f32 %v1032_v45, %v1012_v26  ;;  %v640_v4 = vmul.f32 %v6424_v0, %v6423_v23  ;;  %v1290_v40 = vadd.f32 %v6425_v1, %v1262_v49  ;;  %v6426_v39 = vld [vmem:[#allocation79_spill] sm:$0xff]  ;;  %v4660_v27 = vld [vmem:[#allocation2 + $0x60] sm:$0xff]  ;;  %v6432_v49 = vld [vmem:[#allocation20_spill] sm:$0xff] }
  0x8c   : > { %v952_v13 = vadd.f32 %v944_v3, %v924_v25  ;;  %v4655_v50 = vmul.f32 %v6426_v39, %v4646_v8  ;;  %v6428_v42 = vld [vmem:[#allocation107_spill] sm:$0xff]  ;;  %6429 = vst [vmem:[#allocation51_spill] sm:$0xff] %v4660_v27  ;;  %v6431_v60 = vld [vmem:[#allocation18_spill] sm:$0xff]  ;;  %v6433_v1 = vld [vmem:[#allocation25_spill] sm:$0xff] }
  0x8d   : > { %v1116_v6 = vmul.f32 %v6319_v37, %v6428_v42  ;;  %v1774_v10 = vsel %vm343_vm0, %v1766_v63, 0.0  ;;  %v1068_v45 = vadd.f32 %v1060_v2, %v1040_v19  ;;  %v6430_v26 = vld [vmem:[#allocation63_spill] sm:$0xff]  ;;  %v668_v0 = vmul.f32 %v6431_v60, %v6340_v55  ;;  %v6434_v8 = vld [vmem:[#allocation81_spill] sm:$0xff]  ;;  %v6436_v37 = vld [vmem:[#allocation84_spill] sm:$0xff] }
  0x8e   : > { %6427 = vst [vmem:[#allocation106_spill] sm:$0xff] %v4655_v50  ;;  %v620_v15 = vadd.f32 %v612_v12, %v6430_v26  ;;  %1775 = vadd.xlane.f32.xlu0 %v1774_v10  ;;  %v1318_v3 = vadd.f32 %v6432_v49, %v1290_v40  ;;  %v980_v25 = vadd.f32 %v972_v32, %v952_v13  ;;  %v4674_v63 = vld [vmem:[#allocation2 + $0x61] sm:$0xff] }
  0x8f   : > { %v4668_v50 = vmul.f32 %v6434_v8, %v6433_v1  ;;  %v4672_v17 = vmul.f32 %v6436_v37, %v4660_v27  ;;  %6438 = vst [vmem:[#allocation19_spill] sm:$0xff] %v4674_v63  ;;  %v4676_v19 = vld [vmem:[#allocation2 + $0x62] sm:$0xff]  ;;  %v1096_v2 = vadd.f32 %v1088_v18, %v1068_v45  ;;  %v1144_v12 = vmul.f32 %v6320_v38, %v6383_v47  ;;  %v6442_v1 = vld [vmem:[#allocation85_spill] sm:$0xff]  ;;  %v6450_v38 = vld [vmem:[#allocation88_spill] sm:$0xff] }
  0x90   : > { %6439 = vst [vmem:[#allocation108_spill] sm:$0xff] %v4676_v19  ;;  %v648_v10 = vadd.f32 %v640_v4, %v620_v15  ;;  %v6440_v40 = vld [vmem:[#allocation22_spill] sm:$0xff]  ;;  %v6441_v13 = vld [vmem:[#allocation23_spill] sm:$0xff]  ;;  %v1008_v49 = vadd.f32 %v4571_v16, %v980_v25  ;;  %v4686_v27 = vmul.f32 %v6442_v1, %v4674_v63  ;;  %v1172_v15 = vmul.f32 %v6321_v31, %v6387_v5  ;;  %v6460_v31 = vld [vmem:[#allocation92_spill] sm:$0xff] }
  0x91   : > { %6435 = vst [vmem:[#allocation95_spill] sm:$0xff] %v4668_v50  ;;  %6437 = vst [vmem:[#allocation52_spill] sm:$0xff] %v4672_v17  ;;  %v696_v32 = vmul.f32 %v6440_v40, %v6343_v33  ;;  %v1346_v26 = vadd.f32 %v6441_v13, %v1318_v3  ;;  %v6444_v60 = vld [vmem:[#allocation86_spill] sm:$0xff]  ;;  %v1124_v4 = vadd.f32 %v1116_v6, %v1096_v2  ;;  %v6448_v3 = vld [vmem:[#allocation24_spill] sm:$0xff] }
  0x92   : > { %6443 = vst [vmem:[#allocation43_spill] sm:$0xff] %v4686_v27  ;;  %v4690_v17 = vmul.f32 %v6444_v60, %v4676_v19  ;;  %v4692_v18 = vld [vmem:[#allocation2 + $0x63] sm:$0xff]  ;;  %v676_v40 = vadd.f32 %v668_v0, %v648_v10  ;;  %v724_v16 = vmul.f32 %v6448_v3, %v6350_v62  ;;  %v1036_v63 = vadd.f32 %v4576_v11, %v1008_v49  ;;  %v4710_v6 = vld [vmem:[#allocation2 + $0x90] sm:$0xff] }
  0x93   : > { %6446 = vst [vmem:[#allocation55_spill] sm:$0xff] %v4692_v18  ;;  %v4694_v45 = vld [vmem:[#allocation2 + $0x64] sm:$0xff]  ;;  %v4704_v19 = vmul.f32 %v6450_v38, %v4692_v18  ;;  %6454 = vst [vmem:[#allocation57_spill] sm:$0xff] %v4710_v6  ;;  %v1152_v10 = vadd.f32 %v1144_v12, %v1124_v4  ;;  %v6457_v11 = vld [vmem:[#allocation28_spill] sm:$0xff] }
  0x94   : > { %6445 = vst [vmem:[#allocation109_spill] sm:$0xff] %v4690_v17  ;;  %6447 = vst [vmem:[#allocation100_spill] sm:$0xff] %v4694_v45  ;;  %v6449_v25 = vld [vmem:[#allocation26_spill] sm:$0xff]  ;;  %v6452_v17 = vld [vmem:[#allocation89_spill] sm:$0xff]  ;;  %v752_v49 = vmul.f32 %v6457_v11, %v6353_v28 }
  0x95   : > { %v1374_v13 = vadd.f32 %v6449_v25, %v1346_v26  ;;  %6451 = vst [vmem:[#allocation77_spill] sm:$0xff] %v4704_v19  ;;  %v4708_v27 = vmul.f32 %v6452_v17, %v4694_v45  ;;  %v4712_v2 = vld [vmem:[#allocation2 + $0x65] sm:$0xff]  ;;  %v1201_v26 = vmul.f32 %v6323_v9, %v4710_v6  ;;  %v704_v25 = vadd.f32 %v696_v32, %v676_v40  ;;  %v4730_v12 = vld [vmem:[#allocation2 + $0x91] sm:$0xff] }
  0x96   : > { %6455 = vst [vmem:[#allocation67_spill] sm:$0xff] %v4712_v2  ;;  %v4714_v0 = vld [vmem:[#allocation2 + $0x66] sm:$0xff]  ;;  %v1064_v19 = vadd.f32 %v4583_v52, %v1036_v63  ;;  %6462 = vst [vmem:[#allocation62_spill] sm:$0xff] %v4730_v12  ;;  %v1180_v4 = vadd.f32 %v1172_v15, %v1152_v10  ;;  %v1229_v40 = vmul.f32 %v6324_v56, %v4730_v12  ;;  %v4746_v15 = vld [vmem:[#allocation2 + $0x92] sm:$0xff] }
  0x97   : > { %6453 = vst [vmem:[#allocation56_spill] sm:$0xff] %v4708_v27  ;;  %6456 = vst [vmem:[#allocation60_spill] sm:$0xff] %v4714_v0  ;;  %v6458_v18 = vld [vmem:[#allocation30_spill] sm:$0xff]  ;;  %v4728_v50 = vmul.f32 %v6460_v31, %v4714_v0  ;;  %v732_v32 = vadd.f32 %v724_v16, %v704_v25  ;;  %v6465_v0 = vld [vmem:[#allocation97_spill] sm:$0xff]  ;;  %v1257_v16 = vmul.f32 %v6325_v34, %v4746_v15 }
  0x98   : > { %v1403_v3 = vadd.f32 %v6458_v18, %v1374_v13  ;;  %v6459_v45 = vld [vmem:[#allocation90_spill] sm:$0xff]  ;;  %v780_v18 = vmul.f32 %v6390_v57, %v6356_v46  ;;  %v6463_v13 = vld [vmem:[#allocation33_spill] sm:$0xff]  ;;  %v1092_v63 = vadd.f32 %v4587_v61, %v1064_v19  ;;  %6467 = vst [vmem:[#allocation64_spill] sm:$0xff] %v4746_v15  ;;  %v1209_v10 = vadd.f32 %v1201_v26, %v1180_v4 }
  0x99   : > { %v4724_v27 = vmul.f32 %v6459_v45, %v4712_v2  ;;  %6461 = vst [vmem:[#allocation61_spill] sm:$0xff] %v4728_v50  ;;  %v6464_v2 = vld [vmem:[#allocation96_spill] sm:$0xff]  ;;  %v4744_v50 = vmul.f32 %v6465_v0, %v6423_v23  ;;  %v760_v25 = vadd.f32 %v752_v49, %v732_v32  ;;  %v6470_v23 = vld [vmem:[#allocation99_spill] sm:$0xff] }
  0x9a   : > { %v1431_v52 = vadd.f32 %v6463_v13, %v1403_v3  ;;  %v4740_v11 = vmul.f32 %v6464_v2, %v6335_v43  ;;  %v809_v3 = vmul.f32 %v6298_v20, %v6362_v41  ;;  %v6468_v13 = vld [vmem:[#allocation34_spill] sm:$0xff]  ;;  %v1120_v19 = vadd.f32 %v4592_v59, %v1092_v63  ;;  %v4762_v26 = vld [vmem:[#allocation2 + $0x93] sm:$0xff] }
  0x9b   : > { %6466 = vst [vmem:[#allocation13_spill] sm:$0xff] %v4744_v50  ;;  %v6469_v43 = vld [vmem:[#allocation98_spill] sm:$0xff]  ;;  %v4760_v50 = vmul.f32 %v6470_v23, %v6343_v33  ;;  %6472 = vst [vmem:[#allocation68_spill] sm:$0xff] %v4762_v26  ;;  %v1237_v4 = vadd.f32 %v1229_v40, %v1209_v10  ;;  %v1285_v49 = vmul.f32 %v6326_v54, %v4762_v26  ;;  %v6476_v33 = vld [vmem:[#allocation12_spill] sm:$0xff] }
  0x9c   : > { %v1459_v61 = vadd.f32 %v6468_v13, %v1431_v52  ;;  %v4756_v57 = vmul.f32 %v6469_v43, %v6340_v55  ;;  %v788_v32 = vadd.f32 %v780_v18, %v760_v25  ;;  %v837_v41 = vmul.f32 %v6381_v7, %v6365_v44  ;;  %v6473_v52 = vld [vmem:[#allocation59_spill] sm:$0xff]  ;;  %v6474_v55 = vld [vmem:[#allocation101_spill] sm:$0xff] }
  0x9d   : > { %6471 = vst [vmem:[#allocation65_spill] sm:$0xff] %v4760_v50  ;;  %v1148_v63 = vadd.f32 %v4599_v24, %v1120_v19  ;;  %v4772_v13 = vmul.f32 %v6474_v55, %v6350_v62  ;;  %v4776_v50 = vmul.f32 %v6476_v33, %v6353_v28  ;;  %v4778_v40 = vld [vmem:[#allocation2 + $0x94] sm:$0xff]  ;;  %v1265_v10 = vadd.f32 %v1257_v16, %v1237_v4 }
  0x9e   : > { %v1487_v59 = vadd.f32 %v6473_v52, %v1459_v61  ;;  %6478 = vst [vmem:[#allocation80_spill] sm:$0xff] %v4778_v40  ;;  %v1313_v18 = vmul.f32 %v6418_v14, %v4778_v40  ;;  %v4782_v25 = vld [vmem:[#allocation2 + $0x95] sm:$0xff]  ;;  %v817_v44 = vadd.f32 %v809_v3, %v788_v32  ;;  %v865_v24 = vmul.f32 %v6307_v30, %v6368_v58  ;;  %v6481_v52 = vld [vmem:[#allocation103_spill] sm:$0xff]  ;;  %v4798_v32 = vld [vmem:[#allocation2 + $0xa0] sm:$0xff] }
  0x9f   : > { %6475 = vst [vmem:[#allocation15_spill] sm:$0xff] %v4772_v13  ;;  %6477 = vst [vmem:[#allocation75_spill] sm:$0xff] %v4776_v50  ;;  %v6480_v61 = vld [vmem:[#allocation69_spill] sm:$0xff]  ;;  %v1176_v62 = vadd.f32 %v4603_v53, %v1148_v63  ;;  %v4790_v28 = vmul.f32 %v6481_v52, %v6356_v46  ;;  %v1341_v16 = vmul.f32 %v6426_v39, %v4782_v25  ;;  %v4800_v58 = vld [vmem:[#allocation2 + $0xa1] sm:$0xff] }
  0xa0   : > { %6479 = vst [vmem:[#allocation21_spill] sm:$0xff] %v4782_v25  ;;  %v1515_v19 = vadd.f32 %v6480_v61, %v1487_v59  ;;  %v4794_v4 = vld [vmem:[#allocation2 + $0x96] sm:$0xff]  ;;  %v1293_v50 = vadd.f32 %v1285_v49, %v1265_v10  ;;  %v845_v59 = vadd.f32 %v837_v41, %v817_v44  ;;  %v893_v53 = vmul.f32 %v6308_v48, %v6371_v22  ;;  %v4810_v10 = vld [vmem:[#allocation2 + $0xa2] sm:$0xff] }
  0xa1   : > { %6482 = vst [vmem:[#allocation83_spill] sm:$0xff] %v4790_v28  ;;  %6483 = vst [vmem:[#allocation27_spill] sm:$0xff] %v4794_v4  ;;  %v1369_v3 = vmul.f32 %v6434_v8, %v4794_v4  ;;  %v6484_v63 = vld [vmem:[#allocation73_spill] sm:$0xff]  ;;  %v1205_v61 = vadd.f32 %v4610_v51, %v1176_v62  ;;  %v1398_v28 = vmul.f32 %v6436_v37, %v4798_v32  ;;  %v4814_v41 = vld [vmem:[#allocation2 + $0xa3] sm:$0xff] }
  0xa2   : > { %v1543_v46 = vadd.f32 %v6484_v63, %v1515_v19  ;;  %v1426_v49 = vmul.f32 %v6442_v1, %v4800_v58  ;;  %v1321_v13 = vadd.f32 %v1313_v18, %v1293_v50  ;;  %v1454_v8 = vmul.f32 %v6444_v60, %v4810_v10  ;;  %v6485_v19 = vld [vmem:[#allocation74_spill] sm:$0xff] }
  0xa3   : > { %v873_v44 = vadd.f32 %v865_v24, %v845_v59  ;;  %v921_v22 = vmul.f32 %v6310_v35, %v6428_v42  ;;  %v1233_v62 = vadd.f32 %v4621_v29, %v1205_v61  ;;  %v1482_v63 = vmul.f32 %v6450_v38, %v4814_v41  ;;  %v6486_v59 = vld [vmem:[#allocation36_spill] sm:$0xff] }
  0xa4   : > { %v1571_v51 = vadd.f32 %v6485_v19, %v1543_v46  ;;  %v810_v1 = vmul.f32 %v4710_v6, %v6298_v20  ;;  %v1349_v50 = vadd.f32 %v1341_v16, %v1321_v13  ;;  %v949_v60 = vmul.f32 %v6311_v36, %v6383_v47  ;;  %v4830_v19 = vld [vmem:[#allocation2 + $0xa4] sm:$0xff]  ;;  %v6487_v29 = vld [vmem:[#allocation32_spill] sm:$0xff]  ;;  %v6488_v47 = vld [vmem:[#allocation45_spill] sm:$0xff] }
  0xa5   : > { %v901_v18 = vadd.f32 %v893_v53, %v873_v44  ;;  %v838_v24 = vmul.f32 %v4730_v12, %v6381_v7  ;;  %v1261_v46 = vadd.f32 %v4625_v21, %v1233_v62  ;;  %v866_v38 = vmul.f32 %v4746_v15, %v6307_v30  ;;  %v6489_v44 = vld [vmem:[#allocation41_spill] sm:$0xff]  ;;  %v4841_v21 = vld [vmem:[#allocation2 + $0xa5] sm:$0xff] }
  0xa6   : > { %v1600_v42 = vadd.f32 %v6486_v59, %v1571_v51  ;;  %v818_v61 = vadd.f32 %v810_v1, %v6487_v29  ;;  %v1377_v20 = vadd.f32 %v1369_v3, %v1349_v50  ;;  %v1510_v13 = vmul.f32 %v6452_v17, %v4830_v19  ;;  %v6490_v51 = vld [vmem:[#allocation94_spill] sm:$0xff]  ;;  %v6493_v17 = vld [vmem:[#allocation104_spill] sm:$0xff] }
  0xa7   : > { %v929_v16 = vadd.f32 %v921_v22, %v901_v18  ;;  %v977_v53 = vmul.f32 %v6488_v47, %v6387_v5  ;;  %v1289_v59 = vadd.f32 %v6490_v51, %v1261_v46  ;;  %v894_v1 = vmul.f32 %v4762_v26, %v6308_v48  ;;  %v6491_v30 = vld [vmem:[#allocation46_spill] sm:$0xff]  ;;  %v6494_v51 = vld [vmem:[#allocation48_spill] sm:$0xff] }
  0xa8   : > { %v1628_v7 = vadd.f32 %v6489_v44, %v1600_v42  ;;  %v846_v62 = vadd.f32 %v838_v24, %v818_v61  ;;  %v1406_v29 = vadd.f32 %v1398_v28, %v1377_v20  ;;  %v1538_v3 = vmul.f32 %v6459_v45, %v4841_v21  ;;  %v6492_v18 = vld [vmem:[#allocation66_spill] sm:$0xff] }
  0xa9   : > { %v957_v50 = vadd.f32 %v949_v60, %v929_v16  ;;  %v1005_v22 = vmul.f32 %v4710_v6, %v6491_v30  ;;  %v1317_v42 = vadd.f32 %v6493_v17, %v1289_v59  ;;  %v4851_v44 = vld [vmem:[#allocation2 + $0xa6] sm:$0xff]  ;;  %v922_v24 = vmul.f32 %v4778_v40, %v6310_v35 }
  0xaa   : > { %v1656_v5 = vadd.f32 %v6492_v18, %v1628_v7  ;;  %v874_v46 = vadd.f32 %v866_v38, %v846_v62  ;;  %v1434_v61 = vadd.f32 %v1426_v49, %v1406_v29  ;;  %v1566_v20 = vmul.f32 %v6460_v31, %v4851_v44  ;;  %v6495_v16 = vld [vmem:[#allocation71_spill] sm:$0xff]  ;;  %v6496_v48 = vld [vmem:[#allocation106_spill] sm:$0xff]  ;;  %v4861_v18 = vld [vmem:[#allocation2 + $0xb0] sm:$0xff] }
  0xab   : > { %v985_v28 = vadd.f32 %v977_v53, %v957_v50  ;;  %v1033_v60 = vmul.f32 %v4730_v12, %v6494_v51  ;;  %v1345_v7 = vadd.f32 %v6496_v48, %v1317_v42  ;;  %v950_v38 = vmul.f32 %v4782_v25, %v6311_v36  ;;  %v6497_v29 = vld [vmem:[#allocation49_spill] sm:$0xff]  ;;  %v6498_v50 = vld [vmem:[#allocation76_spill] sm:$0xff]  ;;  %v6499_v35 = vld [vmem:[#allocation95_spill] sm:$0xff] }
  0xac   : > { %v1684_v6 = vadd.f32 %v6495_v16, %v1656_v5  ;;  %v902_v17 = vadd.f32 %v894_v1, %v874_v46  ;;  %v1462_v59 = vadd.f32 %v1454_v8, %v1434_v61  ;;  %v1595_v49 = vmul.f32 %v6464_v2, %v4861_v18  ;;  %v4871_v16 = vld [vmem:[#allocation2 + $0xb1] sm:$0xff]  ;;  %v6500_v61 = vld [vmem:[#allocation50_spill] sm:$0xff] }
  0xad   : > { %v1013_v62 = vadd.f32 %v1005_v22, %v985_v28  ;;  %v1061_v53 = vmul.f32 %v4746_v15, %v6497_v29  ;;  %v1373_v5 = vadd.f32 %v6499_v35, %v1345_v7  ;;  %v978_v1 = vmul.f32 %v4794_v4, %v6488_v47  ;;  %v6501_v28 = vld [vmem:[#allocation42_spill] sm:$0xff]  ;;  %v6502_v36 = vld [vmem:[#allocation52_spill] sm:$0xff]  ;;  %v6505_v47 = vld [vmem:[#allocation43_spill] sm:$0xff] }
  0xae   : > { %v1712_v12 = vadd.f32 %v6498_v50, %v1684_v6  ;;  %v930_v48 = vadd.f32 %v922_v24, %v902_v17  ;;  %v1490_v42 = vadd.f32 %v1482_v63, %v1462_v59  ;;  %v1623_v8 = vmul.f32 %v6465_v0, %v4871_v16  ;;  %v4881_v50 = vld [vmem:[#allocation2 + $0xb2] sm:$0xff] }
  0xaf   : > { %v1041_v46 = vadd.f32 %v1033_v60, %v1013_v62  ;;  %v1089_v22 = vmul.f32 %v4762_v26, %v6500_v61  ;;  %v1402_v6 = vadd.f32 %v6502_v36, %v1373_v5  ;;  %v1006_v24 = vmul.f32 %v4798_v32, %v6491_v30  ;;  %v6503_v59 = vld [vmem:[#allocation53_spill] sm:$0xff]  ;;  %v6504_v62 = vld [vmem:[#allocation91_spill] sm:$0xff] }
  0xb0   : > { %v1740_v15 = vadd.f32 %v6501_v28, %v1712_v12  ;;  %v958_v35 = vadd.f32 %v950_v38, %v930_v48  ;;  %v1518_v7 = vadd.f32 %v1510_v13, %v1490_v42  ;;  %v1651_v63 = vmul.f32 %v6469_v43, %v4881_v50  ;;  %v4891_v28 = vld [vmem:[#allocation2 + $0xb3] sm:$0xff]  ;;  %v6506_v42 = vld [vmem:[#allocation54_spill] sm:$0xff] }
  0xb1   : > { %v1069_v17 = vadd.f32 %v1061_v53, %v1041_v46  ;;  %v1117_v60 = vmul.f32 %v4778_v40, %v6503_v59  ;;  %v1430_v12 = vadd.f32 %v6505_v47, %v1402_v6  ;;  %v1034_v38 = vmul.f32 %v4800_v58, %v6494_v51  ;;  %v6507_v40 = vld [vmem:[#allocation109_spill] sm:$0xff] }
  0xb2   : > { %v1768_v26 = vadd.f32 %v6504_v62, %v1740_v15  ;;  %v986_v36 = vadd.f32 %v978_v1, %v958_v35  ;;  %v1546_v5 = vadd.f32 %v1538_v3, %v1518_v7  ;;  %v1679_v13 = vmul.f32 %v6470_v23, %v4891_v28  ;;  %v4901_v62 = vld [vmem:[#allocation2 + $0xb4] sm:$0xff]  ;;  %v6508_v7 = vld [vmem:[#allocation58_spill] sm:$0xff] }
  0xb3   : > { %v1097_v48 = vadd.f32 %v1089_v22, %v1069_v17  ;;  %v1145_v53 = vmul.f32 %v4782_v25, %v6506_v42  ;;  %v1458_v15 = vadd.f32 %v6507_v40, %v1430_v12  ;;  %v1062_v1 = vmul.f32 %v4810_v10, %v6497_v29  ;;  %v4907_v35 = vld [vmem:[#allocation2 + $0xb5] sm:$0xff] }
  0xb4   : > { %v1780_v46 = vsel %vm343_vm0, %v1768_v26, 0.0  ;;  %v1014_v47 = vadd.f32 %v1006_v24, %v986_v36  ;;  %v1574_v6 = vadd.f32 %v1566_v20, %v1546_v5  ;;  %v1707_v3 = vmul.f32 %v6474_v55, %v4901_v62  ;;  %v6509_v26 = vld [vmem:[#allocation77_spill] sm:$0xff]  ;;  %v6515_v55 = vld [vmem:[#allocation8_spill] sm:$0xff] }
  0xb5   : > { %1781 = vadd.xlane.f32.xlu1 %v1780_v46  ;;  %v1125_v22 = vadd.f32 %v1117_v60, %v1097_v48  ;;  %v1173_v17 = vmul.f32 %v4794_v4, %v6508_v7  ;;  %v1486_v25 = vadd.f32 %v6509_v26, %v1458_v15  ;;  %v1735_v40 = vmul.f32 %v6476_v33, %v4907_v35  ;;  %v4914_v24 = vld [vmem:[#allocation2 + $0xb6] sm:$0xff] }
  0xb6   : > { %v1042_v12 = vadd.f32 %v1034_v38, %v1014_v47  ;;  %v1090_v20 = vmul.f32 %v4814_v41, %v6500_v61  ;;  %v1603_v36 = vadd.f32 %v1595_v49, %v1574_v6  ;;  %v1763_v5 = vmul.f32 %v6481_v52, %v4914_v24  ;;  %v400_v48 = vld [vmem:[#allocation2 + $0x30] sm:$0xff] }
  0xb7   : > { %v1153_v46 = vadd.f32 %v1145_v53, %v1125_v22  ;;  %v1202_v60 = vmul.f32 %v4798_v32, %v6323_v9  ;;  %v428_v4 = vld [vmem:[#allocation2 + $0x31] sm:$0xff]  ;;  %v1230_v29 = vmul.f32 %v4800_v58, %v6324_v56  ;;  %v1118_v38 = vmul.f32 %v4830_v19, %v6503_v59  ;;  %v6512_v58 = vld [vmem:[#allocation6_spill] sm:$0xff] }
  0xb8   : > { %v6510_v15 = vld [vmem:[#allocation56_spill] sm:$0xff]  ;;  %v1070_v51 = vadd.f32 %v1062_v1, %v1042_v12  ;;  %v1631_v49 = vadd.f32 %v1623_v8, %v1603_v36  ;;  %v1258_v52 = vmul.f32 %v4810_v10, %v6325_v34  ;;  %v1146_v32 = vmul.f32 %v4841_v21, %v6506_v42  ;;  %v6514_v10 = vld [vmem:[#allocation61_spill] sm:$0xff] }
  0xb9   : > { %v1514_v26 = vadd.f32 %v6510_v15, %v1486_v25  ;;  %v456_v47 = vld [vmem:[#allocation2 + $0x32] sm:$0xff]  ;;  %v1181_v6 = vadd.f32 %v1173_v17, %v1153_v46  ;;  %v440_v1 = vmul.f32 %v6512_v58, %v428_v4  ;;  %v1174_v8 = vmul.f32 %v4851_v44, %v6508_v7  ;;  %v6513_v17 = vld [vmem:[#allocation7_spill] sm:$0xff] }
  0xba   : > { %v484_v53 = vld [vmem:[#allocation2 + $0x33] sm:$0xff]  ;;  %v1098_v25 = vadd.f32 %v1090_v20, %v1070_v51  ;;  %v1659_v12 = vadd.f32 %v1651_v63, %v1631_v49  ;;  %v468_v36 = vmul.f32 %v6513_v17, %v456_v47  ;;  %v1286_v20 = vmul.f32 %v4814_v41, %v6326_v54 }
  0xbb   : > { %v1542_v22 = vadd.f32 %v4724_v27, %v1514_v26  ;;  %v6511_v15 = vld [vmem:[#allocation5_spill] sm:$0xff]  ;;  %v1210_v30 = vadd.f32 %v1202_v60, %v1181_v6  ;;  %v496_v23 = vmul.f32 %v6515_v55, %v484_v53  ;;  %v1203_v4 = vmul.f32 %v4861_v18, %v6323_v9 }
  0xbc   : > { %v412_v61 = vmul.f32 %v6511_v15, %v400_v48  ;;  %v512_v46 = vld [vmem:[#allocation2 + $0x34] sm:$0xff]  ;;  %v1126_v33 = vadd.f32 %v1118_v38, %v1098_v25  ;;  %v1687_v27 = vadd.f32 %v1679_v13, %v1659_v12  ;;  %v6518_v25 = vld [vmem:[#allocation10_spill] sm:$0xff] }
  0xbd   : > { %v1570_v59 = vadd.f32 %v6514_v10, %v1542_v22  ;;  %v1238_v51 = vadd.f32 %v1230_v29, %v1210_v30  ;;  %v540_v63 = vld [vmem:[#allocation2 + $0x35] sm:$0xff]  ;;  %v1231_v30 = vmul.f32 %v4871_v16, %v6324_v56  ;;  %v4961_v10 = vld [vmem:[#allocation2 + $0x40] sm:$0xff] }
  0xbe   : > { %v448_v42 = vadd.f32 %v440_v1, %v412_v61  ;;  %v1154_v48 = vadd.f32 %v1146_v32, %v1126_v33  ;;  %v6516_v47 = vld [vmem:[#allocation9_spill] sm:$0xff]  ;;  %v1715_v6 = vadd.f32 %v1707_v3, %v1687_v27  ;;  %v1314_v61 = vmul.f32 %v4830_v19, %v6418_v14  ;;  %v6519_v32 = vld [vmem:[#allocation11_spill] sm:$0xff] }
  0xbf   : > { %v1599_v60 = vadd.f32 %v4740_v11, %v1570_v59  ;;  %v524_v49 = vmul.f32 %v6516_v47, %v512_v46  ;;  %v1266_v38 = vadd.f32 %v1258_v52, %v1238_v51  ;;  %v568_v29 = vld [vmem:[#allocation2 + $0x36] sm:$0xff]  ;;  %v552_v1 = vmul.f32 %v6518_v25, %v540_v63 }
  0xc0   : > { %v476_v26 = vadd.f32 %v468_v36, %v448_v42  ;;  %v6517_v41 = vld [vmem:[#allocation13_spill] sm:$0xff]  ;;  %v1182_v53 = vadd.f32 %v1174_v8, %v1154_v48  ;;  %v1743_v11 = vadd.f32 %v1735_v40, %v1715_v6  ;;  %v1342_v59 = vmul.f32 %v4841_v21, %v6426_v39  ;;  %v4971_v48 = vld [vmem:[#allocation2 + $0x41] sm:$0xff] }
  0xc1   : > { %v1627_v13 = vadd.f32 %v6517_v41, %v1599_v60  ;;  %v1294_v33 = vadd.f32 %v1286_v20, %v1266_v38  ;;  %v1259_v42 = vmul.f32 %v4881_v50, %v6325_v34  ;;  %v580_v12 = vmul.f32 %v6519_v32, %v568_v29  ;;  %v6520_v8 = vld [vmem:[#allocation81_spill] sm:$0xff] }
  0xc2   : > { %v504_v22 = vadd.f32 %v496_v23, %v476_v26  ;;  %v1211_v3 = vadd.f32 %v1203_v4, %v1182_v53  ;;  %v1771_v36 = vadd.f32 %v1763_v5, %v1743_v11  ;;  %v1370_v23 = vmul.f32 %v4851_v44, %v6520_v8  ;;  %v6521_v21 = vld [vmem:[#allocation65_spill] sm:$0xff]  ;;  %v6523_v26 = vld [vmem:[#allocation15_spill] sm:$0xff]  ;;  %v1584_v11 = vld [vmem:[#allocation2 + $0xc0] sm:$0xff] }
  0xc3   : > { %v1655_v19 = vadd.f32 %v4756_v57, %v1627_v13  ;;  %v1322_v46 = vadd.f32 %v1314_v61, %v1294_v33  ;;  %v1287_v40 = vmul.f32 %v4891_v28, %v6326_v54  ;;  %v6522_v57 = vld [vmem:[#allocation14_spill] sm:$0xff]  ;;  %v1399_v5 = vmul.f32 %v4861_v18, %v6436_v37  ;;  %v6524_v61 = vld [vmem:[#allocation16_spill] sm:$0xff]  ;;  %v6525_v41 = vld [vmem:[#allocation85_spill] sm:$0xff] }
  0xc4   : > { %v532_v52 = vadd.f32 %v524_v49, %v504_v22  ;;  %v1239_v51 = vadd.f32 %v1231_v30, %v1211_v3  ;;  %v609_v4 = vmul.f32 %v6522_v57, %v4961_v10  ;;  %v1789_v63 = vsel %vm343_vm0, %v1771_v36, 0.0  ;;  %v653_v53 = vld [vmem:[#allocation2 + $0x42] sm:$0xff] }
  0xc5   : > { %v1683_v27 = vadd.f32 %v6521_v21, %v1655_v19  ;;  %v1350_v60 = vadd.f32 %v1342_v59, %v1322_v46  ;;  %v1315_v44 = vmul.f32 %v4901_v62, %v6418_v14  ;;  %1790 = vadd.xlane.f32.xlu1 %v1789_v63  ;;  %v637_v30 = vmul.f32 %v6524_v61, %v4971_v48  ;;  %v6526_v22 = vld [vmem:[#allocation75_spill] sm:$0xff]  ;;  %v6527_v19 = vld [vmem:[#allocation18_spill] sm:$0xff] }
  0xc6   : > { %v560_v20 = vadd.f32 %v552_v1, %v532_v52  ;;  %v1267_v6 = vadd.f32 %v1259_v42, %v1239_v51  ;;  %v1427_v13 = vmul.f32 %v4871_v16, %v6525_v41  ;;  %v1343_v18 = vmul.f32 %v4907_v35, %v6426_v39  ;;  %v6528_v52 = vld [vmem:[#allocation86_spill] sm:$0xff]  ;;  %v6529_v16 = vld [vmem:[#allocation83_spill] sm:$0xff] }
  0xc7   : > { %v1711_v49 = vadd.f32 %v6523_v26, %v1683_v27  ;;  %v1378_v29 = vadd.f32 %v1370_v23, %v1350_v60  ;;  %v665_v3 = vmul.f32 %v6527_v19, %v653_v53  ;;  %v1371_v36 = vmul.f32 %v4914_v24, %v6520_v8  ;;  %v681_v46 = vld [vmem:[#allocation2 + $0x43] sm:$0xff]  ;;  %v6531_v60 = vld [vmem:[#allocation88_spill] sm:$0xff] }
  0xc8   : > { %v588_v38 = vadd.f32 %v580_v12, %v560_v20  ;;  %v1295_v33 = vadd.f32 %v1287_v40, %v1267_v6  ;;  %v1455_v12 = vmul.f32 %v4881_v50, %v6528_v52  ;;  %v6530_v51 = vld [vmem:[#allocation22_spill] sm:$0xff]  ;;  %v1483_v40 = vmul.f32 %v4891_v28, %v6531_v60 }
  0xc9   : > { %v1739_v1 = vadd.f32 %v6526_v22, %v1711_v49  ;;  %v1407_v42 = vadd.f32 %v1399_v5, %v1378_v29  ;;  %v693_v20 = vmul.f32 %v6530_v51, %v681_v46  ;;  %v1400_v5 = vmul.f32 %v1584_v11, %v6436_v37  ;;  %v709_v26 = vld [vmem:[#allocation2 + $0x44] sm:$0xff] }
  0xca   : > { %v617_v59 = vadd.f32 %v609_v4, %v588_v38  ;;  %v1323_v21 = vadd.f32 %v1315_v44, %v1295_v33  ;;  %v1612_v4 = vld [vmem:[#allocation2 + $0xc1] sm:$0xff]  ;;  %v6532_v38 = vld [vmem:[#allocation24_spill] sm:$0xff]  ;;  %v6533_v44 = vld [vmem:[#allocation89_spill] sm:$0xff] }
  0xcb   : > { %v1767_v23 = vadd.f32 %v6529_v16, %v1739_v1  ;;  %v1435_v63 = vadd.f32 %v1427_v13, %v1407_v42  ;;  %v721_v29 = vmul.f32 %v6532_v38, %v709_v26  ;;  %v1640_v1 = vld [vmem:[#allocation2 + $0xc2] sm:$0xff]  ;;  %v1428_v28 = vmul.f32 %v1612_v4, %v6525_v41  ;;  %v6534_v42 = vld [vmem:[#allocation28_spill] sm:$0xff] }
  0xcc   : > { %v645_v27 = vadd.f32 %v637_v30, %v617_v59  ;;  %v1351_v49 = vadd.f32 %v1343_v18, %v1323_v21  ;;  %v1511_v30 = vmul.f32 %v4901_v62, %v6533_v44  ;;  %v737_v13 = vld [vmem:[#allocation2 + $0x45] sm:$0xff]  ;;  %v1539_v18 = vmul.f32 %v4907_v35, %v6459_v45  ;;  %v6535_v62 = vld [vmem:[#allocation29_spill] sm:$0xff] }
  0xcd   : > { %v1777_v50 = vsel %vm343_vm0, %v1767_v23, 0.0  ;;  %v1463_v22 = vadd.f32 %v1455_v12, %v1435_v63  ;;  %v749_v16 = vmul.f32 %v6534_v42, %v737_v13  ;;  %v765_v23 = vld [vmem:[#allocation2 + $0x46] sm:$0xff]  ;;  %v1456_v12 = vmul.f32 %v1640_v1, %v6528_v52 }
  0xce   : > { %v673_v6 = vadd.f32 %v665_v3, %v645_v27  ;;  %1778 = vadd.xlane.f32.xlu0 %v1777_v50  ;;  %v1379_v33 = vadd.f32 %v1371_v36, %v1351_v49  ;;  %v1668_v3 = vld [vmem:[#allocation2 + $0xc3] sm:$0xff]  ;;  %v777_v50 = vmul.f32 %v6535_v62, %v765_v23  ;;  %v1567_v36 = vmul.f32 %v4914_v24, %v6460_v31 }
  0xcf   : > { %v1491_v37 = vadd.f32 %v1483_v40, %v1463_v22  ;;  %v1696_v21 = vld [vmem:[#allocation2 + $0xc4] sm:$0xff] }
  0xd0   : > { %v701_v59 = vadd.f32 %v693_v20, %v673_v6  ;;  %v1408_v27 = vadd.f32 %v1400_v5, %v1379_v33  ;;  %v1596_v20 = vmul.f32 %v6464_v2, %v1584_v11  ;;  %v1724_v49 = vld [vmem:[#allocation2 + $0xc5] sm:$0xff]  ;;  %v1484_v6 = vmul.f32 %v1668_v3, %v6531_v60  ;;  %v1585_v60 = vld [vmem:[#allocation2 + $0xd0] sm:$0xff] }
  0xd1   : > { %v1519_v8 = vadd.f32 %v1511_v30, %v1491_v37  ;;  %v6536_v22 = vld [vmem:[#allocation31_spill] sm:$0xff]  ;;  %v6537_v41 = vld [vmem:[#allocation82_spill] sm:$0xff]  ;;  %v1512_v33 = vmul.f32 %v1696_v21, %v6533_v44  ;;  %v413_v37 = vmul.f32 %v4961_v10, %v6511_v15  ;;  %v497_v10 = vmul.f32 %v681_v46, %v6515_v55  ;;  %v6545_v55 = vld [vmem:[#allocation40_spill] sm:$0xff] }
  0xd2   : > { %v729_v63 = vadd.f32 %v721_v29, %v701_v59  ;;  %v1436_v40 = vadd.f32 %v1428_v28, %v1408_v27  ;;  %v806_v39 = vmul.f32 %v6537_v41, %v6536_v22  ;;  %v6538_v29 = vld [vmem:[#allocation37_spill] sm:$0xff]  ;;  %v6539_v59 = vld [vmem:[#allocation87_spill] sm:$0xff]  ;;  %v441_v28 = vmul.f32 %v4971_v48, %v6512_v58  ;;  %v6546_v46 = vld [vmem:[#allocation102_spill] sm:$0xff] }
  0xd3   : > { %v1547_v5 = vadd.f32 %v1539_v18, %v1519_v8  ;;  %v834_v52 = vmul.f32 %v6539_v59, %v6538_v29  ;;  %v1752_v24 = vld [vmem:[#allocation2 + $0xc6] sm:$0xff]  ;;  %v1624_v41 = vmul.f32 %v6465_v0, %v1612_v4  ;;  %v1540_v8 = vmul.f32 %v1724_v49, %v6459_v45 }
  0xd4   : > { %v757_v35 = vadd.f32 %v749_v16, %v729_v63  ;;  %v1464_v30 = vadd.f32 %v1456_v12, %v1436_v40  ;;  %v469_v16 = vmul.f32 %v653_v53, %v6513_v17  ;;  %v6540_v18 = vld [vmem:[#allocation38_spill] sm:$0xff]  ;;  %v6541_v63 = vld [vmem:[#allocation93_spill] sm:$0xff]  ;;  %v449_v15 = vadd.f32 %v441_v28, %v413_v37  ;;  %v6542_v17 = vld [vmem:[#allocation39_spill] sm:$0xff] }
  0xd5   : > { %v1575_v27 = vadd.f32 %v1567_v36, %v1547_v5  ;;  %v862_v44 = vmul.f32 %v6541_v63, %v6540_v18  ;;  %v1568_v58 = vmul.f32 %v1752_v24, %v6460_v31  ;;  %v6543_v48 = vld [vmem:[#allocation47_spill] sm:$0xff]  ;;  %v1613_v36 = vld [vmem:[#allocation2 + $0xd1] sm:$0xff]  ;;  %v525_v5 = vmul.f32 %v709_v26, %v6516_v47 }
  0xd6   : > { %v785_v11 = vadd.f32 %v777_v50, %v757_v35  ;;  %v1492_v59 = vadd.f32 %v1484_v6, %v1464_v30  ;;  %v1652_v50 = vmul.f32 %v6469_v43, %v1640_v1  ;;  %v890_v53 = vmul.f32 %v6543_v48, %v6542_v17  ;;  %v6544_v30 = vld [vmem:[#allocation99_spill] sm:$0xff]  ;;  %v6548_v47 = vld [vmem:[#allocation44_spill] sm:$0xff]  ;;  %v6549_v26 = vld [vmem:[#allocation105_spill] sm:$0xff] }
  0xd7   : > { %v1604_v12 = vadd.f32 %v1596_v20, %v1575_v27  ;;  %v477_v35 = vadd.f32 %v469_v16, %v449_v15  ;;  %v1597_v37 = vmul.f32 %v6464_v2, %v1585_v60  ;;  %v918_v20 = vmul.f32 %v6546_v46, %v6545_v55  ;;  %v1669_v60 = vld [vmem:[#allocation2 + $0xd3] sm:$0xff] }
  0xd8   : > { %v814_v14 = vadd.f32 %v806_v39, %v785_v11  ;;  %v1520_v4 = vadd.f32 %v1512_v33, %v1492_v59  ;;  %v1680_v39 = vmul.f32 %v6544_v30, %v1668_v3  ;;  %v1641_v11 = vld [vmem:[#allocation2 + $0xd2] sm:$0xff]  ;;  %v553_v63 = vmul.f32 %v737_v13, %v6518_v25 }
  0xd9   : > { %v1632_v6 = vadd.f32 %v1624_v41, %v1604_v12  ;;  %v505_v27 = vadd.f32 %v497_v10, %v477_v35  ;;  %v6547_v59 = vld [vmem:[#allocation101_spill] sm:$0xff]  ;;  %v946_v16 = vmul.f32 %v6549_v26, %v6548_v47  ;;  %v598_v3 = vld [vmem:[#allocation2 + $0x50] sm:$0xff]  ;;  %v1653_v25 = vmul.f32 %v6469_v43, %v1641_v11 }
  0xda   : > { %v842_v40 = vadd.f32 %v834_v52, %v814_v14  ;;  %v1548_v1 = vadd.f32 %v1540_v8, %v1520_v4  ;;  %v1708_v14 = vmul.f32 %v6547_v59, %v1696_v21  ;;  %v1625_v52 = vmul.f32 %v6465_v0, %v1613_v36  ;;  %v962_v12 = vld [vmem:[#allocation2 + $0x56] sm:$0xff] }
  0xdb   : > { %v1660_v33 = vadd.f32 %v1652_v50, %v1632_v6  ;;  %v533_v48 = vadd.f32 %v525_v5, %v505_v27  ;;  %v581_v8 = vmul.f32 %v765_v23, %v6519_v32  ;;  %v6550_v10 = vld [vmem:[#allocation12_spill] sm:$0xff]  ;;  %v6551_v13 = vld [vmem:[#allocation45_spill] sm:$0xff]  ;;  %v1681_v23 = vmul.f32 %v6544_v30, %v1669_v60  ;;  %v6553_v5 = vld [vmem:[#allocation51_spill] sm:$0xff] }
  0xdc   : > { %v870_v28 = vadd.f32 %v862_v44, %v842_v40  ;;  %v1576_v41 = vadd.f32 %v1568_v58, %v1548_v1  ;;  %v1736_v4 = vmul.f32 %v6550_v10, %v1724_v49  ;;  %v974_v21 = vmul.f32 %v6551_v13, %v962_v12  ;;  %v626_v50 = vld [vmem:[#allocation2 + $0x51] sm:$0xff]  ;;  %v6552_v49 = vld [vmem:[#allocation46_spill] sm:$0xff] }
  0xdd   : > { %v1688_v44 = vadd.f32 %v1680_v39, %v1660_v33  ;;  %v1697_v40 = vld [vmem:[#allocation2 + $0xd4] sm:$0xff]  ;;  %v561_v6 = vadd.f32 %v553_v63, %v533_v48  ;;  %v610_v58 = vmul.f32 %v6522_v57, %v598_v3  ;;  %v1002_v39 = vmul.f32 %v6553_v5, %v6552_v49 }
  0xde   : > { %v898_v15 = vadd.f32 %v890_v53, %v870_v28  ;;  %v1605_v36 = vadd.f32 %v1597_v37, %v1576_v41  ;;  %v5042_v53 = vld [vmem:[%s5905_s4 + $0x30] ss:$0 sm:$0xff]  ;;  %v654_v1 = vld [vmem:[#allocation2 + $0x52] sm:$0xff]  ;;  %v638_v57 = vmul.f32 %v6524_v61, %v626_v50  ;;  %v1709_v63 = vmul.f32 %v6547_v59, %v1697_v40 }
  0xdf   : > { %v1716_v46 = vadd.f32 %v1708_v14, %v1688_v44  ;;  %v1764_v32 = vmul.f32 %v5042_v53, %v1752_v24  ;;  %v1725_v11 = vld [vmem:[#allocation2 + $0xd5] sm:$0xff]  ;;  %v589_v28 = vadd.f32 %v581_v8, %v561_v6  ;;  %v6555_v14 = vld [vmem:[#allocation19_spill] sm:$0xff]  ;;  %v666_v48 = vmul.f32 %v6527_v19, %v654_v1 }
  0xe0   : > { %v926_v35 = vadd.f32 %v918_v20, %v898_v15  ;;  %v1633_v37 = vadd.f32 %v1625_v52, %v1605_v36  ;;  %v6554_v33 = vld [vmem:[#allocation48_spill] sm:$0xff]  ;;  %v1737_v52 = vmul.f32 %v6550_v10, %v1725_v11  ;;  %v6560_v11 = vld [vmem:[#allocation53_spill] sm:$0xff] }
  0xe1   : > { %v1744_v27 = vadd.f32 %v1736_v4, %v1716_v46  ;;  %v1030_v26 = vmul.f32 %v6555_v14, %v6554_v33  ;;  %v682_v3 = vld [vmem:[#allocation2 + $0x53] sm:$0xff]  ;;  %v618_v15 = vadd.f32 %v610_v58, %v589_v28  ;;  %v6559_v58 = vld [vmem:[#allocation55_spill] sm:$0xff]  ;;  %v6562_v14 = vld [vmem:[#allocation54_spill] sm:$0xff] }
  0xe2   : > { %v954_v20 = vadd.f32 %v946_v16, %v926_v35  ;;  %v1661_v24 = vadd.f32 %v1653_v25, %v1633_v37  ;;  %v1753_v41 = vld [vmem:[#allocation2 + $0xd6] sm:$0xff]  ;;  %v694_v35 = vmul.f32 %v6530_v51, %v682_v3  ;;  %v6563_v3 = vld [vmem:[#allocation67_spill] sm:$0xff] }
  0xe3   : > { %v1772_v44 = vadd.f32 %v1764_v32, %v1744_v27  ;;  %v6556_v16 = vld [vmem:[#allocation49_spill] sm:$0xff]  ;;  %v6557_v8 = vld [vmem:[#allocation108_spill] sm:$0xff]  ;;  %v646_v40 = vadd.f32 %v638_v57, %v618_v15  ;;  %v1765_v25 = vmul.f32 %v5042_v53, %v1753_v41  ;;  %v795_v27 = vld [vmem:[#allocation2 + $0x60] sm:$0xff] }
  0xe4   : > { %v982_v60 = vadd.f32 %v974_v21, %v954_v20  ;;  %v1058_v36 = vmul.f32 %v6557_v8, %v6556_v16  ;;  %v710_v61 = vld [vmem:[#allocation2 + $0x54] sm:$0xff]  ;;  %v1689_v4 = vadd.f32 %v1681_v23, %v1661_v24  ;;  %v6558_v21 = vld [vmem:[#allocation50_spill] sm:$0xff]  ;;  %v1142_v24 = vmul.f32 %v6563_v3, %v6562_v14 }
  0xe5   : > { %v1792_v6 = vsel %vm343_vm0, %v1772_v44, 0.0  ;;  %v1086_v46 = vmul.f32 %v6559_v58, %v6558_v21  ;;  %v738_v19 = vld [vmem:[#allocation2 + $0x55] sm:$0xff]  ;;  %v674_v1 = vadd.f32 %v666_v48, %v646_v40  ;;  %v722_v37 = vmul.f32 %v6532_v38, %v710_v61  ;;  %v823_v44 = vld [vmem:[#allocation2 + $0x61] sm:$0xff] }
  0xe6   : > { %v1010_v50 = vadd.f32 %v1002_v39, %v982_v60  ;;  %1793 = vadd.xlane.f32.xlu0 %v1792_v6  ;;  %v1717_v32 = vadd.f32 %v1709_v63, %v1689_v4  ;;  %v6561_v23 = vld [vmem:[#allocation100_spill] sm:$0xff]  ;;  %v750_v57 = vmul.f32 %v6534_v42, %v738_v19  ;;  %v778_v63 = vmul.f32 %v962_v12, %v6535_v62  ;;  %v963_v3 = vld [vmem:[#allocation2 + $0x66] sm:$0xff] }
  0xe7   : > { %v1114_v39 = vmul.f32 %v6561_v23, %v6560_v11  ;;  %v702_v51 = vadd.f32 %v694_v35, %v674_v1  ;;  %v807_v48 = vmul.f32 %v6536_v22, %v795_v27  ;;  %v1187_v62 = vld [vmem:[#allocation2 + $0x70] sm:$0xff]  ;;  %v851_v22 = vld [vmem:[#allocation2 + $0x62] sm:$0xff] }
  0xe8   : > { %v1038_v5 = vadd.f32 %v1030_v26, %v1010_v50  ;;  %v1745_v20 = vadd.f32 %v1737_v52, %v1717_v32  ;;  %v6564_v26 = vld [vmem:[#allocation60_spill] sm:$0xff]  ;;  %v1199_v61 = vmul.f32 %v6323_v9, %v1187_v62  ;;  %v835_v50 = vmul.f32 %v6538_v29, %v823_v44  ;;  %v879_v35 = vld [vmem:[#allocation2 + $0x63] sm:$0xff] }
  0xe9   : > { %v730_v15 = vadd.f32 %v722_v37, %v702_v51  ;;  %v1170_v38 = vmul.f32 %v6564_v26, %v6508_v7  ;;  %v1215_v40 = vld [vmem:[#allocation2 + $0x71] sm:$0xff]  ;;  %v907_v32 = vld [vmem:[#allocation2 + $0x64] sm:$0xff]  ;;  %v891_v23 = vmul.f32 %v6542_v17, %v879_v35  ;;  %v975_v44 = vmul.f32 %v6551_v13, %v963_v3 }
  0xea   : > { %v1066_v28 = vadd.f32 %v1058_v36, %v1038_v5  ;;  %v1773_v41 = vadd.f32 %v1765_v25, %v1745_v20  ;;  %v3657_v36 = vmov 0   ;;  %v1227_v25 = vmul.f32 %v6324_v56, %v1215_v40  ;;  %v1243_v19 = vld [vmem:[#allocation2 + $0x72] sm:$0xff]  ;;  %v935_v20 = vld [vmem:[#allocation2 + $0x65] sm:$0xff] }
  0xeb   : > { %v758_v42 = vadd.f32 %v750_v57, %v730_v15  ;;  %1955 = vst.msk [vmem:[#allocation3 + $0x8] sm:$0xf] %vm1951_vm2, %v3657_v36  ;;  %1952 = vst.msk [vmem:[#allocation3] sm:$0xf] %vm1951_vm2, %v3657_v36  ;;  %v1255_v1 = vmul.f32 %v6325_v34, %v1243_v19  ;;  %v919_v57 = vmul.f32 %v6545_v55, %v907_v32  ;;  %v1299_v27 = vld [vmem:[#allocation2 + $0x74] sm:$0xff] }
  0xec   : > { %v1094_v60 = vadd.f32 %v1086_v46, %v1066_v28  ;;  %v1795_v52 = vsel %vm343_vm0, %v1773_v41, 0.0  ;;  %1957 = vst.msk [vmem:[#allocation3 + $0x10] sm:$0xf] %vm1951_vm2, %v3657_v36  ;;  %1959 = vst.msk [vmem:[#allocation3 + $0x18] sm:$0xf] %vm1951_vm2, %v3657_v36  ;;  %v863_v46 = vmul.f32 %v6540_v18, %v851_v22  ;;  %v6565_v18 = vld [vmem:[#allocation78_spill] sm:$0xff]  ;;  %v947_v15 = vmul.f32 %v6548_v47, %v935_v20 }
  0xed   : > { %1961 = vst.msk [vmem:[#allocation3 + $0x20] sm:$0xf] %vm1951_vm2, %v3657_v36  ;;  %1963 = vst.msk [vmem:[#allocation3 + $0x28] sm:$0xf] %vm1951_vm2, %v3657_v36  ;;  %1796 = vadd.xlane.f32.xlu1 %v1795_v52  ;;  %v786_v4 = vadd.f32 %v778_v63, %v758_v42  ;;  %v1311_v41 = vmul.f32 %v6565_v18, %v1299_v27  ;;  %v1327_v63 = vld [vmem:[#allocation2 + $0x75] sm:$0xff]  ;;  %v1003_v22 = vmul.f32 %v1187_v62, %v6552_v49  ;;  %v1468_v62 = vld [vmem:[#allocation2 + $0x83] sm:$0xff] }
  0xee   : > { %v1122_v8 = vadd.f32 %v1114_v39, %v1094_v60  ;;  %1965 = vst.msk [vmem:[#allocation3 + $0x30] sm:$0xf] %vm1951_vm2, %v3657_v36  ;;  %1967 = vst.msk [vmem:[#allocation3 + $0x38] sm:$0xf] %vm1951_vm2, %v3657_v36  ;;  %v1271_v39 = vld [vmem:[#allocation2 + $0x73] sm:$0xff]  ;;  %v1031_v47 = vmul.f32 %v1215_v40, %v6554_v33  ;;  %v1059_v13 = vmul.f32 %v1243_v19, %v6556_v16  ;;  %v1496_v40 = vld [vmem:[#allocation2 + $0x84] sm:$0xff] }
  0xef   : > { %1969 = vst.msk [vmem:[#allocation3 + $0x40] sm:$0xf] %vm1951_vm2, %v3657_v36  ;;  %1971 = vst.msk [vmem:[#allocation3 + $0x48] sm:$0xf] %vm1951_vm2, %v3657_v36  ;;  %v815_v58 = vadd.f32 %v807_v48, %v786_v4  ;;  %v1283_v29 = vmul.f32 %v6326_v54, %v1271_v39  ;;  %v1355_v52 = vld [vmem:[#allocation2 + $0x76] sm:$0xff]  ;;  %v1087_v49 = vmul.f32 %v1271_v39, %v6558_v21  ;;  %v1524_v19 = vld [vmem:[#allocation2 + $0x85] sm:$0xff] }
  0xf0   : > { %1956 = vst.msk [vmem:[#allocation3 + $0xc] sm:$0x1] %vm1953_vm3, %v3657_v36  ;;  %1954 = vst.msk [vmem:[#allocation3 + $0x4] sm:$0x1] %vm1953_vm3, %v3657_v36  ;;  %v1150_v12 = vadd.f32 %v1142_v24, %v1122_v8  ;;  %v6567_v42 = vld [vmem:[#allocation81_spill] sm:$0xff]  ;;  %v6568_v4 = vld [vmem:[#allocation84_spill] sm:$0xff]  ;;  %v1115_v33 = vmul.f32 %v1299_v27, %v6560_v11  ;;  %v1143_v16 = vmul.f32 %v1327_v63, %v6562_v14 }
  0xf1   : > { %1958 = vst.msk [vmem:[#allocation3 + $0x14] sm:$0x1] %vm1953_vm3, %v3657_v36  ;;  %1960 = vst.msk [vmem:[#allocation3 + $0x1c] sm:$0x1] %vm1953_vm3, %v3657_v36  ;;  %v843_v37 = vadd.f32 %v835_v50, %v815_v58  ;;  %v6569_v58 = vld [vmem:[#allocation85_spill] sm:$0xff]  ;;  %v1171_v21 = vmul.f32 %v1355_v52, %v6508_v7  ;;  %v1552_v39 = vld [vmem:[#allocation2 + $0x86] sm:$0xff] }
  0xf2   : > { %1962 = vst.msk [vmem:[#allocation3 + $0x24] sm:$0x1] %vm1953_vm3, %v3657_v36  ;;  %1964 = vst.msk [vmem:[#allocation3 + $0x2c] sm:$0x1] %vm1953_vm3, %v3657_v36  ;;  %v1178_v6 = vadd.f32 %v1170_v38, %v1150_v12  ;;  %v6566_v38 = vld [vmem:[#allocation79_spill] sm:$0xff]  ;;  %v1384_v12 = vld [vmem:[#allocation2 + $0x80] sm:$0xff] }
  0xf3   : > { %1966 = vst.msk [vmem:[#allocation3 + $0x34] sm:$0x1] %vm1953_vm3, %v3657_v36  ;;  %1968 = vst.msk [vmem:[#allocation3 + $0x3c] sm:$0x1] %vm1953_vm3, %v3657_v36  ;;  %v871_v51 = vadd.f32 %v863_v46, %v843_v37  ;;  %v1339_v17 = vmul.f32 %v6566_v38, %v1327_v63  ;;  %v1396_v50 = vmul.f32 %v6568_v4, %v1384_v12  ;;  %v6570_v37 = vld [vmem:[#allocation86_spill] sm:$0xff]  ;;  %vm1886_vm2 = vcmask 326912  }
  0xf4   : > { %1970 = vst.msk [vmem:[#allocation3 + $0x44] sm:$0x1] %vm1953_vm3, %v3657_v36  ;;  %1972 = vst.msk [vmem:[#allocation3 + $0x4c] sm:$0x1] %vm1953_vm3, %v3657_v36  ;;  %v1207_v5 = vadd.f32 %v1199_v61, %v1178_v6  ;;  %v1367_v36 = vmul.f32 %v6567_v42, %v1355_v52  ;;  %v1412_v6 = vld [vmem:[#allocation2 + $0x81] sm:$0xff]  ;;  %v1200_v11 = vmul.f32 %v1384_v12, %v6323_v9  ;;  %vm1893_vm3 = vcmask 392512  }
  0xf5   : > { %v899_v60 = vadd.f32 %v891_v23, %v871_v51  ;;  %v1424_v46 = vmul.f32 %v6569_v58, %v1412_v6  ;;  %v1228_v14 = vmul.f32 %v1412_v6, %v6324_v56  ;;  %v1284_v9 = vmul.f32 %v1468_v62, %v6326_v54 }
  0xf6   : > { %v1235_v28 = vadd.f32 %v1227_v25, %v1207_v5  ;;  %v1440_v5 = vld [vmem:[#allocation2 + $0x82] sm:$0xff]  ;;  %v1312_v56 = vmul.f32 %v1496_v40, %v6565_v18 }
  0xf7   : > { %v927_v48 = vadd.f32 %v919_v57, %v899_v60  ;;  %v1452_v23 = vmul.f32 %v6570_v37, %v1440_v5  ;;  %v1256_v7 = vmul.f32 %v1440_v5, %v6325_v34  ;;  %v1340_v34 = vmul.f32 %v1524_v19, %v6566_v38  ;;  %v1385_v5 = vld [vmem:[#allocation2 + $0x90] sm:$0xff] }
  0xf8   : > { %v1263_v24 = vadd.f32 %v1255_v1, %v1235_v28 }
  0xf9   : > { %v955_v55 = vadd.f32 %v947_v15, %v927_v48 }
  0xfa   : > { %v1291_v26 = vadd.f32 %v1283_v29, %v1263_v24  ;;  %v6571_v29 = vld [vmem:[#allocation88_spill] sm:$0xff]  ;;  %v6572_v24 = vld [vmem:[#allocation89_spill] sm:$0xff] }
  0xfb   : > { %v983_v35 = vadd.f32 %v975_v44, %v955_v55  ;;  %v1480_v51 = vmul.f32 %v6571_v29, %v1468_v62  ;;  %v1564_v44 = vmul.f32 %v6460_v31, %v1552_v39  ;;  %v1368_v62 = vmul.f32 %v1552_v39, %v6567_v42 }
  0xfc   : > { %v1319_v8 = vadd.f32 %v1311_v41, %v1291_v26  ;;  %v1508_v41 = vmul.f32 %v6572_v24, %v1496_v40  ;;  %v1536_v26 = vmul.f32 %v6459_v45, %v1524_v19  ;;  %v1469_v19 = vld [vmem:[#allocation2 + $0x93] sm:$0xff] }
  0xfd   : > { %v1011_v32 = vadd.f32 %v1003_v22, %v983_v35 }
  0xfe   : > { %v1347_v61 = vadd.f32 %v1339_v17, %v1319_v8 }
  0xff   : > { %v1039_v20 = vadd.f32 %v1031_v47, %v1011_v32  ;;  %v6575_v47 = vld [vmem:[#allocation64_spill] sm:$0xff] }
 0x100   : > { %v1375_v25 = vadd.f32 %v1367_v36, %v1347_v61  ;;  %v6573_v36 = vld [vmem:[#allocation57_spill] sm:$0xff]  ;;  %v6574_v61 = vld [vmem:[#allocation62_spill] sm:$0xff]  ;;  %v6576_v32 = vld [vmem:[#allocation68_spill] sm:$0xff] }
 0x101   : > { %v1067_v57 = vadd.f32 %v1059_v13, %v1039_v20  ;;  %v1593_v55 = vmul.f32 %v6464_v2, %v6573_v36  ;;  %v1677_v13 = vmul.f32 %v6544_v30, %v6576_v32 }
 0x102   : > { %v1404_v1 = vadd.f32 %v1396_v50, %v1375_v25  ;;  %v1621_v50 = vmul.f32 %v6465_v0, %v6574_v61  ;;  %v1649_v25 = vmul.f32 %v6469_v43, %v6575_v47 }
 0x103   : > { %v1095_v60 = vadd.f32 %v1087_v49, %v1067_v57 }
 0x104   : > { %v1432_v28 = vadd.f32 %v1424_v46, %v1404_v1 }
 0x105   : > { %v1123_v17 = vadd.f32 %v1115_v33, %v1095_v60  ;;  %v1413_v33 = vld [vmem:[#allocation2 + $0x91] sm:$0xff]  ;;  %v1397_v60 = vmul.f32 %v6568_v4, %v1385_v5  ;;  %v5172_v5 = vld [vmem:[%s328_s10] ss:$0 sm:$0xff] }
 0x106   : > { %v1460_v3 = vadd.f32 %v1452_v23, %v1432_v28  ;;  %v6577_v23 = vld [vmem:[#allocation80_spill] sm:$0xff]  ;;  %v1425_v38 = vmul.f32 %v6569_v58, %v1413_v33 }
 0x107   : > { %v1151_v8 = vadd.f32 %v1143_v16, %v1123_v17  ;;  %v1705_v20 = vmul.f32 %v6547_v59, %v6577_v23  ;;  %v1441_v16 = vld [vmem:[#allocation2 + $0x92] sm:$0xff] }
 0x108   : > { %v1488_v15 = vadd.f32 %v1480_v51, %v1460_v3  ;;  %v6578_v51 = vld [vmem:[#allocation21_spill] sm:$0xff] }
 0x109   : > { %v1179_v22 = vadd.f32 %v1171_v21, %v1151_v8  ;;  %v1733_v57 = vmul.f32 %v6550_v10, %v6578_v51  ;;  %v1525_v4 = vld [vmem:[#allocation2 + $0x95] sm:$0xff] }
 0x10a   : > { %v1516_v48 = vadd.f32 %v1508_v41, %v1488_v15  ;;  %v6579_v41 = vld [vmem:[#allocation27_spill] sm:$0xff]  ;;  %v1553_v58 = vld [vmem:[#allocation2 + $0x96] sm:$0xff] }
 0x10b   : > { %v1208_v35 = vadd.f32 %v1200_v11, %v1179_v22  ;;  %v1761_v18 = vmul.f32 %v5042_v53, %v6579_v41  ;;  %v1481_v11 = vmul.f32 %v6571_v29, %v1469_v19  ;;  %v3606_v41 = vld [vmem:[%s5906_s5 + $0x8] sm:$0xff]  }
 0x10c   : > { %v1544_v27 = vadd.f32 %v1536_v26, %v1516_v48  ;;  %v1453_v48 = vmul.f32 %v6570_v37, %v1441_v16  ;;  %v1582_v37 = vld [vmem:[#allocation2 + $0xa0] sm:$0xff] }
 0x10d   : > { %v1236_v46 = vadd.f32 %v1228_v14, %v1208_v35  ;;  %v1610_v35 = vld [vmem:[#allocation2 + $0xa1] sm:$0xff]  ;;  %v1594_v29 = vmul.f32 %v6464_v2, %v1582_v37 }
 0x10e   : > { %v1572_v63 = vadd.f32 %v1564_v44, %v1544_v27  ;;  %v1497_v44 = vld [vmem:[#allocation2 + $0x94] sm:$0xff]  ;;  %v1750_v2 = vld [vmem:[#allocation2 + $0xa6] sm:$0xff] }
 0x10f   : > { %v1264_v1 = vadd.f32 %v1256_v7, %v1236_v46  ;;  %v1666_v46 = vld [vmem:[#allocation2 + $0xa3] sm:$0xff] }
 0x110   : > { %v1601_v52 = vadd.f32 %v1593_v55, %v1572_v63  ;;  %v1509_v55 = vmul.f32 %v6572_v24, %v1497_v44  ;;  %v1537_v63 = vmul.f32 %v6459_v45, %v1525_v4  ;;  %v1678_v32 = vmul.f32 %v6544_v30, %v1666_v46  ;;  %v5191_v4 = vld [vmem:[%s5159_s30 + $0x8] sm:$0xff]  }
 0x111   : > { %v1292_v49 = vadd.f32 %v1284_v9, %v1264_v1 }
 0x112   : > { %v1629_v12 = vadd.f32 %v1621_v50, %v1601_v52  ;;  %v1565_v50 = vmul.f32 %v6460_v31, %v1553_v58  ;;  %v1638_v52 = vld [vmem:[#allocation2 + $0xa2] sm:$0xff] }
 0x113   : > { %v1320_v54 = vadd.f32 %v1312_v56, %v1292_v49  ;;  %v1650_v9 = vmul.f32 %v6469_v43, %v1638_v52  ;;  %v1762_v49 = vmul.f32 %v5042_v53, %v1750_v2  ;;  %v2104_v52 = vld [vmem:[#allocation3 + $0x18] sm:$0xf] }
 0x114   : > { %v1657_v6 = vadd.f32 %v1649_v25, %v1629_v12  ;;  %v1622_v25 = vmul.f32 %v6465_v0, %v1610_v35  ;;  %v1694_v12 = vld [vmem:[#allocation2 + $0xa4] sm:$0xff] }
 0x115   : > { %v1348_v40 = vadd.f32 %v1340_v34, %v1320_v54  ;;  %v1706_v31 = vmul.f32 %v6547_v59, %v1694_v12  ;;  %v5163_v59 = vld [vmem:[%s5159_s30] sm:$0xff]  }
 0x116   : > { %v1685_v28 = vadd.f32 %v1677_v13, %v1657_v6  ;;  %v1722_v13 = vld [vmem:[#allocation2 + $0xa5] sm:$0xff] }
 0x117   : > { %v1376_v26 = vadd.f32 %v1368_v62, %v1348_v40  ;;  %v1776_v42 = vpop.xlane.xlu0 %1775  ;;  %v1734_v23 = vmul.f32 %v6550_v10, %v1722_v13  ;;  %v3481_v10 = vunpack.c.l.bf16 %v5163_v59 }
 0x118   : > { %v1713_v3 = vadd.f32 %v1705_v20, %v1685_v28  ;;  %v1798_v27 = vsub.f32 0.0, %v1776_v42 }
 0x119   : > { %v1405_v21 = vadd.f32 %v1397_v60, %v1376_v26  ;;  %v2089_v60 = vld [vmem:[#allocation3 + $0x8] sm:$0xf] }
 0x11a   : > { %v1741_v15 = vadd.f32 %v1733_v57, %v1713_v3  ;;  %v1806_v22 = vmul.f32 1.442695, %v1798_v27 }
 0x11b   : > { %v1433_v8 = vadd.f32 %v1425_v38, %v1405_v21 }
 0x11c   : > { %v1769_v17 = vadd.f32 %v1761_v18, %v1741_v15  ;;  %3615 = vpow2.f32 %v1806_v22  ;;  %v2095_v15 = vld [vmem:[#allocation3 + $0xc] sm:$0x1] }
 0x11d   : > { %v1461_v36 = vadd.f32 %v1453_v48, %v1433_v8 }
 0x11e   : > { %v1783_v39 = vsel %vm343_vm0, %v1769_v17, 0.0 }
 0x11f   : > { %1784 = vadd.xlane.f32.xlu0 %v1783_v39  ;;  %v1489_v14 = vadd.f32 %v1481_v11, %v1461_v36  ;;  %v3485_v36 = vunpack.c.l.bf16 %v5191_v4 }
 0x121   : > { %v1517_v61 = vadd.f32 %v1509_v55, %v1489_v14 }
 0x123   : > { %v1545_v7 = vadd.f32 %v1537_v63, %v1517_v61 }
 0x125   : > { %v1573_v47 = vadd.f32 %v1565_v50, %v1545_v7 }
 0x127   : > { %v1602_v24 = vadd.f32 %v1594_v29, %v1573_v47  ;;  %v2107_v47 = vld [vmem:[#allocation3 + $0x1c] sm:$0x1] }
 0x129   : > { %v1630_v45 = vadd.f32 %v1622_v25, %v1602_v24  ;;  %v3616_v56 = vpop.eup %3615  ;;  %v5196_v24 = vld [vmem:[%s5159_s30 + $0x10] sm:$0xff]  }
 0x12a   : > { %v1822_v0 = vadd.f32 1.0, %v3616_v56  ;;  %v3490_v13 = vunpack.c.h.bf16 %v5196_v24 }
 0x12b   : > { %v1658_v1 = vadd.f32 %v1650_v9, %v1630_v45  ;;  %v6584_v45 = vlaneseq }
 0x12c   : > { %3617 = vrcp.f32 %v1822_v0 }
 0x12d   : > { %v1686_v6 = vadd.f32 %v1678_v32, %v1658_v1  ;;  %v5203_v32 = vand.u32 127, %v6584_v45 }
 0x12f   : > { %v1714_v20 = vadd.f32 %v1706_v31, %v1686_v6  ;;  %v1867_v31 = vadd.s32 4294967280, %v5203_v32  ;;  %v1860_v6 = vadd.s32 4294967288, %v5203_v32 }
 0x131   : > { %v1742_v43 = vadd.f32 %v1734_v23, %v1714_v20  ;;  %v5211_v20 = vld [vmem:[#allocation3] sm:$0xf] }
 0x133   : > { %v1770_v34 = vadd.f32 %v1762_v49, %v1742_v43  ;;  %v6585_v43 = vld [vmem:[#allocation4_spill] sm:$0xff] }
 0x135   : > { %v1786_v30 = vsel %vm343_vm0, %v1770_v34, 0.0  ;;  %v1870_v34 = vsub.s32 %v1867_v31, %v6585_v43 }
 0x136   : > { %1787 = vadd.xlane.f32.xlu1 %v1786_v30 }
 0x139   : > { %v5170_v53 = vpop.eup %3617 }
 0x13a   : > { %v1928_v28 = vmul.f32 %v5170_v53, %v3481_v10  ;;  %v1858_v10 = vsub.s32 %v5203_v32, %v6585_v43 }
 0x13c   : > { %v1943_v54 = vmul.f32 %v5172_v5, %v1928_v28  ;;  %v1863_v28 = vsub.s32 %v1860_v6, %v6585_v43 }
 0x13e   : > { %v1782_v51 = vpop.xlane.xlu1 %1781  ;;  %v3471_v33 = vpack.c.bf16 %v1943_v54, %v1943_v54 }
 0x13f   : > { %v1800_v57 = vsub.f32 0.0, %v1782_v51  ;;  %v3482_v51 = vunpack.c.h.bf16 %v5163_v59 }
 0x140   : > { %v2006_v3 = vshrl.u32 %v3471_v33, 16  ;;  %v2009_v40 = vshll.u32 %v3471_v33, 16 }
 0x141   : > { %v1810_v62 = vmul.f32 1.442695, %v1800_v57 }
 0x142   : > { %v2008_v18 = vrot.slane %v2006_v3, 7 }
 0x143   : > { %3619 = vpow2.f32 %v1810_v62 }
 0x144   : > { %v2011_v26 = vor.u32 %v2009_v40, %v2008_v18  ;;  %v2012_v38 = vrot.slane %v2008_v18, 4 }
 0x146   : > { %v2090_v19 = vsel %vm5177_vm6, %v2011_v26, %v2089_v60  ;;  %v2096_v17 = vsel %vm5182_vm7, %v2012_v38, %v2095_v15  ;;  %v1859_v15 = vrot.slane %v5170_v53, %v1858_v10 }
 0x147   : > { %2091 = vst [vmem:[#allocation3 + $0x8] sm:$0xf] %v2090_v19  ;;  %2097 = vst [vmem:[#allocation3 + $0xc] sm:$0x1] %v2096_v17 }
 0x14e   : > { %v1791_v21 = vpop.xlane.xlu1 %1790  ;;  %v5213_v49 = vld [vmem:[#allocation3 + $0x8] sm:$0xf] }
 0x14f   : > { %v1803_v44 = vsub.f32 0.0, %v1791_v21 }
 0x150   : > { %v3620_v48 = vpop.eup %3619 }
 0x151   : > { %v1824_v42 = vadd.f32 1.0, %v3620_v48  ;;  %v1816_v39 = vmul.f32 1.442695, %v1803_v44  ;;  %v2122_v48 = vld [vmem:[#allocation3 + $0x30] sm:$0xf] }
 0x152   : > { %v2125_v44 = vld [vmem:[#allocation3 + $0x34] sm:$0x1] }
 0x153   : > { %3621 = vrcp.f32 %v1824_v42  ;;  %v5225_v42 = vld [vmem:[#allocation3 + $0x8] sm:$0xf] }
 0x154   : > { %3623 = vpow2.f32 %v1816_v39 }
 0x157   : > { %v1779_v8 = vpop.xlane.xlu0 %1778 }
 0x158   : > { %v1799_v11 = vsub.f32 0.0, %v1779_v8 }
 0x15a   : > { %v1808_v27 = vmul.f32 1.442695, %v1799_v11 }
 0x15c   : > { %3625 = vpow2.f32 %v1808_v27 }
 0x160   : > { %v3622_v55 = vpop.eup %3621 }
 0x161   : > { %v3624_v22 = vpop.eup %3623  ;;  %v1930_v58 = vmul.f32 %v3622_v55, %v3485_v36  ;;  %v1871_v18 = vrot.slane %v3622_v55, %v1870_v34  ;;  %v2347_v55 = vshrl.u32 %v5225_v42, 16  ;;  %v5250_v34 = vld [vmem:[#allocation3 + $0xc] sm:$0x1] }
 0x162   : > { %v1827_v14 = vadd.f32 1.0, %v3624_v22  ;;  %v2350_v22 = vshll.u32 %v5225_v42, 16 }
 0x163   : > { %v1945_v63 = vmul.f32 %v5172_v5, %v1930_v58 }
 0x164   : > { %3627 = vrcp.f32 %v1827_v14  ;;  %v5235_v14 = vld [vmem:[#allocation3 + $0xc] sm:$0x1] }
 0x165   : > { %v3473_v37 = vpack.c.bf16 %v1945_v63, %v1945_v63  ;;  %v2098_v63 = vld [vmem:[#allocation3 + $0x10] sm:$0xf]  ;;  %v2356_v6 = vshll.u32 %v5235_v14, 16 }
 0x167   : > { %v2022_v61 = vshrl.u32 %v3473_v37, 16  ;;  %v2025_v50 = vshll.u32 %v3473_v37, 16  ;;  %v2101_v37 = vld [vmem:[#allocation3 + $0x14] sm:$0x1] }
 0x169   : > { %v3626_v35 = vpop.eup %3625  ;;  %v2024_v7 = vrot.slane %v2022_v61, 7 }
 0x16a   : > { %v1823_v29 = vadd.f32 1.0, %v3626_v35 }
 0x16b   : > { %v2027_v25 = vor.u32 %v2025_v50, %v2024_v7  ;;  %v2028_v46 = vrot.slane %v2024_v7, 4  ;;  %v5239_v50 = vld [vmem:[#allocation3 + $0x8] sm:$0xe] }
 0x16c   : > { %3629 = vrcp.f32 %v1823_v29 }
 0x16d   : > { %v2105_v9 = vsel %vm5177_vm6, %v2027_v25, %v2104_v52  ;;  %v2108_v12 = vsel %vm5182_vm7, %v2028_v46, %v2107_v47  ;;  %v5241_v52 = vld [vmem:[#allocation3 + $0x4] sm:$0x1]  ;;  %v2271_v47 = vld [vmem:[#allocation3] sm:$0xe]  ;;  %v2349_v46 = vrot.slane %v2347_v55, 4 }
 0x16e   : > { %2106 = vst [vmem:[#allocation3 + $0x18] sm:$0xf] %v2105_v9  ;;  %2109 = vst [vmem:[#allocation3 + $0x1c] sm:$0x1] %v2108_v12  ;;  %v2352_v9 = vrot.slane %v2350_v22, 5 }
 0x16f   : > { %v1794_v1 = vpop.xlane.xlu0 %1793  ;;  %v2272_v12 = vld [vmem:[#allocation3 + $0x8] sm:$0xe] }
 0x170   : > { %v1804_v56 = vsub.f32 0.0, %v1794_v1 }
 0x171   : > { %v5207_v2 = vpop.eup %3627 }
 0x172   : > { %v1933_v23 = vmul.f32 %v5207_v2, %v3490_v13  ;;  %v1818_v0 = vmul.f32 1.442695, %v1804_v56  ;;  %v5245_v56 = vld [vmem:[#allocation3 + $0x48] sm:$0xf] }
 0x174   : > { %v1948_v30 = vmul.f32 %v5172_v5, %v1933_v23  ;;  %3631 = vpow2.f32 %v1818_v0  ;;  %v3391_v23 = vrot.slane %v5239_v50, 9  ;;  %v2484_v0 = vrot.slane %v5235_v14, 5 }
 0x175   : > { %v5237_v61 = vld [vmem:[#allocation3 + $0x18] sm:$0xf] }
 0x176   : > { %v3476_v54 = vpack.c.bf16 %v1948_v30, %v1948_v30  ;;  %v1797_v62 = vpop.xlane.xlu1 %1796  ;;  %v2546_v1 = vshrl.u32 %v5237_v61, 16  ;;  %v2549_v31 = vshll.u32 %v5237_v61, 16 }
 0x177   : > { %v1805_v33 = vsub.f32 0.0, %v1797_v62  ;;  %v2353_v62 = vor.u32 %v2352_v9, %v2349_v46  ;;  %v2485_v9 = vsel %vm5276_vm13, %v3391_v23, %v2484_v0 }
 0x178   : > { %v2046_v40 = vshrl.u32 %v3476_v54, 16  ;;  %v2049_v60 = vshll.u32 %v3476_v54, 16  ;;  %v5258_v54 = vld [vmem:[%s5159_s30 + $0x18] sm:$0xff]  }
 0x179   : > { %v3630_v3 = vpop.eup %3629  ;;  %v1820_v19 = vmul.f32 1.442695, %v1805_v33  ;;  %v2630_v33 = vshrl.u32 %v5245_v56, 16 }
 0x17a   : > { %v1864_v26 = vrot.slane %v3630_v3, %v1863_v28  ;;  %v1929_v38 = vmul.f32 %v3630_v3, %v3482_v51  ;;  %v2048_v17 = vrot.slane %v2046_v40, 7  ;;  %v3383_v28 = vrot.slane %v2271_v47, 9 }
 0x17b   : > { %3633 = vpow2.f32 %v1820_v19  ;;  %v2300_v51 = vrot.slane %v5241_v52, 5  ;;  %v2633_v3 = vshll.u32 %v5245_v56, 16  ;;  %v2548_v40 = vrot.slane %v2546_v1, 4  ;;  %v5264_v19 = vld [vmem:[#allocation3 + $0x1c] sm:$0x1] }
 0x17c   : > { %v1866_v21 = vsel %vm1865_vm8, %v1864_v26, %v1859_v15  ;;  %v1944_v59 = vmul.f32 %v5172_v5, %v1929_v38  ;;  %v2051_v39 = vor.u32 %v2049_v60, %v2048_v17  ;;  %v2052_v8 = vrot.slane %v2048_v17, 4 }
 0x17d   : > { %v5227_v11 = vsel %vm1872_vm9, %v1871_v18, %v1866_v21  ;;  %v3384_v18 = vrot.slane %v2272_v12, 9  ;;  %v2551_v60 = vrot.slane %v2549_v31, 5  ;;  %v2304_v15 = vrot.slane %v5250_v34, 5 }
 0x17e   : > { %v3472_v27 = vpack.c.bf16 %v1944_v59, %v1944_v59  ;;  %v2123_v53 = vsel %vm5177_vm6, %v2051_v39, %v2122_v48  ;;  %v2126_v36 = vsel %vm5182_vm7, %v2052_v8, %v2125_v44  ;;  %v2160_v26 = vshrl.u32 %v5211_v20, 16  ;;  %v5269_v44 = vld [vmem:[#allocation3 + $0x18] sm:$0xe]  ;;  %v5271_v39 = vld [vmem:[#allocation3 + $0x1c] sm:$0x1] }
 0x17f   : > { %2124 = vst [vmem:[#allocation3 + $0x30] sm:$0xf] %v2123_v53  ;;  %2127 = vst [vmem:[#allocation3 + $0x34] sm:$0x1] %v2126_v36  ;;  %v2163_v17 = vshll.u32 %v5211_v20, 16  ;;  %v2169_v21 = vshll.u32 %v5241_v52, 16  ;;  %v3493_v59 = vunpack.c.l.bf16 %v5258_v54  ;;  %v2301_v12 = vsel %vm5276_vm13, %v3383_v28, %v2300_v51 }
 0x180   : > { %v2014_v58 = vshrl.u32 %v3472_v27, 16  ;;  %v2017_v29 = vshll.u32 %v3472_v27, 16  ;;  %v2174_v8 = vshrl.u32 %v5213_v49, 16  ;;  %v5280_v53 = vrot.slane %v2353_v62, 4 }
 0x181   : > { %v3632_v35 = vpop.eup %3631  ;;  %v5282_v36 = vrot.slane %v2630_v33, 4  ;;  %v5284_v55 = vrot.slane %v2633_v3, 5  ;;  %v2555_v22 = vshll.u32 %v5271_v39, 16  ;;  %v2312_v50 = vrot.slane %v5264_v19, 5 }
 0x182   : > { %v2016_v7 = vrot.slane %v2014_v58, 7  ;;  %v1828_v25 = vadd.f32 1.0, %v3632_v35  ;;  %v2552_v58 = vor.u32 %v2551_v60, %v2548_v40  ;;  %v2165_v35 = vrot.slane %v2163_v17, 5 }
 0x183   : > { %v2176_v40 = vrot.slane %v2174_v8, 4  ;;  %vm1910_vm8 = vcmask 516096  }
 0x184   : > { %v2019_v45 = vor.u32 %v2017_v29, %v2016_v7  ;;  %v2020_v13 = vrot.slane %v2016_v7, 4  ;;  %3635 = vrcp.f32 %v1828_v25  ;;  %v2177_v7 = vshll.u32 %v5213_v49, 16 }
 0x185   : > { %v3494_v29 = vunpack.c.h.bf16 %v5258_v54  ;;  %v2553_v3 = vrot.slane %v2552_v58, 4  ;;  %v3593_v54 = vld [vmem:[%s5906_s5 + $0x78] sm:$0xff]  }
 0x186   : > { %v2099_v30 = vsel %vm5177_vm6, %v2019_v45, %v2098_v63  ;;  %v2102_v10 = vsel %vm5182_vm7, %v2020_v13, %v2101_v37  ;;  %v2162_v63 = vrot.slane %v2160_v26, 4  ;;  %v3386_v37 = vrot.slane %v5269_v44, 9  ;;  %3498 = vmatprep.subr.bf16.mxu0 %v3593_v54  ;;  %3556 = vmatprep.subr.bf16.mxu1 %v3593_v54 }
 0x187   : > { %2100 = vst [vmem:[#allocation3 + $0x10] sm:$0xf] %v2099_v30  ;;  %2103 = vst [vmem:[#allocation3 + $0x14] sm:$0x1] %v2102_v10  ;;  %v2305_v45 = vsel %vm5276_vm13, %v3384_v18, %v2304_v15  ;;  %v2557_v10 = vrot.slane %v2555_v22, 5  ;;  %v2358_v54 = vrot.slane %v2356_v6, 5 }
 0x188   : > { %v3634_v38 = vpop.eup %3633  ;;  %v3415_v23 = vcombine.low %v2301_v12, %v2305_v45  ;;  %v2166_v51 = vor.u32 %v2165_v35, %v2162_v63  ;;  %v5330_v45 = vld [vmem:[#allocation3 + $0x18] sm:$0xf] }
 0x189   : > { %v1829_v48 = vadd.f32 1.0, %v3634_v38  ;;  %6590 = vst [vmem:[#allocation72_spill] sm:$0xff] %v5330_v45  ;;  %v2359_v6 = vsel %vm5314_vm15, %v5280_v53, %v2358_v54 }
 0x18b   : > { %3637 = vrcp.f32 %v1829_v48  ;;  %v2179_v48 = vrot.slane %v2177_v7, 5 }
 0x18e   : > { %v2515_v47 = vld [vmem:[#allocation3 + $0x10] sm:$0xf]  ;;  %v5291_v25 = vld [vmem:[#allocation3 + $0x14] sm:$0x1] }
 0x18f   : > { %v2459_v46 = vld [vmem:[#allocation3 + $0x10] sm:$0xe]  ;;  %v2532_v13 = vshrl.u32 %v2515_v47, 16  ;;  %v2535_v1 = vshll.u32 %v2515_v47, 16  ;;  %v3431_v31 = vcombine.low %v2515_v47, %v5237_v61  ;;  %v2488_v33 = vrot.slane %v5291_v25, 5 }
 0x190   : > { %v2331_v30 = vld [vmem:[#allocation3 + $0x10] sm:$0xf]  ;;  %v3392_v62 = vrot.slane %v2459_v46, 9  ;;  %v5302_v0 = vld [vmem:[#allocation3 + $0x14] sm:$0x1] }
 0x191   : > { %v2534_v60 = vrot.slane %v2532_v13, 4  ;;  %v2537_v26 = vrot.slane %v2535_v1, 5  ;;  %2839 = vrot.lane.b32.xlu1 %v3431_v31, %s3658_s11  ;;  %v2273_v28 = vld [vmem:[#allocation3 + $0x10] sm:$0xe]  ;;  %v5304_v18 = vpop.eup %3635  ;;  %v2361_v15 = vshrl.u32 %v2331_v30, 16  ;;  %v2364_v38 = vshll.u32 %v2331_v30, 16 }
 0x192   : > { %v2489_v61 = vsel %vm5276_vm13, %v3392_v62, %v2488_v33  ;;  %v5308_v17 = vld [vmem:[#allocation3 + $0x14] sm:$0x1]  ;;  %v1934_v44 = vmul.f32 %v5304_v18, %v3493_v59  ;;  %v3419_v22 = vcombine.low %v5225_v42, %v2331_v30  ;;  %v3385_v35 = vrot.slane %v2273_v28, 9 }
 0x193   : > { %v3427_v8 = vcombine.low %v2485_v9, %v2489_v61  ;;  %v2538_v63 = vor.u32 %v2537_v26, %v2534_v60  ;;  %v2308_v47 = vrot.slane %v5302_v0, 5  ;;  %v2541_v46 = vshll.u32 %v5308_v17, 16 }
 0x194   : > { %v1949_v7 = vmul.f32 %v5172_v5, %v1934_v44  ;;  %v5324_v59 = vrot.slane %v2166_v51, 4  ;;  %v5328_v9 = vrot.slane %v2169_v21, 5  ;;  %v2313_v13 = vsel %vm5276_vm13, %v3386_v37, %v2312_v50  ;;  %v2131_v44 = vld [vmem:[#allocation3 + $0x3c] sm:$0x1] }
 0x195   : > { %2811 = vrot.lane.b32.xlu0 %v3427_v8, %s3659_s12  ;;  %2779 = vrot.lane.b32.xlu1 %v3419_v22, %s3660_s13  ;;  %v2539_v42 = vrot.slane %v2538_v63, 4  ;;  %v2543_v1 = vrot.slane %v2541_v46, 5  ;;  %v2558_v31 = vsel %vm5314_vm15, %v2553_v3, %v2557_v10  ;;  %v2183_v30 = vshll.u32 %v5250_v34, 16 }
 0x196   : > { %v3477_v62 = vpack.c.bf16 %v1949_v7, %v1949_v7  ;;  %v2363_v33 = vrot.slane %v2361_v15, 4  ;;  %v2366_v60 = vrot.slane %v2364_v38, 5  ;;  %v2180_v26 = vor.u32 %v2179_v48, %v2176_v40  ;;  %v2128_v40 = vld [vmem:[#allocation3 + $0x38] sm:$0xf]  ;;  %v5357_v38 = vld [vmem:[#allocation3 + $0x10] sm:$0xf] }
 0x197   : > { %v2309_v52 = vsel %vm5276_vm13, %v3385_v35, %v2308_v47  ;;  %v2544_v21 = vsel %vm5314_vm15, %v2539_v42, %v2543_v1  ;;  %v2202_v28 = vshrl.u32 %v5330_v45, 16  ;;  %v2205_v37 = vshll.u32 %v5330_v45, 16  ;;  %6591 = vst [vmem:[#allocation35_spill] sm:$0xff] %v5357_v38  ;;  %v3595_v7 = vld [vmem:[%s5906_s5 + $0x70] sm:$0xff]  }
 0x198   : > { %v5343_v50 = vpop.eup %3637  ;;  %v2054_v51 = vshrl.u32 %v3477_v62, 16  ;;  %v2057_v10 = vshll.u32 %v3477_v62, 16  ;;  %v5346_v34 = vcombine.low %v2544_v21, %v2558_v31  ;;  %v2172_v3 = vsel %vm5314_vm15, %v5324_v59, %v5328_v9  ;;  %v5378_v1 = vld [vmem:[#allocation3 + $0x30] sm:$0xe] }
 0x199   : > { %2751 = vrot.lane.b32.xlu1 %v3415_v23, %s3658_s11  ;;  %v1935_v61 = vmul.f32 %v5343_v50, %v3494_v29  ;;  %v5355_v15 = vrot.slane %v2183_v30, 5  ;;  %v2211_v48 = vshll.u32 %v5264_v19, 16  ;;  %v2636_v23 = vor.u32 %v5284_v55, %v5282_v36  ;;  %v3594_v29 = vld [vmem:[%s5906_s5 + $0x38] sm:$0xff]   ;;  %v5372_v55 = vld [vmem:[#allocation3 + $0x4c] sm:$0x1] }
 0x19a   : > { %v2056_v8 = vrot.slane %v2054_v51, 7  ;;  %v2367_v22 = vor.u32 %v2366_v60, %v2363_v33  ;;  %v3416_v63 = vcombine.low %v2309_v52, %v2313_v13  ;;  %v5362_v35 = vrot.slane %v2180_v26, 4  ;;  %3499 = vmatpush3.bf16.msra.mxu0 %v3594_v29  ;;  %v3596_v26 = vld [vmem:[%s5906_s5 + $0x30] sm:$0xff]   ;;  %3564 = vmatpush3.bf16.msra.mxu1 %v3594_v29 }
 0x19b   : > { %v1950_v47 = vmul.f32 %v5172_v5, %v1935_v61  ;;  %v2370_v19 = vshll.u32 %v5291_v25, 16  ;;  %v2204_v46 = vrot.slane %v2202_v28, 4  ;;  %v2207_v36 = vrot.slane %v2205_v37, 5  ;;  %v5398_v51 = vld [vmem:[#allocation3 + $0x34] sm:$0x1]  ;;  %3500 = vmatprep.subr.bf16.mxu0 %v3595_v7  ;;  %v3597_v61 = vld [vmem:[%s5906_s5 + $0x68] sm:$0xff]   ;;  %3557 = vmatprep.subr.bf16.mxu1 %v3595_v7 }
 0x19c   : > { %v2059_v42 = vor.u32 %v2057_v10, %v2056_v8  ;;  %v2060_v13 = vrot.slane %v2056_v8, 4  ;;  %v2188_v31 = vshrl.u32 %v5357_v38, 16  ;;  %v2191_v30 = vshll.u32 %v5357_v38, 16  ;;  %v5400_v10 = vld [vmem:[#allocation3 + $0x30] sm:$0xf] }
 0x19d   : > { %2753 = vrot.lane.b32.xlu1 %v3416_v63, %s3658_s11  ;;  %v3478_v25 = vpack.c.bf16 %v1950_v47, %v1950_v47  ;;  %v5382_v62 = vrot.slane %v2211_v48, 5  ;;  %v5384_v33 = vrot.slane %v2636_v23, 4  ;;  %v2639_v60 = vshll.u32 %v5372_v55, 16  ;;  %v2134_v8 = vld [vmem:[#allocation3 + $0x40] sm:$0xf] }
 0x19e   : > { %v2129_v52 = vsel %vm5177_vm6, %v2059_v42, %v2128_v40  ;;  %v2132_v21 = vsel %vm5182_vm7, %v2060_v13, %v2131_v44  ;;  %v2368_v28 = vrot.slane %v2367_v22, 4  ;;  %v2186_v37 = vsel %vm5314_vm15, %v5362_v35, %v5355_v15  ;;  %v2643_v42 = vld [vmem:[#allocation3 + $0x10] sm:$0xe]  ;;  %v2137_v13 = vld [vmem:[#allocation3 + $0x44] sm:$0x1]  ;;  %3501 = vmatpush3.bf16.msra.mxu0 %v3596_v26  ;;  %3565 = vmatpush3.bf16.msra.mxu1 %v3596_v26 }
 0x19f   : > { %2130 = vst [vmem:[#allocation3 + $0x38] sm:$0xf] %v2129_v52  ;;  %2133 = vst [vmem:[#allocation3 + $0x3c] sm:$0x1] %v2132_v21  ;;  %v2062_v40 = vshrl.u32 %v3478_v25, 16  ;;  %v2065_v48 = vshll.u32 %v3478_v25, 16  ;;  %v2208_v44 = vor.u32 %v2207_v36, %v2204_v46  ;;  %3502 = vmatprep.subr.bf16.mxu0 %v3597_v61  ;;  %3558 = vmatprep.subr.bf16.mxu1 %v3597_v61 }
 0x1a0   : > { %v2190_v22 = vrot.slane %v2188_v31, 4  ;;  %v2193_v63 = vrot.slane %v2191_v30, 5  ;;  %v2372_v47 = vrot.slane %v2370_v19, 5  ;;  %v2324_v29 = vrot.slane %v5398_v51, 5  ;;  %v3598_v46 = vld [vmem:[%s5906_s5 + $0x28] sm:$0xff]   ;;  %v3599_v31 = vld [vmem:[%s5906_s5 + $0x60] sm:$0xff]  }
 0x1a1   : > { %v2064_v57 = vrot.slane %v2062_v40, 7  ;;  %v2244_v52 = vshrl.u32 %v5400_v10, 16  ;;  %v2669_v7 = vrot.slane %v5308_v17, 5  ;;  %v2247_v14 = vshll.u32 %v5400_v10, 16  ;;  %v2644_v30 = vld [vmem:[#allocation3 + $0x18] sm:$0xe] }
 0x1a2   : > { %v2373_v19 = vsel %vm5314_vm15, %v2368_v28, %v2372_v47  ;;  %v3399_v17 = vrot.slane %v2643_v42, 9  ;;  %v2194_v36 = vor.u32 %v2193_v63, %v2190_v22  ;;  %v2197_v23 = vshll.u32 %v5302_v0, 16  ;;  %3503 = vmatpush3.bf16.msra.mxu0 %v3598_v46  ;;  %3566 = vmatpush3.bf16.msra.mxu1 %v3598_v46  ;;  %v5452_v42 = vld [vmem:[#allocation3 + $0x34] sm:$0x1] }
 0x1a3   : > { %v2067_v25 = vor.u32 %v2065_v48, %v2064_v57  ;;  %v2068_v21 = vrot.slane %v2064_v57, 4  ;;  %v5425_v40 = vcombine.low %v2359_v6, %v2373_v19  ;;  %v5428_v12 = vrot.slane %v2208_v44, 4  ;;  %v3600_v57 = vld [vmem:[%s5906_s5 + $0x20] sm:$0xff]   ;;  %3504 = vmatprep.subr.bf16.mxu0 %v3599_v31  ;;  %3559 = vmatprep.subr.bf16.mxu1 %v3599_v31  ;;  %v3602_v19 = vld [vmem:[%s5906_s5 + $0x18] sm:$0xff]   ;;  %v5481_v31 = vld [vmem:[#allocation3 + $0x30] sm:$0xe] }
 0x1a4   : > { %v2253_v53 = vshll.u32 %v5398_v51, 16  ;;  %v5435_v54 = vrot.slane %v2639_v60, 5  ;;  %v3400_v61 = vrot.slane %v2644_v30, 9  ;;  %v5443_v44 = vrot.slane %v2244_v52, 4  ;;  %v3601_v60 = vld [vmem:[%s5906_s5 + $0x58] sm:$0xff]  }
 0x1a5   : > { %v2135_v28 = vsel %vm5177_vm6, %v2067_v25, %v2134_v8  ;;  %v2138_v26 = vsel %vm5182_vm7, %v2068_v21, %v2137_v13  ;;  %v5445_v8 = vrot.slane %v2247_v14, 5  ;;  %v5456_v13 = vsel %vm5276_vm13, %v3399_v17, %v2669_v7  ;;  %v5458_v52 = vld [vmem:[#allocation3 + $0x48] sm:$0xe] }
 0x1a6   : > { %2136 = vst [vmem:[#allocation3 + $0x40] sm:$0xf] %v2135_v28  ;;  %2139 = vst [vmem:[#allocation3 + $0x44] sm:$0x1] %v2138_v26  ;;  %v5440_v48 = vld [vmem:[#allocation3 + $0x38] sm:$0xf]  ;;  %v5470_v46 = vcombine.low %v2172_v3, %v2186_v37  ;;  %3505 = vmatpush3.bf16.msra.mxu0 %v3600_v57  ;;  %3567 = vmatpush3.bf16.msra.mxu1 %v3600_v57 }
 0x1a7   : > { %v2431_v63 = vshrl.u32 %v5440_v48, 16  ;;  %v2434_v47 = vshll.u32 %v5440_v48, 16  ;;  %6592 = vst [vmem:[#allocation70_spill] sm:$0xff] %v5456_v13  ;;  %v5472_v14 = vrot.slane %v2194_v36, 4  ;;  %v5474_v6 = vrot.slane %v2197_v23, 5  ;;  %3506 = vmatprep.subr.bf16.mxu0 %v3601_v60  ;;  %3560 = vmatprep.subr.bf16.mxu1 %v3601_v60 }
 0x1a8   : > { %v1785_v0 = vpop.xlane.xlu0 %1784  ;;  %v5476_v7 = vrot.slane %v2253_v53, 5  ;;  %v5483_v25 = vld [vmem:[#allocation3 + $0x3c] sm:$0x1]  ;;  %v6593_v59 = vrot.slane %v5271_v39, 5  ;;  %v2278_v37 = vld [vmem:[#allocation3 + $0x38] sm:$0xe] }
 0x1a9   : > { %v1801_v22 = vsub.f32 0.0, %v1785_v0  ;;  %v2433_v35 = vrot.slane %v2431_v63, 4  ;;  %v2436_v30 = vrot.slane %v2434_v47, 5  ;;  %v5491_v3 = vld [vmem:[#allocation3 + $0x3c] sm:$0x1]  ;;  %v6595_v23 = vrot.slane %v5378_v1, 9 }
 0x1aa   : > { %v5489_v9 = vsel %vm5276_vm13, %v3400_v61, %v6593_v59  ;;  %v5503_v17 = vld [vmem:[#allocation3 + $0x38] sm:$0xf]  ;;  %v2440_v53 = vshll.u32 %v5491_v3, 16  ;;  %v2328_v26 = vrot.slane %v5483_v25, 5  ;;  %v3403_v61 = vrot.slane %v5481_v31, 9  ;;  %3507 = vmatpush3.bf16.msra.mxu0 %v3602_v19  ;;  %3568 = vmatpush3.bf16.msra.mxu1 %v3602_v19 }
 0x1ab   : > { %v1812_v15 = vmul.f32 1.442695, %v1801_v22  ;;  %6594 = vst [vmem:[#allocation17_spill] sm:$0xff] %v5489_v9  ;;  %v5497_v36 = vsel %vm5276_vm13, %v6595_v23, %v2324_v29  ;;  %v2258_v1 = vshrl.u32 %v5503_v17, 16  ;;  %v2685_v29 = vrot.slane %v5452_v42, 5 }
 0x1ac   : > { %v2437_v28 = vor.u32 %v2436_v30, %v2433_v35  ;;  %v3406_v0 = vrot.slane %v5458_v52, 9  ;;  %v3390_v63 = vrot.slane %v2278_v37, 9  ;;  %v2250_v47 = vor.u32 %v5445_v8, %v5443_v44 }
 0x1ad   : > { %3639 = vpow2.f32 %v1812_v15  ;;  %v2521_v22 = vld [vmem:[#allocation3 + $0x40] sm:$0xf]  ;;  %v2261_v15 = vshll.u32 %v5503_v17, 16  ;;  %v2529_v39 = vld [vmem:[#allocation3 + $0x44] sm:$0x1]  ;;  %v2260_v37 = vrot.slane %v2258_v1, 4 }
 0x1ae   : > { %v2337_v57 = vld [vmem:[#allocation3 + $0x40] sm:$0xf]  ;;  %v2616_v60 = vshrl.u32 %v2521_v22, 16  ;;  %v2619_v35 = vshll.u32 %v2521_v22, 16  ;;  %v3434_v30 = vcombine.low %v2521_v22, %v5245_v56  ;;  %v2442_v21 = vrot.slane %v2440_v53, 5 }
 0x1af   : > { %v3422_v31 = vcombine.low %v5440_v48, %v2337_v57  ;;  %v2445_v52 = vshrl.u32 %v2337_v57, 16  ;;  %v2448_v23 = vshll.u32 %v2337_v57, 16  ;;  %v2438_v8 = vrot.slane %v2437_v28, 4  ;;  %v5522_v59 = vld [vmem:[#allocation3 + $0x44] sm:$0x1] }
 0x1b0   : > { %v2618_v51 = vrot.slane %v2616_v60, 4  ;;  %v2621_v44 = vrot.slane %v2619_v35, 5  ;;  %2845 = vrot.lane.b32.xlu0 %v3434_v30, %s3658_s11  ;;  %v2625_v9 = vshll.u32 %v2529_v39, 16  ;;  %v2454_v48 = vshll.u32 %v5522_v59, 16  ;;  %v5525_v22 = vld [vmem:[#allocation3 + $0x3c] sm:$0x1] }
 0x1b1   : > { %2785 = vrot.lane.b32.xlu1 %v3422_v31, %s3660_s13  ;;  %v2447_v13 = vrot.slane %v2445_v52, 4  ;;  %v2450_v56 = vrot.slane %v2448_v23, 5  ;;  %v2263_v19 = vrot.slane %v2261_v15, 5  ;;  %v2200_v53 = vsel %vm5314_vm15, %v5472_v14, %v5474_v6  ;;  %v2648_v52 = vld [vmem:[#allocation3 + $0x38] sm:$0xe] }
 0x1b2   : > { %v2622_v1 = vor.u32 %v2621_v44, %v2618_v51  ;;  %v2627_v57 = vrot.slane %v2625_v9, 5  ;;  %v2251_v28 = vrot.slane %v2250_v47, 4  ;;  %v2329_v35 = vsel %vm5276_vm13, %v3390_v63, %v2328_v26  ;;  %v2649_v23 = vld [vmem:[#allocation3 + $0x40] sm:$0xe] }
 0x1b3   : > { %v2451_v60 = vor.u32 %v2450_v56, %v2447_v13  ;;  %v2264_v30 = vor.u32 %v2263_v19, %v2260_v37  ;;  %v2267_v31 = vshll.u32 %v5483_v25, 16  ;;  %v2693_v45 = vrot.slane %v2529_v39, 5 }
 0x1b4   : > { %v2623_v15 = vrot.slane %v2622_v1, 4  ;;  %v2689_v38 = vrot.slane %v5525_v22, 5  ;;  %v2443_v51 = vsel %vm5314_vm15, %v2438_v8, %v2442_v21  ;;  %v2456_v13 = vrot.slane %v2454_v48, 5 }
 0x1b5   : > { %2731 = vrot.lane.b32.xlu1 %v5470_v46, %s3659_s12  ;;  %v2452_v14 = vrot.slane %v2451_v60, 4  ;;  %v5541_v6 = vsel %vm5276_vm13, %v3403_v61, %v2685_v29  ;;  %v6596_v25 = vrot.slane %v5372_v55, 5  ;;  %v3418_v46 = vcombine.low %v5497_v36, %v2329_v35 }
 0x1b6   : > { %v2628_v39 = vsel %vm5314_vm15, %v2623_v15, %v2627_v57  ;;  %v3404_v26 = vrot.slane %v2648_v52, 9  ;;  %v3405_v63 = vrot.slane %v2649_v23, 9  ;;  %v6597_v21 = vsel %vm5314_vm15, %v5384_v33, %v5435_v54  ;;  %v2110_v23 = vld [vmem:[#allocation3 + $0x20] sm:$0xf]  ;;  %v2113_v15 = vld [vmem:[#allocation3 + $0x24] sm:$0x1] }
 0x1b7   : > { %v5547_v9 = vsel %vm5276_vm13, %v3406_v0, %v6596_v25  ;;  %v5557_v29 = vcombine.low %v2628_v39, %v6597_v21  ;;  %v2265_v61 = vrot.slane %v2264_v30, 4  ;;  %v2269_v55 = vrot.slane %v2267_v31, 5 }
 0x1b8   : > { %v2457_v0 = vsel %vm5314_vm15, %v2452_v14, %v2456_v13  ;;  %v5566_v37 = vsel %vm5276_vm13, %v3404_v26, %v2689_v38  ;;  %v5570_v44 = vsel %vm5276_vm13, %v3405_v63, %v2693_v45  ;;  %v2214_v54 = vsel %vm5314_vm15, %v5428_v12, %v5382_v62 }
 0x1b9   : > { %2757 = vrot.lane.b32.xlu1 %v3418_v46, %s3658_s11  ;;  %v5562_v36 = vcombine.low %v2443_v51, %v2457_v0  ;;  %v3412_v48 = vcombine.low %v2200_v53, %v2214_v54  ;;  %v2256_v38 = vsel %vm5314_vm15, %v2251_v28, %v5476_v7  ;;  %v2270_v45 = vsel %vm5314_vm15, %v2265_v61, %v2269_v55  ;;  %v2332_v46 = vld [vmem:[#allocation3 + $0x18] sm:$0xf] }
 0x1ba   : > { %v3640_v47 = vpop.eup %3639  ;;  %v3414_v19 = vcombine.low %v2256_v38, %v2270_v45  ;;  %v3486_v57 = vunpack.c.h.bf16 %v5191_v4  ;;  %v1874_v39 = vadd.s32 4294967272, %v5203_v32  ;;  %v2375_v26 = vshrl.u32 %v2332_v46, 16 }
 0x1bb   : > { %v1825_v33 = vadd.f32 1.0, %v3640_v47  ;;  %v2378_v63 = vshll.u32 %v2332_v46, 16  ;;  %v1895_v21 = vadd.s32 4294967248, %v5203_v32  ;;  %v1888_v55 = vadd.s32 4294967256, %v5203_v32 }
 0x1bc   : > { %v1877_v61 = vsub.s32 %v1874_v39, %v6585_v43  ;;  %v1881_v0 = vadd.s32 4294967264, %v5203_v32  ;;  %v1902_v47 = vadd.s32 4294967240, %v5203_v32 }
 0x1bd   : > { %3641 = vrcp.f32 %v1825_v33  ;;  %2733 = vrot.lane.b32.xlu1 %v3412_v48, %s3659_s12  ;;  %v2377_v33 = vrot.slane %v2375_v26, 4  ;;  %v2380_v54 = vrot.slane %v2378_v63, 5  ;;  %v1898_v48 = vsub.s32 %v1895_v21, %v6585_v43 }
 0x1be   : > { %v1891_v45 = vsub.s32 %v1888_v55, %v6585_v43 }
 0x1bf   : > { %v1788_v1 = vpop.xlane.xlu1 %1787 }
 0x1c0   : > { %v1802_v12 = vsub.f32 0.0, %v1788_v1  ;;  %v3489_v1 = vunpack.c.l.bf16 %v5196_v24 }
 0x1c1   : > { %2737 = vrot.lane.b32.xlu1 %v3414_v19, %s3659_s12  ;;  %v1884_v19 = vsub.s32 %v1881_v0, %v6585_v43 }
 0x1c2   : > { %v1814_v62 = vmul.f32 1.442695, %v1802_v12 }
 0x1c4   : > { %3643 = vpow2.f32 %v1814_v62  ;;  %v1905_v62 = vsub.s32 %v1902_v47, %v6585_v43 }
 0x1c6   : > { %v1906_v39 = vrot.slane %v5343_v50, %v1905_v62  ;;  %v2119_v62 = vld [vmem:[#allocation3 + $0x2c] sm:$0x1] }
 0x1ca   : > { %v3642_v53 = vpop.eup %3641 }
 0x1cb   : > { %v1931_v60 = vmul.f32 %v3642_v53, %v3486_v57  ;;  %v1878_v38 = vrot.slane %v3642_v53, %v1877_v61  ;;  %v5604_v57 = vld [vmem:[#allocation3 + $0x1c] sm:$0x1] }
 0x1cd   : > { %v1946_v35 = vmul.f32 %v5172_v5, %v1931_v60  ;;  %v2381_v60 = vor.u32 %v2380_v54, %v2377_v33 }
 0x1cf   : > { %v3474_v30 = vpack.c.bf16 %v1946_v35, %v1946_v35 }
 0x1d1   : > { %v2030_v7 = vshrl.u32 %v3474_v30, 16  ;;  %v2033_v28 = vshll.u32 %v3474_v30, 16  ;;  %v3644_v52 = vpop.eup %3643  ;;  %v2384_v30 = vshll.u32 %v5604_v57, 16 }
 0x1d2   : > { %v1826_v13 = vadd.f32 1.0, %v3644_v52 }
 0x1d3   : > { %v2032_v31 = vrot.slane %v2030_v7, 7 }
 0x1d4   : > { %3645 = vrcp.f32 %v1826_v13  ;;  %v1892_v13 = vrot.slane %v5207_v2, %v1891_v45 }
 0x1d5   : > { %v2035_v51 = vor.u32 %v2033_v28, %v2032_v31  ;;  %v2036_v14 = vrot.slane %v2032_v31, 4  ;;  %v1899_v28 = vrot.slane %v5304_v18, %v1898_v48  ;;  %v1880_v31 = vsel %vm1879_vm1, %v1878_v38, %v5227_v11  ;;  %v2116_v48 = vld [vmem:[#allocation3 + $0x28] sm:$0xf] }
 0x1d6   : > { %v2382_v18 = vrot.slane %v2381_v60, 4  ;;  %v3603_v60 = vld [vmem:[%s5906_s5 + $0x50] sm:$0xff]  }
 0x1d7   : > { %v2111_v25 = vsel %vm5177_vm6, %v2035_v51, %v2110_v23  ;;  %v2114_v4 = vsel %vm5182_vm7, %v2036_v14, %v2113_v15  ;;  %v5613_v14 = vld [vmem:[#allocation3 + $0x30] sm:$0xf]  ;;  %3508 = vmatprep.subr.bf16.mxu0 %v3603_v60  ;;  %3561 = vmatprep.subr.bf16.mxu1 %v3603_v60 }
 0x1d8   : > { %2112 = vst [vmem:[#allocation3 + $0x20] sm:$0xf] %v2111_v25  ;;  %2115 = vst [vmem:[#allocation3 + $0x24] sm:$0x1] %v2114_v4  ;;  %v2417_v63 = vshrl.u32 %v5613_v14, 16  ;;  %v2420_v2 = vshll.u32 %v5613_v14, 16 }
 0x1df   : > { %v2333_v12 = vld [vmem:[#allocation3 + $0x20] sm:$0xf]  ;;  %v5609_v24 = vld [vmem:[#allocation3 + $0x24] sm:$0x1] }
 0x1e0   : > { %v3420_v35 = vcombine.low %v2332_v46, %v2333_v12  ;;  %v2389_v32 = vshrl.u32 %v2333_v12, 16  ;;  %v2392_v53 = vshll.u32 %v2333_v12, 16  ;;  %v2398_v15 = vshll.u32 %v5609_v24, 16 }
 0x1e1   : > { %v3646_v7 = vpop.eup %3645  ;;  %v2386_v46 = vrot.slane %v2384_v30, 5  ;;  %v2422_v12 = vrot.slane %v2420_v2, 5 }
 0x1e2   : > { %2781 = vrot.lane.b32.xlu1 %v3420_v35, %s3660_s13  ;;  %v2391_v43 = vrot.slane %v2389_v32, 4  ;;  %v1885_v52 = vrot.slane %v3646_v7, %v1884_v19  ;;  %v1932_v23 = vmul.f32 %v3646_v7, %v3489_v1  ;;  %v2394_v51 = vrot.slane %v2392_v53, 5  ;;  %v5635_v19 = vld [vmem:[#allocation3 + $0x20] sm:$0xf]  ;;  %v3604_v35 = vld [vmem:[%s5906_s5 + $0x10] sm:$0xff]  }
 0x1e3   : > { %v2400_v0 = vrot.slane %v2398_v15, 5  ;;  %v2387_v33 = vsel %vm5314_vm15, %v2382_v18, %v2386_v46  ;;  %v2419_v1 = vrot.slane %v2417_v63, 4  ;;  %v2460_v53 = vld [vmem:[#allocation3 + $0x18] sm:$0xe]  ;;  %v2465_v15 = vld [vmem:[#allocation3 + $0x40] sm:$0xe]  ;;  %3509 = vmatpush3.bf16.msra.mxu0 %v3604_v35  ;;  %3569 = vmatpush3.bf16.msra.mxu1 %v3604_v35 }
 0x1e4   : > { %v1887_v11 = vsel %vm1886_vm2, %v1885_v52, %v1880_v31  ;;  %v1947_v25 = vmul.f32 %v5172_v5, %v1932_v23  ;;  %v2395_v4 = vor.u32 %v2394_v51, %v2391_v43  ;;  %v2464_v7 = vld [vmem:[#allocation3 + $0x38] sm:$0xe]  ;;  %v2216_v31 = vshrl.u32 %v5635_v19, 16 }
 0x1e5   : > { %v1894_v26 = vsel %vm1893_vm3, %v1892_v13, %v1887_v11  ;;  %v2219_v43 = vshll.u32 %v5635_v19, 16  ;;  %v2423_v13 = vor.u32 %v2422_v12, %v2419_v1  ;;  %v3393_v18 = vrot.slane %v2460_v53, 9  ;;  %v3607_v12 = vld [vmem:[%s5906_s5 + $0x40] sm:$0xff]  }
 0x1e6   : > { %v1901_v21 = vsel %vm1900_vm4, %v1899_v28, %v1894_v26  ;;  %v3475_v61 = vpack.c.bf16 %v1947_v25, %v1947_v25  ;;  %v2396_v55 = vrot.slane %v2395_v4, 4  ;;  %v5643_v28 = vld [vmem:[#allocation3 + $0x34] sm:$0x1]  ;;  %v2492_v11 = vrot.slane %v5604_v57, 5  ;;  %v3605_v25 = vld [vmem:[%s5906_s5 + $0x48] sm:$0xff]  }
 0x1e7   : > { %v1908_v5 = vsel %vm1907_vm5, %v1906_v39, %v1901_v21  ;;  %v2426_v51 = vshll.u32 %v5643_v28, 16  ;;  %v3397_v16 = vrot.slane %v2464_v7, 9  ;;  %v2508_v4 = vrot.slane %v5491_v3, 5  ;;  %v2517_v39 = vld [vmem:[#allocation3 + $0x20] sm:$0xf]  ;;  %3510 = vmatprep.subr.bf16.mxu0 %v3605_v25  ;;  %3562 = vmatprep.subr.bf16.mxu1 %v3605_v25 }
 0x1e8   : > { %1911 = vst.msk [vmem:[%s341_s19] sm:$0x1] %vm1910_vm8, %v1908_v5  ;;  %v2038_v50 = vshrl.u32 %v3475_v61, 16  ;;  %v2041_v47 = vshll.u32 %v3475_v61, 16  ;;  %v2401_v54 = vsel %vm5314_vm15, %v2396_v55, %v2400_v0  ;;  %v3398_v26 = vrot.slane %v2465_v15, 9  ;;  %3511 = vmatpush3.bf16.msra.mxu0 %v3606_v41  ;;  %3570 = vmatpush3.bf16.msra.mxu1 %v3606_v41 }
 0x1e9   : > { %v5633_v38 = vcombine.low %v2387_v33, %v2401_v54  ;;  %v2512_v63 = vrot.slane %v5522_v59, 5  ;;  %v2218_v2 = vrot.slane %v2216_v31, 4  ;;  %v2221_v21 = vrot.slane %v2219_v43, 5  ;;  %v2461_v57 = vld [vmem:[#allocation3 + $0x20] sm:$0xe]  ;;  %3512 = vmatprep.subr.bf16.mxu0 %v3607_v12  ;;  %3563 = vmatprep.subr.bf16.mxu1 %v3607_v12 }
 0x1ea   : > { %v2040_v45 = vrot.slane %v2038_v50, 7  ;;  %v5662_v61 = vld [vmem:[#allocation3 + $0x30] sm:$0xe]  ;;  %v5664_v55 = vld [vmem:[#allocation3 + $0x24] sm:$0x1]  ;;  %v5668_v5 = vrot.slane %v2423_v13, 4  ;;  %v5674_v59 = vsel %vm5276_vm13, %v3393_v18, %v2492_v11 }
 0x1eb   : > { %v5666_v0 = vld [vmem:[#allocation3 + $0x30] sm:$0xf]  ;;  %v5670_v3 = vrot.slane %v2426_v51, 5  ;;  %v2152_v50 = vld [vmem:[#allocation3 + $0x24] sm:$0x1]  ;;  %v2560_v54 = vshrl.u32 %v2517_v39, 16  ;;  %v5688_v60 = vsel %vm5276_vm13, %v3398_v26, %v2512_v63 }
 0x1ec   : > { %v2043_v32 = vor.u32 %v2041_v47, %v2040_v45  ;;  %v2044_v30 = vrot.slane %v2040_v45, 4  ;;  %v2275_v47 = vld [vmem:[#allocation3 + $0x20] sm:$0xe]  ;;  %v5678_v45 = vsel %vm5276_vm13, %v3397_v16, %v2508_v4  ;;  %v2225_v1 = vshll.u32 %v2152_v50, 16 }
 0x1ed   : > { %v2645_v33 = vld [vmem:[#allocation3 + $0x20] sm:$0xe]  ;;  %v3394_v35 = vrot.slane %v2461_v57, 9  ;;  %v2677_v7 = vrot.slane %v5664_v55, 5  ;;  %v3387_v31 = vrot.slane %v2275_v47, 9  ;;  %v2316_v43 = vrot.slane %v2152_v50, 5 }
 0x1ee   : > { %v2117_v52 = vsel %vm5177_vm6, %v2043_v32, %v2116_v48  ;;  %v2120_v23 = vsel %vm5182_vm7, %v2044_v30, %v2119_v62  ;;  %v2563_v48 = vshll.u32 %v2517_v39, 16  ;;  %v3609_v62 = vld [vmem:[%s5906_s5] sm:$0xff]   ;;  %v2496_v32 = vrot.slane %v5609_v24, 5 }
 0x1ef   : > { %2118 = vst [vmem:[#allocation3 + $0x28] sm:$0xf] %v2117_v52  ;;  %2121 = vst [vmem:[#allocation3 + $0x2c] sm:$0x1] %v2120_v23  ;;  %v2222_v30 = vor.u32 %v2221_v21, %v2218_v2  ;;  %v3401_v52 = vrot.slane %v2645_v33, 9  ;;  %3513 = vmatpush3.bf16.msra.mxu0 %v3609_v62  ;;  %3571 = vmatpush3.bf16.msra.mxu1 %v3609_v62  ;;  %v5695_v18 = vrot.slane %v2560_v54, 4 }
 0x1f0   : > { %v5697_v24 = vrot.slane %v2563_v48, 5  ;;  %v2227_v25 = vrot.slane %v2225_v1, 5  ;;  %v3430_v16 = vcombine.low %v5678_v45, %v5688_v60  ;;  %v2497_v4 = vsel %vm5276_vm13, %v3394_v35, %v2496_v32 }
 0x1f1   : > { %v2223_v21 = vrot.slane %v2222_v30, 4  ;;  %v2317_v50 = vsel %vm5276_vm13, %v3387_v31, %v2316_v43  ;;  %v5718_v48 = vsel %vm5276_vm13, %v3401_v52, %v2677_v7  ;;  %vm2891_vm6 = vcmask 523264  }
 0x1f2   : > { %vm2900_vm7 = vcmask 785408  }
 0x1f6   : > { %v2518_v53 = vld [vmem:[#allocation3 + $0x28] sm:$0xf]  ;;  %v2153_v11 = vld [vmem:[#allocation3 + $0x2c] sm:$0x1] }
 0x1f7   : > { %v3432_v23 = vcombine.low %v2517_v39, %v2518_v53  ;;  %v2342_v39 = vld [vmem:[#allocation3 + $0x2c] sm:$0x1]  ;;  %v2276_v63 = vld [vmem:[#allocation3 + $0x28] sm:$0xe]  ;;  %v2320_v2 = vrot.slane %v2153_v11, 5  ;;  %v2574_v57 = vshrl.u32 %v2518_v53, 16 }
 0x1f8   : > { %v5708_v26 = vld [vmem:[#allocation3 + $0x2c] sm:$0x1]  ;;  %v3388_v47 = vrot.slane %v2276_v63, 9  ;;  %v5712_v33 = vld [vmem:[#allocation3 + $0x28] sm:$0xf]  ;;  %v2577_v45 = vshll.u32 %v2518_v53, 16 }
 0x1f9   : > { %2841 = vrot.lane.b32.xlu0 %v3432_v23, %s3658_s11  ;;  %v5714_v54 = vld [vmem:[#allocation3 + $0x28] sm:$0xf]  ;;  %v2230_v12 = vshrl.u32 %v5712_v33, 16  ;;  %v2233_v62 = vshll.u32 %v5712_v33, 16  ;;  %v2239_v60 = vshll.u32 %v2153_v11, 16  ;;  %v2412_v35 = vshll.u32 %v2342_v39, 16 }
 0x1fa   : > { %v2462_v1 = vld [vmem:[#allocation3 + $0x28] sm:$0xe]  ;;  %v2321_v32 = vsel %vm5276_vm13, %v3388_v47, %v2320_v2  ;;  %v2403_v30 = vshrl.u32 %v5714_v54, 16  ;;  %v2406_v31 = vshll.u32 %v5714_v54, 16  ;;  %v2681_v53 = vrot.slane %v5708_v26, 5 }
 0x1fb   : > { %v2646_v43 = vld [vmem:[#allocation3 + $0x28] sm:$0xe]  ;;  %v3417_v7 = vcombine.low %v2317_v50, %v2321_v32  ;;  %v2232_v52 = vrot.slane %v2230_v12, 4  ;;  %v2235_v23 = vrot.slane %v2233_v62, 5  ;;  %v3395_v63 = vrot.slane %v2462_v1, 9 }
 0x1fc   : > { %v2500_v56 = vrot.slane %v2342_v39, 5  ;;  %v5729_v11 = vld [vmem:[#allocation3 + $0x38] sm:$0xf]  ;;  %v2405_v8 = vrot.slane %v2403_v30, 4  ;;  %v2408_v13 = vrot.slane %v2406_v31, 5  ;;  %v2241_v47 = vrot.slane %v2239_v60, 5 }
 0x1fd   : > { %2859 = vrot.lane.b32.xlu0 %v5346_v34, %s3660_s13  ;;  %2755 = vrot.lane.b32.xlu1 %v3417_v7, %s3658_s11  ;;  %v2236_v2 = vor.u32 %v2235_v23, %v2232_v52  ;;  %v3409_v51 = vcombine.low %v5635_v19, %v5712_v33  ;;  %v3402_v15 = vrot.slane %v2646_v43, 9  ;;  %v2576_v34 = vrot.slane %v2574_v57, 4 }
 0x1fe   : > { %v2579_v46 = vrot.slane %v2577_v45, 5  ;;  %v2409_v41 = vor.u32 %v2408_v13, %v2405_v8  ;;  %v2414_v50 = vrot.slane %v2412_v35, 5  ;;  %v2602_v39 = vshrl.u32 %v5729_v11, 16 }
 0x1ff   : > { %v2228_v1 = vsel %vm5314_vm15, %v2223_v21, %v2227_v25  ;;  %v2237_v12 = vrot.slane %v2236_v2, 4  ;;  %v5740_v62 = vsel %vm5276_vm13, %v3402_v15, %v2681_v53  ;;  %v2569_v60 = vshll.u32 %v5664_v55, 16  ;;  %v5755_v55 = vld [vmem:[%s5906_s5 + $0x88] sm:$0xff]  }
 0x200   : > { %v2605_v32 = vshll.u32 %v5729_v11, 16  ;;  %v2410_v57 = vrot.slane %v2409_v41, 4  ;;  %v3440_v8 = vcombine.low %v5718_v48, %v5740_v62  ;;  %v3428_v13 = vcombine.low %v5674_v59, %v2497_v4  ;;  %3544 = vmatprep.subr.bf16.mxu1 %v5755_v55 }
 0x201   : > { %2817 = vrot.lane.b32.xlu0 %v3430_v16, %s3659_s12  ;;  %v2566_v16 = vor.u32 %v5697_v24, %v5695_v18  ;;  %v2583_v25 = vshll.u32 %v5708_v26, 16  ;;  %v2242_v21 = vsel %vm5314_vm15, %v2237_v12, %v2241_v47  ;;  %v2501_v15 = vsel %vm5276_vm13, %v3395_v63, %v2500_v56 }
 0x202   : > { %v2580_v41 = vor.u32 %v2579_v46, %v2576_v34  ;;  %v3413_v45 = vcombine.low %v2228_v1, %v2242_v21  ;;  %v2415_v59 = vsel %vm5314_vm15, %v2410_v57, %v2414_v50  ;;  %v6598_v18 = vsel %vm5314_vm15, %v5668_v5, %v5670_v3 }
 0x203   : > { %v5767_v24 = vcombine.low %v2415_v59, %v6598_v18  ;;  %v6599_v4 = vrot.slane %v5643_v28, 5  ;;  %v6600_v56 = vrot.slane %v5662_v61, 9  ;;  %v6601_v26 = vshrl.u32 %v5666_v0, 16 }
 0x204   : > { %v6602_v30 = vshll.u32 %v5666_v0, 16  ;;  %2735 = vrot.lane.b32.xlu1 %v3413_v45, %s3659_s12  ;;  %v2571_v3 = vrot.slane %v2569_v60, 5  ;;  %v2604_v43 = vrot.slane %v2602_v39, 4  ;;  %v2607_v53 = vrot.slane %v2605_v32, 5 }
 0x205   : > { %2813 = vrot.lane.b32.xlu0 %v3428_v13, %s3659_s12  ;;  %v2505_v46 = vsel %vm5276_vm13, %v6600_v56, %v6599_v4  ;;  %v2590_v35 = vrot.slane %v6601_v26, 4  ;;  %v2567_v7 = vrot.slane %v2566_v16, 4  ;;  %v2581_v52 = vrot.slane %v2580_v41, 4 }
 0x206   : > { %v2593_v31 = vrot.slane %v6602_v30, 5  ;;  %v3429_v5 = vcombine.low %v2501_v15, %v2505_v46  ;;  %v2585_v28 = vrot.slane %v2583_v25, 5  ;;  %v3421_v61 = vcombine.low %v5714_v54, %v5613_v14 }
 0x207   : > { %v2597_v23 = vshll.u32 %v5452_v42, 16  ;;  %v2572_v63 = vsel %vm5314_vm15, %v2567_v7, %v2571_v3  ;;  %v2608_v47 = vor.u32 %v2607_v53, %v2604_v43  ;;  %v2611_v34 = vshll.u32 %v5525_v22, 16  ;;  %v2812_v21 = vpop.permute.xlu0 %2811  ;;  %v6605_v7 = vld [vmem:[#allocation35_spill] sm:$0xff] }
 0x208   : > { %2783 = vrot.lane.b32.xlu1 %v3421_v61, %s3660_s13  ;;  %v2594_v27 = vor.u32 %v2593_v31, %v2590_v35  ;;  %v2586_v2 = vsel %vm5314_vm15, %v2581_v52, %v2585_v28  ;;  %v3433_v42 = vcombine.low %v5666_v0, %v5729_v11  ;;  %v6603_v11 = vcombine.low %v5211_v20, %v5213_v49  ;;  %v6606_v52 = vld [vmem:[#allocation72_spill] sm:$0xff] }
 0x209   : > { %2815 = vrot.lane.b32.xlu0 %v3429_v5, %s3659_s12  ;;  %v3436_v14 = vcombine.low %v2572_v63, %v2586_v2  ;;  %v2599_v50 = vrot.slane %v2597_v23, 5  ;;  %v2609_v39 = vrot.slane %v2608_v47, 4  ;;  %v2613_v1 = vrot.slane %v2611_v34, 5 }
 0x20a   : > { %v2595_v54 = vrot.slane %v2594_v27, 4  ;;  %v2915_v59 = vsel %vm343_vm0, %v5425_v40, %v2812_v21  ;;  %v6604_v31 = vcombine.low %v5400_v10, %v5503_v17  ;;  %v6607_v28 = vcombine.low %v6605_v7, %v6606_v52  ;;  %v2983_v21 = vld [vmem:[%s5866_s17 + $0x10] sm:$0xff]  ;;  %v2985_v52 = vld [vmem:[%s5866_s17 + $0x20] sm:$0xff] }
 0x20b   : > { %v2614_v60 = vsel %vm5314_vm15, %v2609_v39, %v2613_v1  ;;  %v6611_v19 = vcombine.low %v5541_v6, %v5566_v37  ;;  %v6612_v48 = vcombine.low %v5570_v44, %v5547_v9 }
 0x20c   : > { %v2600_v12 = vsel %vm5314_vm15, %v2595_v54, %v2599_v50  ;;  %v6608_v54 = vld [vmem:[#allocation70_spill] sm:$0xff]  ;;  %v6609_v50 = vld [vmem:[#allocation17_spill] sm:$0xff] }
 0x20d   : > { %2865 = vrot.lane.b32.xlu0 %v5557_v29, %s3660_s13  ;;  %v3437_v22 = vcombine.low %v2600_v12, %v2614_v60  ;;  %v2840_v29 = vpop.permute.xlu1 %2839  ;;  %v6610_v39 = vcombine.low %v6608_v54, %v6609_v50 }
 0x20e   : > { %v2926_v56 = vsel %vm2891_vm6, %v2915_v59, %v2840_v29 }
 0x211   : > { %2861 = vrot.lane.b32.xlu0 %v3436_v14, %s3660_s13  ;;  %v2780_v32 = vpop.permute.xlu1 %2779 }
 0x215   : > { %2843 = vrot.lane.b32.xlu0 %v3433_v42, %s3658_s11  ;;  %v2752_v57 = vpop.permute.xlu1 %2751 }
 0x219   : > { %2863 = vrot.lane.b32.xlu0 %v3437_v22, %s3660_s13  ;;  %v2754_v13 = vpop.permute.xlu1 %2753 }
 0x222   : > { %v2846_v0 = vpop.permute.xlu0 %2845 }
 0x223   : > { %v2786_v16 = vpop.permute.xlu1 %2785 }
 0x227   : > { %v2732_v25 = vpop.permute.xlu1 %2731 }
 0x228   : > { %v2881_v58 = vsel %vm343_vm0, %v6603_v11, %v2732_v25 }
 0x229   : > { %v2893_v18 = vsel %vm2891_vm6, %v2881_v58, %v2752_v57 }
 0x22a   : > { %v2902_v46 = vsel %vm2900_vm7, %v2893_v18, %v2780_v32 }
 0x22b   : > { %v2758_v15 = vpop.permute.xlu1 %2757 }
 0x22f   : > { %v2734_v41 = vpop.permute.xlu1 %2733 }
 0x230   : > { %v2884_v61 = vsel %vm343_vm0, %v6607_v28, %v2734_v41 }
 0x231   : > { %v2895_v2 = vsel %vm2891_vm6, %v2884_v61, %v2754_v13 }
 0x233   : > { %v2738_v35 = vpop.permute.xlu1 %2737 }
 0x234   : > { %v2890_v40 = vsel %vm343_vm0, %v6604_v31, %v2738_v35 }
 0x235   : > { %v2899_v43 = vsel %vm2891_vm6, %v2890_v40, %v2758_v15  ;;  %v2981_v15 = vld [vmem:[%s5866_s17] sm:$0xff] }
 0x236   : > { %v2911_v63 = vsel %vm2900_vm7, %v2899_v43, %v2786_v16 }
 0x254   : > { %v2782_v49 = vpop.permute.xlu1 %2781 }
 0x26b   : > { %v2842_v45 = vpop.permute.xlu0 %2841 }
 0x26f   : > { %v2860_v4 = vpop.permute.xlu0 %2859  ;;  %v2756_v53 = vpop.permute.xlu1 %2755 }
 0x270   : > { %v2934_v26 = vsel %vm2900_vm7, %v2926_v56, %v2860_v4 }
 0x271   : > { %3141 = vmatprep.mubr.bf16.mxu0 %v2934_v26  ;;  %v2982_v26 = vld [vmem:[%s5866_s17 + $0x8] sm:$0xff] }
 0x272   : > { %3142 = vmatmul.mubr.bf16.vlgmr.msra.gmra.mxu0 %v2902_v46  ;;  %v2984_v46 = vld [vmem:[%s5866_s17 + $0x18] sm:$0xff] }
 0x273   : > { %v2818_v20 = vpop.permute.xlu0 %2817 }
 0x274   : > { %v2924_v3 = vsel %vm343_vm0, %v5562_v36, %v2818_v20  ;;  %v3613_v36 = vld [vmem:[%s5906_s5 + $0x80] sm:$0xff]  }
 0x275   : > { %v2932_v23 = vsel %vm2891_vm6, %v2924_v3, %v2846_v0 }
 0x276   : > { %v2736_v47 = vpop.permute.xlu1 %2735 }
 0x277   : > { %v2814_v30 = vpop.permute.xlu0 %2813  ;;  %v2887_v12 = vsel %vm343_vm0, %v3409_v51, %v2736_v47 }
 0x278   : > { %v2918_v10 = vsel %vm343_vm0, %v5633_v38, %v2814_v30  ;;  %v2905_v38 = vsel %vm2900_vm7, %v2895_v2, %v2782_v49  ;;  %v2897_v22 = vsel %vm2891_vm6, %v2887_v12, %v2756_v53  ;;  %v2987_v30 = vld [vmem:[%s5866_s17 + $0x30] sm:$0xff] }
 0x279   : > { %v2928_v14 = vsel %vm2891_vm6, %v2918_v10, %v2842_v45 }
 0x27b   : > { %v2816_v5 = vpop.permute.xlu0 %2815 }
 0x27c   : > { %v2921_v60 = vsel %vm343_vm0, %v5767_v24, %v2816_v5 }
 0x27f   : > { %v2866_v27 = vpop.permute.xlu0 %2865 }
 0x280   : > { %v2943_v17 = vsel %vm2900_vm7, %v2932_v23, %v2866_v27 }
 0x281   : > { %3165 = vmatprep.mubr.bf16.mxu1 %v2943_v17  ;;  %v2988_v17 = vld [vmem:[%s5866_s17 + $0x38] sm:$0xff] }
 0x282   : > { %3166 = vmatmul.mubr.bf16.vlgmr.msra.gmra.mxu1 %v2911_v63 }
 0x283   : > { %v2862_v34 = vpop.permute.xlu0 %2861  ;;  %3545 = vmatpush3.bf16.msra.mxu1 %v5755_v55  ;;  %3548 = vmatprep.mubr.msk.bf16.mxu1 %vm343_vm0, %v6610_v39  ;;  %v2784_v55 = vpop.permute.xlu1 %2783 }
 0x284   : > { %v2937_v1 = vsel %vm2900_vm7, %v2928_v14, %v2862_v34  ;;  %3546 = vmatprep.subr.bf16.mxu1 %v3613_v36  ;;  %v2908_v51 = vsel %vm2900_vm7, %v2897_v22, %v2784_v55  ;;  %v2986_v14 = vld [vmem:[%s5866_s17 + $0x28] sm:$0xff] }
 0x285   : > { %3149 = vmatprep.mubr.bf16.mxu0 %v2937_v1 }
 0x286   : > { %3150 = vmatmul.mubr.bf16.gmra.mxu0 %v2905_v38 }
 0x287   : > { %v2844_v42 = vpop.permute.xlu0 %2843  ;;  %3547 = vmatpush3.bf16.msra.mxu1 %v3613_v36 }
 0x288   : > { %v2930_v29 = vsel %vm2891_vm6, %v2921_v60, %v2844_v42 }
 0x28a   : > { %3549 = vmatmul.mubr.msk.bf16.vlgmr.msra.gmra.mxu1 %vm343_vm0, %v3440_v8 }
 0x28b   : > { %v2864_v32 = vpop.permute.xlu0 %2863  ;;  %3552 = vmatprep.mubr.msk.bf16.mxu1 %vm343_vm0, %v6611_v19 }
 0x28c   : > { %v2940_v33 = vsel %vm2900_vm7, %v2930_v29, %v2864_v32 }
 0x28d   : > { %3157 = vmatprep.mubr.bf16.mxu0 %v2940_v33 }
 0x28e   : > { %3158 = vmatmul.mubr.bf16.gmra.mxu0 %v2908_v51 }
 0x292   : > { %3553 = vmatmul.mubr.msk.bf16.gmra.mxu1 %vm343_vm0, %v6612_v48 }
 0x332   : > { %v3514_v62 = vpop.f32.mrf.mxu0 }
 0x334   : > { %v3515_v8 = vpop.f32.mrf.mxu0 }
 0x335   : > { %v3516_v9 = vadd.f32 %v3515_v8, %v3514_v62 }
 0x336   : > { %v3517_v24 = vpop.f32.mrf.mxu0 }
 0x337   : > { %v3144_v59 = vadd.f32 %v3516_v9, %v2981_v15 }
 0x338   : > { %v3518_v13 = vpop.f32.mrf.mxu0 }
 0x339   : > { %v3519_v41 = vadd.f32 %v3518_v13, %v3517_v24 }
 0x33b   : > { %v3147_v3 = vadd.f32 %v3519_v41, %v2982_v26 }
 0x342   : > { %v3532_v57 = vpop.f32.mrf.mxu1 }
 0x344   : > { %v3533_v16 = vpop.f32.mrf.mxu1 }
 0x345   : > { %v3534_v18 = vadd.f32 %v3533_v16, %v3532_v57 }
 0x346   : > { %v3520_v6 = vpop.f32.mrf.mxu0  ;;  %v3535_v37 = vpop.f32.mrf.mxu1 }
 0x347   : > { %v3168_v7 = vadd.f32 %v3534_v18, %v2987_v30 }
 0x348   : > { %v3521_v44 = vpop.f32.mrf.mxu0  ;;  %v3536_v25 = vpop.f32.mrf.mxu1 }
 0x349   : > { %v3522_v0 = vadd.f32 %v3521_v44, %v3520_v6  ;;  %v3537_v28 = vadd.f32 %v3536_v25, %v3535_v37 }
 0x34a   : > { %v3523_v11 = vpop.f32.mrf.mxu0  ;;  %v3550_v58 = vpop.f32.mrf.mxu1 }
 0x34b   : > { %v3152_v45 = vadd.f32 %v3522_v0, %v2983_v21  ;;  %v3171_v39 = vadd.f32 %v3537_v28, %v2988_v17 }
 0x34c   : > { %v3524_v4 = vpop.f32.mrf.mxu0  ;;  %v3208_v56 = vpop.f32.mrf.mxu1 }
 0x34d   : > { %v3525_v35 = vadd.f32 %v3524_v4, %v3523_v11  ;;  %v3217_v20 = vadd.f32 %v3550_v58, %v3152_v45  ;;  %v3209_v49 = vadd.f32 %v3208_v56, %v3144_v59 }
 0x34e   : > { %v3551_v31 = vpop.f32.mrf.mxu1  ;;  %v3526_v40 = vpop.f32.mrf.mxu0 }
 0x34f   : > { %3241 = vst.msk [vmem:[%s5874_s25 + $0x10] sm:$0xff] %vm343_vm0, %v3217_v20  ;;  %3239 = vst.msk [vmem:[%s5874_s25] sm:$0xff] %vm343_vm0, %v3209_v49  ;;  %v3155_v5 = vadd.f32 %v3525_v35, %v2984_v46 }
 0x350   : > { %v3211_v43 = vpop.f32.mrf.mxu1  ;;  %v3527_v53 = vpop.f32.mrf.mxu0 }
 0x351   : > { %v3220_v61 = vadd.f32 %v3551_v31, %v3155_v5  ;;  %v3212_v27 = vadd.f32 %v3211_v43, %v3147_v3  ;;  %v3528_v23 = vadd.f32 %v3527_v53, %v3526_v40 }
 0x352   : > { %v3554_v63 = vpop.f32.mrf.mxu1  ;;  %v3529_v10 = vpop.f32.mrf.mxu0 }
 0x353   : > { %3242 = vst.msk [vmem:[%s5874_s25 + $0x18] sm:$0xff] %vm343_vm0, %v3220_v61  ;;  %3240 = vst.msk [vmem:[%s5874_s25 + $0x8] sm:$0xff] %vm343_vm0, %v3212_v27  ;;  %v3233_v36 = vadd.f32 %v3554_v63, %v3168_v7  ;;  %v3160_v2 = vadd.f32 %v3528_v23, %v2985_v52 }
 0x354   : > { %v3224_v47 = vpop.f32.mrf.mxu1  ;;  %v3530_v34 = vpop.f32.mrf.mxu0 }
 0x355   : > { %3245 = vst.msk [vmem:[%s5874_s25 + $0x30] sm:$0xff] %vm343_vm0, %v3233_v36  ;;  %v3225_v54 = vadd.f32 %v3224_v47, %v3160_v2  ;;  %v3531_v50 = vadd.f32 %v3530_v34, %v3529_v10 }
 0x356   : > { %v3555_v38 = vpop.f32.mrf.mxu1 }
 0x357   : > { %3243 = vst.msk [vmem:[%s5874_s25 + $0x20] sm:$0xff] %vm343_vm0, %v3225_v54  ;;  %v3236_v1 = vadd.f32 %v3555_v38, %v3171_v39  ;;  %v3163_v42 = vadd.f32 %v3531_v50, %v2986_v14 }
 0x358   : > { %v3227_v12 = vpop.f32.mrf.mxu1 }
 0x359   : > { %3246 = vst.msk [vmem:[%s5874_s25 + $0x38] sm:$0xff] %vm343_vm0, %v3236_v1  ;;  %v3228_v55 = vadd.f32 %v3227_v12, %v3163_v42 }
 0x35b   : > { %3244 = vst.msk [vmem:[%s5874_s25 + $0x28] sm:$0xff] %vm343_vm0, %v3228_v55 }
 0x35c PF: > { %s18_s24 = sadd.s32 1, %s3654_s24  }
 0x35d   : > { %p15_p4 = scmp.ge.s32.totalorder %s18_s24, 4  }
 0x35f   :  { %17 = sbr.rel (!%p15_p4) target bundleno = 1 (0x1), region = 103 }

// kernel: forward_pallas.9
= control target key start
LH: loop header
LB: loop body
LE: loop exit
PB: predicated region body
PF: predicated region fallthrough
CT: control target
= control target key end

     0   :  { %s3611_s21 = smov 0   ;;  %s4863_s0 = inlined_call_operand.vmem [shape: f32[2,8,8,32], index: 0, kind: input, shape index: {}]   ;;  %s4864_s1 = inlined_call_operand.vmem [shape: f32[2,8,8,32], index: 1, kind: input, shape index: {}]   ;;  %s4865_s2 = inlined_call_operand.vmem [shape: bf16[288,32], index: 2, kind: input, shape index: {}]   ;;  %s4866_s3 = inlined_call_operand.vmem [shape: f32[1,32], index: 3, kind: input, shape index: {}]   ;;  %s4867_s4 = inlined_call_operand.vmem [shape: bf16[288,32], index: 4, kind: input, shape index: {}]   ;;  %s4868_s5 = inlined_call_operand.vmem [shape: f32[1,32], index: 5, kind: input, shape index: {}]   ;;  %s4869_s6 = inlined_call_operand.vmem [shape: f32[2,8,8,32], index: 6, kind: output, shape index: {}]  }
   0x1 LB: > { %s3124_s22 = sadd.s32 4294967295, %s3569_s21   ;;  %p3128_p0 = scmp.ge.s32.totalorder %s3569_s21, 1  ;;  %s3569_s21 = sphi %s3611_s21, %s16_s21  }
   0x2   : > { %p222_p1 = scmp.lt.s32.totalorder %s3569_s21, 3 }
   0x4   : > { %p223_p2 = pnand %p3128_p0, %p222_p1 }
   0x5   : > { %p3619_p3 = scmp.lt.s32.totalorder (!%p223_p2), %s3124_s22, 1  ;;  %s3572_s16 = smov (!%p223_p2), 64  }
   0x6   : > { %226 = sbr.rel (%p223_p2) target bundleno = 871 (0x367), region = 44  ;;  %s3574_s25 = smov (!%p223_p2), 32  }
   0xb   : > { %vm273_vm0 = vcmask 257024   ;;  %v3571_v0 = vmov 0   ;;  %vm275_vm1 = vcmask 253952   ;;  %s4880_s22 = smov (!%p3619_p3, %s3124_s22), 1  ;;  %v3475_v1 = vld [vmem:[%s4865_s2 + $0x78] sm:$0xff]   ;;  %vm625_vm6 = vcmask 1042432  }
   0xc   : > { %283 = vst.msk [vmem:[#allocation2 + $0x20] sm:$0xf] %vm273_vm0, %v3571_v0  ;;  %285 = vst.msk [vmem:[#allocation2 + $0x28] sm:$0xf] %vm273_vm0, %v3571_v0  ;;  %s3648_s26 = sshll.u32 %s4880_s22, 6  ;;  %3338 = vmatprep.subr.bf16.mxu0 %v3475_v1  ;;  %v3476_v2 = vld [vmem:[%s4865_s2 + $0x38] sm:$0xff]  }
   0xd   : > { %274 = vst.msk [vmem:[#allocation2] sm:$0xf] %vm273_vm0, %v3571_v0  ;;  %277 = vst.msk [vmem:[#allocation2 + $0x8] sm:$0xf] %vm273_vm0, %v3571_v0  ;;  %s3654_s29 = scalar_lea.vmem %s4863_s0, %s3648_s26  ;;  %3339 = vmatpush3.bf16.msra.mxu0 %v3476_v2  ;;  %vm417_vm2 = vsmask.f32 7938  ;;  %s4820_s27 = scalar_lea.vmem %s4864_s1, %s3648_s26 }
   0xe   : > { %279 = vst.msk [vmem:[#allocation2 + $0x10] sm:$0xf] %vm273_vm0, %v3571_v0  ;;  %281 = vst.msk [vmem:[#allocation2 + $0x18] sm:$0xf] %vm273_vm0, %v3571_v0  ;;  %v298_v3 = vld [vmem:[%s3654_s29 + $0x18] sm:$0xff]  ;;  %v299_v4 = vld [vmem:[%s3654_s29 + $0x20] sm:$0xff]  ;;  %s4828_s7 = scalar_lea.vmem %s4869_s6, %s3648_s26 }
   0xf   : > { %287 = vst.msk [vmem:[#allocation2 + $0x30] sm:$0xf] %vm273_vm0, %v3571_v0  ;;  %289 = vst.msk [vmem:[#allocation2 + $0x38] sm:$0xf] %vm273_vm0, %v3571_v0  ;;  %v296_v5 = vld [vmem:[%s3654_s29 + $0x8] sm:$0xff]  ;;  %v3325_v6 = vpack.c.bf16 %v298_v3, %v298_v3  ;;  %v3326_v7 = vpack.c.bf16 %v299_v4, %v299_v4  ;;  %v297_v8 = vld [vmem:[%s3654_s29 + $0x10] sm:$0xff] }
  0x10   : > { %291 = vst.msk [vmem:[#allocation2 + $0x40] sm:$0xf] %vm273_vm0, %v3571_v0  ;;  %293 = vst.msk [vmem:[#allocation2 + $0x48] sm:$0xf] %vm273_vm0, %v3571_v0  ;;  %v3323_v9 = vpack.c.bf16 %v296_v5, %v296_v5  ;;  %v295_v10 = vld [vmem:[%s3654_s29] sm:$0xff]  ;;  %v3324_v11 = vpack.c.bf16 %v297_v8, %v297_v8  ;;  %v300_v17 = vld [vmem:[%s3654_s29 + $0x28] sm:$0xff] }
  0x11   : > { %278 = vst.msk [vmem:[#allocation2 + $0xc] sm:$0x1] %vm275_vm1, %v3571_v0  ;;  %280 = vst.msk [vmem:[#allocation2 + $0x14] sm:$0x1] %vm275_vm1, %v3571_v0  ;;  %v3322_v12 = vpack.c.bf16 %v295_v10, %v295_v10  ;;  %vm423_vm3 = vsmask.f32 256  ;;  %v3327_v34 = vpack.c.bf16 %v300_v17, %v300_v17 }
  0x12   : > { %276 = vst.msk [vmem:[#allocation2 + $0x4] sm:$0x1] %vm275_vm1, %v3571_v0  ;;  %282 = vst.msk [vmem:[#allocation2 + $0x1c] sm:$0x1] %vm275_vm1, %v3571_v0  ;;  %v360_v13 = vshrl.u32 %v3325_v6, 16  ;;  %v363_v14 = vshll.u32 %v3325_v6, 16 }
  0x13   : > { %284 = vst.msk [vmem:[#allocation2 + $0x24] sm:$0x1] %vm275_vm1, %v3571_v0  ;;  %286 = vst.msk [vmem:[#allocation2 + $0x2c] sm:$0x1] %vm275_vm1, %v3571_v0  ;;  %v368_v15 = vshrl.u32 %v3326_v7, 16  ;;  %v371_v16 = vshll.u32 %v3326_v7, 16 }
  0x14   : > { %288 = vst.msk [vmem:[#allocation2 + $0x34] sm:$0x1] %vm275_vm1, %v3571_v0  ;;  %290 = vst.msk [vmem:[#allocation2 + $0x3c] sm:$0x1] %vm275_vm1, %v3571_v0  ;;  %v440_v18 = vld [vmem:[#allocation2 + $0x20] sm:$0xf] }
  0x15   : > { %292 = vst.msk [vmem:[#allocation2 + $0x44] sm:$0x1] %vm275_vm1, %v3571_v0  ;;  %294 = vst.msk [vmem:[#allocation2 + $0x4c] sm:$0x1] %vm275_vm1, %v3571_v0  ;;  %v446_v19 = vld [vmem:[#allocation2 + $0x28] sm:$0xf] }
  0x16   : > { %v344_v20 = vshrl.u32 %v3323_v9, 16  ;;  %v347_v21 = vshll.u32 %v3323_v9, 16  ;;  %v352_v22 = vshrl.u32 %v3324_v11, 16  ;;  %v355_v23 = vshll.u32 %v3324_v11, 16  ;;  %v428_v26 = vld [vmem:[#allocation2 + $0x10] sm:$0xf]  ;;  %vm3667_vm4 = vmand %vm273_vm0, %vm417_vm2 }
  0x17   : > { %v362_v24 = vrot.slane %v360_v13, 7  ;;  %v370_v25 = vrot.slane %v368_v15, 7  ;;  %v434_v27 = vld [vmem:[#allocation2 + $0x18] sm:$0xf]  ;;  %v336_v28 = vshrl.u32 %v3322_v12, 16  ;;  %v339_v32 = vshll.u32 %v3322_v12, 16  ;;  %vm3673_vm5 = vmand %vm275_vm1, %vm423_vm3 }
  0x18   : > { %v346_v30 = vrot.slane %v344_v20, 7  ;;  %v354_v31 = vrot.slane %v352_v22, 7  ;;  %v431_v33 = vld [vmem:[#allocation2 + $0x14] sm:$0x1]  ;;  %v419_v53 = vld [vmem:[#allocation2 + $0x8] sm:$0xf] }
  0x19   : > { %v365_v35 = vor.u32 %v363_v14, %v362_v24  ;;  %v366_v36 = vrot.slane %v362_v24, 4  ;;  %v373_v37 = vor.u32 %v371_v16, %v370_v25  ;;  %v374_v38 = vrot.slane %v370_v25, 4  ;;  %v437_v40 = vld [vmem:[#allocation2 + $0x1c] sm:$0x1]  ;;  %v425_v54 = vld [vmem:[#allocation2 + $0xc] sm:$0x1] }
  0x1a   : > { %v443_v41 = vld [vmem:[#allocation2 + $0x24] sm:$0x1]  ;;  %v349_v42 = vor.u32 %v347_v21, %v346_v30  ;;  %v350_v43 = vrot.slane %v346_v30, 4  ;;  %v357_v44 = vor.u32 %v355_v23, %v354_v31  ;;  %v358_v45 = vrot.slane %v354_v31, 4  ;;  %v449_v50 = vld [vmem:[#allocation2 + $0x2c] sm:$0x1] }
  0x1b   : > { %v441_v46 = vsel %vm3667_vm4, %v365_v35, %v440_v18  ;;  %v447_v47 = vsel %vm3667_vm4, %v373_v37, %v446_v19  ;;  %v338_v48 = vrot.slane %v336_v28, 7  ;;  %v444_v49 = vsel %vm3673_vm5, %v366_v36, %v443_v41  ;;  %v470_v61 = vld [vmem:[#allocation2] sm:$0xf]  ;;  %v452_v63 = vld [vmem:[#allocation2 + $0x30] sm:$0xf]  ;;  %v3479_v14 = vld [vmem:[%s4865_s2 + $0x68] sm:$0xff]  }
  0x1c   : > { %442 = vst [vmem:[#allocation2 + $0x20] sm:$0xf] %v441_v46  ;;  %448 = vst [vmem:[#allocation2 + $0x28] sm:$0xf] %v447_v47  ;;  %v429_v51 = vsel %vm3667_vm4, %v349_v42, %v428_v26  ;;  %v435_v52 = vsel %vm3667_vm4, %v357_v44, %v434_v27  ;;  %v432_v55 = vsel %vm3673_vm5, %v350_v43, %v431_v33  ;;  %v376_v59 = vshrl.u32 %v3327_v34, 16  ;;  %v3477_v1 = vld [vmem:[%s4865_s2 + $0x70] sm:$0xff]  }
  0x1d   : > { %v438_v56 = vsel %vm3673_vm5, %v358_v45, %v437_v40  ;;  %445 = vst [vmem:[#allocation2 + $0x24] sm:$0x1] %v444_v49  ;;  %430 = vst [vmem:[#allocation2 + $0x10] sm:$0xf] %v429_v51  ;;  %v341_v57 = vor.u32 %v339_v32, %v338_v48  ;;  %v342_v58 = vrot.slane %v338_v48, 4  ;;  %v379_v60 = vshll.u32 %v3327_v34, 16  ;;  %3340 = vmatprep.subr.bf16.mxu0 %v3477_v1 }
  0x1e   : > { %436 = vst [vmem:[#allocation2 + $0x18] sm:$0xf] %v435_v52  ;;  %433 = vst [vmem:[#allocation2 + $0x14] sm:$0x1] %v432_v55  ;;  %v450_v62 = vsel %vm3673_vm5, %v374_v38, %v449_v50  ;;  %v455_v0 = vld [vmem:[#allocation2 + $0x34] sm:$0x1] }
  0x1f   : > { %439 = vst [vmem:[#allocation2 + $0x1c] sm:$0x1] %v438_v56  ;;  %v420_v2 = vsel %vm3667_vm4, %v341_v57, %v419_v53  ;;  %v426_v3 = vsel %vm3673_vm5, %v342_v58, %v425_v54  ;;  %v378_v4 = vrot.slane %v376_v59, 7  ;;  %451 = vst [vmem:[#allocation2 + $0x2c] sm:$0x1] %v450_v62  ;;  %v301_v7 = vld [vmem:[%s3654_s29 + $0x30] sm:$0xff] }
  0x20   : > { %v3700_v5 = vld [vmem:[#allocation2 + $0x4] sm:$0x1]  ;;  %v3702_v6 = vld [vmem:[#allocation2] sm:$0xe]  ;;  %421 = vst [vmem:[#allocation2 + $0x8] sm:$0xf] %v420_v2  ;;  %v3712_v15 = vpack.c.bf16 %v301_v7, %v301_v7 }
  0x21   : > { %427 = vst [vmem:[#allocation2 + $0xc] sm:$0x1] %v426_v3  ;;  %v490_v8 = vshrl.u32 %v470_v61, 16  ;;  %v493_v9 = vshll.u32 %v470_v61, 16  ;;  %v381_v10 = vor.u32 %v379_v60, %v378_v4  ;;  %v382_v11 = vrot.slane %v378_v4, 4  ;;  %v3478_v13 = vld [vmem:[%s4865_s2 + $0x30] sm:$0xff]  }
  0x22   : > { %v499_v12 = vshll.u32 %v3700_v5, 16  ;;  %vm626_vm7 = vcmask 1046532   ;;  %3341 = vmatpush3.bf16.msra.mxu0 %v3478_v13  ;;  %v3143_v22 = vrot.slane %v3702_v6, 9  ;;  %v3480_v23 = vld [vmem:[%s4865_s2 + $0x28] sm:$0xff]   ;;  %v630_v25 = vrot.slane %v3700_v5, 5  ;;  %v3481_v40 = vld [vmem:[%s4865_s2 + $0x60] sm:$0xff]  }
  0x23   : > { %v3714_v16 = vld [vmem:[#allocation2 + $0x20] sm:$0xf]  ;;  %v848_v17 = vld [vmem:[#allocation2 + $0x28] sm:$0xf]  ;;  %v453_v18 = vsel %vm3667_vm4, %v381_v10, %v452_v63  ;;  %v456_v19 = vsel %vm3673_vm5, %v382_v11, %v455_v0  ;;  %3342 = vmatprep.subr.bf16.mxu0 %v3479_v14  ;;  %v3730_v26 = vrot.slane %v490_v8, 4  ;;  %v3732_v27 = vrot.slane %v493_v9, 5  ;;  %vm3755_vm8 = vmor %vm625_vm6, %vm626_vm7 }
  0x24   : > { %v3192_v20 = vcombine.low %v3714_v16, %v848_v17  ;;  %v3721_v21 = vld [vmem:[#allocation2 + $0x10] sm:$0xf]  ;;  %454 = vst [vmem:[#allocation2 + $0x30] sm:$0xf] %v453_v18  ;;  %457 = vst [vmem:[#allocation2 + $0x34] sm:$0x1] %v456_v19  ;;  %v3772_v55 = vsel %vm3755_vm8, %v3143_v22, %v630_v25 }
  0x25   : > { %v3727_v24 = vld [vmem:[#allocation2 + $0x18] sm:$0xf]  ;;  %v3734_v28 = vrot.slane %v499_v12, 5  ;;  %v904_v30 = vshrl.u32 %v848_v17, 16  ;;  %v907_v31 = vshll.u32 %v848_v17, 16  ;;  %v384_v33 = vshrl.u32 %v3712_v15, 16 }
  0x26   : > { %1171 = vrot.lane.b32.xlu0 %v3192_v20, %s3572_s16  ;;  %v3737_v32 = vld [vmem:[#allocation2 + $0x24] sm:$0x1]  ;;  %v387_v34 = vshll.u32 %v3712_v15, 16  ;;  %v890_v35 = vshrl.u32 %v3714_v16, 16  ;;  %v3191_v36 = vcombine.low %v3721_v21, %v3727_v24  ;;  %v3746_v38 = vld [vmem:[#allocation2 + $0x14] sm:$0x1]  ;;  %3343 = vmatpush3.bf16.msra.mxu0 %v3480_v23  ;;  %v496_v8 = vor.u32 %v3732_v27, %v3730_v26 }
  0x27   : > { %v893_v41 = vshll.u32 %v3714_v16, 16  ;;  %v862_v42 = vshrl.u32 %v3721_v21, 16  ;;  %v788_v44 = vld [vmem:[#allocation2 + $0x8] sm:$0xe]  ;;  %v789_v45 = vld [vmem:[#allocation2 + $0x10] sm:$0xe]  ;;  %3344 = vmatprep.subr.bf16.mxu0 %v3481_v40 }
  0x28   : > { %v3744_v37 = vld [vmem:[#allocation2 + $0xc] sm:$0x1]  ;;  %1169 = vrot.lane.b32.xlu1 %v3191_v36, %s3572_s16  ;;  %v865_v46 = vshll.u32 %v3721_v21, 16  ;;  %v3151_v47 = vrot.slane %v788_v44, 9  ;;  %v3152_v49 = vrot.slane %v789_v45, 9  ;;  %v818_v51 = vrot.slane %v3746_v38, 5 }
  0x29   : > { %v814_v48 = vrot.slane %v3744_v37, 5  ;;  %v3762_v50 = vld [vmem:[#allocation2 + $0x8] sm:$0xf]  ;;  %v3765_v52 = vld [vmem:[#allocation2 + $0x10] sm:$0xf]  ;;  %v826_v54 = vrot.slane %v3737_v32, 5 }
  0x2a   : > { %v3767_v53 = vld [vmem:[#allocation2 + $0x1c] sm:$0x1]  ;;  %v876_v56 = vshrl.u32 %v3727_v24, 16  ;;  %v879_v57 = vshll.u32 %v3727_v24, 16  ;;  %v3179_v59 = vcombine.low %v3762_v50, %v3765_v52  ;;  %v790_v60 = vld [vmem:[#allocation2 + $0x18] sm:$0xe]  ;;  %v819_v62 = vsel %vm3755_vm8, %v3152_v49, %v818_v51 }
  0x2b   : > { %v815_v58 = vsel %vm3755_vm8, %v3151_v47, %v814_v48  ;;  %v791_v61 = vld [vmem:[#allocation2 + $0x20] sm:$0xe]  ;;  %v3153_v63 = vrot.slane %v790_v60, 9  ;;  %v822_v0 = vrot.slane %v3767_v53, 5  ;;  %v3783_v2 = vld [vmem:[#allocation2 + $0x18] sm:$0xf] }
  0x2c   : > { %v3154_v1 = vrot.slane %v791_v61, 9  ;;  %v3482_v3 = vld [vmem:[%s4865_s2 + $0x20] sm:$0xff]   ;;  %v3788_v4 = vrot.slane %v904_v30, 4  ;;  %v3790_v5 = vrot.slane %v907_v31, 5  ;;  %v3187_v6 = vcombine.low %v815_v58, %v819_v62  ;;  %s3573_s22 = smov 96   ;;  %v3483_v9 = vld [vmem:[%s4865_s2 + $0x58] sm:$0xff]  }
  0x2d   : > { %1109 = vrot.lane.b32.xlu1 %v3179_v59, %s3573_s22  ;;  %v3793_v7 = vld [vmem:[#allocation2 + $0x20] sm:$0xf]  ;;  %vm486_vm9 = vsmask.f32 3328  ;;  %vm487_vm10 = vsmask.f32 7440  ;;  %v823_v12 = vsel %vm3755_vm8, %v3153_v63, %v822_v0  ;;  %3345 = vmatpush3.bf16.msra.mxu0 %v3482_v3 }
  0x2e   : > { %v3800_v10 = vrot.slane %v862_v42, 4  ;;  %v3802_v11 = vrot.slane %v865_v46, 5  ;;  %v827_v13 = vsel %vm3755_vm8, %v3154_v1, %v826_v54  ;;  %v3808_v14 = vld [vmem:[#allocation2 + $0x2c] sm:$0x1]  ;;  %v3810_v16 = vld [vmem:[#allocation2 + $0x34] sm:$0x1]  ;;  %1141 = vrot.lane.b32.xlu0 %v3187_v6, %s3574_s25  ;;  %v3180_v20 = vcombine.low %v3783_v2, %v3793_v7  ;;  %3346 = vmatprep.subr.bf16.mxu0 %v3483_v9  ;;  %vm3872_vm11 = vmor %vm486_vm9, %vm487_vm10 }
  0x2f   : > { %v3812_v17 = vrot.slane %v876_v56, 4  ;;  %v3814_v18 = vrot.slane %v879_v57, 5  ;;  %v3188_v19 = vcombine.low %v823_v12, %v827_v13  ;;  %v792_v21 = vld [vmem:[#allocation2 + $0x28] sm:$0xe]  ;;  %v793_v22 = vld [vmem:[#allocation2 + $0x30] sm:$0xe] }
  0x30   : > { %v3819_v23 = vrot.slane %v890_v35, 4  ;;  %v3821_v24 = vrot.slane %v893_v41, 5  ;;  %v3155_v25 = vrot.slane %v792_v21, 9  ;;  %v830_v26 = vrot.slane %v3808_v14, 5  ;;  %v479_v27 = vld [vmem:[#allocation2 + $0xc] sm:$0x1] }
  0x31   : > { %1111 = vrot.lane.b32.xlu1 %v3180_v20, %s3573_s22  ;;  %v3156_v30 = vrot.slane %v793_v22, 9  ;;  %v834_v31 = vrot.slane %v3810_v16, 5  ;;  %v602_v36 = vld [vmem:[#allocation2 + $0x8] sm:$0xe]  ;;  %v634_v40 = vrot.slane %v479_v27, 5  ;;  %v3826_v42 = vrot.slane %v496_v8, 4 }
  0x32   : > { %v831_v44 = vsel %vm3755_vm8, %v3155_v25, %v830_v26  ;;  %v3144_v35 = vrot.slane %v602_v36, 9  ;;  %v3830_v45 = vld [vmem:[#allocation2 + $0x14] sm:$0x1]  ;;  %v3832_v41 = vld [vmem:[#allocation2 + $0x1c] sm:$0x1]  ;;  %v513_v46 = vshll.u32 %v479_v27, 16  ;;  %v868_v47 = vor.u32 %v3802_v11, %v3800_v10  ;;  %1143 = vrot.lane.b32.xlu0 %v3188_v19, %s3574_s25 }
  0x33   : > { %v835_v48 = vsel %vm3755_vm8, %v3156_v30, %v834_v31  ;;  %v603_v49 = vld [vmem:[#allocation2 + $0x10] sm:$0xe]  ;;  %v604_v51 = vld [vmem:[#allocation2 + $0x18] sm:$0xe]  ;;  %v638_v54 = vrot.slane %v3830_v45, 5  ;;  %v642_v56 = vrot.slane %v3832_v41, 5  ;;  %v882_v57 = vor.u32 %v3814_v18, %v3812_v17 }
  0x34   : > { %v3189_v58 = vcombine.low %v831_v44, %v835_v48  ;;  %v635_v59 = vsel %vm3755_vm8, %v3144_v35, %v634_v40  ;;  %v3145_v60 = vrot.slane %v603_v49, 9  ;;  %v3146_v61 = vrot.slane %v604_v51, 9  ;;  %v3845_v62 = vld [vmem:[#allocation2 + $0x8] sm:$0xf]  ;;  %v3847_v63 = vld [vmem:[#allocation2 + $0x24] sm:$0x1] }
  0x35   : > { %v3175_v0 = vcombine.low %v3772_v55, %v635_v59  ;;  %v504_v1 = vshrl.u32 %v3845_v62, 16  ;;  %v507_v3 = vshll.u32 %v3845_v62, 16  ;;  %v515_v6 = vrot.slane %v513_v46, 5  ;;  %v3852_v8 = vld [vmem:[#allocation2 + $0x2c] sm:$0x1]  ;;  %v3484_v9 = vld [vmem:[%s4865_s2 + $0x18] sm:$0xff]  }
  0x36   : > { %v639_v10 = vsel %vm3755_vm8, %v3145_v60, %v638_v54  ;;  %v643_v11 = vsel %vm3755_vm8, %v3146_v61, %v642_v56  ;;  %v605_v12 = vld [vmem:[#allocation2 + $0x20] sm:$0xe]  ;;  %v606_v13 = vld [vmem:[#allocation2 + $0x28] sm:$0xe]  ;;  %v646_v55 = vrot.slane %v3847_v63, 5  ;;  %v650_v17 = vrot.slane %v3852_v8, 5  ;;  %1145 = vrot.lane.b32.xlu0 %v3189_v58, %s3574_s25  ;;  %3347 = vmatpush3.bf16.msra.mxu0 %v3484_v9 }
  0x37   : > { %1081 = vrot.lane.b32.xlu1 %v3175_v0, %s3572_s16  ;;  %v3176_v18 = vcombine.low %v639_v10, %v643_v11  ;;  %v506_v19 = vrot.slane %v504_v1, 4  ;;  %v509_v20 = vrot.slane %v507_v3, 5  ;;  %v3147_v21 = vrot.slane %v605_v12, 9  ;;  %v3865_v22 = vld [vmem:[#allocation2 + $0x14] sm:$0x1]  ;;  %v3487_v0 = vld [vmem:[%s4865_s2 + $0x88] sm:$0xff]  }
  0x38   : > { %v3485_v25 = vld [vmem:[%s4865_s2 + $0x50] sm:$0xff]   ;;  %v3148_v27 = vrot.slane %v606_v13, 9  ;;  %v3876_v30 = vld [vmem:[#allocation2 + $0x1c] sm:$0x1]  ;;  %v869_v31 = vrot.slane %v868_v47, 4  ;;  %v871_v36 = vshll.u32 %v3865_v22, 16  ;;  %3430 = vmatprep.subr.bf16.mxu1 %v3487_v0 }
  0x39   : > { %v883_v40 = vrot.slane %v882_v57, 4  ;;  %v510_v44 = vor.u32 %v509_v20, %v506_v19  ;;  %v647_v35 = vsel %vm3755_vm8, %v3147_v21, %v646_v55  ;;  %v885_v46 = vshll.u32 %v3876_v30, 16  ;;  %v3882_v48 = vld [vmem:[#allocation2 + $0x10] sm:$0xf]  ;;  %v3884_v49 = vld [vmem:[#allocation2 + $0x18] sm:$0xf]  ;;  %3348 = vmatprep.subr.bf16.mxu0 %v3485_v25  ;;  %3431 = vmatpush3.bf16.msra.mxu1 %v3487_v0 }
  0x3a   : > { %v527_v51 = vshll.u32 %v3830_v45, 16  ;;  %v651_v47 = vsel %vm3755_vm8, %v3148_v27, %v650_v17  ;;  %v873_v54 = vrot.slane %v871_v36, 5  ;;  %v518_v56 = vshrl.u32 %v3882_v48, 16  ;;  %v3486_v58 = vld [vmem:[%s4865_s2 + $0x10] sm:$0xff]   ;;  %v3914_v55 = vld [vmem:[#allocation2 + $0x48] sm:$0xf] }
  0x3b   : > { %v521_v57 = vshll.u32 %v3882_v48, 16  ;;  %1083 = vrot.lane.b32.xlu1 %v3176_v18, %s3572_s16  ;;  %v502_v45 = vsel %vm3872_vm11, %v3826_v42, %v3734_v28  ;;  %v511_v59 = vrot.slane %v510_v44, 4  ;;  %v3177_v60 = vcombine.low %v647_v35, %v651_v47  ;;  %3349 = vmatpush3.bf16.msra.mxu0 %v3486_v58  ;;  %v3488_v28 = vld [vmem:[%s4865_s2 + $0x48] sm:$0xff]   ;;  %v458_v21 = vld [vmem:[#allocation2 + $0x38] sm:$0xf] }
  0x3c   : > { %v887_v61 = vrot.slane %v885_v46, 5  ;;  %v874_v1 = vsel %vm3872_vm11, %v869_v31, %v873_v54  ;;  %v520_v3 = vrot.slane %v518_v56, 4  ;;  %v532_v10 = vshrl.u32 %v3884_v49, 16  ;;  %v3916_v25 = vld [vmem:[#allocation2 + $0x30] sm:$0xf]  ;;  %v302_v27 = vld [vmem:[%s3654_s29 + $0x38] sm:$0xff]  ;;  %3350 = vmatprep.subr.bf16.mxu0 %v3488_v28 }
  0x3d   : > { %v523_v9 = vrot.slane %v521_v57, 5  ;;  %v516_v42 = vsel %vm3872_vm11, %v511_v59, %v515_v6  ;;  %v535_v12 = vshll.u32 %v3884_v49, 16  ;;  %v541_v13 = vshll.u32 %v3832_v41, 16  ;;  %v3489_v6 = vld [vmem:[%s4865_s2 + $0x8] sm:$0xff]   ;;  %v3930_v46 = vld [vmem:[#allocation2 + $0x24] sm:$0x1] }
  0x3e   : > { %v888_v11 = vsel %vm3872_vm11, %v883_v40, %v887_v61  ;;  %v3171_v17 = vcombine.low %v502_v45, %v516_v42  ;;  %v529_v19 = vrot.slane %v527_v51, 5  ;;  %v534_v20 = vrot.slane %v532_v10, 4  ;;  %v3925_v36 = vld [vmem:[#allocation2 + $0x28] sm:$0xf]  ;;  %v3927_v40 = vld [vmem:[#allocation2 + $0x30] sm:$0xf] }
  0x3f   : > { %v524_v18 = vor.u32 %v523_v9, %v520_v3  ;;  %1085 = vrot.lane.b32.xlu1 %v3177_v60, %s3572_s16  ;;  %v537_v41 = vrot.slane %v535_v12, 5  ;;  %v386_v31 = vrot.slane %v384_v33, 7  ;;  %v3195_v44 = vcombine.low %v874_v1, %v888_v11  ;;  %v3932_v51 = vld [vmem:[#allocation2 + $0x2c] sm:$0x1]  ;;  %3351 = vmatpush3.bf16.msra.mxu0 %v3489_v6  ;;  %v3940_v58 = vld [vmem:[#allocation2 + $0x20] sm:$0xf] }
  0x40   : > { %1061 = vrot.lane.b32.xlu0 %v3171_v17, %s3574_s25  ;;  %v896_v47 = vor.u32 %v3821_v24, %v3819_v23  ;;  %v910_v54 = vor.u32 %v3790_v5, %v3788_v4  ;;  %v543_v56 = vrot.slane %v541_v13, 5  ;;  %v3942_v45 = vld [vmem:[#allocation2 + $0x28] sm:$0xf]  ;;  %v918_v59 = vshrl.u32 %v3916_v25, 16  ;;  %v3491_v4 = vld [vmem:[%s4865_s2 + $0x80] sm:$0xff]  }
  0x41   : > { %v525_v35 = vrot.slane %v524_v18, 4  ;;  %v538_v33 = vor.u32 %v537_v41, %v534_v20  ;;  %v389_v57 = vor.u32 %v387_v34, %v386_v31  ;;  %v921_v60 = vshll.u32 %v3916_v25, 16  ;;  %v461_v10 = vld [vmem:[#allocation2 + $0x3c] sm:$0x1]  ;;  %3432 = vmatprep.subr.bf16.mxu1 %v3491_v4  ;;  %v3492_v13 = vld [vmem:[%s4865_s2 + $0x40] sm:$0xff]  }
  0x42   : > { %v3946_v61 = vpack.c.bf16 %v302_v27, %v302_v27  ;;  %v960_v23 = vshrl.u32 %v3914_v55, 16  ;;  %v390_v5 = vrot.slane %v386_v31, 4  ;;  %v3181_v0 = vcombine.low %v3925_v36, %v3927_v40  ;;  %3433 = vmatpush3.bf16.msra.mxu1 %v3491_v4  ;;  %v3493_v27 = vld [vmem:[%s4865_s2] sm:$0xff]   ;;  %3352 = vmatprep.subr.bf16.mxu0 %v3492_v13 }
  0x43   : > { %v530_v15 = vsel %vm3872_vm11, %v525_v35, %v529_v19  ;;  %v539_v34 = vrot.slane %v538_v33, 4  ;;  %v459_v24 = vsel %vm3667_vm4, %v389_v57, %v458_v21  ;;  %v897_v1 = vrot.slane %v896_v47, 4  ;;  %v3970_v21 = vld [vmem:[#allocation2 + $0x34] sm:$0x1]  ;;  %3353 = vmatpush3.bf16.msra.mxu0 %v3493_v27  ;;  %v467_v27 = vld [vmem:[#allocation2 + $0x44] sm:$0x1] }
  0x44   : > { %1189 = vrot.lane.b32.xlu0 %v3195_v44, %s3573_s22  ;;  %460 = vst [vmem:[#allocation2 + $0x38] sm:$0xf] %v459_v24  ;;  %v899_v3 = vshll.u32 %v3930_v46, 16  ;;  %v911_v9 = vrot.slane %v910_v54, 4  ;;  %v913_v42 = vshll.u32 %v3932_v51, 16  ;;  %v546_v11 = vshrl.u32 %v3940_v58, 16 }
  0x45   : > { %v544_v28 = vsel %vm3872_vm11, %v539_v34, %v543_v56  ;;  %v549_v12 = vshll.u32 %v3940_v58, 16  ;;  %v555_v19 = vshll.u32 %v3847_v63, 16  ;;  %v560_v20 = vshrl.u32 %v3942_v45, 16 }
  0x46   : > { %v3172_v17 = vcombine.low %v530_v15, %v544_v28  ;;  %v901_v18 = vrot.slane %v899_v3, 5  ;;  %v915_v6 = vrot.slane %v913_v42, 5  ;;  %v548_v41 = vrot.slane %v546_v11, 4 }
  0x47   : > { %v551_v31 = vrot.slane %v549_v12, 5  ;;  %v563_v44 = vshll.u32 %v3942_v45, 16  ;;  %v557_v63 = vrot.slane %v555_v19, 5  ;;  %v562_v47 = vrot.slane %v560_v20, 4  ;;  %v464_v20 = vld [vmem:[#allocation2 + $0x40] sm:$0xf] }
  0x48   : > { %1063 = vrot.lane.b32.xlu1 %v3172_v17, %s3574_s25  ;;  %v902_v35 = vsel %vm3872_vm11, %v897_v1, %v901_v18  ;;  %v569_v54 = vshll.u32 %v3852_v8, 16  ;;  %v916_v33 = vsel %vm3872_vm11, %v911_v9, %v915_v6  ;;  %v462_v4 = vsel %vm3673_vm5, %v390_v5, %v461_v10  ;;  %v3990_v10 = vld [vmem:[#allocation2 + $0x30] sm:$0xf] }
  0x49   : > { %v552_v56 = vor.u32 %v551_v31, %v548_v41  ;;  %v565_v57 = vrot.slane %v563_v44, 5  ;;  %v3196_v15 = vcombine.low %v902_v35, %v916_v33  ;;  %463 = vst [vmem:[#allocation2 + $0x3c] sm:$0x1] %v462_v4  ;;  %v920_v24 = vrot.slane %v918_v59, 4  ;;  %v3998_v44 = vld [vmem:[#allocation2 + $0x34] sm:$0x1] }
  0x4a   : > { %v571_v34 = vrot.slane %v569_v54, 5  ;;  %v923_v3 = vrot.slane %v921_v60, 5  ;;  %v927_v11 = vshll.u32 %v3970_v21, 16  ;;  %v392_v8 = vshrl.u32 %v3946_v61, 16 }
  0x4b   : > { %v850_v28 = vld [vmem:[#allocation2 + $0x38] sm:$0xf]  ;;  %v553_v1 = vrot.slane %v552_v56, 4  ;;  %v566_v42 = vor.u32 %v565_v57, %v562_v47  ;;  %v574_v54 = vshrl.u32 %v3990_v10, 16  ;;  %vm1209_vm12 = vcmask 261120  }
  0x4c   : > { %v932_v12 = vshrl.u32 %v850_v28, 16  ;;  %v935_v13 = vshll.u32 %v850_v28, 16  ;;  %v3193_v9 = vcombine.low %v3916_v25, %v850_v28  ;;  %1113 = vrot.lane.b32.xlu1 %v3181_v0, %s3573_s22  ;;  %v924_v17 = vor.u32 %v923_v3, %v920_v24  ;;  %v3988_v5 = vld [vmem:[#allocation2 + $0x38] sm:$0xe] }
  0x4d   : > { %v558_v59 = vsel %vm3872_vm11, %v553_v1, %v557_v63  ;;  %v567_v60 = vrot.slane %v566_v42, 4  ;;  %v929_v18 = vrot.slane %v927_v11, 5  ;;  %v394_v19 = vrot.slane %v392_v8, 7  ;;  %v3996_v31 = vld [vmem:[#allocation2 + $0x38] sm:$0xf] }
  0x4e   : > { %1173 = vrot.lane.b32.xlu0 %v3193_v9, %s3572_s16  ;;  %v925_v6 = vrot.slane %v924_v17, 4  ;;  %v934_v41 = vrot.slane %v932_v12, 4  ;;  %v937_v25 = vrot.slane %v935_v13, 5  ;;  %v395_v0 = vshll.u32 %v3946_v61, 16  ;;  %v607_v11 = vld [vmem:[#allocation2 + $0x30] sm:$0xe] }
  0x4f   : > { %v572_v35 = vsel %vm3872_vm11, %v567_v60, %v571_v34  ;;  %v398_v63 = vrot.slane %v394_v19, 4  ;;  %v3157_v47 = vrot.slane %v3988_v5, 9  ;;  %v576_v8 = vrot.slane %v574_v54, 4  ;;  %v608_v9 = vld [vmem:[#allocation2 + $0x38] sm:$0xe] }
  0x50   : > { %v3173_v33 = vcombine.low %v558_v59, %v572_v35  ;;  %v938_v56 = vor.u32 %v937_v25, %v934_v41  ;;  %v397_v57 = vor.u32 %v395_v0, %v394_v19  ;;  %v4004_v4 = vld [vmem:[#allocation2 + $0x3c] sm:$0x1]  ;;  %v930_v34 = vsel %vm3872_vm11, %v925_v6, %v929_v18  ;;  %v4022_v18 = vld [vmem:[#allocation2 + $0x4c] sm:$0x1] }
  0x51   : > { %v468_v61 = vsel %vm3673_vm5, %v398_v63, %v467_v27  ;;  %v4008_v24 = vld [vmem:[#allocation2 + $0x3c] sm:$0x1]  ;;  %v941_v1 = vshll.u32 %v4004_v4, 16  ;;  %v577_v12 = vshll.u32 %v3990_v10, 16  ;;  %v583_v13 = vshll.u32 %v3998_v44, 16 }
  0x52   : > { %v485_v3 = vld [vmem:[#allocation2 + $0x3c] sm:$0x1]  ;;  %1191 = vrot.lane.b32.xlu0 %v3196_v15, %s3573_s22  ;;  %1065 = vrot.lane.b32.xlu1 %v3173_v33, %s3574_s25  ;;  %v939_v28 = vrot.slane %v938_v56, 4  ;;  %v465_v42 = vsel %vm3667_vm4, %v397_v57, %v464_v20  ;;  %469 = vst [vmem:[#allocation2 + $0x44] sm:$0x1] %v468_v61  ;;  %v588_v15 = vshrl.u32 %v3996_v31, 16 }
  0x53   : > { %466 = vst [vmem:[#allocation2 + $0x40] sm:$0xf] %v465_v42  ;;  %v943_v17 = vrot.slane %v941_v1, 5  ;;  %v838_v5 = vrot.slane %v4008_v24, 5  ;;  %v591_v59 = vshll.u32 %v3996_v31, 16  ;;  %v597_v60 = vshll.u32 %v485_v3, 16 }
  0x54   : > { %v579_v19 = vrot.slane %v577_v12, 5  ;;  %v585_v20 = vrot.slane %v583_v13, 5  ;;  %v590_v27 = vrot.slane %v588_v15, 4  ;;  %v962_v6 = vrot.slane %v960_v23, 4 }
  0x55   : > { %v944_v41 = vsel %vm3872_vm11, %v939_v28, %v943_v17  ;;  %v593_v25 = vrot.slane %v591_v59, 5  ;;  %v599_v0 = vrot.slane %v597_v60, 5  ;;  %v963_v35 = vshll.u32 %v3914_v55, 16 }
  0x56   : > { %v3197_v63 = vcombine.low %v930_v34, %v944_v41  ;;  %v580_v54 = vor.u32 %v579_v19, %v576_v8  ;;  %v3149_v33 = vrot.slane %v607_v11, 9  ;;  %v654_v56 = vrot.slane %v3998_v44, 5 }
  0x57   : > { %v594_v57 = vor.u32 %v593_v25, %v590_v27  ;;  %v965_v61 = vrot.slane %v963_v35, 5  ;;  %v3150_v1 = vrot.slane %v608_v9, 9  ;;  %v658_v42 = vrot.slane %v485_v3, 5 }
  0x58   : > { %1193 = vrot.lane.b32.xlu0 %v3197_v63, %s3573_s22  ;;  %v581_v23 = vrot.slane %v580_v54, 4  ;;  %v969_v28 = vshll.u32 %v4022_v18, 16  ;;  %v839_v34 = vsel %vm3755_vm8, %v3157_v47, %v838_v5  ;;  %v655_v27 = vsel %vm3755_vm8, %v3149_v33, %v654_v56  ;;  %v4053_v56 = vld [vmem:[#allocation2 + $0x38] sm:$0xf] }
  0x59   : > { %v4031_v12 = vld [vmem:[#allocation2 + $0x44] sm:$0x1]  ;;  %v595_v44 = vrot.slane %v594_v57, 4  ;;  %v966_v17 = vor.u32 %v965_v61, %v962_v6  ;;  %v659_v47 = vsel %vm3755_vm8, %v3150_v1, %v658_v42  ;;  %vm1222_vm13 = vcmask 523264  }
  0x5a   : > { %v4033_v13 = vld [vmem:[#allocation2 + $0x44] sm:$0x1]  ;;  %v795_v15 = vld [vmem:[#allocation2 + $0x40] sm:$0xe]  ;;  %v842_v11 = vrot.slane %v4031_v12, 5  ;;  %v586_v3 = vsel %vm3872_vm11, %v581_v23, %v585_v20  ;;  %v971_v54 = vrot.slane %v969_v28, 5 }
  0x5b   : > { %v851_v8 = vld [vmem:[#allocation2 + $0x40] sm:$0xf]  ;;  %v3158_v9 = vrot.slane %v795_v15, 9  ;;  %v600_v19 = vsel %vm3872_vm11, %v595_v44, %v599_v0  ;;  %v955_v5 = vshll.u32 %v4033_v13, 16  ;;  %v967_v63 = vrot.slane %v966_v17, 4 }
  0x5c   : > { %v946_v59 = vshrl.u32 %v851_v8, 16  ;;  %v949_v60 = vshll.u32 %v851_v8, 16  ;;  %v3174_v41 = vcombine.low %v586_v3, %v600_v19  ;;  %v3178_v0 = vcombine.low %v655_v27, %v659_v47  ;;  %v4055_v1 = vld [vmem:[#allocation2 + $0x40] sm:$0xf]  ;;  %v976_v17 = vld [vmem:[#allocation2 + $0x28] sm:$0xe] }
  0x5d   : > { %v843_v6 = vsel %vm3755_vm8, %v3158_v9, %v842_v11  ;;  %v957_v61 = vrot.slane %v955_v5, 5  ;;  %v3194_v33 = vcombine.low %v851_v8, %v3914_v55  ;;  %v972_v23 = vsel %vm3872_vm11, %v967_v63, %v971_v54  ;;  %v973_v55 = vld [vmem:[#allocation2 + $0x10] sm:$0xe]  ;;  %v974_v11 = vld [vmem:[#allocation2 + $0x18] sm:$0xe] }
  0x5e   : > { %v948_v25 = vrot.slane %v946_v59, 4  ;;  %v951_v35 = vrot.slane %v949_v60, 5  ;;  %v3190_v20 = vcombine.low %v839_v34, %v843_v6  ;;  %1067 = vrot.lane.b32.xlu1 %v3174_v41, %s3574_s25  ;;  %v3182_v15 = vcombine.low %v4053_v56, %v4055_v1  ;;  %v975_v44 = vld [vmem:[#allocation2 + $0x20] sm:$0xe]  ;;  %v977_v47 = vld [vmem:[#allocation2 + $0x30] sm:$0xe] }
  0x5f   : > { %v3159_v8 = vrot.slane %v973_v55, 9  ;;  %v999_v9 = vrot.slane %v3865_v22, 5  ;;  %v3160_v3 = vrot.slane %v974_v11, 9  ;;  %v1003_v59 = vrot.slane %v3876_v30, 5 }
  0x60   : > { %v952_v57 = vor.u32 %v951_v35, %v948_v25  ;;  %1147 = vrot.lane.b32.xlu0 %v3190_v20, %s3574_s25  ;;  %v3161_v60 = vrot.slane %v975_v44, 9  ;;  %v1007_v27 = vrot.slane %v3930_v46, 5  ;;  %v3162_v6 = vrot.slane %v976_v17, 9  ;;  %v978_v25 = vld [vmem:[#allocation2 + $0x38] sm:$0xe] }
  0x61   : > { %v1000_v19 = vsel %vm3755_vm8, %v3159_v8, %v999_v9  ;;  %v1004_v5 = vsel %vm3755_vm8, %v3160_v3, %v1003_v59  ;;  %v1011_v41 = vrot.slane %v3932_v51, 5  ;;  %v979_v46 = vld [vmem:[#allocation2 + $0x40] sm:$0xe]  ;;  %v3163_v63 = vrot.slane %v977_v47, 9 }
  0x62   : > { %v953_v42 = vrot.slane %v952_v57, 4  ;;  %1087 = vrot.lane.b32.xlu1 %v3178_v0, %s3572_s16  ;;  %v3199_v35 = vcombine.low %v1000_v19, %v1004_v5  ;;  %v1008_v22 = vsel %vm3755_vm8, %v3161_v60, %v1007_v27  ;;  %v1015_v54 = vrot.slane %v3970_v21, 5  ;;  %v980_v0 = vld [vmem:[#allocation2 + $0x48] sm:$0xe] }
  0x63   : > { %v1012_v30 = vsel %vm3755_vm8, %v3162_v6, %v1011_v41  ;;  %v1027_v57 = vrot.slane %v4022_v18, 5  ;;  %v3164_v51 = vrot.slane %v978_v25, 9  ;;  %v694_v44 = vshll.u32 %v3765_v52, 16 }
  0x64   : > { %v958_v28 = vsel %vm3872_vm11, %v953_v42, %v957_v61  ;;  %1175 = vrot.lane.b32.xlu0 %v3194_v33, %s3572_s16  ;;  %3434 = vmatprep.mubr.msk.bf16.mxu1 %vm1209_vm12, %v3199_v35  ;;  %v3200_v20 = vcombine.low %v1008_v22, %v1012_v30  ;;  %v1016_v61 = vsel %vm3755_vm8, %v3163_v63, %v1015_v54  ;;  %v1019_v33 = vrot.slane %v4004_v4, 5 }
  0x65   : > { %v3198_v34 = vcombine.low %v958_v28, %v972_v23  ;;  %v3165_v42 = vrot.slane %v979_v46, 9  ;;  %v1023_v23 = vrot.slane %v4033_v13, 5  ;;  %v3166_v28 = vrot.slane %v980_v0, 9 }
  0x66   : > { %1115 = vrot.lane.b32.xlu1 %v3182_v15, %s3573_s22  ;;  %3435 = vmatmul.mubr.msk.bf16.vlgmr.msra.gmra.mxu1 %vm1209_vm12, %v3200_v20  ;;  %v1020_v15 = vsel %vm3755_vm8, %v3164_v51, %v1019_v33  ;;  %v691_v13 = vshrl.u32 %v3765_v52, 16  ;;  %v677_v8 = vshrl.u32 %v3762_v50, 16  ;;  %v680_v17 = vshll.u32 %v3762_v50, 16 }
  0x67   : > { %v1024_v21 = vsel %vm3755_vm8, %v3165_v42, %v1023_v23  ;;  %v1028_v18 = vsel %vm3755_vm8, %v3166_v28, %v1027_v57  ;;  %v696_v59 = vrot.slane %v694_v44, 5  ;;  %v686_v5 = vshll.u32 %v3744_v37, 16 }
  0x68   : > { %1195 = vrot.lane.b32.xlu0 %v3198_v34, %s3573_s22  ;;  %v3201_v34 = vcombine.low %v1016_v61, %v1020_v15  ;;  %v3202_v55 = vcombine.low %v1024_v21, %v1028_v18  ;;  %v693_v3 = vrot.slane %v691_v13, 4  ;;  %v679_v60 = vrot.slane %v677_v8, 4 }
  0x69   : > { %v682_v19 = vrot.slane %v680_v17, 5  ;;  %v700_v41 = vshll.u32 %v3746_v38, 16  ;;  %v688_v52 = vrot.slane %v686_v5, 5  ;;  %v705_v20 = vshrl.u32 %v3783_v2, 16 }
  0x6a   : > { %3438 = vmatprep.mubr.msk.bf16.mxu1 %vm1209_vm12, %v3201_v34  ;;  %v697_v6 = vor.u32 %v696_v59, %v693_v3  ;;  %v708_v46 = vshll.u32 %v3783_v2, 16  ;;  %v719_v54 = vshrl.u32 %v3793_v7, 16  ;;  %v722_v0 = vshll.u32 %v3793_v7, 16  ;;  %v3559_v2 = vld [vmem:[#allocation2] sm:$0xf] }
  0x6b   : > { %v683_v25 = vor.u32 %v682_v19, %v679_v60  ;;  %v702_v30 = vrot.slane %v700_v41, 5  ;;  %v707_v51 = vrot.slane %v705_v20, 4  ;;  %v3167_v15 = vcombine.low %v3559_v2, %v3845_v62 }
  0x6c   : > { %v698_v22 = vrot.slane %v697_v6, 4  ;;  %v710_v61 = vrot.slane %v708_v46, 5  ;;  %v721_v33 = vrot.slane %v719_v54, 4  ;;  %v724_v42 = vrot.slane %v722_v0, 5 }
  0x6d   : > { %v684_v50 = vrot.slane %v683_v25, 4  ;;  %v733_v21 = vshrl.u32 %v3925_v36, 16  ;;  %v736_v7 = vshll.u32 %v3925_v36, 16  ;;  %v747_v34 = vshrl.u32 %v3927_v40, 16 }
  0x6e   : > { %3439 = vmatmul.mubr.msk.bf16.gmra.mxu1 %vm1209_vm12, %v3202_v55  ;;  %v703_v37 = vsel %vm3872_vm11, %v698_v22, %v702_v30  ;;  %v750_v18 = vshll.u32 %v3927_v40, 16  ;;  %v711_v55 = vor.u32 %v710_v61, %v707_v51  ;;  %v714_v13 = vshll.u32 %v3767_v53, 16 }
  0x6f   : > { %v689_v38 = vsel %vm3872_vm11, %v684_v50, %v688_v52  ;;  %v725_v44 = vor.u32 %v724_v42, %v721_v33  ;;  %v728_v8 = vshll.u32 %v3737_v32, 16  ;;  %v735_v62 = vrot.slane %v733_v21, 4 }
  0x70   : > { %v3183_v28 = vcombine.low %v689_v38, %v703_v37  ;;  %v738_v60 = vrot.slane %v736_v7, 5  ;;  %v749_v19 = vrot.slane %v747_v34, 4  ;;  %v752_v5 = vrot.slane %v750_v18, 5 }
  0x71   : > { %v712_v6 = vrot.slane %v711_v55, 4  ;;  %vm1231_vm14 = vcmask 785408   ;;  %v716_v53 = vrot.slane %v714_v13, 5  ;;  %v726_v41 = vrot.slane %v725_v44, 4 }
  0x72   : > { %v730_v25 = vrot.slane %v728_v8, 5  ;;  %v739_v30 = vor.u32 %v738_v60, %v735_v62  ;;  %v742_v50 = vshll.u32 %v3808_v14, 16  ;;  %v756_v54 = vshll.u32 %v3810_v16, 16 }
  0x73   : > { %v717_v20 = vsel %vm3872_vm11, %v712_v6, %v716_v53  ;;  %v3168_v37 = vcombine.low %v3882_v48, %v3884_v49  ;;  %v775_v14 = vshrl.u32 %v4055_v1, 16  ;;  %v778_v38 = vshll.u32 %v4055_v1, 16 }
  0x74   : > { %v731_v46 = vsel %vm3872_vm11, %v726_v41, %v730_v25  ;;  %v740_v61 = vrot.slane %v739_v30, 4  ;;  %v744_v33 = vrot.slane %v742_v50, 5  ;;  %v3169_v44 = vcombine.low %v3940_v58, %v3942_v45 }
  0x75   : > { %v3184_v51 = vcombine.low %v717_v20, %v731_v46  ;;  %v777_v49 = vrot.slane %v775_v14, 4  ;;  %v770_v62 = vshll.u32 %v4008_v24, 16  ;;  %v3170_v25 = vcombine.low %v3990_v10, %v3996_v31  ;;  %v3498_v10 = vld [vmem:[%s4867_s4 + $0x88] sm:$0xff]   ;;  %v3500_v31 = vld [vmem:[%s4867_s4 + $0x80] sm:$0xff]  }
  0x76   : > { %v745_v34 = vsel %vm3872_vm11, %v740_v61, %v744_v33  ;;  %3442 = vmatprep.subr.bf16.mxu0 %v3498_v10 }
  0x77   : > { %v772_v45 = vrot.slane %v770_v62, 5 }
  0x98   : > { %v4095_v4 = vpop.permute.xlu0 %1171 }
  0x9a   : > { %v1170_v11 = vpop.permute.xlu1 %1169 }
  0x9f   : > { %v1110_v9 = vpop.permute.xlu1 %1109 }
  0xa0   : > { %v1142_v27 = vpop.permute.xlu0 %1141 }
  0xa1   : > { %v1246_v3 = vsel %vm1209_vm12, %v3183_v28, %v1142_v27  ;;  %v758_v28 = vrot.slane %v756_v54, 5 }
  0xa2   : > { %v1257_v52 = vsel %vm1222_vm13, %v1246_v3, %v1170_v11  ;;  %v761_v11 = vshrl.u32 %v4053_v56, 16 }
  0xa3   : > { %v4101_v47 = vpop.permute.xlu1 %1111 }
  0xa4   : > { %v4105_v35 = vpop.permute.xlu0 %1143  ;;  %v763_v21 = vrot.slane %v761_v11, 4 }
  0xa5   : > { %v1249_v48 = vsel %vm1209_vm12, %v3184_v51, %v4105_v35 }
  0xa6   : > { %v1259_v13 = vsel %vm1222_vm13, %v1249_v48, %v4095_v4  ;;  %v1944_v48 = vld [vmem:[#allocation2] sm:$0xf] }
  0xa8   : > { %v4115_v57 = vpop.permute.xlu0 %1145 }
  0xa9   : > { %v1082_v63 = vpop.permute.xlu1 %1081 }
  0xad   : > { %v1084_v23 = vpop.permute.xlu1 %1083 }
  0xb1   : > { %v4126_v36 = vpop.permute.xlu1 %1085 }
  0xb2   : > { %v1062_v17 = vpop.permute.xlu0 %1061 }
  0xb3   : > { %v1212_v59 = vsel %vm1209_vm12, %v3167_v15, %v1062_v17 }
  0xb4   : > { %v1224_v40 = vsel %vm1222_vm13, %v1212_v59, %v1082_v63  ;;  %v753_v63 = vor.u32 %v752_v5, %v749_v19 }
  0xb5   : > { %v1233_v22 = vsel %vm1231_vm14, %v1224_v40, %v1110_v9  ;;  %v764_v9 = vshll.u32 %v4053_v56, 16  ;;  %v780_v56 = vrot.slane %v778_v38, 5  ;;  %v4190_v38 = vld [vmem:[%s4866_s3] ss:$0 sm:$0xff] }
  0xb6   : > { %v1190_v32 = vpop.permute.xlu0 %1189  ;;  %v754_v42 = vrot.slane %v753_v63, 4 }
  0xb7   : > { %v1265_v27 = vsel %vm1231_vm14, %v1257_v52, %v1190_v32  ;;  %v766_v7 = vrot.slane %v764_v9, 5  ;;  %v781_v60 = vor.u32 %v780_v56, %v777_v49 }
  0xb8   : > { %1471 = vmatprep.mubr.bf16.mxu0 %v1265_v27  ;;  %v759_v1 = vsel %vm3872_vm11, %v754_v42, %v758_v28 }
  0xb9   : > { %1472 = vmatmul.mubr.bf16.vlgmr.msra.gmra.mxu0 %v1233_v22  ;;  %v3185_v8 = vcombine.low %v745_v34, %v759_v1  ;;  %v767_v3 = vor.u32 %v766_v7, %v763_v21  ;;  %v782_v5 = vrot.slane %v781_v60, 4  ;;  %v1961_v1 = vshrl.u32 %v1944_v48, 16 }
  0xba   : > { %v1064_v0 = vpop.permute.xlu1 %1063  ;;  %3443 = vmatpush3.bf16.msra.mxu0 %v3498_v10 }
  0xbb   : > { %v1215_v16 = vsel %vm1209_vm12, %v3168_v37, %v1064_v0  ;;  %v768_v19 = vrot.slane %v767_v3, 4  ;;  %v1252_v58 = vsel %vm1209_vm12, %v3185_v8, %v4115_v57  ;;  %3444 = vmatprep.subr.bf16.mxu0 %v3500_v31  ;;  %v1963_v3 = vrot.slane %v1961_v1, 4 }
  0xbc   : > { %v1226_v18 = vsel %vm1222_vm13, %v1215_v16, %v1084_v23  ;;  %v784_v23 = vshll.u32 %v4031_v12, 16 }
  0xbd   : > { %v1236_v59 = vsel %vm1231_vm14, %v1226_v18, %v4101_v47  ;;  %v773_v12 = vsel %vm3872_vm11, %v768_v19, %v772_v45  ;;  %v1964_v18 = vshll.u32 %v1944_v48, 16 }
  0xbe   : > { %v1114_v2 = vpop.permute.xlu1 %1113  ;;  %v786_v6 = vrot.slane %v784_v23, 5  ;;  %3445 = vmatpush3.bf16.msra.mxu0 %v3500_v31 }
  0xc0   : > { %v1174_v15 = vpop.permute.xlu0 %1173  ;;  %v787_v41 = vsel %vm3872_vm11, %v782_v5, %v786_v6  ;;  %v2072_v6 = vld [vmem:[#allocation2] sm:$0xe] }
  0xc1   : > { %v1261_v40 = vsel %vm1222_vm13, %v1252_v58, %v1174_v15  ;;  %v3186_v32 = vcombine.low %v773_v12, %v787_v41  ;;  %v1952_v58 = vld [vmem:[#allocation2 + $0x4] sm:$0x1] }
  0xc4   : > { %v1192_v55 = vpop.permute.xlu0 %1191  ;;  %v1066_v17 = vpop.permute.xlu1 %1065 }
  0xc5   : > { %v1268_v35 = vsel %vm1231_vm14, %v1259_v13, %v1192_v55  ;;  %v1218_v4 = vsel %vm1209_vm12, %v3169_v44, %v1066_v17 }
  0xc6   : > { %1479 = vmatprep.mubr.bf16.mxu0 %v1268_v35  ;;  %v1228_v47 = vsel %vm1222_vm13, %v1218_v4, %v4126_v36 }
  0xc7   : > { %1480 = vmatmul.mubr.bf16.gmra.mxu0 %v1236_v59  ;;  %v1239_v57 = vsel %vm1231_vm14, %v1228_v47, %v1114_v2  ;;  %v1966_v59 = vrot.slane %v1964_v18, 5 }
  0xca   : > { %v1194_v53 = vpop.permute.xlu0 %1193 }
  0xcb   : > { %v1271_v24 = vsel %vm1231_vm14, %v1261_v40, %v1194_v53  ;;  %v1967_v40 = vor.u32 %v1966_v59, %v1963_v3  ;;  %v1970_v53 = vshll.u32 %v1952_v58, 16 }
  0xcc   : > { %1487 = vmatprep.mubr.bf16.mxu0 %v1271_v24 }
  0xcf   : > { %1488 = vmatmul.mubr.bf16.gmra.mxu0 %v1239_v57 }
  0xd0   : > { %v1068_v52 = vpop.permute.xlu1 %1067 }
  0xd1   : > { %v1221_v36 = vsel %vm1209_vm12, %v3170_v25, %v1068_v52  ;;  %v2098_v52 = vrot.slane %v1952_v58, 5 }
  0xd2   : > { %v1148_v27 = vpop.permute.xlu0 %1147 }
  0xd3   : > { %v1255_v22 = vsel %vm1209_vm12, %v3186_v32, %v1148_v27  ;;  %v3234_v32 = vrot.slane %v2072_v6, 9 }
  0xd4   : > { %v1088_v30 = vpop.permute.xlu1 %1087 }
  0xd5   : > { %v1230_v20 = vsel %vm1222_vm13, %v1221_v36, %v1088_v30  ;;  %v4203_v30 = vrot.slane %v1970_v53, 5 }
  0xd6   : > { %v1176_v50 = vpop.permute.xlu0 %1175 }
  0xd7   : > { %v1263_v46 = vsel %vm1222_vm13, %v1255_v22, %v1176_v50  ;;  %v4201_v22 = vrot.slane %v1967_v40, 4 }
  0xd8   : > { %v1116_v63 = vpop.permute.xlu1 %1115 }
  0xd9   : > { %v1242_v0 = vsel %vm1231_vm14, %v1230_v20, %v1116_v63 }
  0xda   : > { %v1196_v54 = vpop.permute.xlu0 %1195 }
  0xdb   : > { %v1274_v11 = vsel %vm1231_vm14, %v1263_v46, %v1196_v54 }
  0xdc   : > { %1495 = vmatprep.mubr.bf16.mxu0 %v1274_v11 }
  0xdd   : > { %1496 = vmatmul.mubr.bf16.gmra.mxu0 %v1242_v0 }
 0x126   : > { %v3436_v37 = vpop.f32.mrf.mxu1 }
 0x128   : > { %v1538_v14 = vpop.f32.mrf.mxu1 }
 0x12a   : > { %v3437_v28 = vpop.f32.mrf.mxu1 }
 0x12c   : > { %v1541_v49 = vpop.f32.mrf.mxu1 }
 0x12e   : > { %v4198_v24 = vpop.f32.mrf.mxu1 }
 0x130   : > { %v1554_v63 = vpop.f32.mrf.mxu1 }
 0x179   : > { %v3354_v9 = vpop.f32.mrf.mxu0 }
 0x17b   : > { %v3355_v51 = vpop.f32.mrf.mxu0 }
 0x17c   : > { %v3356_v61 = vadd.f32 %v3355_v51, %v3354_v9  ;;  %v4210_v9 = vsel %vm3755_vm8, %v3234_v32, %v2098_v52  ;;  %v3575_v51 = vmov -1.0  }
 0x17d   : > { %v3357_v33 = vpop.f32.mrf.mxu0 }
 0x17e   : > { %v1474_v42 = vadd.f32 %v3356_v61, %v4190_v38 }
 0x17f   : > { %v3358_v2 = vpop.f32.mrf.mxu0 }
 0x180   : > { %v1539_v16 = vadd.f32 %v1538_v14, %v1474_v42  ;;  %v3359_v15 = vadd.f32 %v3358_v2, %v3357_v33  ;;  %v4212_v14 = vld [vmem:[#allocation2 + $0x48] sm:$0xe]  ;;  %v4222_v2 = vld [vmem:[#allocation2 + $0x4c] sm:$0x1] }
 0x182   : > { %v1577_v21 = vmul.f32 0.70710677, %v1539_v16  ;;  %v1477_v7 = vadd.f32 %v3359_v15, %v4190_v38  ;;  %v4205_v54 = vmul.f32 0.5, %v1539_v16 }
 0x184   : > { %v1601_v56 = vand.u32 2147483647, %v1577_v21  ;;  %v1542_v34 = vadd.f32 %v1541_v49, %v1477_v7  ;;  %vm1585_vm15 = vcmp.ge.f32.partialorder %v1577_v21, 0.0  ;;  %v4224_v7 = vpop.f32.mrf.mxu1 }
 0x185   : > { %v4215_v61 = vsel %vm1585_vm15, 1.0, %v3575_v51 }
 0x186   : > { %v1609_v55 = vmul.f32 0.3275911, %v1601_v56  ;;  %v4194_v13 = vmul.f32 0.70710677, %v1542_v34  ;;  %v1713_v4 = vsub.f32 0.0, %v1601_v56 }
 0x187   : > { %v3360_v44 = vpop.f32.mrf.mxu0 }
 0x188   : > { %v1617_v8 = vadd.f32 1.0, %v1609_v55  ;;  %v1602_v35 = vand.u32 2147483647, %v4194_v13  ;;  %v1721_v57 = vmul.f32 %v1713_v4, %v1601_v56  ;;  %vm1586_vm0 = vcmp.ge.f32.partialorder %v4194_v13, 0.0 }
 0x189   : > { %v3361_v17 = vpop.f32.mrf.mxu0  ;;  %v4228_v56 = vmul.f32 0.5, %v1542_v34  ;;  %v3257_v55 = vrot.slane %v4212_v14, 9 }
 0x18a   : > { %3527 = vrcp.f32 %v1617_v8  ;;  %v1610_v62 = vmul.f32 0.3275911, %v1602_v35  ;;  %v3362_v60 = vadd.f32 %v3361_v17, %v3360_v44  ;;  %v1714_v50 = vsub.f32 0.0, %v1602_v35 }
 0x18b   : > { %v3363_v23 = vpop.f32.mrf.mxu0  ;;  %v1729_v10 = vmul.f32 1.442695, %v1721_v57  ;;  %v2494_v17 = vrot.slane %v4222_v2, 5 }
 0x18c   : > { %v1618_v19 = vadd.f32 1.0, %v1610_v62  ;;  %v1482_v45 = vadd.f32 %v3362_v60, %v4190_v38  ;;  %v1722_v16 = vmul.f32 %v1714_v50, %v1602_v35  ;;  %v4236_v35 = vsel %vm1586_vm0, 1.0, %v3575_v51 }
 0x18d   : > { %v3364_v5 = vpop.f32.mrf.mxu0 }
 0x18e   : > { %3529 = vrcp.f32 %v1618_v19  ;;  %v3365_v47 = vadd.f32 %v3364_v5, %v3363_v23  ;;  %v1547_v12 = vadd.f32 %v3436_v37, %v1482_v45  ;;  %v1731_v62 = vmul.f32 1.442695, %v1722_v16  ;;  %v1557_v23 = vpop.f32.mrf.mxu1 }
 0x18f   : > { %v3366_v41 = vpop.f32.mrf.mxu0  ;;  %3531 = vpow2.f32 %v1729_v10  ;;  %v2319_v10 = vld [vmem:[#allocation2 + $0x48] sm:$0xf] }
 0x190   : > { %v1485_v25 = vadd.f32 %v3365_v47, %v4190_v38  ;;  %v1579_v27 = vmul.f32 0.70710677, %v1547_v12  ;;  %v4241_v19 = vmul.f32 0.5, %v1547_v12 }
 0x191   : > { %v3367_v36 = vpop.f32.mrf.mxu0 }
 0x192   : > { %v1550_v20 = vadd.f32 %v3437_v28, %v1485_v25  ;;  %v3368_v46 = vadd.f32 %v3367_v36, %v3366_v41  ;;  %v1603_v0 = vand.u32 2147483647, %v1579_v27  ;;  %v1973_v28 = vsel %vm3872_vm11, %v4201_v22, %v4203_v30  ;;  %v3523_v22 = vld [vmem:[%s4867_s4] sm:$0xff]  }
 0x193   : > { %v3369_v11 = vpop.f32.mrf.mxu0  ;;  %vm1587_vm1 = vcmp.ge.f32.partialorder %v1579_v27, 0.0 }
 0x194   : > { %v1580_v31 = vmul.f32 0.70710677, %v1550_v20  ;;  %v1490_v37 = vadd.f32 %v3368_v46, %v4190_v38  ;;  %v1611_v33 = vmul.f32 0.3275911, %v1603_v0  ;;  %v1715_v18 = vsub.f32 0.0, %v1603_v0 }
 0x195   : > { %v3370_v42 = vpop.f32.mrf.mxu0  ;;  %v4246_v40 = vsel %vm1587_vm1, 1.0, %v3575_v51  ;;  %v4248_v53 = vmul.f32 0.5, %v1550_v20 }
 0x196   : > { %v1604_v15 = vand.u32 2147483647, %v1580_v31  ;;  %v1555_v21 = vadd.f32 %v1554_v63, %v1490_v37  ;;  %v3371_v48 = vadd.f32 %v3370_v42, %v3369_v11  ;;  %v1619_v1 = vadd.f32 1.0, %v1611_v33 }
 0x197   : > { %v4226_v49 = vpop.eup %3527  ;;  %v1723_v58 = vmul.f32 %v1715_v18, %v1603_v0  ;;  %vm1588_vm2 = vcmp.ge.f32.partialorder %v1580_v31, 0.0 }
 0x198   : > { %v1641_v44 = vmul.f32 1.0614054, %v4226_v49  ;;  %v1612_v8 = vmul.f32 0.3275911, %v1604_v15  ;;  %3533 = vrcp.f32 %v1619_v1  ;;  %v1581_v3 = vmul.f32 0.70710677, %v1555_v21 }
 0x199   : > { %v1493_v34 = vadd.f32 %v3371_v48, %v4190_v38  ;;  %v1716_v47 = vsub.f32 0.0, %v1604_v15  ;;  %v1733_v52 = vmul.f32 1.442695, %v1723_v58  ;;  %v4253_v27 = vsel %vm1588_vm2, 1.0, %v3575_v51 }
 0x19a   : > { %v1649_v59 = vadd.f32 -1.4531521, %v1641_v44  ;;  %v1620_v60 = vadd.f32 1.0, %v1612_v8  ;;  %v1605_v45 = vand.u32 2147483647, %v1581_v3  ;;  %v4257_v0 = vmul.f32 0.5, %v1555_v21 }
 0x19b   : > { %v4239_v4 = vpop.eup %3529  ;;  %v1558_v5 = vadd.f32 %v1557_v23, %v1493_v34  ;;  %v1724_v31 = vmul.f32 %v1716_v47, %v1604_v15  ;;  %vm1589_vm3 = vcmp.ge.f32.partialorder %v1581_v3, 0.0  ;;  %v4262_v48 = vsel %vm3755_vm8, %v3257_v55, %v2494_v17  ;;  %v3508_v55 = vld [vmem:[%s4867_s4 + $0x38] sm:$0xff]   ;;  %v3509_v17 = vld [vmem:[%s4867_s4 + $0x70] sm:$0xff]  }
 0x19c   : > { %v1657_v13 = vmul.f32 %v4226_v49, %v1649_v59  ;;  %v1642_v6 = vmul.f32 1.0614054, %v4239_v4  ;;  %3535 = vrcp.f32 %v1620_v60  ;;  %v1613_v41 = vmul.f32 0.3275911, %v1605_v45  ;;  %v3532_v60 = vpop.eup %3531 }
 0x19d   : > { %v3372_v57 = vpop.f32.mrf.mxu0  ;;  %3537 = vpow2.f32 %v1731_v62  ;;  %v4250_v32 = vmul.f32 0.70710677, %v1558_v5  ;;  %v1717_v50 = vsub.f32 0.0, %v1605_v45  ;;  %v2427_v44 = vshrl.u32 %v2319_v10, 16  ;;  %v3507_v62 = vld [vmem:[%s4867_s4 + $0x78] sm:$0xff]  }
 0x19e   : > { %v1665_v25 = vadd.f32 1.4214138, %v1657_v13  ;;  %v1650_v12 = vadd.f32 -1.4531521, %v1642_v6  ;;  %v1621_v36 = vadd.f32 1.0, %v1613_v41  ;;  %v4278_v58 = vsel %vm1589_vm3, 1.0, %v3575_v51  ;;  %3384 = vmatprep.subr.bf16.mxu1 %v3507_v62 }
 0x19f   : > { %v3373_v46 = vpop.f32.mrf.mxu0  ;;  %v1606_v11 = vand.u32 2147483647, %v4250_v32  ;;  %v1725_v1 = vmul.f32 %v1717_v50, %v1605_v45  ;;  %v1735_v23 = vmul.f32 1.442695, %v1724_v31  ;;  %v2430_v13 = vshll.u32 %v2319_v10, 16  ;;  %3385 = vmatpush3.bf16.msra.mxu1 %v3508_v55 }
 0x1a0   : > { %v1673_v63 = vmul.f32 %v4226_v49, %v1665_v25  ;;  %v1658_v20 = vmul.f32 %v4239_v4, %v1650_v12  ;;  %3539 = vrcp.f32 %v1621_v36  ;;  %v3374_v37 = vadd.f32 %v3373_v46, %v3372_v57  ;;  %3386 = vmatprep.subr.bf16.mxu1 %v3509_v17 }
 0x1a1   : > { %v3375_v14 = vpop.f32.mrf.mxu0  ;;  %v1614_v16 = vmul.f32 0.3275911, %v1606_v11  ;;  %3541 = vpow2.f32 %v1733_v52  ;;  %v4285_v12 = vmul.f32 0.5, %v1558_v5  ;;  %vm1590_vm6 = vcmp.ge.f32.partialorder %v4250_v32, 0.0 }
 0x1a2   : > { %v1681_v33 = vadd.f32 -0.28449672, %v1673_v63  ;;  %v1666_v42 = vadd.f32 1.4214138, %v1658_v20  ;;  %v1498_v21 = vadd.f32 %v3374_v37, %v4190_v38  ;;  %v1718_v3 = vsub.f32 0.0, %v1606_v11 }
 0x1a3   : > { %v3376_v18 = vpop.f32.mrf.mxu0  ;;  %v1622_v34 = vadd.f32 1.0, %v1614_v16  ;;  %v1737_v50 = vmul.f32 1.442695, %v1725_v1  ;;  %v2429_v20 = vrot.slane %v2427_v44, 4  ;;  %v2432_v10 = vrot.slane %v2430_v13, 5 }
 0x1a4   : > { %v1689_v8 = vmul.f32 %v4226_v49, %v1681_v33  ;;  %v1674_v15 = vmul.f32 %v4239_v4, %v1666_v42  ;;  %v3377_v59 = vadd.f32 %v3376_v18, %v3375_v14  ;;  %v1563_v45 = vadd.f32 %v4198_v24, %v1498_v21  ;;  %v3510_v24 = vld [vmem:[%s4867_s4 + $0x30] sm:$0xff]   ;;  %v3512_v18 = vld [vmem:[%s4867_s4 + $0x28] sm:$0xff]  }
 0x1a5   : > { %v4281_v6 = vpop.eup %3533  ;;  %3543 = vrcp.f32 %v1622_v34  ;;  %v4308_v16 = vsel %vm1590_vm6, 1.0, %v3575_v51  ;;  %v1726_v1 = vmul.f32 %v1718_v3, %v1606_v11  ;;  %3387 = vmatpush3.bf16.msra.mxu1 %v3510_v24  ;;  %v2436_v32 = vshll.u32 %v4222_v2, 16 }
 0x1a6   : > { %v1697_v47 = vadd.f32 0.2548296, %v1689_v8  ;;  %v1682_v41 = vadd.f32 -0.28449672, %v1674_v15  ;;  %v1501_v57 = vadd.f32 %v3377_v59, %v4190_v38  ;;  %v1643_v25 = vmul.f32 1.0614054, %v4281_v6 }
 0x1a7   : > { %v4293_v46 = vmul.f32 0.70710677, %v1563_v45  ;;  %v3511_v38 = vld [vmem:[%s4867_s4 + $0x68] sm:$0xff]   ;;  %3545 = vpow2.f32 %v1735_v23  ;;  %v2433_v59 = vor.u32 %v2432_v10, %v2429_v20  ;;  %v1739_v13 = vmul.f32 1.442695, %v1726_v1 }
 0x1a8   : > { %v1705_v52 = vmul.f32 %v4226_v49, %v1697_v47  ;;  %v1690_v36 = vmul.f32 %v4239_v4, %v1682_v41  ;;  %v1651_v63 = vadd.f32 -1.4531521, %v1643_v25  ;;  %v4302_v14 = vadd.f32 %v4224_v7, %v1501_v57  ;;  %3388 = vmatprep.subr.bf16.mxu1 %v3511_v38 }
 0x1a9   : > { %v4298_v5 = vpop.eup %3535  ;;  %v1607_v21 = vand.u32 2147483647, %v4293_v46  ;;  %3547 = vpow2.f32 %v1737_v50  ;;  %3389 = vmatpush3.bf16.msra.mxu1 %v3512_v18  ;;  %v4325_v3 = vmul.f32 0.5, %v1563_v45  ;;  %vm1591_vm7 = vcmp.ge.f32.partialorder %v4293_v46, 0.0 }
 0x1aa   : > { %v1745_v31 = vmul.f32 %v3532_v60, %v1705_v52  ;;  %v1698_v37 = vadd.f32 0.2548296, %v1690_v36  ;;  %v1644_v49 = vmul.f32 1.0614054, %v4298_v5  ;;  %v3538_v33 = vpop.eup %3537  ;;  %v1659_v42 = vmul.f32 %v4281_v6, %v1651_v63 }
 0x1ab   : > { %v1615_v34 = vmul.f32 0.3275911, %v1607_v21  ;;  %v4321_v60 = vmul.f32 0.70710677, %v4302_v14  ;;  %v1719_v52 = vsub.f32 0.0, %v1607_v21 }
 0x1ac   : > { %v1753_v44 = vsub.f32 1.0, %v1745_v31  ;;  %v1706_v7 = vmul.f32 %v4239_v4, %v1698_v37  ;;  %v1652_v8 = vadd.f32 -1.4531521, %v1644_v49  ;;  %v1667_v15 = vadd.f32 1.4214138, %v1659_v42 }
 0x1ad   : > { %v4316_v62 = vpop.eup %3539  ;;  %v1623_v47 = vadd.f32 1.0, %v1615_v34  ;;  %v4331_v63 = vand.u32 2147483647, %v4321_v60  ;;  %v4337_v31 = vrot.slane %v2433_v59, 4  ;;  %v4339_v37 = vrot.slane %v2436_v32, 5 }
 0x1ae   : > { %v1761_v11 = vmul.f32 %v1753_v44, %v4215_v61  ;;  %v1746_v55 = vmul.f32 %v3538_v33, %v1706_v7  ;;  %v1660_v17 = vmul.f32 %v4298_v5, %v1652_v8  ;;  %v1675_v4 = vmul.f32 %v4281_v6, %v1667_v15  ;;  %v3542_v41 = vpop.eup %3541 }
 0x1af   : > { %v1645_v23 = vmul.f32 1.0614054, %v4316_v62  ;;  %3549 = vrcp.f32 %v1623_v47  ;;  %v1616_v18 = vmul.f32 0.3275911, %v4331_v63  ;;  %v1727_v34 = vmul.f32 %v1719_v52, %v1607_v21 }
 0x1b0   : > { %v1769_v57 = vadd.f32 1.0, %v1761_v11  ;;  %v1754_v2 = vsub.f32 1.0, %v1746_v55  ;;  %v1668_v25 = vadd.f32 1.4214138, %v1660_v17  ;;  %v1683_v61 = vadd.f32 -0.28449672, %v1675_v4 }
 0x1b1   : > { %v1653_v24 = vadd.f32 -1.4531521, %v1645_v23  ;;  %3551 = vpow2.f32 %v1739_v13  ;;  %v1624_v55 = vadd.f32 1.0, %v1616_v18  ;;  %vm1592_vm9 = vcmp.ge.f32.partialorder %v4321_v60, 0.0 }
 0x1b2   : > { %v1777_v36 = vmul.f32 %v1769_v57, %v4205_v54  ;;  %v1762_v50 = vmul.f32 %v1754_v2, %v4236_v35  ;;  %v1676_v38 = vmul.f32 %v4298_v5, %v1668_v25  ;;  %v4333_v20 = vpop.eup %3543  ;;  %v1691_v10 = vmul.f32 %v4281_v6, %v1683_v61  ;;  %v1899_v57 = vld [vmem:[#allocation2 + $0xc] sm:$0x1] }
 0x1b3   : > { %v1661_v45 = vmul.f32 %v4316_v62, %v1653_v24  ;;  %v1646_v35 = vmul.f32 1.0614054, %v4333_v20  ;;  %3553 = vrcp.f32 %v1624_v55  ;;  %v1720_v24 = vsub.f32 0.0, %v4331_v63 }
 0x1b4   : > { %v3330_v49 = vpack.c.bf16 %v1777_v36, %v1777_v36  ;;  %v1770_v33 = vadd.f32 1.0, %v1762_v50  ;;  %v1684_v54 = vadd.f32 -0.28449672, %v1676_v38  ;;  %v1699_v42 = vadd.f32 0.2548296, %v1691_v10  ;;  %v3546_v44 = vpop.eup %3545 }
 0x1b5   : > { %v1669_v1 = vadd.f32 1.4214138, %v1661_v45  ;;  %v1654_v11 = vadd.f32 -1.4531521, %v1646_v35  ;;  %v3560_v10 = vld [vmem:[#allocation2 + $0x8] sm:$0xf] }
 0x1b6   : > { %v1818_v7 = vshrl.u32 %v3330_v49, 16  ;;  %v1778_v8 = vmul.f32 %v1770_v33, %v4228_v56  ;;  %v1692_v15 = vmul.f32 %v4298_v5, %v1684_v54  ;;  %v1707_v59 = vmul.f32 %v4281_v6, %v1699_v42  ;;  %v3548_v47 = vpop.eup %3547  ;;  %v1902_v54 = vld [vmem:[#allocation2 + $0x10] sm:$0xf]  ;;  %v1905_v35 = vld [vmem:[#allocation2 + $0x14] sm:$0x1] }
 0x1b7   : > { %v1677_v32 = vmul.f32 %v4316_v62, %v1669_v1  ;;  %v1821_v4 = vshll.u32 %v3330_v49, 16  ;;  %v1662_v56 = vmul.f32 %v4333_v20, %v1654_v11 }
 0x1b8   : > { %v1820_v17 = vrot.slane %v1818_v7, 7  ;;  %v3331_v23 = vpack.c.bf16 %v1778_v8, %v1778_v8  ;;  %v1700_v13 = vadd.f32 0.2548296, %v1692_v15  ;;  %v1747_v2 = vmul.f32 %v3542_v41, %v1707_v59 }
 0x1b9   : > { %v1685_v25 = vadd.f32 -0.28449672, %v1677_v32  ;;  %v1670_v38 = vadd.f32 1.4214138, %v1662_v56  ;;  %v1741_v59 = vmul.f32 1.442695, %v1727_v34 }
 0x1ba   : > { %v1823_v21 = vor.u32 %v1821_v4, %v1820_v17  ;;  %v1824_v61 = vrot.slane %v1820_v17, 4  ;;  %v1826_v6 = vshrl.u32 %v3331_v23, 16  ;;  %v1755_v52 = vsub.f32 1.0, %v1747_v2 }
 0x1bb   : > { %v1708_v36 = vmul.f32 %v4298_v5, %v1700_v13  ;;  %v1693_v50 = vmul.f32 %v4316_v62, %v1685_v25  ;;  %v1829_v33 = vshll.u32 %v3331_v23, 16  ;;  %v1678_v18 = vmul.f32 %v4333_v20, %v1670_v38 }
 0x1bc   : > { %v1897_v45 = vsel %vm3667_vm4, %v1823_v21, %v3560_v10  ;;  %v1900_v41 = vsel %vm3673_vm5, %v1824_v61, %v1899_v57  ;;  %v1828_v49 = vrot.slane %v1826_v6, 7  ;;  %v1763_v42 = vmul.f32 %v1755_v52, %v4246_v40  ;;  %v4358_v7 = vpop.eup %3549  ;;  %v3513_v40 = vld [vmem:[%s4867_s4 + $0x60] sm:$0xff]  }
 0x1bd   : > { %1898 = vst [vmem:[#allocation2 + $0x8] sm:$0xf] %v1897_v45  ;;  %1901 = vst [vmem:[#allocation2 + $0xc] sm:$0x1] %v1900_v41  ;;  %v1748_v1 = vmul.f32 %v3546_v44, %v1708_v36  ;;  %v1701_v5 = vadd.f32 0.2548296, %v1693_v50  ;;  %v1728_v13 = vmul.f32 %v1720_v24, %v4331_v63  ;;  %3390 = vmatprep.subr.bf16.mxu1 %v3513_v40  ;;  %3555 = vpow2.f32 %v1741_v59 }
 0x1be   : > { %v1831_v8 = vor.u32 %v1829_v33, %v1828_v49  ;;  %v1832_v15 = vrot.slane %v1828_v49, 4  ;;  %v1771_v32 = vadd.f32 1.0, %v1763_v42  ;;  %v1686_v17 = vadd.f32 -0.28449672, %v1678_v18  ;;  %v3514_v44 = vld [vmem:[%s4867_s4 + $0x20] sm:$0xff]   ;;  %v3552_v56 = vpop.eup %3551 }
 0x1bf   : > { %v1756_v11 = vsub.f32 1.0, %v1748_v1  ;;  %v1709_v55 = vmul.f32 %v4316_v62, %v1701_v5  ;;  %v1647_v23 = vmul.f32 1.0614054, %v4358_v7  ;;  %v4380_v21 = vsel %vm1591_vm7, 1.0, %v3575_v51  ;;  %3391 = vmatpush3.bf16.msra.mxu1 %v3514_v44  ;;  %v1908_v18 = vld [vmem:[#allocation2 + $0x18] sm:$0xf] }
 0x1c0   : > { %v1903_v4 = vsel %vm3667_vm4, %v1831_v8, %v1902_v54  ;;  %v1906_v34 = vsel %vm3673_vm5, %v1832_v15, %v1905_v35  ;;  %v1779_v62 = vmul.f32 %v1771_v32, %v4241_v19  ;;  %v1694_v25 = vmul.f32 %v4333_v20, %v1686_v17  ;;  %v4399_v45 = vpop.eup %3553  ;;  %v1911_v8 = vld [vmem:[#allocation2 + $0x1c] sm:$0x1] }
 0x1c1   : > { %1907 = vst [vmem:[#allocation2 + $0x14] sm:$0x1] %v1906_v34  ;;  %1904 = vst [vmem:[#allocation2 + $0x10] sm:$0xf] %v1903_v4  ;;  %v1764_v57 = vmul.f32 %v1756_v11, %v4253_v27  ;;  %v1749_v2 = vmul.f32 %v3548_v47, %v1709_v55  ;;  %v1655_v61 = vadd.f32 -1.4531521, %v1647_v23 }
 0x1c2   : > { %v4383_v6 = vmul.f32 0.5, %v4302_v14  ;;  %v4388_v19 = vsel %vm1592_vm9, 1.0, %v3575_v51  ;;  %v3332_v27 = vpack.c.bf16 %v1779_v62, %v1779_v62  ;;  %v1702_v24 = vadd.f32 0.2548296, %v1694_v25  ;;  %v3515_v23 = vld [vmem:[%s4867_s4 + $0x58] sm:$0xff]  }
 0x1c3   : > { %v1772_v63 = vadd.f32 1.0, %v1764_v57  ;;  %v1757_v47 = vsub.f32 1.0, %v1749_v2  ;;  %v1663_v52 = vmul.f32 %v4358_v7, %v1655_v61  ;;  %v1743_v46 = vmul.f32 1.442695, %v1728_v13  ;;  %v1914_v2 = vld [vmem:[#allocation2 + $0x20] sm:$0xf]  ;;  %3392 = vmatprep.subr.bf16.mxu1 %v3515_v23 }
 0x1c4   : > { %v4391_v36 = vld [vmem:[#allocation2 + $0xc] sm:$0x1]  ;;  %v2073_v50 = vld [vmem:[#allocation2 + $0x8] sm:$0xe]  ;;  %v2439_v14 = vsel %vm3872_vm11, %v4337_v31, %v4339_v37  ;;  %v1834_v60 = vshrl.u32 %v3332_v27, 16  ;;  %v1837_v51 = vshll.u32 %v3332_v27, 16  ;;  %v1710_v41 = vmul.f32 %v4333_v20, %v1702_v24 }
 0x1c5   : > { %v1780_v38 = vmul.f32 %v1772_v63, %v4248_v53  ;;  %v1765_v10 = vmul.f32 %v1757_v47, %v4278_v58  ;;  %v1671_v49 = vadd.f32 1.4214138, %v1663_v52  ;;  %v3235_v33 = vrot.slane %v2073_v50, 9  ;;  %v4407_v59 = vld [vmem:[#allocation2 + $0xc] sm:$0x1] }
 0x1c6   : > { %v2102_v54 = vrot.slane %v4391_v36, 5  ;;  %v1836_v35 = vrot.slane %v1834_v60, 7  ;;  %v1648_v5 = vmul.f32 1.0614054, %v4399_v45  ;;  %v1750_v15 = vmul.f32 %v3552_v56, %v1710_v41  ;;  %v2256_v17 = vld [vmem:[#allocation2 + $0x8] sm:$0xe] }
 0x1c7   : > { %v3333_v42 = vpack.c.bf16 %v1780_v38, %v1780_v38  ;;  %v1773_v1 = vadd.f32 1.0, %v1765_v10  ;;  %v1679_v53 = vmul.f32 %v4358_v7, %v1671_v49  ;;  %3557 = vpow2.f32 %v1743_v46  ;;  %v1917_v56 = vld [vmem:[#allocation2 + $0x24] sm:$0x1]  ;;  %v4426_v52 = vld [vmem:[#allocation2 + $0x8] sm:$0xf] }
 0x1c8   : > { %v2103_v58 = vsel %vm3755_vm8, %v3235_v33, %v2102_v54  ;;  %v1839_v20 = vor.u32 %v1837_v51, %v1836_v35  ;;  %v1840_v32 = vrot.slane %v1836_v35, 4  ;;  %v1758_v44 = vsub.f32 1.0, %v1750_v15  ;;  %v4424_v24 = vld [vmem:[#allocation2 + $0x14] sm:$0x1]  ;;  %v2257_v60 = vld [vmem:[#allocation2 + $0x10] sm:$0xe] }
 0x1c9   : > { %v1842_v11 = vshrl.u32 %v3333_v42, 16  ;;  %v1845_v55 = vshll.u32 %v3333_v42, 16  ;;  %v1781_v40 = vmul.f32 %v1773_v1, %v4257_v0  ;;  %v1687_v4 = vadd.f32 -0.28449672, %v1679_v53  ;;  %v3516_v0 = vld [vmem:[%s4867_s4 + $0x18] sm:$0xff]  }
 0x1ca   : > { %v1656_v34 = vadd.f32 -1.4531521, %v1648_v5  ;;  %v1909_v13 = vsel %vm3667_vm4, %v1839_v20, %v1908_v18  ;;  %v1912_v62 = vsel %vm3673_vm5, %v1840_v32, %v1911_v8  ;;  %v3266_v25 = vcombine.low %v4210_v9, %v2103_v58  ;;  %3393 = vmatpush3.bf16.msra.mxu1 %v3516_v0  ;;  %v3556_v8 = vpop.eup %3555  ;;  %v1920_v15 = vld [vmem:[#allocation2 + $0x28] sm:$0xf]  ;;  %v1923_v53 = vld [vmem:[#allocation2 + $0x2c] sm:$0x1] }
 0x1cb   : > { %v1844_v57 = vrot.slane %v1842_v11, 7  ;;  %1913 = vst [vmem:[#allocation2 + $0x1c] sm:$0x1] %v1912_v62  ;;  %1910 = vst [vmem:[#allocation2 + $0x18] sm:$0xf] %v1909_v13  ;;  %v3334_v61 = vpack.c.bf16 %v1781_v40, %v1781_v40  ;;  %v1766_v27 = vmul.f32 %v1758_v44, %v4308_v16  ;;  %v1695_v63 = vmul.f32 %v4358_v7, %v1687_v4 }
 0x1cc   : > { %v1664_v47 = vmul.f32 %v4399_v45, %v1656_v34  ;;  %2548 = vrot.lane.b32.xlu1 %v3266_v25, %s3572_s16  ;;  %v2154_v50 = vshll.u32 %v4407_v59, 16  ;;  %v3242_v51 = vrot.slane %v2256_v17, 9  ;;  %v2282_v35 = vrot.slane %v4407_v59, 5  ;;  %v2129_v4 = vld [vmem:[#allocation2 + $0x10] sm:$0xf] }
 0x1cd   : > { %v1847_v9 = vor.u32 %v1845_v55, %v1844_v57  ;;  %v1848_v46 = vrot.slane %v1844_v57, 4  ;;  %v1850_v38 = vshrl.u32 %v3334_v61, 16  ;;  %v1853_v16 = vshll.u32 %v3334_v61, 16  ;;  %v4449_v25 = vld [vmem:[#allocation2 + $0x8] sm:$0xf] }
 0x1ce   : > { %v1774_v10 = vadd.f32 1.0, %v1766_v27  ;;  %v1703_v41 = vadd.f32 0.2548296, %v1695_v63  ;;  %v1672_v54 = vadd.f32 1.4214138, %v1664_v47  ;;  %v3243_v18 = vrot.slane %v2257_v60, 9 }
 0x1cf   : > { %v1915_v49 = vsel %vm3667_vm4, %v1847_v9, %v1914_v2  ;;  %v1918_v33 = vsel %vm3673_vm5, %v1848_v46, %v1917_v56  ;;  %v1852_v42 = vrot.slane %v1850_v38, 7  ;;  %v2283_v20 = vsel %vm3755_vm8, %v3242_v51, %v2282_v35  ;;  %v1926_v9 = vld [vmem:[#allocation2 + $0x30] sm:$0xf]  ;;  %v1929_v38 = vld [vmem:[#allocation2 + $0x34] sm:$0x1] }
 0x1d0   : > { %1919 = vst [vmem:[#allocation2 + $0x24] sm:$0x1] %v1918_v33  ;;  %1916 = vst [vmem:[#allocation2 + $0x20] sm:$0xf] %v1915_v49  ;;  %v1782_v1 = vmul.f32 %v1774_v10, %v4285_v12  ;;  %v1711_v5 = vmul.f32 %v4358_v7, %v1703_v41  ;;  %v1680_v58 = vmul.f32 %v4399_v45, %v1672_v54  ;;  %v2286_v32 = vrot.slane %v4424_v24, 5 }
 0x1d1   : > { %v2145_v11 = vshrl.u32 %v4426_v52, 16  ;;  %v1855_v55 = vor.u32 %v1853_v16, %v1852_v42  ;;  %v1856_v17 = vrot.slane %v1852_v42, 4  ;;  %v2148_v23 = vshll.u32 %v4426_v52, 16 }
 0x1d2   : > { %v3335_v40 = vpack.c.bf16 %v1782_v1, %v1782_v1  ;;  %v1751_v44 = vmul.f32 %v3556_v8, %v1711_v5  ;;  %v1688_v12 = vadd.f32 -0.28449672, %v1680_v58  ;;  %v2287_v7 = vsel %vm3755_vm8, %v3243_v18, %v2286_v32  ;;  %v2312_v1 = vld [vmem:[#allocation2 + $0x10] sm:$0xf] }
 0x1d3   : > { %v2147_v34 = vrot.slane %v2145_v11, 4  ;;  %v1921_v13 = vsel %vm3667_vm4, %v1855_v55, %v1920_v15  ;;  %v1924_v62 = vsel %vm3673_vm5, %v1856_v17, %v1923_v53  ;;  %v3278_v27 = vcombine.low %v2283_v20, %v2287_v7  ;;  %v3518_v15 = vld [vmem:[%s4867_s4 + $0x50] sm:$0xff]  }
 0x1d4   : > { %v1858_v57 = vshrl.u32 %v3335_v40, 16  ;;  %v1861_v2 = vshll.u32 %v3335_v40, 16  ;;  %v3558_v0 = vpop.eup %3557  ;;  %1925 = vst [vmem:[#allocation2 + $0x2c] sm:$0x1] %v1924_v62  ;;  %1922 = vst [vmem:[#allocation2 + $0x28] sm:$0xf] %v1921_v13  ;;  %v1696_v61 = vmul.f32 %v4399_v45, %v1688_v12  ;;  %v3270_v51 = vcombine.low %v4426_v52, %v2129_v4  ;;  %3394 = vmatprep.subr.bf16.mxu1 %v3518_v15 }
 0x1d5   : > { %v1759_v56 = vsub.f32 1.0, %v1751_v44  ;;  %v2150_v63 = vrot.slane %v2148_v23, 5  ;;  %v2159_v46 = vshrl.u32 %v2129_v4, 16  ;;  %v2162_v60 = vshll.u32 %v2129_v4, 16  ;;  %2608 = vrot.lane.b32.xlu0 %v3278_v27, %s3574_s25  ;;  %v4472_v44 = vld [vmem:[#allocation2 + $0x14] sm:$0x1] }
 0x1d6   : > { %v1860_v47 = vrot.slane %v1858_v57, 7  ;;  %v1704_v10 = vadd.f32 0.2548296, %v1696_v61  ;;  %v1975_v49 = vshrl.u32 %v4449_v25, 16  ;;  %2576 = vrot.lane.b32.xlu1 %v3270_v51, %s3573_s22  ;;  %v2168_v52 = vshll.u32 %v4424_v24, 16 }
 0x1d7   : > { %v1767_v16 = vmul.f32 %v1759_v56, %v4380_v21  ;;  %v2151_v41 = vor.u32 %v2150_v63, %v2147_v34  ;;  %v2161_v35 = vrot.slane %v2159_v46, 4  ;;  %v2164_v42 = vrot.slane %v2162_v60, 5  ;;  %v2313_v21 = vld [vmem:[#allocation2 + $0x18] sm:$0xf]  ;;  %v2440_v23 = vld [vmem:[#allocation2 + $0x10] sm:$0xe] }
 0x1d8   : > { %v1863_v33 = vor.u32 %v1861_v2, %v1860_v47  ;;  %v1864_v54 = vrot.slane %v1860_v47, 4  ;;  %v1712_v18 = vmul.f32 %v4399_v45, %v1704_v10  ;;  %v1977_v8 = vrot.slane %v1975_v49, 4  ;;  %v3519_v45 = vld [vmem:[%s4867_s4 + $0x10] sm:$0xff]   ;;  %v2441_v27 = vld [vmem:[#allocation2 + $0x18] sm:$0xe]  ;;  %v3520_v63 = vld [vmem:[%s4867_s4 + $0x48] sm:$0xff]  }
 0x1d9   : > { %v1775_v5 = vadd.f32 1.0, %v1767_v16  ;;  %v2165_v20 = vor.u32 %v2164_v42, %v2161_v35  ;;  %v1978_v32 = vshll.u32 %v4449_v25, 16  ;;  %v1984_v17 = vshll.u32 %v4391_v36, 16  ;;  %3395 = vmatpush3.bf16.msra.mxu1 %v3519_v45  ;;  %v4489_v51 = vld [vmem:[#allocation2 + $0x1c] sm:$0x1] }
 0x1da   : > { %v1927_v53 = vsel %vm3667_vm4, %v1863_v33, %v1926_v9  ;;  %v1930_v58 = vsel %vm3673_vm5, %v1864_v54, %v1929_v38  ;;  %v1752_v55 = vmul.f32 %v3558_v0, %v1712_v18  ;;  %v2329_v40 = vshrl.u32 %v2312_v1, 16  ;;  %v3521_v38 = vld [vmem:[%s4867_s4 + $0x8] sm:$0xff]   ;;  %v1932_v10 = vld [vmem:[#allocation2 + $0x38] sm:$0xf]  ;;  %3396 = vmatprep.subr.bf16.mxu1 %v3520_v63  ;;  %v2259_v18 = vld [vmem:[#allocation2 + $0x20] sm:$0xe] }
 0x1db   : > { %1928 = vst [vmem:[#allocation2 + $0x30] sm:$0xf] %v1927_v53  ;;  %1931 = vst [vmem:[#allocation2 + $0x34] sm:$0x1] %v1930_v58  ;;  %v1783_v11 = vmul.f32 %v1775_v5, %v4325_v3  ;;  %v4474_v12 = vrot.slane %v2151_v41, 4  ;;  %v1980_v7 = vrot.slane %v1978_v32, 5  ;;  %v3282_v34 = vcombine.low %v2312_v1, %v2313_v21 }
 0x1dc   : > { %v2332_v4 = vshll.u32 %v2312_v1, 16  ;;  %v1760_v62 = vsub.f32 1.0, %v1752_v55  ;;  %v4476_v57 = vrot.slane %v2165_v20, 4  ;;  %v1986_v2 = vrot.slane %v1984_v17, 5  ;;  %v4478_v3 = vld [vmem:[#allocation2 + $0x1c] sm:$0x1] }
 0x1dd   : > { %v3336_v13 = vpack.c.bf16 %v1783_v11, %v1783_v11  ;;  %v1981_v0 = vor.u32 %v1980_v7, %v1977_v8  ;;  %v4480_v36 = vrot.slane %v2329_v40, 4  ;;  %2636 = vrot.lane.b32.xlu0 %v3282_v34, %s3572_s16  ;;  %v2343_v56 = vshrl.u32 %v2313_v21, 16  ;;  %v1935_v41 = vld [vmem:[#allocation2 + $0x3c] sm:$0x1]  ;;  %v2258_v35 = vld [vmem:[#allocation2 + $0x18] sm:$0xe]  ;;  %3397 = vmatpush3.bf16.msra.mxu1 %v3521_v38 }
 0x1de   : > { %v2346_v61 = vshll.u32 %v2313_v21, 16  ;;  %v1768_v9 = vmul.f32 %v1760_v62, %v4388_v19  ;;  %v4487_v46 = vrot.slane %v2332_v4, 5  ;;  %v3250_v60 = vrot.slane %v2440_v23, 9  ;;  %v4505_v58 = vld [vmem:[#allocation2 + $0x14] sm:$0x1]  ;;  %v3522_v7 = vld [vmem:[%s4867_s4 + $0x40] sm:$0xff]  }
 0x1df   : > { %v1866_v47 = vshrl.u32 %v3336_v13, 16  ;;  %v1869_v16 = vshll.u32 %v3336_v13, 16  ;;  %v1982_v49 = vrot.slane %v1981_v0, 4  ;;  %v4494_v33 = vrot.slane %v2343_v56, 4  ;;  %v2074_v20 = vld [vmem:[#allocation2 + $0x10] sm:$0xe]  ;;  %3398 = vmatprep.subr.bf16.mxu1 %v3522_v7 }
 0x1e0   : > { %v2466_v54 = vrot.slane %v4472_v44, 5  ;;  %v1776_v42 = vadd.f32 1.0, %v1768_v9  ;;  %v3251_v1 = vrot.slane %v2441_v27, 9  ;;  %v2470_v5 = vrot.slane %v4478_v3, 5  ;;  %v4513_v17 = vld [vmem:[#allocation2 + $0x24] sm:$0x1] }
 0x1e1   : > { %v1868_v19 = vrot.slane %v1866_v47, 7  ;;  %v1987_v8 = vsel %vm3872_vm11, %v1982_v49, %v1986_v2  ;;  %v4500_v21 = vrot.slane %v2346_v61, 5  ;;  %v2182_v53 = vshll.u32 %v4489_v51, 16  ;;  %v4515_v40 = vld [vmem:[#allocation2 + $0x1c] sm:$0x1]  ;;  %3399 = vmatpush3.bf16.msra.mxu1 %v3523_v22 }
 0x1e2   : > { %v2467_v15 = vsel %vm3755_vm8, %v3250_v60, %v2466_v54  ;;  %v1784_v11 = vmul.f32 %v1776_v42, %v4383_v6  ;;  %v3262_v55 = vcombine.low %v1973_v28, %v1987_v8  ;;  %v2471_v4 = vsel %vm3755_vm8, %v3251_v1, %v2470_v5  ;;  %v2075_v13 = vld [vmem:[#allocation2 + $0x18] sm:$0xe]  ;;  %v2131_v47 = vld [vmem:[#allocation2 + $0x20] sm:$0xf]  ;;  %v1941_v42 = vld [vmem:[#allocation2 + $0x44] sm:$0x1] }
 0x1e3   : > { %v1871_v32 = vor.u32 %v1869_v16, %v1868_v19  ;;  %v1872_v45 = vrot.slane %v1868_v19, 4  ;;  %v3244_v34 = vrot.slane %v2258_v35, 9  ;;  %v2290_v6 = vrot.slane %v4489_v51, 5  ;;  %v2130_v0 = vld [vmem:[#allocation2 + $0x18] sm:$0xf] }
 0x1e4   : > { %v3245_v23 = vrot.slane %v2259_v18, 9  ;;  %v3337_v62 = vpack.c.bf16 %v1784_v11, %v1784_v11  ;;  %2528 = vrot.lane.b32.xlu1 %v3262_v55, %s3574_s25  ;;  %v3290_v2 = vcombine.low %v2467_v15, %v2471_v4  ;;  %v2294_v61 = vrot.slane %v4513_v17, 5  ;;  %v2314_v8 = vld [vmem:[#allocation2 + $0x20] sm:$0xf]  ;;  %v2315_v11 = vld [vmem:[#allocation2 + $0x28] sm:$0xf] }
 0x1e5   : > { %v1933_v30 = vsel %vm3667_vm4, %v1871_v32, %v1932_v10  ;;  %v1936_v28 = vsel %vm3673_vm5, %v1872_v45, %v1935_v41  ;;  %v2291_v56 = vsel %vm3755_vm8, %v3244_v34, %v2290_v6  ;;  %v3236_v27 = vrot.slane %v2074_v20, 9  ;;  %v1938_v10 = vld [vmem:[#allocation2 + $0x40] sm:$0xf]  ;;  %v4545_v6 = vld [vmem:[#allocation2 + $0x24] sm:$0x1] }
 0x1e6   : > { %1934 = vst [vmem:[#allocation2 + $0x38] sm:$0xf] %v1933_v30  ;;  %1937 = vst [vmem:[#allocation2 + $0x3c] sm:$0x1] %v1936_v28  ;;  %v2106_v63 = vrot.slane %v4505_v58, 5  ;;  %v1874_v9 = vshrl.u32 %v3337_v62, 16  ;;  %3446 = vmatprep.mubr.msk.bf16.mxu0 %vm1209_vm12, %v3290_v2  ;;  %v2295_v41 = vsel %vm3755_vm8, %v3245_v23, %v2294_v61  ;;  %v3283_v61 = vcombine.low %v2314_v8, %v2315_v11 }
 0x1e7   : > { %v1877_v60 = vshll.u32 %v3337_v62, 16  ;;  %v3237_v38 = vrot.slane %v2075_v13, 9  ;;  %v2110_v16 = vrot.slane %v4515_v40, 5  ;;  %v2173_v54 = vshrl.u32 %v2130_v0, 16  ;;  %v4547_v23 = vld [vmem:[#allocation2 + $0x10] sm:$0xf] }
 0x1e8   : > { %v2107_v49 = vsel %vm3755_vm8, %v3236_v27, %v2106_v63  ;;  %v2176_v35 = vshll.u32 %v2130_v0, 16  ;;  %v1876_v19 = vrot.slane %v1874_v9, 7  ;;  %v3279_v1 = vcombine.low %v2291_v56, %v2295_v41  ;;  %v2442_v62 = vld [vmem:[#allocation2 + $0x20] sm:$0xe]  ;;  %v4554_v63 = vld [vmem:[#allocation2 + $0x2c] sm:$0x1] }
 0x1e9   : > { %v2111_v5 = vsel %vm3755_vm8, %v3237_v38, %v2110_v16  ;;  %v2187_v18 = vshrl.u32 %v2131_v47, 16  ;;  %v2175_v20 = vrot.slane %v2173_v54, 4  ;;  %v2190_v45 = vshll.u32 %v2131_v47, 16  ;;  %v2443_v9 = vld [vmem:[#allocation2 + $0x28] sm:$0xe] }
 0x1ea   : > { %v3267_v15 = vcombine.low %v2107_v49, %v2111_v5  ;;  %v2178_v32 = vrot.slane %v2176_v35, 5  ;;  %v1879_v55 = vor.u32 %v1877_v60, %v1876_v19  ;;  %v1880_v7 = vrot.slane %v1876_v19, 4  ;;  %2610 = vrot.lane.b32.xlu0 %v3279_v1, %s3574_s25  ;;  %v4564_v54 = vld [vmem:[#allocation2 + $0x18] sm:$0xf] }
 0x1eb   : > { %v2196_v4 = vshll.u32 %v4513_v17, 16  ;;  %v2189_v34 = vrot.slane %v2187_v18, 4  ;;  %v2192_v22 = vrot.slane %v2190_v45, 5  ;;  %v2357_v30 = vshrl.u32 %v2314_v8, 16 }
 0x1ec   : > { %2550 = vrot.lane.b32.xlu1 %v3267_v15, %s3572_s16  ;;  %v2179_v13 = vor.u32 %v2178_v32, %v2175_v20  ;;  %v2360_v28 = vshll.u32 %v2314_v8, 16  ;;  %v1939_v2 = vsel %vm3667_vm4, %v1879_v55, %v1938_v10  ;;  %v1942_v56 = vsel %vm3673_vm5, %v1880_v7, %v1941_v42 }
 0x1ed   : > { %v2371_v27 = vshrl.u32 %v2315_v11, 16  ;;  %1940 = vst [vmem:[#allocation2 + $0x40] sm:$0xf] %v1939_v2  ;;  %1943 = vst [vmem:[#allocation2 + $0x44] sm:$0x1] %v1942_v56  ;;  %v2193_v38 = vor.u32 %v2192_v22, %v2189_v34  ;;  %v3271_v16 = vcombine.low %v2130_v0, %v2131_v47  ;;  %v4558_v41 = vrot.slane %v2357_v30, 4 }
 0x1ee   : > { %v4556_v60 = vrot.slane %v2179_v13, 4  ;;  %v4560_v49 = vrot.slane %v2360_v28, 5  ;;  %2638 = vrot.lane.b32.xlu0 %v3283_v61, %s3572_s16  ;;  %v2374_v29 = vshll.u32 %v2315_v11, 16  ;;  %v3252_v39 = vrot.slane %v2442_v62, 9  ;;  %v4584_v34 = vld [vmem:[#allocation2 + $0x2c] sm:$0x1] }
 0x1ef   : > { %v2474_v10 = vrot.slane %v4545_v6, 5  ;;  %v4567_v35 = vrot.slane %v2371_v27, 4  ;;  %v3253_v19 = vrot.slane %v2443_v9, 9  ;;  %v2478_v42 = vrot.slane %v4554_v63, 5  ;;  %v4589_v28 = vld [vmem:[#allocation2 + $0x34] sm:$0x1] }
 0x1f0   : > { %2578 = vrot.lane.b32.xlu1 %v3271_v16, %s3573_s22  ;;  %v1989_v0 = vshrl.u32 %v4547_v23, 16  ;;  %v4571_v47 = vrot.slane %v2193_v38, 4  ;;  %v1992_v5 = vshll.u32 %v4547_v23, 16  ;;  %v1998_v18 = vshll.u32 %v4505_v58, 16  ;;  %v2260_v61 = vld [vmem:[#allocation2 + $0x28] sm:$0xe] }
 0x1f1   : > { %v2475_v1 = vsel %vm3755_vm8, %v3252_v39, %v2474_v10  ;;  %v2479_v8 = vsel %vm3755_vm8, %v3253_v19, %v2478_v42  ;;  %v2003_v20 = vshrl.u32 %v4564_v54, 16  ;;  %v2006_v32 = vshll.u32 %v4564_v54, 16  ;;  %v2261_v27 = vld [vmem:[#allocation2 + $0x30] sm:$0xe]  ;;  %v4598_v42 = vld [vmem:[#allocation2 + $0x2c] sm:$0x1] }
 0x1f2   : > { %v1991_v15 = vrot.slane %v1989_v0, 4  ;;  %v4581_v45 = vrot.slane %v2374_v29, 5  ;;  %v3291_v11 = vcombine.low %v2475_v1, %v2479_v8  ;;  %v1994_v55 = vrot.slane %v1992_v5, 5  ;;  %v2077_v0 = vld [vmem:[#allocation2 + $0x28] sm:$0xe] }
 0x1f3   : > { %v2012_v7 = vshll.u32 %v4515_v40, 16  ;;  %v2005_v13 = vrot.slane %v2003_v20, 4  ;;  %v2008_v22 = vrot.slane %v2006_v32, 5  ;;  %v2335_v58 = vor.u32 %v4487_v46, %v4480_v36  ;;  %v4595_v36 = vld [vmem:[#allocation2 + $0x24] sm:$0x1] }
 0x1f4   : > { %v2338_v30 = vshll.u32 %v4472_v44, 16  ;;  %3447 = vmatmul.mubr.msk.bf16.vlgmr.msra.gmra.mxu0 %vm1209_vm12, %v3291_v11  ;;  %v1995_v62 = vor.u32 %v1994_v55, %v1991_v15  ;;  %v2000_v2 = vrot.slane %v1998_v18, 5  ;;  %v2349_v56 = vor.u32 %v4500_v21, %v4494_v33  ;;  %v2076_v44 = vld [vmem:[#allocation2 + $0x20] sm:$0xe]  ;;  %v4603_v5 = vld [vmem:[#allocation2 + $0x34] sm:$0x1] }
 0x1f5   : > { %v2352_v40 = vshll.u32 %v4478_v3, 16  ;;  %v2009_v9 = vor.u32 %v2008_v22, %v2005_v13  ;;  %v2014_v38 = vrot.slane %v2012_v7, 5  ;;  %v2336_v16 = vrot.slane %v2335_v58, 4  ;;  %v2444_v32 = vld [vmem:[#allocation2 + $0x30] sm:$0xe] }
 0x1f6   : > { %v2340_v29 = vrot.slane %v2338_v30, 5  ;;  %v1996_v46 = vrot.slane %v1995_v62, 4  ;;  %v2350_v39 = vrot.slane %v2349_v56, 4  ;;  %v2210_v19 = vshll.u32 %v4584_v34, 16  ;;  %v2132_v11 = vld [vmem:[#allocation2 + $0x28] sm:$0xf] }
 0x1f7   : > { %v2354_v10 = vrot.slane %v2352_v40, 5  ;;  %v2010_v33 = vrot.slane %v2009_v9, 4  ;;  %v3246_v21 = vrot.slane %v2260_v61, 9  ;;  %v2298_v1 = vrot.slane %v4584_v34, 5  ;;  %v4614_v58 = vld [vmem:[#allocation2 + $0x3c] sm:$0x1] }
 0x1f8   : > { %v2341_v3 = vsel %vm3872_vm11, %v2336_v16, %v2340_v29  ;;  %v2001_v18 = vsel %vm3872_vm11, %v1996_v46, %v2000_v2  ;;  %v3247_v15 = vrot.slane %v2261_v27, 9  ;;  %v2302_v20 = vrot.slane %v4589_v28, 5  ;;  %v2445_v30 = vld [vmem:[#allocation2 + $0x38] sm:$0xe]  ;;  %v2133_v61 = vld [vmem:[#allocation2 + $0x30] sm:$0xf] }
 0x1f9   : > { %v2355_v8 = vsel %vm3872_vm11, %v2350_v39, %v2354_v10  ;;  %v2015_v55 = vsel %vm3872_vm11, %v2010_v33, %v2014_v38  ;;  %v2299_v13 = vsel %vm3755_vm8, %v3246_v21, %v2298_v1  ;;  %v3238_v22 = vrot.slane %v2076_v44, 9  ;;  %v2316_v10 = vld [vmem:[#allocation2 + $0x30] sm:$0xf]  ;;  %v4630_v1 = vld [vmem:[#allocation2 + $0x44] sm:$0x1] }
 0x1fa   : > { %v3286_v7 = vcombine.low %v2341_v3, %v2355_v8  ;;  %v3263_v62 = vcombine.low %v2001_v18, %v2015_v55  ;;  %v2303_v2 = vsel %vm3755_vm8, %v3247_v15, %v2302_v20  ;;  %v2114_v56 = vrot.slane %v4595_v36, 5  ;;  %v2446_v18 = vld [vmem:[#allocation2 + $0x40] sm:$0xe]  ;;  %v2317_v55 = vld [vmem:[#allocation2 + $0x38] sm:$0xf] }
 0x1fb   : > { %v3239_v40 = vrot.slane %v2077_v0, 9  ;;  %v3280_v27 = vcombine.low %v2299_v13, %v2303_v2  ;;  %v2118_v9 = vrot.slane %v4598_v42, 5  ;;  %v3254_v38 = vrot.slane %v2444_v32, 9 }
 0x1fc   : > { %2656 = vrot.lane.b32.xlu0 %v3286_v7, %s3573_s22  ;;  %v2482_v16 = vrot.slane %v4603_v5, 5  ;;  %2530 = vrot.lane.b32.xlu1 %v3263_v62, %s3574_s25  ;;  %v2115_v29 = vsel %vm3755_vm8, %v3238_v22, %v2114_v56  ;;  %v3255_v44 = vrot.slane %v2445_v30, 9  ;;  %v2486_v46 = vrot.slane %v4614_v58, 5 }
 0x1fd   : > { %v2201_v39 = vshrl.u32 %v2132_v11, 16  ;;  %v2119_v0 = vsel %vm3755_vm8, %v3239_v40, %v2118_v9  ;;  %v2204_v3 = vshll.u32 %v2132_v11, 16  ;;  %v2215_v21 = vshrl.u32 %v2133_v61, 16 }
 0x1fe   : > { %v2483_v33 = vsel %vm3755_vm8, %v3254_v38, %v2482_v16  ;;  %v3268_v8 = vcombine.low %v2115_v29, %v2119_v0  ;;  %v2487_v15 = vsel %vm3755_vm8, %v3255_v44, %v2486_v46  ;;  %v2218_v32 = vshll.u32 %v2133_v61, 16  ;;  %v4639_v44 = vld [vmem:[#allocation2 + $0x20] sm:$0xf] }
 0x1ff   : > { %v2203_v20 = vrot.slane %v2201_v39, 4  ;;  %v2224_v7 = vshll.u32 %v4589_v28, 16  ;;  %v3292_v13 = vcombine.low %v2483_v33, %v2487_v15  ;;  %v2206_v22 = vrot.slane %v2204_v3, 5  ;;  %v4645_v33 = vld [vmem:[#allocation2 + $0x28] sm:$0xf] }
 0x200   : > { %2612 = vrot.lane.b32.xlu0 %v3280_v27, %s3574_s25  ;;  %v2217_v30 = vrot.slane %v2215_v21, 4  ;;  %2552 = vrot.lane.b32.xlu1 %v3268_v8, %s3572_s16  ;;  %v2220_v62 = vrot.slane %v2218_v32, 5  ;;  %v3256_v2 = vrot.slane %v2446_v18, 9  ;;  %v2490_v56 = vrot.slane %v4630_v1, 5 }
 0x201   : > { %v2385_v40 = vshrl.u32 %v2316_v10, 16  ;;  %3450 = vmatprep.mubr.msk.bf16.mxu0 %vm1209_vm12, %v3292_v13  ;;  %v2207_v9 = vor.u32 %v2206_v22, %v2203_v20  ;;  %v2388_v38 = vshll.u32 %v2316_v10, 16  ;;  %v3284_v16 = vcombine.low %v2316_v10, %v2317_v55 }
 0x202   : > { %v2399_v29 = vshrl.u32 %v2317_v55, 16  ;;  %v2221_v46 = vor.u32 %v2220_v62, %v2217_v30  ;;  %v3272_v27 = vcombine.low %v2132_v11, %v2133_v61  ;;  %v2491_v39 = vsel %vm3755_vm8, %v3256_v2, %v2490_v56  ;;  %v4668_v2 = vld [vmem:[#allocation2 + $0x3c] sm:$0x1] }
 0x203   : > { %v4643_v0 = vrot.slane %v2385_v40, 4  ;;  %v4647_v3 = vrot.slane %v2207_v9, 4  ;;  %v3293_v21 = vcombine.low %v2491_v39, %v4262_v48  ;;  %v4650_v18 = vrot.slane %v2388_v38, 5  ;;  %v2263_v39 = vld [vmem:[#allocation2 + $0x40] sm:$0xe] }
 0x204   : > { %2640 = vrot.lane.b32.xlu0 %v3284_v16, %s3572_s16  ;;  %v2402_v10 = vshll.u32 %v2317_v55, 16  ;;  %v4653_v8 = vrot.slane %v2221_v46, 4  ;;  %2580 = vrot.lane.b32.xlu1 %v3272_v27, %s3573_s22  ;;  %v4656_v11 = vrot.slane %v2399_v29, 4  ;;  %v2017_v61 = vshrl.u32 %v4639_v44, 16  ;;  %v4670_v16 = vld [vmem:[#allocation2 + $0x34] sm:$0x1] }
 0x205   : > { %v2020_v15 = vshll.u32 %v4639_v44, 16  ;;  %3451 = vmatmul.mubr.msk.bf16.gmra.mxu0 %vm1209_vm12, %v3293_v21  ;;  %v2026_v20 = vshll.u32 %v4595_v36, 16  ;;  %v2031_v48 = vshrl.u32 %v4645_v33, 16  ;;  %v2034_v32 = vshll.u32 %v4645_v33, 16  ;;  %v2262_v36 = vld [vmem:[#allocation2 + $0x38] sm:$0xe] }
 0x206   : > { %v2040_v55 = vshll.u32 %v4598_v42, 16  ;;  %v2019_v13 = vrot.slane %v2017_v61, 4  ;;  %v2363_v30 = vor.u32 %v4560_v49, %v4558_v41  ;;  %v2366_v62 = vshll.u32 %v4545_v6, 16  ;;  %v2078_v21 = vld [vmem:[#allocation2 + $0x30] sm:$0xe] }
 0x207   : > { %v2022_v22 = vrot.slane %v2020_v15, 5  ;;  %v2404_v56 = vrot.slane %v2402_v10, 5  ;;  %v2028_v40 = vrot.slane %v2026_v20, 5  ;;  %v2033_v9 = vrot.slane %v2031_v48, 4  ;;  %v4675_v61 = vld [vmem:[#allocation2 + $0x44] sm:$0x1] }
 0x208   : > { %v2036_v38 = vrot.slane %v2034_v32, 5  ;;  %v2364_v46 = vrot.slane %v2363_v30, 4  ;;  %v2368_v27 = vrot.slane %v2366_v62, 5  ;;  %v2377_v42 = vor.u32 %v4581_v45, %v4567_v35  ;;  %v1959_v62 = vld [vmem:[#allocation2 + $0x3c] sm:$0x1] }
 0x209   : > { %v2023_v29 = vor.u32 %v2022_v22, %v2019_v13  ;;  %v2042_v49 = vrot.slane %v2040_v55, 5  ;;  %v2380_v6 = vshll.u32 %v4554_v63, 16  ;;  %v2238_v10 = vshll.u32 %v4668_v2, 16  ;;  %v2079_v13 = vld [vmem:[#allocation2 + $0x38] sm:$0xe] }
 0x20a   : > { %v2037_v41 = vor.u32 %v2036_v38, %v2033_v9  ;;  %v2369_v20 = vsel %vm3872_vm11, %v2364_v46, %v2368_v27  ;;  %v2378_v48 = vrot.slane %v2377_v42, 4  ;;  %v3248_v32 = vrot.slane %v2262_v36, 9  ;;  %v4691_v42 = vld [vmem:[#allocation2 + $0x30] sm:$0xf] }
 0x20b   : > { %v2024_v15 = vrot.slane %v2023_v29, 4  ;;  %v2382_v30 = vrot.slane %v2380_v6, 5  ;;  %v2306_v35 = vrot.slane %v4668_v2, 5  ;;  %v3249_v45 = vrot.slane %v2263_v39, 9 }
 0x20c   : > { %v2038_v22 = vrot.slane %v2037_v41, 4  ;;  %v2310_v63 = vrot.slane %v4675_v61, 5  ;;  %v3240_v9 = vrot.slane %v2078_v21, 9  ;;  %v2122_v38 = vrot.slane %v4670_v16, 5 }
 0x20d   : > { %v2029_v55 = vsel %vm3872_vm11, %v2024_v15, %v2028_v40  ;;  %v2383_v36 = vsel %vm3872_vm11, %v2378_v48, %v2382_v30  ;;  %v2307_v46 = vsel %vm3755_vm8, %v3248_v32, %v2306_v35  ;;  %v3241_v27 = vrot.slane %v2079_v13, 9  ;;  %v4704_v13 = vld [vmem:[#allocation2 + $0x38] sm:$0xf] }
 0x20e   : > { %v2043_v29 = vsel %vm3872_vm11, %v2038_v22, %v2042_v49  ;;  %v3287_v40 = vcombine.low %v2369_v20, %v2383_v36  ;;  %v2311_v41 = vsel %vm3755_vm8, %v3249_v45, %v2310_v63  ;;  %v2123_v21 = vsel %vm3755_vm8, %v3240_v9, %v2122_v38  ;;  %v2318_v45 = vld [vmem:[#allocation2 + $0x40] sm:$0xf] }
 0x20f   : > { %v3264_v39 = vcombine.low %v2029_v55, %v2043_v29  ;;  %v3281_v6 = vcombine.low %v2307_v46, %v2311_v41  ;;  %v2126_v15 = vrot.slane %v1959_v62, 5  ;;  %v2391_v49 = vor.u32 %v4650_v18, %v4643_v0 }
 0x210   : > { %v2394_v48 = vshll.u32 %v4603_v5, 16  ;;  %2658 = vrot.lane.b32.xlu0 %v3287_v40, %s3573_s22  ;;  %v2405_v32 = vor.u32 %v2404_v56, %v4656_v11  ;;  %v2408_v20 = vshll.u32 %v4614_v58, 16  ;;  %v2045_v22 = vshrl.u32 %v4691_v42, 16 }
 0x211   : > { %2532 = vrot.lane.b32.xlu1 %v3264_v39, %s3574_s25  ;;  %v2048_v30 = vshll.u32 %v4691_v42, 16  ;;  %v2127_v35 = vsel %vm3755_vm8, %v3241_v27, %v2126_v15  ;;  %v2392_v0 = vrot.slane %v2391_v49, 4  ;;  %v2054_v5 = vshll.u32 %v4670_v16, 16  ;;  %v4720_v27 = vld [vmem:[#allocation2 + $0x38] sm:$0xf] }
 0x212   : > { %v2396_v18 = vrot.slane %v2394_v48, 5  ;;  %v3269_v55 = vcombine.low %v2123_v21, %v2127_v35  ;;  %v2406_v63 = vrot.slane %v2405_v32, 4  ;;  %v2410_v9 = vrot.slane %v2408_v20, 5  ;;  %v2135_v15 = vld [vmem:[#allocation2 + $0x40] sm:$0xf] }
 0x213   : > { %v2047_v11 = vrot.slane %v2045_v22, 4  ;;  %v2252_v58 = vshll.u32 %v4675_v61, 16  ;;  %v2050_v38 = vrot.slane %v2048_v30, 5  ;;  %v2059_v29 = vshrl.u32 %v4704_v13, 16  ;;  %v3561_v22 = vld [vmem:[#allocation2 + $0x48] sm:$0xf] }
 0x214   : > { %v2397_v56 = vsel %vm3872_vm11, %v2392_v0, %v2396_v18  ;;  %2614 = vrot.lane.b32.xlu0 %v3281_v6, %s3574_s25  ;;  %v2411_v43 = vsel %vm3872_vm11, %v2406_v63, %v2410_v9  ;;  %v2062_v16 = vshll.u32 %v4704_v13, 16  ;;  %v2068_v36 = vshll.u32 %v1959_v62, 16 }
 0x215   : > { %2554 = vrot.lane.b32.xlu1 %v3269_v55, %s3572_s16  ;;  %v2413_v46 = vshrl.u32 %v2318_v45, 16  ;;  %v2051_v39 = vor.u32 %v2050_v38, %v2047_v11  ;;  %v2056_v40 = vrot.slane %v2054_v5, 5  ;;  %v2061_v41 = vrot.slane %v2059_v29, 4 }
 0x216   : > { %v2416_v21 = vshll.u32 %v2318_v45, 16  ;;  %v3288_v49 = vcombine.low %v2397_v56, %v2411_v43  ;;  %v2064_v48 = vrot.slane %v2062_v16, 5  ;;  %v2070_v32 = vrot.slane %v2068_v36, 5 }
 0x217   : > { %v2415_v6 = vrot.slane %v2413_v46, 4  ;;  %v3285_v30 = vcombine.low %v2318_v45, %v3561_v22  ;;  %v2229_v35 = vshrl.u32 %v4720_v27, 16  ;;  %v2232_v0 = vshll.u32 %v4720_v27, 16 }
 0x218   : > { %v2418_v20 = vrot.slane %v2416_v21, 5  ;;  %2660 = vrot.lane.b32.xlu0 %v3288_v49, %s3573_s22  ;;  %v2052_v62 = vrot.slane %v2051_v39, 4  ;;  %v2065_v18 = vor.u32 %v2064_v48, %v2061_v41  ;;  %v2243_v55 = vshrl.u32 %v2135_v15, 16 }
 0x219   : > { %v2246_v5 = vshll.u32 %v2135_v15, 16  ;;  %v2231_v63 = vrot.slane %v2229_v35, 4  ;;  %v2234_v9 = vrot.slane %v2232_v0, 5  ;;  %v3273_v11 = vcombine.low %v4720_v27, %v2135_v15 }
 0x21a   : > { %v2419_v56 = vor.u32 %v2418_v20, %v2415_v6  ;;  %v2066_v38 = vrot.slane %v2065_v18, 4  ;;  %v2245_v29 = vrot.slane %v2243_v55, 4  ;;  %v2422_v45 = vshll.u32 %v4630_v1, 16 }
 0x21b   : > { %v2248_v43 = vrot.slane %v2246_v5, 5  ;;  %v2235_v16 = vor.u32 %v2234_v9, %v2231_v63  ;;  %v2156_v46 = vrot.slane %v2154_v50, 5  ;;  %v2170_v39 = vrot.slane %v2168_v52, 5 }
 0x21c   : > { %v2420_v36 = vrot.slane %v2419_v56, 4  ;;  %v2057_v41 = vsel %vm3872_vm11, %v2052_v62, %v2056_v40  ;;  %v2071_v27 = vsel %vm3872_vm11, %v2066_v38, %v2070_v32  ;;  %2642 = vrot.lane.b32.xlu0 %v3285_v30, %s3572_s16  ;;  %v2424_v15 = vrot.slane %v2422_v45, 5 }
 0x21d   : > { %v2249_v21 = vor.u32 %v2248_v43, %v2245_v29  ;;  %v3265_v49 = vcombine.low %v2057_v41, %v2071_v27  ;;  %v2236_v1 = vrot.slane %v2235_v16, 4  ;;  %v2157_v59 = vsel %vm3872_vm11, %v4474_v12, %v2156_v46 }
 0x21e   : > { %v2171_v24 = vsel %vm3872_vm11, %v4476_v57, %v2170_v39  ;;  %v2425_v52 = vsel %vm3872_vm11, %v2420_v36, %v2424_v15  ;;  %v2184_v48 = vrot.slane %v2182_v53, 5  ;;  %v2198_v32 = vrot.slane %v2196_v4, 5 }
 0x21f   : > { %v2250_v50 = vrot.slane %v2249_v21, 4  ;;  %v3274_v40 = vcombine.low %v2157_v59, %v2171_v24  ;;  %2534 = vrot.lane.b32.xlu1 %v3265_v49, %s3574_s25  ;;  %v3289_v12 = vcombine.low %v2425_v52, %v2439_v14  ;;  %v3259_v57 = vcombine.low %v4547_v23, %v4564_v54 }
 0x220   : > { %v2212_v6 = vrot.slane %v2210_v19, 5  ;;  %v2185_v51 = vsel %vm3872_vm11, %v4556_v60, %v2184_v48  ;;  %v2226_v53 = vrot.slane %v2224_v7, 5  ;;  %v3260_v31 = vcombine.low %v4639_v44, %v4645_v33 }
 0x221   : > { %v2240_v37 = vrot.slane %v2238_v10, 5  ;;  %2662 = vrot.lane.b32.xlu0 %v3289_v12, %s3573_s22  ;;  %v2199_v14 = vsel %vm3872_vm11, %v4571_v47, %v2198_v32  ;;  %v2254_v4 = vrot.slane %v2252_v58, 5  ;;  %v3261_v23 = vcombine.low %v4691_v42, %v4704_v13  ;;  %v3562_v42 = vld [vmem:[#allocation2] sm:$0xf] }
 0x222   : > { %v2213_v17 = vsel %vm3872_vm11, %v4647_v3, %v2212_v6  ;;  %v3275_v60 = vcombine.low %v2185_v51, %v2199_v14  ;;  %v2227_v54 = vsel %vm3872_vm11, %v4653_v8, %v2226_v53  ;;  %v3258_v8 = vcombine.low %v3562_v42, %v4449_v25 }
 0x223   : > { %v2241_v34 = vsel %vm3872_vm11, %v2236_v1, %v2240_v37  ;;  %2582 = vrot.lane.b32.xlu1 %v3273_v11, %s3573_s22  ;;  %v3276_v47 = vcombine.low %v2213_v17, %v2227_v54  ;;  %v2255_v28 = vsel %vm3872_vm11, %v2250_v50, %v2254_v4  ;;  %v4814_v37 = vld [vmem:[%s4868_s5] ss:$0 sm:$0xff] }
 0x224   : > { %v3277_v19 = vcombine.low %v2241_v34, %v2255_v28  ;;  %v3033_v54 = vld [vmem:[%s4820_s27] sm:$0xff] }
 0x23e   : > { %v2549_v7 = vpop.permute.xlu1 %2548 }
 0x247   : > { %v2609_v44 = vpop.permute.xlu0 %2608 }
 0x248   : > { %v2577_v33 = vpop.permute.xlu1 %2576  ;;  %v2710_v22 = vsel %vm1209_vm12, %v3274_v40, %v2609_v44 }
 0x24f   : > { %v2637_v3 = vpop.permute.xlu0 %2636 }
 0x250   : > { %v2721_v30 = vsel %vm1222_vm13, %v2710_v22, %v2637_v3 }
 0x256   : > { %v2529_v2 = vpop.permute.xlu1 %2528 }
 0x257   : > { %v2678_v58 = vsel %vm1209_vm12, %v3258_v8, %v2529_v2 }
 0x258   : > { %v2689_v26 = vsel %vm1222_vm13, %v2678_v58, %v2549_v7 }
 0x259   : > { %v2697_v62 = vsel %vm1231_vm14, %v2689_v26, %v2577_v33  ;;  %v3034_v33 = vld [vmem:[%s4820_s27 + $0x8] sm:$0xff] }
 0x25c   : > { %v2611_v61 = vpop.permute.xlu0 %2610 }
 0x25d   : > { %v2713_v11 = vsel %vm1209_vm12, %v3275_v60, %v2611_v61 }
 0x25e   : > { %v2551_v10 = vpop.permute.xlu1 %2550 }
 0x260   : > { %v2639_v13 = vpop.permute.xlu0 %2638 }
 0x261   : > { %v2723_v38 = vsel %vm1222_vm13, %v2713_v11, %v2639_v13 }
 0x262   : > { %v2579_v20 = vpop.permute.xlu1 %2578 }
 0x26e   : > { %v2657_v35 = vpop.permute.xlu0 %2656  ;;  %v2531_v18 = vpop.permute.xlu1 %2530 }
 0x26f   : > { %v2729_v0 = vsel %vm1231_vm14, %v2721_v30, %v2657_v35  ;;  %v2681_v9 = vsel %vm1209_vm12, %v3259_v57, %v2531_v18 }
 0x270   : > { %2935 = vmatprep.mubr.bf16.mxu1 %v2729_v0  ;;  %v2691_v56 = vsel %vm1222_vm13, %v2681_v9, %v2551_v10 }
 0x271   : > { %2936 = vmatmul.mubr.bf16.vlgmr.msra.gmra.mxu1 %v2697_v62  ;;  %v2700_v16 = vsel %vm1231_vm14, %v2691_v56, %v2579_v20  ;;  %v3035_v20 = vld [vmem:[%s4820_s27 + $0x10] sm:$0xff] }
 0x272   : > { %v2613_v55 = vpop.permute.xlu0 %2612  ;;  %v2553_v25 = vpop.permute.xlu1 %2552 }
 0x273   : > { %v2716_v39 = vsel %vm1209_vm12, %v3276_v47, %v2613_v55  ;;  %v3036_v55 = vld [vmem:[%s4820_s27 + $0x18] sm:$0xff] }
 0x276   : > { %v2641_v5 = vpop.permute.xlu0 %2640  ;;  %v2581_v63 = vpop.permute.xlu1 %2580 }
 0x277   : > { %v2725_v27 = vsel %vm1222_vm13, %v2716_v39, %v2641_v5 }
 0x282   : > { %v2659_v29 = vpop.permute.xlu0 %2658 }
 0x283   : > { %v2533_v43 = vpop.permute.xlu1 %2532  ;;  %v2732_v45 = vsel %vm1231_vm14, %v2723_v38, %v2659_v29  ;;  %v3037_v29 = vld [vmem:[%s4820_s27 + $0x20] sm:$0xff] }
 0x284   : > { %2943 = vmatprep.mubr.bf16.mxu1 %v2732_v45  ;;  %v2684_v36 = vsel %vm1209_vm12, %v3260_v31, %v2533_v43 }
 0x285   : > { %2944 = vmatmul.mubr.bf16.gmra.mxu1 %v2700_v16  ;;  %v2693_v41 = vsel %vm1222_vm13, %v2684_v36, %v2553_v25 }
 0x286   : > { %v2615_v46 = vpop.permute.xlu0 %2614  ;;  %v2703_v1 = vsel %vm1231_vm14, %v2693_v41, %v2581_v63  ;;  %v3038_v41 = vld [vmem:[%s4820_s27 + $0x28] sm:$0xff] }
 0x287   : > { %v2555_v15 = vpop.permute.xlu1 %2554  ;;  %v2719_v50 = vsel %vm1209_vm12, %v3277_v19, %v2615_v46 }
 0x28a   : > { %v2661_v21 = vpop.permute.xlu0 %2660 }
 0x28b   : > { %v2735_v49 = vsel %vm1231_vm14, %v2725_v27, %v2661_v21 }
 0x28c   : > { %2951 = vmatprep.mubr.bf16.mxu1 %v2735_v49 }
 0x28d   : > { %2952 = vmatmul.mubr.bf16.gmra.mxu1 %v2703_v1 }
 0x28e   : > { %v2643_v59 = vpop.permute.xlu0 %2642 }
 0x28f   : > { %v2727_v40 = vsel %vm1222_vm13, %v2719_v50, %v2643_v59  ;;  %v3039_v50 = vld [vmem:[%s4820_s27 + $0x30] sm:$0xff] }
 0x291   : > { %v2535_v24 = vpop.permute.xlu1 %2534 }
 0x292   : > { %v2687_v52 = vsel %vm1209_vm12, %v3261_v23, %v2535_v24 }
 0x293   : > { %v2663_v48 = vpop.permute.xlu0 %2662  ;;  %v2695_v57 = vsel %vm1222_vm13, %v2687_v52, %v2555_v15 }
 0x294   : > { %v2738_v12 = vsel %vm1231_vm14, %v2727_v40, %v2663_v48 }
 0x295   : > { %v2583_v32 = vpop.permute.xlu1 %2582  ;;  %2959 = vmatprep.mubr.bf16.mxu1 %v2738_v12 }
 0x296   : > { %v2706_v6 = vsel %vm1231_vm14, %v2695_v57, %v2583_v32  ;;  %v3040_v57 = vld [vmem:[%s4820_s27 + $0x38] sm:$0xff] }
 0x297   : > { %2960 = vmatmul.mubr.bf16.gmra.mxu1 %v2706_v6 }
 0x2b4   : > { %v3448_v51 = vpop.f32.mrf.mxu0 }
 0x2b6   : > { %v3002_v31 = vpop.f32.mrf.mxu0 }
 0x2b8   : > { %v3449_v60 = vpop.f32.mrf.mxu0 }
 0x2ba   : > { %v3005_v44 = vpop.f32.mrf.mxu0 }
 0x2c5   : > { %v3452_v58 = vpop.f32.mrf.mxu0 }
 0x2c7   : > { %v3018_v18 = vpop.f32.mrf.mxu0 }
 0x2c9   : > { %v3453_v38 = vpop.f32.mrf.mxu0 }
 0x2cb   : > { %v3021_v39 = vpop.f32.mrf.mxu0 }
 0x331   : > { %v3400_v53 = vpop.f32.mrf.mxu1 }
 0x333   : > { %v3401_v14 = vpop.f32.mrf.mxu1 }
 0x334   : > { %v3402_v17 = vadd.f32 %v3401_v14, %v3400_v53 }
 0x335   : > { %v3403_v4 = vpop.f32.mrf.mxu1 }
 0x336   : > { %v2938_v23 = vadd.f32 %v3402_v17, %v4814_v37 }
 0x337   : > { %v3404_v34 = vpop.f32.mrf.mxu1 }
 0x338   : > { %v3003_v47 = vadd.f32 %v3002_v31, %v2938_v23  ;;  %v3405_v28 = vadd.f32 %v3404_v34, %v3403_v4 }
 0x33a   : > { %v3041_v19 = vadd.f32 %v3033_v54, %v3003_v47  ;;  %v2941_v7 = vadd.f32 %v3405_v28, %v4814_v37 }
 0x33c   : > { %3049 = vst.msk [vmem:[%s4828_s7] sm:$0xff] %vm1209_vm12, %v3041_v19  ;;  %v3006_v3 = vadd.f32 %v3005_v44, %v2941_v7 }
 0x33e   : > { %v3042_v2 = vadd.f32 %v3034_v33, %v3006_v3 }
 0x340   : > { %3050 = vst.msk [vmem:[%s4828_s7 + $0x8] sm:$0xff] %vm1209_vm12, %v3042_v2 }
 0x345   : > { %v3406_v61 = vpop.f32.mrf.mxu1 }
 0x347   : > { %v3407_v10 = vpop.f32.mrf.mxu1 }
 0x348   : > { %v3408_v42 = vadd.f32 %v3407_v10, %v3406_v61 }
 0x349   : > { %v3409_v8 = vpop.f32.mrf.mxu1 }
 0x34a   : > { %v2946_v13 = vadd.f32 %v3408_v42, %v4814_v37 }
 0x34b   : > { %v3410_v22 = vpop.f32.mrf.mxu1 }
 0x34c   : > { %v3011_v26 = vadd.f32 %v3448_v51, %v2946_v13  ;;  %v3411_v30 = vadd.f32 %v3410_v22, %v3409_v8 }
 0x34d   : > { %v3412_v35 = vpop.f32.mrf.mxu1 }
 0x34e   : > { %v3043_v0 = vadd.f32 %v3035_v20, %v3011_v26  ;;  %v2949_v62 = vadd.f32 %v3411_v30, %v4814_v37 }
 0x34f   : > { %v3413_v25 = vpop.f32.mrf.mxu1 }
 0x350   : > { %3051 = vst.msk [vmem:[%s4828_s7 + $0x10] sm:$0xff] %vm1209_vm12, %v3043_v0  ;;  %v3014_v5 = vadd.f32 %v3449_v60, %v2949_v62  ;;  %v3414_v63 = vadd.f32 %v3413_v25, %v3412_v35 }
 0x351   : > { %v3415_v9 = vpop.f32.mrf.mxu1 }
 0x352   : > { %v3044_v11 = vadd.f32 %v3036_v55, %v3014_v5  ;;  %v2954_v56 = vadd.f32 %v3414_v63, %v4814_v37 }
 0x353   : > { %v3416_v43 = vpop.f32.mrf.mxu1 }
 0x354   : > { %3052 = vst.msk [vmem:[%s4828_s7 + $0x18] sm:$0xff] %vm1209_vm12, %v3044_v11  ;;  %v3019_v45 = vadd.f32 %v3018_v18, %v2954_v56  ;;  %v3417_v16 = vadd.f32 %v3416_v43, %v3415_v9 }
 0x356   : > { %v3045_v36 = vadd.f32 %v3037_v29, %v3019_v45  ;;  %v2957_v46 = vadd.f32 %v3417_v16, %v4814_v37 }
 0x357   : > { %v3418_v27 = vpop.f32.mrf.mxu1 }
 0x358   : > { %3053 = vst.msk [vmem:[%s4828_s7 + $0x20] sm:$0xff] %vm1209_vm12, %v3045_v36  ;;  %v3022_v21 = vadd.f32 %v3021_v39, %v2957_v46 }
 0x359   : > { %v3419_v15 = vpop.f32.mrf.mxu1 }
 0x35a   : > { %v3046_v49 = vadd.f32 %v3038_v41, %v3022_v21  ;;  %v3420_v1 = vadd.f32 %v3419_v15, %v3418_v27 }
 0x35b   : > { %v3421_v59 = vpop.f32.mrf.mxu1 }
 0x35c   : > { %3054 = vst.msk [vmem:[%s4828_s7 + $0x28] sm:$0xff] %vm1209_vm12, %v3046_v49  ;;  %v2962_v24 = vadd.f32 %v3420_v1, %v4814_v37 }
 0x35d   : > { %v3422_v52 = vpop.f32.mrf.mxu1 }
 0x35e   : > { %v3027_v40 = vadd.f32 %v3452_v58, %v2962_v24  ;;  %v3423_v48 = vadd.f32 %v3422_v52, %v3421_v59 }
 0x360   : > { %v3047_v12 = vadd.f32 %v3039_v50, %v3027_v40  ;;  %v2965_v32 = vadd.f32 %v3423_v48, %v4814_v37 }
 0x362   : > { %3055 = vst.msk [vmem:[%s4828_s7 + $0x30] sm:$0xff] %vm1209_vm12, %v3047_v12  ;;  %v3030_v6 = vadd.f32 %v3453_v38, %v2965_v32 }
 0x364   : > { %v3048_v51 = vadd.f32 %v3040_v57, %v3030_v6 }
 0x366   : > { %3056 = vst.msk [vmem:[%s4828_s7 + $0x38] sm:$0xff] %vm1209_vm12, %v3048_v51 }
 0x367 PF: > { %s16_s21 = sadd.s32 1, %s3569_s21  }
 0x368   : > { %p13_p4 = scmp.ge.s32.totalorder %s16_s21, 4  }
 0x36a   :  { %15 = sbr.rel (!%p13_p4) target bundleno = 1 (0x1), region = 79 }

</bundles_post_ra>
